<compile_context>
chip_gen: v6e
topology: v6e:2x2x1
jax: 0.10.0
libtpu: 0.0.40
codegen_flags: <defaults>
</compile_context>

<pallas_src>
import functools
import math

import jax
import jax.numpy as jnp
from jax.experimental import pallas as pl
from jax.experimental.pallas import tpu as pltpu

_NEG_BIG = -1e9          # finite "minus infinity": same softmax, no NaN on masked rows
_PER_LAYER = 26          # packed weight tensors per decoder layer


def _vmem_limit(used_bytes):
    """Scoped-VMEM request: double-buffered operands + compiler headroom, v7x-safe cap."""
    return int(min(48 << 20, 2 * int(used_bytes) + (16 << 20)))


# ----------------------------- fused decoder-stack kernel -----------------------------

def _decoder_stack_kernel(x_ref, mem_ref, causal_ref, tpad_ref, mpad_ref, *refs,
                          nhead, eps, B, T, Sp, nlayers):
    """All decoder layers (post-norm) for the whole batch in one kernel invocation."""
    o_ref = refs[-1]
    wlist = refs[:-1]
    E = x_ref.shape[-1]
    dh = E // nhead

    def mm(a, w_ref):
        # bf16 operands, f32 accumulation on the MXU.
        return jax.lax.dot_general(
            a.astype(jnp.bfloat16), w_ref[...].astype(jnp.bfloat16),
            (((1,), (0,)), ((), ())), preferred_element_type=jnp.float32)

    def layernorm(y, g_ref, b_ref):
        mu = jnp.mean(y, axis=-1, keepdims=True)
        yc = y - mu
        var = jnp.mean(yc * yc, axis=-1, keepdims=True)
        return yc * jax.lax.rsqrt(var + eps) * g_ref[...] + b_ref[...]

    def attention(q, k, v, Lq, Lk, wo_ref, bo_ref, masks):
        # q: (B*Lq, E), k/v: (B*Lk, E) f32. 1/sqrt(dh) is pre-folded into the Q projection.
        # Per-(batch, head) score/context matmuls; contexts are concatenated so the
        # output projection is ONE (B*Lq, E) @ (E, E) matmul + one bias add.
        ctx_rows = []
        for b in range(B):
            qb = q[b * Lq:(b + 1) * Lq]
            kb = k[b * Lk:(b + 1) * Lk]
            vb = v[b * Lk:(b + 1) * Lk]
            mb = masks[b]
            heads = []
            for h in range(nhead):
                sl = slice(h * dh, (h + 1) * dh)
                s = jax.lax.dot_general(
                    qb[:, sl].astype(jnp.bfloat16), kb[:, sl].astype(jnp.bfloat16),
                    (((1,), (1,)), ((), ())), preferred_element_type=jnp.float32)
                s = s + mb
                s = s - jnp.max(s, axis=-1, keepdims=True)
                p = jnp.exp(s)
                p = p * pl.reciprocal(jnp.sum(p, axis=-1, keepdims=True), approx=True)
                heads.append(jax.lax.dot_general(
                    p.astype(jnp.bfloat16), vb[:, sl].astype(jnp.bfloat16),
                    (((1,), (0,)), ((), ())), preferred_element_type=jnp.float32))
            ctx_rows.append(jnp.concatenate(heads, axis=-1))      # (Lq, E)
        ctx = jnp.concatenate(ctx_rows, axis=0)                    # (B*Lq, E)
        return mm(ctx, wo_ref) + bo_ref[...]

    x = x_ref[...].astype(jnp.float32)      # (B*T, E) f32 working precision
    mem = mem_ref[...]                       # (B*Sp, E) bf16 (matmul input)
    causal = causal_ref[...]                 # (T, T) additive f32
    tpad = tpad_ref[...]                     # (B, T) additive f32 (tgt key padding)
    mpad = mpad_ref[...]                     # (1, Sp) additive f32 (memory row padding)

    # Masks are assembled in-kernel (cheap VPU adds) - no (B, T, T) tensor is streamed.
    self_masks = [causal + tpad[b:b + 1, :] for b in range(B)]     # (T, T) each
    cross_masks = [mpad] * B                                        # (1, Sp), broadcasts

    for l in range(nlayers):
        (wq, bq, wk, bk, wv, bv, wo, bo, g1, be1,
         wq2, bq2, wk2, bk2, wv2, bv2, wo2, bo2, g2, be2,
         w1, bf1, w2, bf2, g3, be3) = wlist[l * _PER_LAYER:(l + 1) * _PER_LAYER]

        # --- self-attention (batch folded into M for all projections) ---
        sa = attention(mm(x, wq) + bq[...], mm(x, wk) + bk[...], mm(x, wv) + bv[...],
                       T, T, wo, bo, self_masks)
        x = layernorm(x + sa, g1, be1)

        # --- cross-attention over (padded) memory ---
        ca = attention(mm(x, wq2) + bq2[...], mm(mem, wk2) + bk2[...],
                       mm(mem, wv2) + bv2[...], T, Sp, wo2, bo2, cross_masks)
        x = layernorm(x + ca, g2, be2)

        # --- feed-forward (FF1 + ReLU + FF2) ---
        ff = mm(jnp.maximum(mm(x, w1) + bf1[...], 0.0), w2) + bf2[...]
        x = layernorm(x + ff, g3, be3)

    o_ref[...] = x.astype(o_ref.dtype)


def decoder_stack(x, mem, causal, tpad, mpad, layer_flat, nhead, eps=1e-5):
    """x: (B*T, E) bf16, mem: (B*Sp, E) bf16, causal: (T,T), tpad: (B,T), mpad: (1,Sp)."""
    M, E = x.shape
    T = causal.shape[0]
    B = tpad.shape[0]
    Sp = mpad.shape[1]
    assert len(layer_flat) % _PER_LAYER == 0
    nlayers = len(layer_flat) // _PER_LAYER

    inputs = [x, mem, causal, tpad, mpad] + list(layer_flat)
    # Single grid step: all weights + activations are VMEM-resident for the whole stack.
    in_specs = [pl.BlockSpec(a.shape, lambda i, nd=a.ndim: (0,) * nd) for a in inputs]
    used = sum(int(a.size) * a.dtype.itemsize for a in inputs) + M * E * 2
    # NOTE: at production sizes (large d_model/dim_ff) the weight-resident design must
    # be re-tiled (inner pipeline over K / FF) to stay under v7x's 64 MiB VMEM.
    return pl.pallas_call(
        functools.partial(_decoder_stack_kernel, nhead=nhead, eps=eps,
                          B=B, T=T, Sp=Sp, nlayers=nlayers),
        out_shape=jax.ShapeDtypeStruct((M, E), jnp.bfloat16),
        grid=(1,),
        in_specs=in_specs,
        out_specs=pl.BlockSpec((M, E), lambda i: (0, 0)),
        compiler_params=pltpu.CompilerParams(
            dimension_semantics=("arbitrary",),
            vmem_limit_bytes=_vmem_limit(used)),
    )(*inputs)


# ----------------------------- tiled linear (LM head) -----------------------------

def _matmul_kernel(x_ref, w_ref, b_ref, o_ref, acc_ref, *, n_k):
    @pl.when(pl.program_id(2) == 0)
    def _():
        acc_ref[...] = jnp.zeros_like(acc_ref)

    acc_ref[...] += jax.lax.dot_general(
        x_ref[...].astype(jnp.bfloat16), w_ref[...].astype(jnp.bfloat16),
        (((1,), (0,)), ((), ())), preferred_element_type=jnp.float32)

    @pl.when(pl.program_id(2) == n_k - 1)
    def _():
        o_ref[...] = (acc_ref[...] + b_ref[...]).astype(o_ref.dtype)


def _pick_tile(dim, cap, align):
    """Largest tile <= cap that is a multiple of `align` and divides `dim`; else full dim."""
    # NOTE: for prime-ish dims this degenerates to one full block; a masked-tail path
    # would be needed before using it at very large / odd vocab sizes.
    if dim <= cap or dim <= align:
        return dim
    t = (min(cap, dim) // align) * align
    while t >= align:
        if dim % t == 0:
            return t
        t -= align
    return dim


def linear_tiled(x, w, b, *, tm_cap=256, tn_cap=1024, tk_cap=512):
    """y = x @ w + b with w in (d_in, d_out) bf16 layout, b (1, d_out) f32, x bf16/f32."""
    orig = x.shape
    K = orig[-1]
    N = w.shape[1]
    x2 = x.reshape(-1, K)
    M = x2.shape[0]
    b2 = b.reshape(1, N)

    # Prefer >= 2 M-tiles so the "parallel" axis feeds both v7x TensorCores;
    # sublane alignment is dtype-aware (16 rows for bf16 packing, 8 for f32).
    sub = 16 if x2.dtype.itemsize == 2 else 8
    half = (M // 2 // sub) * sub
    tm = _pick_tile(M, min(tm_cap, half) if half >= sub else M, sub)
    tn = _pick_tile(N, tn_cap, 128)
    tk = _pick_tile(K, tk_cap, 128)
    gm, gn, gk = M // tm, N // tn, K // tk

    block_bytes = (tm * tk * x2.dtype.itemsize + tk * tn * w.dtype.itemsize
                   + tn * 4 + 2 * tm * tn * 4)
    out = pl.pallas_call(
        functools.partial(_matmul_kernel, n_k=gk),
        out_shape=jax.ShapeDtypeStruct((M, N), jnp.float32),
        grid=(gm, gn, gk),
        in_specs=[pl.BlockSpec((tm, tk), lambda i, j, k: (i, k)),
                  pl.BlockSpec((tk, tn), lambda i, j, k: (k, j)),
                  pl.BlockSpec((1, tn), lambda i, j, k: (0, j))],
        out_specs=pl.BlockSpec((tm, tn), lambda i, j, k: (i, j)),
        scratch_shapes=[pltpu.VMEM((tm, tn), jnp.float32)],
        compiler_params=pltpu.CompilerParams(
            dimension_semantics=("parallel", "parallel", "arbitrary"),
            vmem_limit_bytes=_vmem_limit(block_bytes)),
    )(x2, w, b2)
    return out.reshape(orig[:-1] + (N,))


# ----------------------------- forward -----------------------------

def decoder_only_forward(packed, src, tgt, tgt_mask, nhead, d_model):
    B, T = tgt.shape
    S = src.shape[1]
    E = d_model

    # Embedding gather + sqrt(d_model) scale + positional encoding: plain-JAX glue
    # (single XLA fusion; padding_idx=0 row is zero). Kernel-boundary activations are bf16.
    emb = jnp.take(packed["emb"], tgt, axis=0)                       # (B, T, E)
    x = emb * math.sqrt(d_model) + packed["pe"][:T][None, :, :]
    x = x.reshape(B * T, E).astype(jnp.bfloat16)

    # Pad memory along S to a sublane multiple so in-kernel per-batch row slices stay
    # 8-aligned; padded key rows are killed by a tiny (1, Sp) additive mask.
    Sp = -(-S // 8) * 8
    mem = src if Sp == S else jnp.pad(src, ((0, 0), (0, Sp - S), (0, 0)))
    mem = mem.reshape(B * Sp, E).astype(jnp.bfloat16)

    causal = jnp.maximum(tgt_mask, _NEG_BIG).astype(jnp.float32)             # (T, T) finite
    tpad = jnp.where(tgt == 0, _NEG_BIG, 0.0).astype(jnp.float32)            # (B, T)
    mpad = jnp.where(jnp.arange(Sp) < S, 0.0, _NEG_BIG).astype(jnp.float32).reshape(1, Sp)

    h = decoder_stack(x, mem, causal, tpad, mpad, packed["layer_flat"], nhead)  # (B*T, E) bf16
    logits = linear_tiled(h, packed["fc_w"], packed["fc_b"])                     # (B*T, vocab)
    return logits.reshape(B, T, -1)


# ----------------------------- deterministic init & packing -----------------------------

def xavier_uniform(key, shape):
    fan_out, fan_in = shape[0], shape[1]
    limit = math.sqrt(6.0 / (fan_in + fan_out))
    return jax.random.uniform(key, shape, jnp.float32, -limit, limit)


def make_positional_encoding(max_len, d_model, temp=10000.0):
    pos = jnp.arange(max_len, dtype=jnp.float32)[:, None]
    div = jnp.exp(jnp.arange(0, d_model, 2, dtype=jnp.float32) * (-math.log(temp) / d_model))
    pe = jnp.zeros((max_len, d_model), jnp.float32)
    pe = pe.at[:, 0::2].set(jnp.sin(pos * div))
    pe = pe.at[:, 1::2].set(jnp.cos(pos * div))
    return pe


def init_params(key, vocab_size, d_model, dim_ff, num_layers, max_len=150):
    """PyTorch-layout params (weights (d_out, d_in)), xavier_uniform, zero biases."""
    keys = iter(jax.random.split(key, 8 + num_layers * 8))
    emb = xavier_uniform(next(keys), (vocab_size, d_model))
    emb = emb.at[0].set(0.0)  # padding_idx=0
    layers = []
    for _ in range(num_layers):
        layers.append(dict(
            sa_in_w=xavier_uniform(next(keys), (3 * d_model, d_model)),
            sa_in_b=jnp.zeros((3 * d_model,), jnp.float32),
            sa_out_w=xavier_uniform(next(keys), (d_model, d_model)),
            sa_out_b=jnp.zeros((d_model,), jnp.float32),
            ca_in_w=xavier_uniform(next(keys), (3 * d_model, d_model)),
            ca_in_b=jnp.zeros((3 * d_model,), jnp.float32),
            ca_out_w=xavier_uniform(next(keys), (d_model, d_model)),
            ca_out_b=jnp.zeros((d_model,), jnp.float32),
            ff1_w=xavier_uniform(next(keys), (dim_ff, d_model)),
            ff1_b=jnp.zeros((dim_ff,), jnp.float32),
            ff2_w=xavier_uniform(next(keys), (d_model, dim_ff)),
            ff2_b=jnp.zeros((d_model,), jnp.float32),
            ln1_g=jnp.ones((d_model,), jnp.float32), ln1_b=jnp.zeros((d_model,), jnp.float32),
            ln2_g=jnp.ones((d_model,), jnp.float32), ln2_b=jnp.zeros((d_model,), jnp.float32),
            ln3_g=jnp.ones((d_model,), jnp.float32), ln3_b=jnp.zeros((d_model,), jnp.float32),
        ))
    fc_w = xavier_uniform(next(keys), (vocab_size, d_model))
    fc_b = jnp.zeros((vocab_size,), jnp.float32)
    pe = make_positional_encoding(max_len, d_model)
    return dict(emb=emb, pe=pe, layers=layers, fc_w=fc_w, fc_b=fc_b)


def pack_params(params, d_model, nhead):
    """One-time repack: weights -> (d_in, d_out) bf16, Q/K/V pre-split, 1/sqrt(dh) folded
    into Q weight+bias, biases/LN -> (1, d) f32. Removes all transposes/casts/slices
    from the jitted forward path."""
    E = d_model
    scale = 1.0 / math.sqrt(E // nhead)

    def wT(w, s=1.0):
        return jnp.asarray(w.T * s, jnp.bfloat16)

    def row(v, s=1.0):
        return (v * s).reshape(1, -1).astype(jnp.float32)

    flat = []
    for p in params["layers"]:
        sw, sb = p["sa_in_w"], p["sa_in_b"]
        cw, cb = p["ca_in_w"], p["ca_in_b"]
        flat += [
            # self-attention (q, k, v, out-proj, LN1)
            wT(sw[:E], scale), row(sb[:E], scale),
            wT(sw[E:2 * E]),   row(sb[E:2 * E]),
            wT(sw[2 * E:]),    row(sb[2 * E:]),
            wT(p["sa_out_w"]), row(p["sa_out_b"]),
            row(p["ln1_g"]),   row(p["ln1_b"]),
            # cross-attention (q, k, v, out-proj, LN2)
            wT(cw[:E], scale), row(cb[:E], scale),
            wT(cw[E:2 * E]),   row(cb[E:2 * E]),
            wT(cw[2 * E:]),    row(cb[2 * E:]),
            wT(p["ca_out_w"]), row(p["ca_out_b"]),
            row(p["ln2_g"]),   row(p["ln2_b"]),
            # feed-forward + LN3
            wT(p["ff1_w"]),    row(p["ff1_b"]),
            wT(p["ff2_w"]),    row(p["ff2_b"]),
            row(p["ln3_g"]),   row(p["ln3_b"]),
        ]
    return dict(emb=params["emb"], pe=params["pe"], layer_flat=flat,
                fc_w=wT(params["fc_w"]), fc_b=row(params["fc_b"]))


# ----------------------------- main -----------------------------

if __name__ == "__main__":
    vocab_size, d_model, nhead, dim_ff, num_layers = 20, 32, 4, 64, 2
    B, T, S = 2, 8, 10

    key = jax.random.PRNGKey(0)
    k_param, k_src, k_tgt = jax.random.split(key, 3)
    params = init_params(k_param, vocab_size, d_model, dim_ff, num_layers)
    packed = pack_params(params, d_model, nhead)

    src = jax.random.normal(k_src, (B, S, d_model), jnp.float32)           # memory / features
    tgt = jax.random.randint(k_tgt, (B, T), 1, vocab_size, jnp.int32)       # token ids
    tgt = tgt.at[1, -1].set(0)                                              # one trailing pad token

    # causal additive mask (as produced by generate_square_subsequent_mask)
    tgt_mask = jnp.where(jnp.triu(jnp.ones((T, T), jnp.bool_), k=1),
                         -jnp.inf, 0.0).astype(jnp.float32)

    fwd = jax.jit(functools.partial(decoder_only_forward, nhead=nhead, d_model=d_model))
    out = fwd(packed, src, tgt, tgt_mask)
    out = jax.block_until_ready(out)

    assert out.shape == (B, T, vocab_size), out.shape
    assert bool(jnp.all(jnp.isfinite(out)))
    print("KERNEL_OK")
</pallas_src>

<mosaic_0001>
module attributes {stable_mosaic.version = 11 : i64} {
  func.func @_matmul_kernel(%arg0: i32, %arg1: i32, %arg2: i32, %arg3: memref<16x32xbf16, #tpu.memory_space<vmem>>, %arg4: memref<32x20xbf16, #tpu.memory_space<vmem>>, %arg5: memref<1x20xf32, #tpu.memory_space<vmem>>, %arg6: memref<16x20xf32, #tpu.memory_space<vmem>>, %arg7: memref<16x20xf32, #tpu.memory_space<vmem>>) attributes {dimension_semantics = [#tpu.dimension_semantics<parallel>, #tpu.dimension_semantics<parallel>, #tpu.dimension_semantics<arbitrary>], iteration_bounds = array<i64: 1, 1, 1>, scalar_prefetch = 0 : i64, scratch_operands = 1 : i64, tpu.core_type = #tpu.core_type<tc>, window_params = [{transform_indices = @transform_0, window_bounds = array<i64: 16, 32>}, {transform_indices = @transform_1, window_bounds = array<i64: 32, 20>}, {transform_indices = @transform_2, window_bounds = array<i64: 1, 20>}, {transform_indices = @transform_3, window_bounds = array<i64: 16, 20>}]} {
    %c0_i32 = arith.constant 0 : i32
    %0 = arith.cmpi eq, %arg2, %c0_i32 : i32
    %1 = arith.extui %0 : i1 to i32
    %c0_i32_0 = arith.constant 0 : i32
    %2 = arith.cmpi ne, %1, %c0_i32_0 : i32
    scf.if %2 {
      %cst_10 = arith.constant 0.000000e+00 : f32
      %12 = vector.broadcast %cst_10 : f32 to vector<16x20xf32>
      %c0_11 = arith.constant 0 : index
      %c0_12 = arith.constant 0 : index
      %13 = vector.load %arg7[%c0_11, %c0_12] : memref<16x20xf32, #tpu.memory_space<vmem>>, vector<16x20xf32>
      tpu.vector_store %arg7[%c0_11, %c0_12], %12 {strides = array<i32>} : memref<16x20xf32, #tpu.memory_space<vmem>>, vector<16x20xf32>,
    } else {
    }
    %c0 = arith.constant 0 : index
    %c0_1 = arith.constant 0 : index
    %3 = vector.load %arg7[%c0, %c0_1] : memref<16x20xf32, #tpu.memory_space<vmem>>, vector<16x20xf32>
    %c0_2 = arith.constant 0 : index
    %c0_3 = arith.constant 0 : index
    %4 = vector.load %arg3[%c0_2, %c0_3] : memref<16x32xbf16, #tpu.memory_space<vmem>>, vector<16x32xbf16>
    %c0_4 = arith.constant 0 : index
    %c0_5 = arith.constant 0 : index
    %5 = vector.load %arg4[%c0_4, %c0_5] : memref<32x20xbf16, #tpu.memory_space<vmem>>, vector<32x20xbf16>
    %cst = arith.constant dense<0.000000e+00> : vector<16x20xf32>
    %6 = tpu.matmul %4, %5, %cst {dimension_numbers = #tpu.dot_dimension_numbers<[1], [0], [0], [1], [0, 0, 1, 1], [], []>} : vector<16x32xbf16>, vector<32x20xbf16>, vector<16x20xf32> -> vector<16x20xf32>
    %7 = arith.addf %3, %6 : vector<16x20xf32>
    %c0_6 = arith.constant 0 : index
    %c0_7 = arith.constant 0 : index
    %8 = vector.load %arg7[%c0_6, %c0_7] : memref<16x20xf32, #tpu.memory_space<vmem>>, vector<16x20xf32>
    tpu.vector_store %arg7[%c0_6, %c0_7], %7 {strides = array<i32>} : memref<16x20xf32, #tpu.memory_space<vmem>>, vector<16x20xf32>,
    %c0_i32_8 = arith.constant 0 : i32
    %9 = arith.cmpi eq, %arg2, %c0_i32_8 : i32
    %10 = arith.extui %9 : i1 to i32
    %c0_i32_9 = arith.constant 0 : i32
    %11 = arith.cmpi ne, %10, %c0_i32_9 : i32
    scf.if %11 {
      %c0_10 = arith.constant 0 : index
      %c0_11 = arith.constant 0 : index
      %12 = vector.load %arg7[%c0_10, %c0_11] : memref<16x20xf32, #tpu.memory_space<vmem>>, vector<16x20xf32>
      %c0_12 = arith.constant 0 : index
      %c0_13 = arith.constant 0 : index
      %13 = vector.load %arg5[%c0_12, %c0_13] : memref<1x20xf32, #tpu.memory_space<vmem>>, vector<1x20xf32>
      %14 = vector.broadcast %13 : vector<1x20xf32> to vector<16x20xf32>
      %15 = arith.addf %12, %14 : vector<16x20xf32>
      %c0_14 = arith.constant 0 : index
      %c0_15 = arith.constant 0 : index
      %16 = vector.load %arg6[%c0_14, %c0_15] : memref<16x20xf32, #tpu.memory_space<vmem>>, vector<16x20xf32>
      tpu.vector_store %arg6[%c0_14, %c0_15], %15 {strides = array<i32>} : memref<16x20xf32, #tpu.memory_space<vmem>>, vector<16x20xf32>,
    } else {
    }
    return
  }
  func.func @transform_0(%arg0: i32, %arg1: i32, %arg2: i32) -> (i32, i32) {
    %c0_i32 = arith.constant 0 : i32
    return %arg0, %arg2 : i32, i32
  }
  func.func @transform_1(%arg0: i32, %arg1: i32, %arg2: i32) -> (i32, i32) {
    %c0_i32 = arith.constant 0 : i32
    return %arg2, %arg1 : i32, i32
  }
  func.func @transform_2(%arg0: i32, %arg1: i32, %arg2: i32) -> (i32, i32) {
    %c0_i32 = arith.constant 0 : i32
    %c0_i32_0 = arith.constant 0 : i32
    return %c0_i32, %arg1 : i32, i32
  }
  func.func @transform_3(%arg0: i32, %arg1: i32, %arg2: i32) -> (i32, i32) {
    %c0_i32 = arith.constant 0 : i32
    return %arg0, %arg1 : i32, i32
  }
}

module attributes {stable_mosaic.version = 11 : i64} {
  func.func @_decoder_stack_kernel(%arg0: i32, %arg1: memref<16x32xbf16, #tpu.memory_space<vmem>>, %arg2: memref<32x32xbf16, #tpu.memory_space<vmem>>, %arg3: memref<8x8xf32, #tpu.memory_space<vmem>>, %arg4: memref<2x8xf32, #tpu.memory_space<vmem>>, %arg5: memref<1x16xf32, #tpu.memory_space<vmem>>, %arg6: memref<32x32xbf16, #tpu.memory_space<vmem>>, %arg7: memref<1x32xf32, #tpu.memory_space<vmem>>, %arg8: memref<32x32xbf16, #tpu.memory_space<vmem>>, %arg9: memref<1x32xf32, #tpu.memory_space<vmem>>, %arg10: memref<32x32xbf16, #tpu.memory_space<vmem>>, %arg11: memref<1x32xf32, #tpu.memory_space<vmem>>, %arg12: memref<32x32xbf16, #tpu.memory_space<vmem>>, %arg13: memref<1x32xf32, #tpu.memory_space<vmem>>, %arg14: memref<1x32xf32, #tpu.memory_space<vmem>>, %arg15: memref<1x32xf32, #tpu.memory_space<vmem>>, %arg16: memref<32x32xbf16, #tpu.memory_space<vmem>>, %arg17: memref<1x32xf32, #tpu.memory_space<vmem>>, %arg18: memref<32x32xbf16, #tpu.memory_space<vmem>>, %arg19: memref<1x32xf32, #tpu.memory_space<vmem>>, %arg20: memref<32x32xbf16, #tpu.memory_space<vmem>>, %arg21: memref<1x32xf32, #tpu.memory_space<vmem>>, %arg22: memref<32x32xbf16, #tpu.memory_space<vmem>>, %arg23: memref<1x32xf32, #tpu.memory_space<vmem>>, %arg24: memref<1x32xf32, #tpu.memory_space<vmem>>, %arg25: memref<1x32xf32, #tpu.memory_space<vmem>>, %arg26: memref<32x64xbf16, #tpu.memory_space<vmem>>, %arg27: memref<1x64xf32, #tpu.memory_space<vmem>>, %arg28: memref<64x32xbf16, #tpu.memory_space<vmem>>, %arg29: memref<1x32xf32, #tpu.memory_space<vmem>>, %arg30: memref<1x32xf32, #tpu.memory_space<vmem>>, %arg31: memref<1x32xf32, #tpu.memory_space<vmem>>, %arg32: memref<32x32xbf16, #tpu.memory_space<vmem>>, %arg33: memref<1x32xf32, #tpu.memory_space<vmem>>, %arg34: memref<32x32xbf16, #tpu.memory_space<vmem>>, %arg35: memref<1x32xf32, #tpu.memory_space<vmem>>, %arg36: memref<32x32xbf16, #tpu.memory_space<vmem>>, %arg37: memref<1x32xf32, #tpu.memory_space<vmem>>, %arg38: memref<32x32xbf16, #tpu.memory_space<vmem>>, %arg39: memref<1x32xf32, #tpu.memory_space<vmem>>, %arg40: memref<1x32xf32, #tpu.memory_space<vmem>>, %arg41: memref<1x32xf32, #tpu.memory_space<vmem>>, %arg42: memref<32x32xbf16, #tpu.memory_space<vmem>>, %arg43: memref<1x32xf32, #tpu.memory_space<vmem>>, %arg44: memref<32x32xbf16, #tpu.memory_space<vmem>>, %arg45: memref<1x32xf32, #tpu.memory_space<vmem>>, %arg46: memref<32x32xbf16, #tpu.memory_space<vmem>>, %arg47: memref<1x32xf32, #tpu.memory_space<vmem>>, %arg48: memref<32x32xbf16, #tpu.memory_space<vmem>>, %arg49: memref<1x32xf32, #tpu.memory_space<vmem>>, %arg50: memref<1x32xf32, #tpu.memory_space<vmem>>, %arg51: memref<1x32xf32, #tpu.memory_space<vmem>>, %arg52: memref<32x64xbf16, #tpu.memory_space<vmem>>, %arg53: memref<1x64xf32, #tpu.memory_space<vmem>>, %arg54: memref<64x32xbf16, #tpu.memory_space<vmem>>, %arg55: memref<1x32xf32, #tpu.memory_space<vmem>>, %arg56: memref<1x32xf32, #tpu.memory_space<vmem>>, %arg57: memref<1x32xf32, #tpu.memory_space<vmem>>, %arg58: memref<16x32xbf16, #tpu.memory_space<vmem>>) attributes {dimension_semantics = [#tpu.dimension_semantics<arbitrary>], iteration_bounds = array<i64: 1>, scalar_prefetch = 0 : i64, scratch_operands = 0 : i64, tpu.core_type = #tpu.core_type<tc>, window_params = [{pipeline_mode = #tpu.pipeline_mode<synchronous>, transform_indices = @transform_0, window_bounds = array<i64: 16, 32>}, {pipeline_mode = #tpu.pipeline_mode<synchronous>, transform_indices = @transform_1, window_bounds = array<i64: 32, 32>}, {pipeline_mode = #tpu.pipeline_mode<synchronous>, transform_indices = @transform_2, window_bounds = array<i64: 8, 8>}, {pipeline_mode = #tpu.pipeline_mode<synchronous>, transform_indices = @transform_3, window_bounds = array<i64: 2, 8>}, {pipeline_mode = #tpu.pipeline_mode<synchronous>, transform_indices = @transform_4, window_bounds = array<i64: 1, 16>}, {pipeline_mode = #tpu.pipeline_mode<synchronous>, transform_indices = @transform_5, window_bounds = array<i64: 32, 32>}, {pipeline_mode = #tpu.pipeline_mode<synchronous>, transform_indices = @transform_6, window_bounds = array<i64: 1, 32>}, {pipeline_mode = #tpu.pipeline_mode<synchronous>, transform_indices = @transform_7, window_bounds = array<i64: 32, 32>}, {pipeline_mode = #tpu.pipeline_mode<synchronous>, transform_indices = @transform_8, window_bounds = array<i64: 1, 32>}, {pipeline_mode = #tpu.pipeline_mode<synchronous>, transform_indices = @transform_9, window_bounds = array<i64: 32, 32>}, {pipeline_mode = #tpu.pipeline_mode<synchronous>, transform_indices = @transform_10, window_bounds = array<i64: 1, 32>}, {pipeline_mode = #tpu.pipeline_mode<synchronous>, transform_indices = @transform_11, window_bounds = array<i64: 32, 32>}, {pipeline_mode = #tpu.pipeline_mode<synchronous>, transform_indices = @transform_12, window_bounds = array<i64: 1, 32>}, {pipeline_mode = #tpu.pipeline_mode<synchronous>, transform_indices = @transform_13, window_bounds = array<i64: 1, 32>}, {pipeline_mode = #tpu.pipeline_mode<synchronous>, transform_indices = @transform_14, window_bounds = array<i64: 1, 32>}, {pipeline_mode = #tpu.pipeline_mode<synchronous>, transform_indices = @transform_15, window_bounds = array<i64: 32, 32>}, {pipeline_mode = #tpu.pipeline_mode<synchronous>, transform_indices = @transform_16, window_bounds = array<i64: 1, 32>}, {pipeline_mode = #tpu.pipeline_mode<synchronous>, transform_indices = @transform_17, window_bounds = array<i64: 32, 32>}, {pipeline_mode = #tpu.pipeline_mode<synchronous>, transform_indices = @transform_18, window_bounds = array<i64: 1, 32>}, {pipeline_mode = #tpu.pipeline_mode<synchronous>, transform_indices = @transform_19, window_bounds = array<i64: 32, 32>}, {pipeline_mode = #tpu.pipeline_mode<synchronous>, transform_indices = @transform_20, window_bounds = array<i64: 1, 32>}, {pipeline_mode = #tpu.pipeline_mode<synchronous>, transform_indices = @transform_21, window_bounds = array<i64: 32, 32>}, {pipeline_mode = #tpu.pipeline_mode<synchronous>, transform_indices = @transform_22, window_bounds = array<i64: 1, 32>}, {pipeline_mode = #tpu.pipeline_mode<synchronous>, transform_indices = @transform_23, window_bounds = array<i64: 1, 32>}, {pipeline_mode = #tpu.pipeline_mode<synchronous>, transform_indices = @transform_24, window_bounds = array<i64: 1, 32>}, {pipeline_mode = #tpu.pipeline_mode<synchronous>, transform_indices = @transform_25, window_bounds = array<i64: 32, 64>}, {pipeline_mode = #tpu.pipeline_mode<synchronous>, transform_indices = @transform_26, window_bounds = array<i64: 1, 64>}, {pipeline_mode = #tpu.pipeline_mode<synchronous>, transform_indices = @transform_27, window_bounds = array<i64: 64, 32>}, {pipeline_mode = #tpu.pipeline_mode<synchronous>, transform_indices = @transform_28, window_bounds = array<i64: 1, 32>}, {pipeline_mode = #tpu.pipeline_mode<synchronous>, transform_indices = @transform_29, window_bounds = array<i64: 1, 32>}, {pipeline_mode = #tpu.pipeline_mode<synchronous>, transform_indices = @transform_30, window_bounds = array<i64: 1, 32>}, {pipeline_mode = #tpu.pipeline_mode<synchronous>, transform_indices = @transform_31, window_bounds = array<i64: 32, 32>}, {pipeline_mode = #tpu.pipeline_mode<synchronous>, transform_indices = @transform_32, window_bounds = array<i64: 1, 32>}, {pipeline_mode = #tpu.pipeline_mode<synchronous>, transform_indices = @transform_33, window_bounds = array<i64: 32, 32>}, {pipeline_mode = #tpu.pipeline_mode<synchronous>, transform_indices = @transform_34, window_bounds = array<i64: 1, 32>}, {pipeline_mode = #tpu.pipeline_mode<synchronous>, transform_indices = @transform_35, window_bounds = array<i64: 32, 32>}, {pipeline_mode = #tpu.pipeline_mode<synchronous>, transform_indices = @transform_36, window_bounds = array<i64: 1, 32>}, {pipeline_mode = #tpu.pipeline_mode<synchronous>, transform_indices = @transform_37, window_bounds = array<i64: 32, 32>}, {pipeline_mode = #tpu.pipeline_mode<synchronous>, transform_indices = @transform_38, window_bounds = array<i64: 1, 32>}, {pipeline_mode = #tpu.pipeline_mode<synchronous>, transform_indices = @transform_39, window_bounds = array<i64: 1, 32>}, {pipeline_mode = #tpu.pipeline_mode<synchronous>, transform_indices = @transform_40, window_bounds = array<i64: 1, 32>}, {pipeline_mode = #tpu.pipeline_mode<synchronous>, transform_indices = @transform_41, window_bounds = array<i64: 32, 32>}, {pipeline_mode = #tpu.pipeline_mode<synchronous>, transform_indices = @transform_42, window_bounds = array<i64: 1, 32>}, {pipeline_mode = #tpu.pipeline_mode<synchronous>, transform_indices = @transform_43, window_bounds = array<i64: 32, 32>}, {pipeline_mode = #tpu.pipeline_mode<synchronous>, transform_indices = @transform_44, window_bounds = array<i64: 1, 32>}, {pipeline_mode = #tpu.pipeline_mode<synchronous>, transform_indices = @transform_45, window_bounds = array<i64: 32, 32>}, {pipeline_mode = #tpu.pipeline_mode<synchronous>, transform_indices = @transform_46, window_bounds = array<i64: 1, 32>}, {pipeline_mode = #tpu.pipeline_mode<synchronous>, transform_indices = @transform_47, window_bounds = array<i64: 32, 32>}, {pipeline_mode = #tpu.pipeline_mode<synchronous>, transform_indices = @transform_48, window_bounds = array<i64: 1, 32>}, {pipeline_mode = #tpu.pipeline_mode<synchronous>, transform_indices = @transform_49, window_bounds = array<i64: 1, 32>}, {pipeline_mode = #tpu.pipeline_mode<synchronous>, transform_indices = @transform_50, window_bounds = array<i64: 1, 32>}, {pipeline_mode = #tpu.pipeline_mode<synchronous>, transform_indices = @transform_51, window_bounds = array<i64: 32, 64>}, {pipeline_mode = #tpu.pipeline_mode<synchronous>, transform_indices = @transform_52, window_bounds = array<i64: 1, 64>}, {pipeline_mode = #tpu.pipeline_mode<synchronous>, transform_indices = @transform_53, window_bounds = array<i64: 64, 32>}, {pipeline_mode = #tpu.pipeline_mode<synchronous>, transform_indices = @transform_54, window_bounds = array<i64: 1, 32>}, {pipeline_mode = #tpu.pipeline_mode<synchronous>, transform_indices = @transform_55, window_bounds = array<i64: 1, 32>}, {pipeline_mode = #tpu.pipeline_mode<synchronous>, transform_indices = @transform_56, window_bounds = array<i64: 1, 32>}, {pipeline_mode = #tpu.pipeline_mode<synchronous>, transform_indices = @transform_57, window_bounds = array<i64: 16, 32>}]} {
    %c0 = arith.constant 0 : index
    %c0_0 = arith.constant 0 : index
    %0 = vector.load %arg1[%c0, %c0_0] : memref<16x32xbf16, #tpu.memory_space<vmem>>, vector<16x32xbf16>
    %1 = arith.extf %0 : vector<16x32xbf16> to vector<16x32xf32>
    %c0_1 = arith.constant 0 : index
    %c0_2 = arith.constant 0 : index
    %2 = vector.load %arg2[%c0_1, %c0_2] : memref<32x32xbf16, #tpu.memory_space<vmem>>, vector<32x32xbf16>
    %c0_3 = arith.constant 0 : index
    %c0_4 = arith.constant 0 : index
    %3 = vector.load %arg3[%c0_3, %c0_4] : memref<8x8xf32, #tpu.memory_space<vmem>>, vector<8x8xf32>
    %c0_5 = arith.constant 0 : index
    %c0_6 = arith.constant 0 : index
    %4 = vector.load %arg4[%c0_5, %c0_6] : memref<2x8xf32, #tpu.memory_space<vmem>>, vector<2x8xf32>
    %c0_7 = arith.constant 0 : index
    %c0_8 = arith.constant 0 : index
    %5 = vector.load %arg5[%c0_7, %c0_8] : memref<1x16xf32, #tpu.memory_space<vmem>>, vector<1x16xf32>
    %6 = vector.extract_strided_slice %4 {offsets = [0, 0], sizes = [1, 8], strides = [1, 1]} : vector<2x8xf32> to vector<1x8xf32>
    %7 = vector.broadcast %6 : vector<1x8xf32> to vector<8x8xf32>
    %8 = arith.addf %3, %7 : vector<8x8xf32>
    %9 = vector.extract_strided_slice %4 {offsets = [1, 0], sizes = [1, 8], strides = [1, 1]} : vector<2x8xf32> to vector<1x8xf32>
    %10 = vector.broadcast %9 : vector<1x8xf32> to vector<8x8xf32>
    %11 = arith.addf %3, %10 : vector<8x8xf32>
    %12 = arith.truncf %1 : vector<16x32xf32> to vector<16x32xbf16>
    %c0_9 = arith.constant 0 : index
    %c0_10 = arith.constant 0 : index
    %13 = vector.load %arg6[%c0_9, %c0_10] : memref<32x32xbf16, #tpu.memory_space<vmem>>, vector<32x32xbf16>
    %cst = arith.constant dense<0.000000e+00> : vector<16x32xf32>
    %14 = tpu.matmul %12, %13, %cst {dimension_numbers = #tpu.dot_dimension_numbers<[1], [0], [0], [1], [0, 0, 1, 1], [], []>} : vector<16x32xbf16>, vector<32x32xbf16>, vector<16x32xf32> -> vector<16x32xf32>
    %c0_11 = arith.constant 0 : index
    %c0_12 = arith.constant 0 : index
    %15 = vector.load %arg7[%c0_11, %c0_12] : memref<1x32xf32, #tpu.memory_space<vmem>>, vector<1x32xf32>
    %16 = vector.broadcast %15 : vector<1x32xf32> to vector<16x32xf32>
    %17 = arith.addf %14, %16 : vector<16x32xf32>
    %18 = arith.truncf %1 : vector<16x32xf32> to vector<16x32xbf16>
    %c0_13 = arith.constant 0 : index
    %c0_14 = arith.constant 0 : index
    %19 = vector.load %arg8[%c0_13, %c0_14] : memref<32x32xbf16, #tpu.memory_space<vmem>>, vector<32x32xbf16>
    %cst_15 = arith.constant dense<0.000000e+00> : vector<16x32xf32>
    %20 = tpu.matmul %18, %19, %cst_15 {dimension_numbers = #tpu.dot_dimension_numbers<[1], [0], [0], [1], [0, 0, 1, 1], [], []>} : vector<16x32xbf16>, vector<32x32xbf16>, vector<16x32xf32> -> vector<16x32xf32>
    %c0_16 = arith.constant 0 : index
    %c0_17 = arith.constant 0 : index
    %21 = vector.load %arg9[%c0_16, %c0_17] : memref<1x32xf32, #tpu.memory_space<vmem>>, vector<1x32xf32>
    %22 = vector.broadcast %21 : vector<1x32xf32> to vector<16x32xf32>
    %23 = arith.addf %20, %22 : vector<16x32xf32>
    %24 = arith.truncf %1 : vector<16x32xf32> to vector<16x32xbf16>
    %c0_18 = arith.constant 0 : index
    %c0_19 = arith.constant 0 : index
    %25 = vector.load %arg10[%c0_18, %c0_19] : memref<32x32xbf16, #tpu.memory_space<vmem>>, vector<32x32xbf16>
    %cst_20 = arith.constant dense<0.000000e+00> : vector<16x32xf32>
    %26 = tpu.matmul %24, %25, %cst_20 {dimension_numbers = #tpu.dot_dimension_numbers<[1], [0], [0], [1], [0, 0, 1, 1], [], []>} : vector<16x32xbf16>, vector<32x32xbf16>, vector<16x32xf32> -> vector<16x32xf32>
    %c0_21 = arith.constant 0 : index
    %c0_22 = arith.constant 0 : index
    %27 = vector.load %arg11[%c0_21, %c0_22] : memref<1x32xf32, #tpu.memory_space<vmem>>, vector<1x32xf32>
    %28 = vector.broadcast %27 : vector<1x32xf32> to vector<16x32xf32>
    %29 = arith.addf %26, %28 : vector<16x32xf32>
    %30 = vector.extract_strided_slice %17 {offsets = [0, 0], sizes = [8, 32], strides = [1, 1]} : vector<16x32xf32> to vector<8x32xf32>
    %31 = vector.extract_strided_slice %23 {offsets = [0, 0], sizes = [8, 32], strides = [1, 1]} : vector<16x32xf32> to vector<8x32xf32>
    %32 = vector.extract_strided_slice %29 {offsets = [0, 0], sizes = [8, 32], strides = [1, 1]} : vector<16x32xf32> to vector<8x32xf32>
    %33 = vector.extract_strided_slice %30 {offsets = [0, 0], sizes = [8, 8], strides = [1, 1]} : vector<8x32xf32> to vector<8x8xf32>
    %34 = arith.truncf %33 : vector<8x8xf32> to vector<8x8xbf16>
    %35 = vector.extract_strided_slice %31 {offsets = [0, 0], sizes = [8, 8], strides = [1, 1]} : vector<8x32xf32> to vector<8x8xf32>
    %36 = arith.truncf %35 : vector<8x8xf32> to vector<8x8xbf16>
    %cst_23 = arith.constant dense<0.000000e+00> : vector<8x8xf32>
    %37 = tpu.matmul %34, %36, %cst_23 {dimension_numbers = #tpu.dot_dimension_numbers<[1], [1], [0], [0], [0, 0, 1, 0], [], []>} : vector<8x8xbf16>, vector<8x8xbf16>, vector<8x8xf32> -> vector<8x8xf32>
    %38 = arith.addf %37, %8 : vector<8x8xf32>
    %cst_24 = arith.constant dense<0xFF800000> : vector<8xf32>
    %39 = vector.multi_reduction <maximumf>, %38, %cst_24 [1] : vector<8x8xf32> to vector<8xf32>
    %40 = vector.shape_cast %39 : vector<8xf32> to vector<8x1xf32>
    %41 = vector.broadcast %40 : vector<8x1xf32> to vector<8x8xf32>
    %42 = arith.subf %38, %41 : vector<8x8xf32>
    %43 = math.exp %42 : vector<8x8xf32>
    %cst_25 = arith.constant dense<0.000000e+00> : vector<8xf32>
    %44 = vector.multi_reduction <add>, %43, %cst_25 [1] : vector<8x8xf32> to vector<8xf32>
    %45 = vector.shape_cast %44 : vector<8xf32> to vector<8x1xf32>
    %46 = tpu.reciprocal %45 {approx = true} : vector<8x1xf32> -> vector<8x1xf32>
    %47 = vector.broadcast %46 : vector<8x1xf32> to vector<8x8xf32>
    %48 = arith.mulf %43, %47 : vector<8x8xf32>
    %49 = arith.truncf %48 : vector<8x8xf32> to vector<8x8xbf16>
    %50 = vector.extract_strided_slice %32 {offsets = [0, 0], sizes = [8, 8], strides = [1, 1]} : vector<8x32xf32> to vector<8x8xf32>
    %51 = arith.truncf %50 : vector<8x8xf32> to vector<8x8xbf16>
    %cst_26 = arith.constant dense<0.000000e+00> : vector<8x8xf32>
    %52 = tpu.matmul %49, %51, %cst_26 {dimension_numbers = #tpu.dot_dimension_numbers<[1], [0], [0], [1], [0, 0, 1, 1], [], []>} : vector<8x8xbf16>, vector<8x8xbf16>, vector<8x8xf32> -> vector<8x8xf32>
    %53 = vector.extract_strided_slice %30 {offsets = [0, 8], sizes = [8, 8], strides = [1, 1]} : vector<8x32xf32> to vector<8x8xf32>
    %54 = arith.truncf %53 : vector<8x8xf32> to vector<8x8xbf16>
    %55 = vector.extract_strided_slice %31 {offsets = [0, 8], sizes = [8, 8], strides = [1, 1]} : vector<8x32xf32> to vector<8x8xf32>
    %56 = arith.truncf %55 : vector<8x8xf32> to vector<8x8xbf16>
    %cst_27 = arith.constant dense<0.000000e+00> : vector<8x8xf32>
    %57 = tpu.matmul %54, %56, %cst_27 {dimension_numbers = #tpu.dot_dimension_numbers<[1], [1], [0], [0], [0, 0, 1, 0], [], []>} : vector<8x8xbf16>, vector<8x8xbf16>, vector<8x8xf32> -> vector<8x8xf32>
    %58 = arith.addf %57, %8 : vector<8x8xf32>
    %cst_28 = arith.constant dense<0xFF800000> : vector<8xf32>
    %59 = vector.multi_reduction <maximumf>, %58, %cst_28 [1] : vector<8x8xf32> to vector<8xf32>
    %60 = vector.shape_cast %59 : vector<8xf32> to vector<8x1xf32>
    %61 = vector.broadcast %60 : vector<8x1xf32> to vector<8x8xf32>
    %62 = arith.subf %58, %61 : vector<8x8xf32>
    %63 = math.exp %62 : vector<8x8xf32>
    %cst_29 = arith.constant dense<0.000000e+00> : vector<8xf32>
    %64 = vector.multi_reduction <add>, %63, %cst_29 [1] : vector<8x8xf32> to vector<8xf32>
    %65 = vector.shape_cast %64 : vector<8xf32> to vector<8x1xf32>
    %66 = tpu.reciprocal %65 {approx = true} : vector<8x1xf32> -> vector<8x1xf32>
    %67 = vector.broadcast %66 : vector<8x1xf32> to vector<8x8xf32>
    %68 = arith.mulf %63, %67 : vector<8x8xf32>
    %69 = arith.truncf %68 : vector<8x8xf32> to vector<8x8xbf16>
    %70 = vector.extract_strided_slice %32 {offsets = [0, 8], sizes = [8, 8], strides = [1, 1]} : vector<8x32xf32> to vector<8x8xf32>
    %71 = arith.truncf %70 : vector<8x8xf32> to vector<8x8xbf16>
    %cst_30 = arith.constant dense<0.000000e+00> : vector<8x8xf32>
    %72 = tpu.matmul %69, %71, %cst_30 {dimension_numbers = #tpu.dot_dimension_numbers<[1], [0], [0], [1], [0, 0, 1, 1], [], []>} : vector<8x8xbf16>, vector<8x8xbf16>, vector<8x8xf32> -> vector<8x8xf32>
    %73 = vector.extract_strided_slice %30 {offsets = [0, 16], sizes = [8, 8], strides = [1, 1]} : vector<8x32xf32> to vector<8x8xf32>
    %74 = arith.truncf %73 : vector<8x8xf32> to vector<8x8xbf16>
    %75 = vector.extract_strided_slice %31 {offsets = [0, 16], sizes = [8, 8], strides = [1, 1]} : vector<8x32xf32> to vector<8x8xf32>
    %76 = arith.truncf %75 : vector<8x8xf32> to vector<8x8xbf16>
    %cst_31 = arith.constant dense<0.000000e+00> : vector<8x8xf32>
    %77 = tpu.matmul %74, %76, %cst_31 {dimension_numbers = #tpu.dot_dimension_numbers<[1], [1], [0], [0], [0, 0, 1, 0], [], []>} : vector<8x8xbf16>, vector<8x8xbf16>, vector<8x8xf32> -> vector<8x8xf32>
    %78 = arith.addf %77, %8 : vector<8x8xf32>
    %cst_32 = arith.constant dense<0xFF800000> : vector<8xf32>
    %79 = vector.multi_reduction <maximumf>, %78, %cst_32 [1] : vector<8x8xf32> to vector<8xf32>
    %80 = vector.shape_cast %79 : vector<8xf32> to vector<8x1xf32>
    %81 = vector.broadcast %80 : vector<8x1xf32> to vector<8x8xf32>
    %82 = arith.subf %78, %81 : vector<8x8xf32>
    %83 = math.exp %82 : vector<8x8xf32>
    %cst_33 = arith.constant dense<0.000000e+00> : vector<8xf32>
    %84 = vector.multi_reduction <add>, %83, %cst_33 [1] : vector<8x8xf32> to vector<8xf32>
    %85 = vector.shape_cast %84 : vector<8xf32> to vector<8x1xf32>
    %86 = tpu.reciprocal %85 {approx = true} : vector<8x1xf32> -> vector<8x1xf32>
    %87 = vector.broadcast %86 : vector<8x1xf32> to vector<8x8xf32>
    %88 = arith.mulf %83, %87 : vector<8x8xf32>
    %89 = arith.truncf %88 : vector<8x8xf32> to vector<8x8xbf16>
    %90 = vector.extract_strided_slice %32 {offsets = [0, 16], sizes = [8, 8], strides = [1, 1]} : vector<8x32xf32> to vector<8x8xf32>
    %91 = arith.truncf %90 : vector<8x8xf32> to vector<8x8xbf16>
    %cst_34 = arith.constant dense<0.000000e+00> : vector<8x8xf32>
    %92 = tpu.matmul %89, %91, %cst_34 {dimension_numbers = #tpu.dot_dimension_numbers<[1], [0], [0], [1], [0, 0, 1, 1], [], []>} : vector<8x8xbf16>, vector<8x8xbf16>, vector<8x8xf32> -> vector<8x8xf32>
    %93 = vector.extract_strided_slice %30 {offsets = [0, 24], sizes = [8, 8], strides = [1, 1]} : vector<8x32xf32> to vector<8x8xf32>
    %94 = arith.truncf %93 : vector<8x8xf32> to vector<8x8xbf16>
    %95 = vector.extract_strided_slice %31 {offsets = [0, 24], sizes = [8, 8], strides = [1, 1]} : vector<8x32xf32> to vector<8x8xf32>
    %96 = arith.truncf %95 : vector<8x8xf32> to vector<8x8xbf16>
    %cst_35 = arith.constant dense<0.000000e+00> : vector<8x8xf32>
    %97 = tpu.matmul %94, %96, %cst_35 {dimension_numbers = #tpu.dot_dimension_numbers<[1], [1], [0], [0], [0, 0, 1, 0], [], []>} : vector<8x8xbf16>, vector<8x8xbf16>, vector<8x8xf32> -> vector<8x8xf32>
    %98 = arith.addf %97, %8 : vector<8x8xf32>
    %cst_36 = arith.constant dense<0xFF800000> : vector<8xf32>
    %99 = vector.multi_reduction <maximumf>, %98, %cst_36 [1] : vector<8x8xf32> to vector<8xf32>
    %100 = vector.shape_cast %99 : vector<8xf32> to vector<8x1xf32>
    %101 = vector.broadcast %100 : vector<8x1xf32> to vector<8x8xf32>
    %102 = arith.subf %98, %101 : vector<8x8xf32>
    %103 = math.exp %102 : vector<8x8xf32>
    %cst_37 = arith.constant dense<0.000000e+00> : vector<8xf32>
    %104 = vector.multi_reduction <add>, %103, %cst_37 [1] : vector<8x8xf32> to vector<8xf32>
    %105 = vector.shape_cast %104 : vector<8xf32> to vector<8x1xf32>
    %106 = tpu.reciprocal %105 {approx = true} : vector<8x1xf32> -> vector<8x1xf32>
    %107 = vector.broadcast %106 : vector<8x1xf32> to vector<8x8xf32>
    %108 = arith.mulf %103, %107 : vector<8x8xf32>
    %109 = arith.truncf %108 : vector<8x8xf32> to vector<8x8xbf16>
    %110 = vector.extract_strided_slice %32 {offsets = [0, 24], sizes = [8, 8], strides = [1, 1]} : vector<8x32xf32> to vector<8x8xf32>
    %111 = arith.truncf %110 : vector<8x8xf32> to vector<8x8xbf16>
    %cst_38 = arith.constant dense<0.000000e+00> : vector<8x8xf32>
    %112 = tpu.matmul %109, %111, %cst_38 {dimension_numbers = #tpu.dot_dimension_numbers<[1], [0], [0], [1], [0, 0, 1, 1], [], []>} : vector<8x8xbf16>, vector<8x8xbf16>, vector<8x8xf32> -> vector<8x8xf32>
    %113 = tpu.concatenate %52, %72, %92, %112 in 1 : vector<8x8xf32>, vector<8x8xf32>, vector<8x8xf32>, vector<8x8xf32> -> vector<8x32xf32>
    %114 = vector.extract_strided_slice %17 {offsets = [8, 0], sizes = [8, 32], strides = [1, 1]} : vector<16x32xf32> to vector<8x32xf32>
    %115 = vector.extract_strided_slice %23 {offsets = [8, 0], sizes = [8, 32], strides = [1, 1]} : vector<16x32xf32> to vector<8x32xf32>
    %116 = vector.extract_strided_slice %29 {offsets = [8, 0], sizes = [8, 32], strides = [1, 1]} : vector<16x32xf32> to vector<8x32xf32>
    %117 = vector.extract_strided_slice %114 {offsets = [0, 0], sizes = [8, 8], strides = [1, 1]} : vector<8x32xf32> to vector<8x8xf32>
    %118 = arith.truncf %117 : vector<8x8xf32> to vector<8x8xbf16>
    %119 = vector.extract_strided_slice %115 {offsets = [0, 0], sizes = [8, 8], strides = [1, 1]} : vector<8x32xf32> to vector<8x8xf32>
    %120 = arith.truncf %119 : vector<8x8xf32> to vector<8x8xbf16>
    %cst_39 = arith.constant dense<0.000000e+00> : vector<8x8xf32>
    %121 = tpu.matmul %118, %120, %cst_39 {dimension_numbers = #tpu.dot_dimension_numbers<[1], [1], [0], [0], [0, 0, 1, 0], [], []>} : vector<8x8xbf16>, vector<8x8xbf16>, vector<8x8xf32> -> vector<8x8xf32>
    %122 = arith.addf %121, %11 : vector<8x8xf32>
    %cst_40 = arith.constant dense<0xFF800000> : vector<8xf32>
    %123 = vector.multi_reduction <maximumf>, %122, %cst_40 [1] : vector<8x8xf32> to vector<8xf32>
    %124 = vector.shape_cast %123 : vector<8xf32> to vector<8x1xf32>
    %125 = vector.broadcast %124 : vector<8x1xf32> to vector<8x8xf32>
    %126 = arith.subf %122, %125 : vector<8x8xf32>
    %127 = math.exp %126 : vector<8x8xf32>
    %cst_41 = arith.constant dense<0.000000e+00> : vector<8xf32>
    %128 = vector.multi_reduction <add>, %127, %cst_41 [1] : vector<8x8xf32> to vector<8xf32>
    %129 = vector.shape_cast %128 : vector<8xf32> to vector<8x1xf32>
    %130 = tpu.reciprocal %129 {approx = true} : vector<8x1xf32> -> vector<8x1xf32>
    %131 = vector.broadcast %130 : vector<8x1xf32> to vector<8x8xf32>
    %132 = arith.mulf %127, %131 : vector<8x8xf32>
    %133 = arith.truncf %132 : vector<8x8xf32> to vector<8x8xbf16>
    %134 = vector.extract_strided_slice %116 {offsets = [0, 0], sizes = [8, 8], strides = [1, 1]} : vector<8x32xf32> to vector<8x8xf32>
    %135 = arith.truncf %134 : vector<8x8xf32> to vector<8x8xbf16>
    %cst_42 = arith.constant dense<0.000000e+00> : vector<8x8xf32>
    %136 = tpu.matmul %133, %135, %cst_42 {dimension_numbers = #tpu.dot_dimension_numbers<[1], [0], [0], [1], [0, 0, 1, 1], [], []>} : vector<8x8xbf16>, vector<8x8xbf16>, vector<8x8xf32> -> vector<8x8xf32>
    %137 = vector.extract_strided_slice %114 {offsets = [0, 8], sizes = [8, 8], strides = [1, 1]} : vector<8x32xf32> to vector<8x8xf32>
    %138 = arith.truncf %137 : vector<8x8xf32> to vector<8x8xbf16>
    %139 = vector.extract_strided_slice %115 {offsets = [0, 8], sizes = [8, 8], strides = [1, 1]} : vector<8x32xf32> to vector<8x8xf32>
    %140 = arith.truncf %139 : vector<8x8xf32> to vector<8x8xbf16>
    %cst_43 = arith.constant dense<0.000000e+00> : vector<8x8xf32>
    %141 = tpu.matmul %138, %140, %cst_43 {dimension_numbers = #tpu.dot_dimension_numbers<[1], [1], [0], [0], [0, 0, 1, 0], [], []>} : vector<8x8xbf16>, vector<8x8xbf16>, vector<8x8xf32> -> vector<8x8xf32>
    %142 = arith.addf %141, %11 : vector<8x8xf32>
    %cst_44 = arith.constant dense<0xFF800000> : vector<8xf32>
    %143 = vector.multi_reduction <maximumf>, %142, %cst_44 [1] : vector<8x8xf32> to vector<8xf32>
    %144 = vector.shape_cast %143 : vector<8xf32> to vector<8x1xf32>
    %145 = vector.broadcast %144 : vector<8x1xf32> to vector<8x8xf32>
    %146 = arith.subf %142, %145 : vector<8x8xf32>
    %147 = math.exp %146 : vector<8x8xf32>
    %cst_45 = arith.constant dense<0.000000e+00> : vector<8xf32>
    %148 = vector.multi_reduction <add>, %147, %cst_45 [1] : vector<8x8xf32> to vector<8xf32>
    %149 = vector.shape_cast %148 : vector<8xf32> to vector<8x1xf32>
    %150 = tpu.reciprocal %149 {approx = true} : vector<8x1xf32> -> vector<8x1xf32>
    %151 = vector.broadcast %150 : vector<8x1xf32> to vector<8x8xf32>
    %152 = arith.mulf %147, %151 : vector<8x8xf32>
    %153 = arith.truncf %152 : vector<8x8xf32> to vector<8x8xbf16>
    %154 = vector.extract_strided_slice %116 {offsets = [0, 8], sizes = [8, 8], strides = [1, 1]} : vector<8x32xf32> to vector<8x8xf32>
    %155 = arith.truncf %154 : vector<8x8xf32> to vector<8x8xbf16>
    %cst_46 = arith.constant dense<0.000000e+00> : vector<8x8xf32>
    %156 = tpu.matmul %153, %155, %cst_46 {dimension_numbers = #tpu.dot_dimension_numbers<[1], [0], [0], [1], [0, 0, 1, 1], [], []>} : vector<8x8xbf16>, vector<8x8xbf16>, vector<8x8xf32> -> vector<8x8xf32>
    %157 = vector.extract_strided_slice %114 {offsets = [0, 16], sizes = [8, 8], strides = [1, 1]} : vector<8x32xf32> to vector<8x8xf32>
    %158 = arith.truncf %157 : vector<8x8xf32> to vector<8x8xbf16>
    %159 = vector.extract_strided_slice %115 {offsets = [0, 16], sizes = [8, 8], strides = [1, 1]} : vector<8x32xf32> to vector<8x8xf32>
    %160 = arith.truncf %159 : vector<8x8xf32> to vector<8x8xbf16>
    %cst_47 = arith.constant dense<0.000000e+00> : vector<8x8xf32>
    %161 = tpu.matmul %158, %160, %cst_47 {dimension_numbers = #tpu.dot_dimension_numbers<[1], [1], [0], [0], [0, 0, 1, 0], [], []>} : vector<8x8xbf16>, vector<8x8xbf16>, vector<8x8xf32> -> vector<8x8xf32>
    %162 = arith.addf %161, %11 : vector<8x8xf32>
    %cst_48 = arith.constant dense<0xFF800000> : vector<8xf32>
    %163 = vector.multi_reduction <maximumf>, %162, %cst_48 [1] : vector<8x8xf32> to vector<8xf32>
    %164 = vector.shape_cast %163 : vector<8xf32> to vector<8x1xf32>
    %165 = vector.broadcast %164 : vector<8x1xf32> to vector<8x8xf32>
    %166 = arith.subf %162, %165 : vector<8x8xf32>
    %167 = math.exp %166 : vector<8x8xf32>
    %cst_49 = arith.constant dense<0.000000e+00> : vector<8xf32>
    %168 = vector.multi_reduction <add>, %167, %cst_49 [1] : vector<8x8xf32> to vector<8xf32>
    %169 = vector.shape_cast %168 : vector<8xf32> to vector<8x1xf32>
    %170 = tpu.reciprocal %169 {approx = true} : vector<8x1xf32> -> vector<8x1xf32>
    %171 = vector.broadcast %170 : vector<8x1xf32> to vector<8x8xf32>
    %172 = arith.mulf %167, %171 : vector<8x8xf32>
    %173 = arith.truncf %172 : vector<8x8xf32> to vector<8x8xbf16>
    %174 = vector.extract_strided_slice %116 {offsets = [0, 16], sizes = [8, 8], strides = [1, 1]} : vector<8x32xf32> to vector<8x8xf32>
    %175 = arith.truncf %174 : vector<8x8xf32> to vector<8x8xbf16>
    %cst_50 = arith.constant dense<0.000000e+00> : vector<8x8xf32>
    %176 = tpu.matmul %173, %175, %cst_50 {dimension_numbers = #tpu.dot_dimension_numbers<[1], [0], [0], [1], [0, 0, 1, 1], [], []>} : vector<8x8xbf16>, vector<8x8xbf16>, vector<8x8xf32> -> vector<8x8xf32>
    %177 = vector.extract_strided_slice %114 {offsets = [0, 24], sizes = [8, 8], strides = [1, 1]} : vector<8x32xf32> to vector<8x8xf32>
    %178 = arith.truncf %177 : vector<8x8xf32> to vector<8x8xbf16>
    %179 = vector.extract_strided_slice %115 {offsets = [0, 24], sizes = [8, 8], strides = [1, 1]} : vector<8x32xf32> to vector<8x8xf32>
    %180 = arith.truncf %179 : vector<8x8xf32> to vector<8x8xbf16>
    %cst_51 = arith.constant dense<0.000000e+00> : vector<8x8xf32>
    %181 = tpu.matmul %178, %180, %cst_51 {dimension_numbers = #tpu.dot_dimension_numbers<[1], [1], [0], [0], [0, 0, 1, 0], [], []>} : vector<8x8xbf16>, vector<8x8xbf16>, vector<8x8xf32> -> vector<8x8xf32>
    %182 = arith.addf %181, %11 : vector<8x8xf32>
    %cst_52 = arith.constant dense<0xFF800000> : vector<8xf32>
    %183 = vector.multi_reduction <maximumf>, %182, %cst_52 [1] : vector<8x8xf32> to vector<8xf32>
    %184 = vector.shape_cast %183 : vector<8xf32> to vector<8x1xf32>
    %185 = vector.broadcast %184 : vector<8x1xf32> to vector<8x8xf32>
    %186 = arith.subf %182, %185 : vector<8x8xf32>
    %187 = math.exp %186 : vector<8x8xf32>
    %cst_53 = arith.constant dense<0.000000e+00> : vector<8xf32>
    %188 = vector.multi_reduction <add>, %187, %cst_53 [1] : vector<8x8xf32> to vector<8xf32>
    %189 = vector.shape_cast %188 : vector<8xf32> to vector<8x1xf32>
    %190 = tpu.reciprocal %189 {approx = true} : vector<8x1xf32> -> vector<8x1xf32>
    %191 = vector.broadcast %190 : vector<8x1xf32> to vector<8x8xf32>
    %192 = arith.mulf %187, %191 : vector<8x8xf32>
    %193 = arith.truncf %192 : vector<8x8xf32> to vector<8x8xbf16>
    %194 = vector.extract_strided_slice %116 {offsets = [0, 24], sizes = [8, 8], strides = [1, 1]} : vector<8x32xf32> to vector<8x8xf32>
    %195 = arith.truncf %194 : vector<8x8xf32> to vector<8x8xbf16>
    %cst_54 = arith.constant dense<0.000000e+00> : vector<8x8xf32>
    %196 = tpu.matmul %193, %195, %cst_54 {dimension_numbers = #tpu.dot_dimension_numbers<[1], [0], [0], [1], [0, 0, 1, 1], [], []>} : vector<8x8xbf16>, vector<8x8xbf16>, vector<8x8xf32> -> vector<8x8xf32>
    %197 = tpu.concatenate %136, %156, %176, %196 in 1 : vector<8x8xf32>, vector<8x8xf32>, vector<8x8xf32>, vector<8x8xf32> -> vector<8x32xf32>
    %198 = tpu.concatenate %113, %197 in 0 : vector<8x32xf32>, vector<8x32xf32> -> vector<16x32xf32>
    %199 = arith.truncf %198 : vector<16x32xf32> to vector<16x32xbf16>
    %c0_55 = arith.constant 0 : index
    %c0_56 = arith.constant 0 : index
    %200 = vector.load %arg12[%c0_55, %c0_56] : memref<32x32xbf16, #tpu.memory_space<vmem>>, vector<32x32xbf16>
    %cst_57 = arith.constant dense<0.000000e+00> : vector<16x32xf32>
    %201 = tpu.matmul %199, %200, %cst_57 {dimension_numbers = #tpu.dot_dimension_numbers<[1], [0], [0], [1], [0, 0, 1, 1], [], []>} : vector<16x32xbf16>, vector<32x32xbf16>, vector<16x32xf32> -> vector<16x32xf32>
    %c0_58 = arith.constant 0 : index
    %c0_59 = arith.constant 0 : index
    %202 = vector.load %arg13[%c0_58, %c0_59] : memref<1x32xf32, #tpu.memory_space<vmem>>, vector<1x32xf32>
    %203 = vector.broadcast %202 : vector<1x32xf32> to vector<16x32xf32>
    %204 = arith.addf %201, %203 : vector<16x32xf32>
    %205 = arith.addf %1, %204 : vector<16x32xf32>
    %cst_60 = arith.constant dense<0.000000e+00> : vector<16xf32>
    %206 = vector.multi_reduction <add>, %205, %cst_60 [1] : vector<16x32xf32> to vector<16xf32>
    %207 = vector.shape_cast %206 : vector<16xf32> to vector<16x1xf32>
    %cst_61 = arith.constant 3.200000e+01 : f32
    %208 = vector.broadcast %cst_61 : f32 to vector<16x1xf32>
    %209 = arith.divf %207, %208 : vector<16x1xf32>
    %210 = vector.broadcast %209 : vector<16x1xf32> to vector<16x32xf32>
    %211 = arith.subf %205, %210 : vector<16x32xf32>
    %212 = arith.mulf %211, %211 : vector<16x32xf32>
    %cst_62 = arith.constant dense<0.000000e+00> : vector<16xf32>
    %213 = vector.multi_reduction <add>, %212, %cst_62 [1] : vector<16x32xf32> to vector<16xf32>
    %214 = vector.shape_cast %213 : vector<16xf32> to vector<16x1xf32>
    %cst_63 = arith.constant 3.200000e+01 : f32
    %215 = vector.broadcast %cst_63 : f32 to vector<16x1xf32>
    %216 = arith.divf %214, %215 : vector<16x1xf32>
    %cst_64 = arith.constant 9.99999974E-6 : f32
    %217 = vector.broadcast %cst_64 : f32 to vector<16x1xf32>
    %218 = arith.addf %216, %217 : vector<16x1xf32>
    %219 = math.rsqrt %218 : vector<16x1xf32>
    %220 = vector.broadcast %219 : vector<16x1xf32> to vector<16x32xf32>
    %221 = arith.mulf %211, %220 : vector<16x32xf32>
    %c0_65 = arith.constant 0 : index
    %c0_66 = arith.constant 0 : index
    %222 = vector.load %arg14[%c0_65, %c0_66] : memref<1x32xf32, #tpu.memory_space<vmem>>, vector<1x32xf32>
    %223 = vector.broadcast %222 : vector<1x32xf32> to vector<16x32xf32>
    %224 = arith.mulf %221, %223 : vector<16x32xf32>
    %c0_67 = arith.constant 0 : index
    %c0_68 = arith.constant 0 : index
    %225 = vector.load %arg15[%c0_67, %c0_68] : memref<1x32xf32, #tpu.memory_space<vmem>>, vector<1x32xf32>
    %226 = vector.broadcast %225 : vector<1x32xf32> to vector<16x32xf32>
    %227 = arith.addf %224, %226 : vector<16x32xf32>
    %228 = arith.truncf %227 : vector<16x32xf32> to vector<16x32xbf16>
    %c0_69 = arith.constant 0 : index
    %c0_70 = arith.constant 0 : index
    %229 = vector.load %arg16[%c0_69, %c0_70] : memref<32x32xbf16, #tpu.memory_space<vmem>>, vector<32x32xbf16>
    %cst_71 = arith.constant dense<0.000000e+00> : vector<16x32xf32>
    %230 = tpu.matmul %228, %229, %cst_71 {dimension_numbers = #tpu.dot_dimension_numbers<[1], [0], [0], [1], [0, 0, 1, 1], [], []>} : vector<16x32xbf16>, vector<32x32xbf16>, vector<16x32xf32> -> vector<16x32xf32>
    %c0_72 = arith.constant 0 : index
    %c0_73 = arith.constant 0 : index
    %231 = vector.load %arg17[%c0_72, %c0_73] : memref<1x32xf32, #tpu.memory_space<vmem>>, vector<1x32xf32>
    %232 = vector.broadcast %231 : vector<1x32xf32> to vector<16x32xf32>
    %233 = arith.addf %230, %232 : vector<16x32xf32>
    %c0_74 = arith.constant 0 : index
    %c0_75 = arith.constant 0 : index
    %234 = vector.load %arg18[%c0_74, %c0_75] : memref<32x32xbf16, #tpu.memory_space<vmem>>, vector<32x32xbf16>
    %cst_76 = arith.constant dense<0.000000e+00> : vector<32x32xf32>
    %235 = tpu.matmul %2, %234, %cst_76 {dimension_numbers = #tpu.dot_dimension_numbers<[1], [0], [0], [1], [0, 0, 1, 1], [], []>} : vector<32x32xbf16>, vector<32x32xbf16>, vector<32x32xf32> -> vector<32x32xf32>
    %c0_77 = arith.constant 0 : index
    %c0_78 = arith.constant 0 : index
    %236 = vector.load %arg19[%c0_77, %c0_78] : memref<1x32xf32, #tpu.memory_space<vmem>>, vector<1x32xf32>
    %237 = vector.broadcast %236 : vector<1x32xf32> to vector<32x32xf32>
    %238 = arith.addf %235, %237 : vector<32x32xf32>
    %c0_79 = arith.constant 0 : index
    %c0_80 = arith.constant 0 : index
    %239 = vector.load %arg20[%c0_79, %c0_80] : memref<32x32xbf16, #tpu.memory_space<vmem>>, vector<32x32xbf16>
    %cst_81 = arith.constant dense<0.000000e+00> : vector<32x32xf32>
    %240 = tpu.matmul %2, %239, %cst_81 {dimension_numbers = #tpu.dot_dimension_numbers<[1], [0], [0], [1], [0, 0, 1, 1], [], []>} : vector<32x32xbf16>, vector<32x32xbf16>, vector<32x32xf32> -> vector<32x32xf32>
    %c0_82 = arith.constant 0 : index
    %c0_83 = arith.constant 0 : index
    %241 = vector.load %arg21[%c0_82, %c0_83] : memref<1x32xf32, #tpu.memory_space<vmem>>, vector<1x32xf32>
    %242 = vector.broadcast %241 : vector<1x32xf32> to vector<32x32xf32>
    %243 = arith.addf %240, %242 : vector<32x32xf32>
    %244 = vector.extract_strided_slice %233 {offsets = [0, 0], sizes = [8, 32], strides = [1, 1]} : vector<16x32xf32> to vector<8x32xf32>
    %245 = vector.extract_strided_slice %238 {offsets = [0, 0], sizes = [16, 32], strides = [1, 1]} : vector<32x32xf32> to vector<16x32xf32>
    %246 = vector.extract_strided_slice %243 {offsets = [0, 0], sizes = [16, 32], strides = [1, 1]} : vector<32x32xf32> to vector<16x32xf32>
    %247 = vector.extract_strided_slice %244 {offsets = [0, 0], sizes = [8, 8], strides = [1, 1]} : vector<8x32xf32> to vector<8x8xf32>
    %248 = arith.truncf %247 : vector<8x8xf32> to vector<8x8xbf16>
    %249 = vector.extract_strided_slice %245 {offsets = [0, 0], sizes = [16, 8], strides = [1, 1]} : vector<16x32xf32> to vector<16x8xf32>
    %250 = arith.truncf %249 : vector<16x8xf32> to vector<16x8xbf16>
    %cst_84 = arith.constant dense<0.000000e+00> : vector<8x16xf32>
    %251 = tpu.matmul %248, %250, %cst_84 {dimension_numbers = #tpu.dot_dimension_numbers<[1], [1], [0], [0], [0, 0, 1, 0], [], []>} : vector<8x8xbf16>, vector<16x8xbf16>, vector<8x16xf32> -> vector<8x16xf32>
    %252 = vector.broadcast %5 : vector<1x16xf32> to vector<8x16xf32>
    %253 = arith.addf %251, %252 : vector<8x16xf32>
    %cst_85 = arith.constant dense<0xFF800000> : vector<8xf32>
    %254 = vector.multi_reduction <maximumf>, %253, %cst_85 [1] : vector<8x16xf32> to vector<8xf32>
    %255 = vector.shape_cast %254 : vector<8xf32> to vector<8x1xf32>
    %256 = vector.broadcast %255 : vector<8x1xf32> to vector<8x16xf32>
    %257 = arith.subf %253, %256 : vector<8x16xf32>
    %258 = math.exp %257 : vector<8x16xf32>
    %cst_86 = arith.constant dense<0.000000e+00> : vector<8xf32>
    %259 = vector.multi_reduction <add>, %258, %cst_86 [1] : vector<8x16xf32> to vector<8xf32>
    %260 = vector.shape_cast %259 : vector<8xf32> to vector<8x1xf32>
    %261 = tpu.reciprocal %260 {approx = true} : vector<8x1xf32> -> vector<8x1xf32>
    %262 = vector.broadcast %261 : vector<8x1xf32> to vector<8x16xf32>
    %263 = arith.mulf %258, %262 : vector<8x16xf32>
    %264 = arith.truncf %263 : vector<8x16xf32> to vector<8x16xbf16>
    %265 = vector.extract_strided_slice %246 {offsets = [0, 0], sizes = [16, 8], strides = [1, 1]} : vector<16x32xf32> to vector<16x8xf32>
    %266 = arith.truncf %265 : vector<16x8xf32> to vector<16x8xbf16>
    %cst_87 = arith.constant dense<0.000000e+00> : vector<8x8xf32>
    %267 = tpu.matmul %264, %266, %cst_87 {dimension_numbers = #tpu.dot_dimension_numbers<[1], [0], [0], [1], [0, 0, 1, 1], [], []>} : vector<8x16xbf16>, vector<16x8xbf16>, vector<8x8xf32> -> vector<8x8xf32>
    %268 = vector.extract_strided_slice %244 {offsets = [0, 8], sizes = [8, 8], strides = [1, 1]} : vector<8x32xf32> to vector<8x8xf32>
    %269 = arith.truncf %268 : vector<8x8xf32> to vector<8x8xbf16>
    %270 = vector.extract_strided_slice %245 {offsets = [0, 8], sizes = [16, 8], strides = [1, 1]} : vector<16x32xf32> to vector<16x8xf32>
    %271 = arith.truncf %270 : vector<16x8xf32> to vector<16x8xbf16>
    %cst_88 = arith.constant dense<0.000000e+00> : vector<8x16xf32>
    %272 = tpu.matmul %269, %271, %cst_88 {dimension_numbers = #tpu.dot_dimension_numbers<[1], [1], [0], [0], [0, 0, 1, 0], [], []>} : vector<8x8xbf16>, vector<16x8xbf16>, vector<8x16xf32> -> vector<8x16xf32>
    %273 = vector.broadcast %5 : vector<1x16xf32> to vector<8x16xf32>
    %274 = arith.addf %272, %273 : vector<8x16xf32>
    %cst_89 = arith.constant dense<0xFF800000> : vector<8xf32>
    %275 = vector.multi_reduction <maximumf>, %274, %cst_89 [1] : vector<8x16xf32> to vector<8xf32>
    %276 = vector.shape_cast %275 : vector<8xf32> to vector<8x1xf32>
    %277 = vector.broadcast %276 : vector<8x1xf32> to vector<8x16xf32>
    %278 = arith.subf %274, %277 : vector<8x16xf32>
    %279 = math.exp %278 : vector<8x16xf32>
    %cst_90 = arith.constant dense<0.000000e+00> : vector<8xf32>
    %280 = vector.multi_reduction <add>, %279, %cst_90 [1] : vector<8x16xf32> to vector<8xf32>
    %281 = vector.shape_cast %280 : vector<8xf32> to vector<8x1xf32>
    %282 = tpu.reciprocal %281 {approx = true} : vector<8x1xf32> -> vector<8x1xf32>
    %283 = vector.broadcast %282 : vector<8x1xf32> to vector<8x16xf32>
    %284 = arith.mulf %279, %283 : vector<8x16xf32>
    %285 = arith.truncf %284 : vector<8x16xf32> to vector<8x16xbf16>
    %286 = vector.extract_strided_slice %246 {offsets = [0, 8], sizes = [16, 8], strides = [1, 1]} : vector<16x32xf32> to vector<16x8xf32>
    %287 = arith.truncf %286 : vector<16x8xf32> to vector<16x8xbf16>
    %cst_91 = arith.constant dense<0.000000e+00> : vector<8x8xf32>
    %288 = tpu.matmul %285, %287, %cst_91 {dimension_numbers = #tpu.dot_dimension_numbers<[1], [0], [0], [1], [0, 0, 1, 1], [], []>} : vector<8x16xbf16>, vector<16x8xbf16>, vector<8x8xf32> -> vector<8x8xf32>
    %289 = vector.extract_strided_slice %244 {offsets = [0, 16], sizes = [8, 8], strides = [1, 1]} : vector<8x32xf32> to vector<8x8xf32>
    %290 = arith.truncf %289 : vector<8x8xf32> to vector<8x8xbf16>
    %291 = vector.extract_strided_slice %245 {offsets = [0, 16], sizes = [16, 8], strides = [1, 1]} : vector<16x32xf32> to vector<16x8xf32>
    %292 = arith.truncf %291 : vector<16x8xf32> to vector<16x8xbf16>
    %cst_92 = arith.constant dense<0.000000e+00> : vector<8x16xf32>
    %293 = tpu.matmul %290, %292, %cst_92 {dimension_numbers = #tpu.dot_dimension_numbers<[1], [1], [0], [0], [0, 0, 1, 0], [], []>} : vector<8x8xbf16>, vector<16x8xbf16>, vector<8x16xf32> -> vector<8x16xf32>
    %294 = vector.broadcast %5 : vector<1x16xf32> to vector<8x16xf32>
    %295 = arith.addf %293, %294 : vector<8x16xf32>
    %cst_93 = arith.constant dense<0xFF800000> : vector<8xf32>
    %296 = vector.multi_reduction <maximumf>, %295, %cst_93 [1] : vector<8x16xf32> to vector<8xf32>
    %297 = vector.shape_cast %296 : vector<8xf32> to vector<8x1xf32>
    %298 = vector.broadcast %297 : vector<8x1xf32> to vector<8x16xf32>
    %299 = arith.subf %295, %298 : vector<8x16xf32>
    %300 = math.exp %299 : vector<8x16xf32>
    %cst_94 = arith.constant dense<0.000000e+00> : vector<8xf32>
    %301 = vector.multi_reduction <add>, %300, %cst_94 [1] : vector<8x16xf32> to vector<8xf32>
    %302 = vector.shape_cast %301 : vector<8xf32> to vector<8x1xf32>
    %303 = tpu.reciprocal %302 {approx = true} : vector<8x1xf32> -> vector<8x1xf32>
    %304 = vector.broadcast %303 : vector<8x1xf32> to vector<8x16xf32>
    %305 = arith.mulf %300, %304 : vector<8x16xf32>
    %306 = arith.truncf %305 : vector<8x16xf32> to vector<8x16xbf16>
    %307 = vector.extract_strided_slice %246 {offsets = [0, 16], sizes = [16, 8], strides = [1, 1]} : vector<16x32xf32> to vector<16x8xf32>
    %308 = arith.truncf %307 : vector<16x8xf32> to vector<16x8xbf16>
    %cst_95 = arith.constant dense<0.000000e+00> : vector<8x8xf32>
    %309 = tpu.matmul %306, %308, %cst_95 {dimension_numbers = #tpu.dot_dimension_numbers<[1], [0], [0], [1], [0, 0, 1, 1], [], []>} : vector<8x16xbf16>, vector<16x8xbf16>, vector<8x8xf32> -> vector<8x8xf32>
    %310 = vector.extract_strided_slice %244 {offsets = [0, 24], sizes = [8, 8], strides = [1, 1]} : vector<8x32xf32> to vector<8x8xf32>
    %311 = arith.truncf %310 : vector<8x8xf32> to vector<8x8xbf16>
    %312 = vector.extract_strided_slice %245 {offsets = [0, 24], sizes = [16, 8], strides = [1, 1]} : vector<16x32xf32> to vector<16x8xf32>
    %313 = arith.truncf %312 : vector<16x8xf32> to vector<16x8xbf16>
    %cst_96 = arith.constant dense<0.000000e+00> : vector<8x16xf32>
    %314 = tpu.matmul %311, %313, %cst_96 {dimension_numbers = #tpu.dot_dimension_numbers<[1], [1], [0], [0], [0, 0, 1, 0], [], []>} : vector<8x8xbf16>, vector<16x8xbf16>, vector<8x16xf32> -> vector<8x16xf32>
    %315 = vector.broadcast %5 : vector<1x16xf32> to vector<8x16xf32>
    %316 = arith.addf %314, %315 : vector<8x16xf32>
    %cst_97 = arith.constant dense<0xFF800000> : vector<8xf32>
    %317 = vector.multi_reduction <maximumf>, %316, %cst_97 [1] : vector<8x16xf32> to vector<8xf32>
    %318 = vector.shape_cast %317 : vector<8xf32> to vector<8x1xf32>
    %319 = vector.broadcast %318 : vector<8x1xf32> to vector<8x16xf32>
    %320 = arith.subf %316, %319 : vector<8x16xf32>
    %321 = math.exp %320 : vector<8x16xf32>
    %cst_98 = arith.constant dense<0.000000e+00> : vector<8xf32>
    %322 = vector.multi_reduction <add>, %321, %cst_98 [1] : vector<8x16xf32> to vector<8xf32>
    %323 = vector.shape_cast %322 : vector<8xf32> to vector<8x1xf32>
    %324 = tpu.reciprocal %323 {approx = true} : vector<8x1xf32> -> vector<8x1xf32>
    %325 = vector.broadcast %324 : vector<8x1xf32> to vector<8x16xf32>
    %326 = arith.mulf %321, %325 : vector<8x16xf32>
    %327 = arith.truncf %326 : vector<8x16xf32> to vector<8x16xbf16>
    %328 = vector.extract_strided_slice %246 {offsets = [0, 24], sizes = [16, 8], strides = [1, 1]} : vector<16x32xf32> to vector<16x8xf32>
    %329 = arith.truncf %328 : vector<16x8xf32> to vector<16x8xbf16>
    %cst_99 = arith.constant dense<0.000000e+00> : vector<8x8xf32>
    %330 = tpu.matmul %327, %329, %cst_99 {dimension_numbers = #tpu.dot_dimension_numbers<[1], [0], [0], [1], [0, 0, 1, 1], [], []>} : vector<8x16xbf16>, vector<16x8xbf16>, vector<8x8xf32> -> vector<8x8xf32>
    %331 = tpu.concatenate %267, %288, %309, %330 in 1 : vector<8x8xf32>, vector<8x8xf32>, vector<8x8xf32>, vector<8x8xf32> -> vector<8x32xf32>
    %332 = vector.extract_strided_slice %233 {offsets = [8, 0], sizes = [8, 32], strides = [1, 1]} : vector<16x32xf32> to vector<8x32xf32>
    %333 = vector.extract_strided_slice %238 {offsets = [16, 0], sizes = [16, 32], strides = [1, 1]} : vector<32x32xf32> to vector<16x32xf32>
    %334 = vector.extract_strided_slice %243 {offsets = [16, 0], sizes = [16, 32], strides = [1, 1]} : vector<32x32xf32> to vector<16x32xf32>
    %335 = vector.extract_strided_slice %332 {offsets = [0, 0], sizes = [8, 8], strides = [1, 1]} : vector<8x32xf32> to vector<8x8xf32>
    %336 = arith.truncf %335 : vector<8x8xf32> to vector<8x8xbf16>
    %337 = vector.extract_strided_slice %333 {offsets = [0, 0], sizes = [16, 8], strides = [1, 1]} : vector<16x32xf32> to vector<16x8xf32>
    %338 = arith.truncf %337 : vector<16x8xf32> to vector<16x8xbf16>
    %cst_100 = arith.constant dense<0.000000e+00> : vector<8x16xf32>
    %339 = tpu.matmul %336, %338, %cst_100 {dimension_numbers = #tpu.dot_dimension_numbers<[1], [1], [0], [0], [0, 0, 1, 0], [], []>} : vector<8x8xbf16>, vector<16x8xbf16>, vector<8x16xf32> -> vector<8x16xf32>
    %340 = vector.broadcast %5 : vector<1x16xf32> to vector<8x16xf32>
    %341 = arith.addf %339, %340 : vector<8x16xf32>
    %cst_101 = arith.constant dense<0xFF800000> : vector<8xf32>
    %342 = vector.multi_reduction <maximumf>, %341, %cst_101 [1] : vector<8x16xf32> to vector<8xf32>
    %343 = vector.shape_cast %342 : vector<8xf32> to vector<8x1xf32>
    %344 = vector.broadcast %343 : vector<8x1xf32> to vector<8x16xf32>
    %345 = arith.subf %341, %344 : vector<8x16xf32>
    %346 = math.exp %345 : vector<8x16xf32>
    %cst_102 = arith.constant dense<0.000000e+00> : vector<8xf32>
    %347 = vector.multi_reduction <add>, %346, %cst_102 [1] : vector<8x16xf32> to vector<8xf32>
    %348 = vector.shape_cast %347 : vector<8xf32> to vector<8x1xf32>
    %349 = tpu.reciprocal %348 {approx = true} : vector<8x1xf32> -> vector<8x1xf32>
    %350 = vector.broadcast %349 : vector<8x1xf32> to vector<8x16xf32>
    %351 = arith.mulf %346, %350 : vector<8x16xf32>
    %352 = arith.truncf %351 : vector<8x16xf32> to vector<8x16xbf16>
    %353 = vector.extract_strided_slice %334 {offsets = [0, 0], sizes = [16, 8], strides = [1, 1]} : vector<16x32xf32> to vector<16x8xf32>
    %354 = arith.truncf %353 : vector<16x8xf32> to vector<16x8xbf16>
    %cst_103 = arith.constant dense<0.000000e+00> : vector<8x8xf32>
    %355 = tpu.matmul %352, %354, %cst_103 {dimension_numbers = #tpu.dot_dimension_numbers<[1], [0], [0], [1], [0, 0, 1, 1], [], []>} : vector<8x16xbf16>, vector<16x8xbf16>, vector<8x8xf32> -> vector<8x8xf32>
    %356 = vector.extract_strided_slice %332 {offsets = [0, 8], sizes = [8, 8], strides = [1, 1]} : vector<8x32xf32> to vector<8x8xf32>
    %357 = arith.truncf %356 : vector<8x8xf32> to vector<8x8xbf16>
    %358 = vector.extract_strided_slice %333 {offsets = [0, 8], sizes = [16, 8], strides = [1, 1]} : vector<16x32xf32> to vector<16x8xf32>
    %359 = arith.truncf %358 : vector<16x8xf32> to vector<16x8xbf16>
    %cst_104 = arith.constant dense<0.000000e+00> : vector<8x16xf32>
    %360 = tpu.matmul %357, %359, %cst_104 {dimension_numbers = #tpu.dot_dimension_numbers<[1], [1], [0], [0], [0, 0, 1, 0], [], []>} : vector<8x8xbf16>, vector<16x8xbf16>, vector<8x16xf32> -> vector<8x16xf32>
    %361 = vector.broadcast %5 : vector<1x16xf32> to vector<8x16xf32>
    %362 = arith.addf %360, %361 : vector<8x16xf32>
    %cst_105 = arith.constant dense<0xFF800000> : vector<8xf32>
    %363 = vector.multi_reduction <maximumf>, %362, %cst_105 [1] : vector<8x16xf32> to vector<8xf32>
    %364 = vector.shape_cast %363 : vector<8xf32> to vector<8x1xf32>
    %365 = vector.broadcast %364 : vector<8x1xf32> to vector<8x16xf32>
    %366 = arith.subf %362, %365 : vector<8x16xf32>
    %367 = math.exp %366 : vector<8x16xf32>
    %cst_106 = arith.constant dense<0.000000e+00> : vector<8xf32>
    %368 = vector.multi_reduction <add>, %367, %cst_106 [1] : vector<8x16xf32> to vector<8xf32>
    %369 = vector.shape_cast %368 : vector<8xf32> to vector<8x1xf32>
    %370 = tpu.reciprocal %369 {approx = true} : vector<8x1xf32> -> vector<8x1xf32>
    %371 = vector.broadcast %370 : vector<8x1xf32> to vector<8x16xf32>
    %372 = arith.mulf %367, %371 : vector<8x16xf32>
    %373 = arith.truncf %372 : vector<8x16xf32> to vector<8x16xbf16>
    %374 = vector.extract_strided_slice %334 {offsets = [0, 8], sizes = [16, 8], strides = [1, 1]} : vector<16x32xf32> to vector<16x8xf32>
    %375 = arith.truncf %374 : vector<16x8xf32> to vector<16x8xbf16>
    %cst_107 = arith.constant dense<0.000000e+00> : vector<8x8xf32>
    %376 = tpu.matmul %373, %375, %cst_107 {dimension_numbers = #tpu.dot_dimension_numbers<[1], [0], [0], [1], [0, 0, 1, 1], [], []>} : vector<8x16xbf16>, vector<16x8xbf16>, vector<8x8xf32> -> vector<8x8xf32>
    %377 = vector.extract_strided_slice %332 {offsets = [0, 16], sizes = [8, 8], strides = [1, 1]} : vector<8x32xf32> to vector<8x8xf32>
    %378 = arith.truncf %377 : vector<8x8xf32> to vector<8x8xbf16>
    %379 = vector.extract_strided_slice %333 {offsets = [0, 16], sizes = [16, 8], strides = [1, 1]} : vector<16x32xf32> to vector<16x8xf32>
    %380 = arith.truncf %379 : vector<16x8xf32> to vector<16x8xbf16>
    %cst_108 = arith.constant dense<0.000000e+00> : vector<8x16xf32>
    %381 = tpu.matmul %378, %380, %cst_108 {dimension_numbers = #tpu.dot_dimension_numbers<[1], [1], [0], [0], [0, 0, 1, 0], [], []>} : vector<8x8xbf16>, vector<16x8xbf16>, vector<8x16xf32> -> vector<8x16xf32>
    %382 = vector.broadcast %5 : vector<1x16xf32> to vector<8x16xf32>
    %383 = arith.addf %381, %382 : vector<8x16xf32>
    %cst_109 = arith.constant dense<0xFF800000> : vector<8xf32>
    %384 = vector.multi_reduction <maximumf>, %383, %cst_109 [1] : vector<8x16xf32> to vector<8xf32>
    %385 = vector.shape_cast %384 : vector<8xf32> to vector<8x1xf32>
    %386 = vector.broadcast %385 : vector<8x1xf32> to vector<8x16xf32>
    %387 = arith.subf %383, %386 : vector<8x16xf32>
    %388 = math.exp %387 : vector<8x16xf32>
    %cst_110 = arith.constant dense<0.000000e+00> : vector<8xf32>
    %389 = vector.multi_reduction <add>, %388, %cst_110 [1] : vector<8x16xf32> to vector<8xf32>
    %390 = vector.shape_cast %389 : vector<8xf32> to vector<8x1xf32>
    %391 = tpu.reciprocal %390 {approx = true} : vector<8x1xf32> -> vector<8x1xf32>
    %392 = vector.broadcast %391 : vector<8x1xf32> to vector<8x16xf32>
    %393 = arith.mulf %388, %392 : vector<8x16xf32>
    %394 = arith.truncf %393 : vector<8x16xf32> to vector<8x16xbf16>
    %395 = vector.extract_strided_slice %334 {offsets = [0, 16], sizes = [16, 8], strides = [1, 1]} : vector<16x32xf32> to vector<16x8xf32>
    %396 = arith.truncf %395 : vector<16x8xf32> to vector<16x8xbf16>
    %cst_111 = arith.constant dense<0.000000e+00> : vector<8x8xf32>
    %397 = tpu.matmul %394, %396, %cst_111 {dimension_numbers = #tpu.dot_dimension_numbers<[1], [0], [0], [1], [0, 0, 1, 1], [], []>} : vector<8x16xbf16>, vector<16x8xbf16>, vector<8x8xf32> -> vector<8x8xf32>
    %398 = vector.extract_strided_slice %332 {offsets = [0, 24], sizes = [8, 8], strides = [1, 1]} : vector<8x32xf32> to vector<8x8xf32>
    %399 = arith.truncf %398 : vector<8x8xf32> to vector<8x8xbf16>
    %400 = vector.extract_strided_slice %333 {offsets = [0, 24], sizes = [16, 8], strides = [1, 1]} : vector<16x32xf32> to vector<16x8xf32>
    %401 = arith.truncf %400 : vector<16x8xf32> to vector<16x8xbf16>
    %cst_112 = arith.constant dense<0.000000e+00> : vector<8x16xf32>
    %402 = tpu.matmul %399, %401, %cst_112 {dimension_numbers = #tpu.dot_dimension_numbers<[1], [1], [0], [0], [0, 0, 1, 0], [], []>} : vector<8x8xbf16>, vector<16x8xbf16>, vector<8x16xf32> -> vector<8x16xf32>
    %403 = vector.broadcast %5 : vector<1x16xf32> to vector<8x16xf32>
    %404 = arith.addf %402, %403 : vector<8x16xf32>
    %cst_113 = arith.constant dense<0xFF800000> : vector<8xf32>
    %405 = vector.multi_reduction <maximumf>, %404, %cst_113 [1] : vector<8x16xf32> to vector<8xf32>
    %406 = vector.shape_cast %405 : vector<8xf32> to vector<8x1xf32>
    %407 = vector.broadcast %406 : vector<8x1xf32> to vector<8x16xf32>
    %408 = arith.subf %404, %407 : vector<8x16xf32>
    %409 = math.exp %408 : vector<8x16xf32>
    %cst_114 = arith.constant dense<0.000000e+00> : vector<8xf32>
    %410 = vector.multi_reduction <add>, %409, %cst_114 [1] : vector<8x16xf32> to vector<8xf32>
    %411 = vector.shape_cast %410 : vector<8xf32> to vector<8x1xf32>
    %412 = tpu.reciprocal %411 {approx = true} : vector<8x1xf32> -> vector<8x1xf32>
    %413 = vector.broadcast %412 : vector<8x1xf32> to vector<8x16xf32>
    %414 = arith.mulf %409, %413 : vector<8x16xf32>
    %415 = arith.truncf %414 : vector<8x16xf32> to vector<8x16xbf16>
    %416 = vector.extract_strided_slice %334 {offsets = [0, 24], sizes = [16, 8], strides = [1, 1]} : vector<16x32xf32> to vector<16x8xf32>
    %417 = arith.truncf %416 : vector<16x8xf32> to vector<16x8xbf16>
    %cst_115 = arith.constant dense<0.000000e+00> : vector<8x8xf32>
    %418 = tpu.matmul %415, %417, %cst_115 {dimension_numbers = #tpu.dot_dimension_numbers<[1], [0], [0], [1], [0, 0, 1, 1], [], []>} : vector<8x16xbf16>, vector<16x8xbf16>, vector<8x8xf32> -> vector<8x8xf32>
    %419 = tpu.concatenate %355, %376, %397, %418 in 1 : vector<8x8xf32>, vector<8x8xf32>, vector<8x8xf32>, vector<8x8xf32> -> vector<8x32xf32>
    %420 = tpu.concatenate %331, %419 in 0 : vector<8x32xf32>, vector<8x32xf32> -> vector<16x32xf32>
    %421 = arith.truncf %420 : vector<16x32xf32> to vector<16x32xbf16>
    %c0_116 = arith.constant 0 : index
    %c0_117 = arith.constant 0 : index
    %422 = vector.load %arg22[%c0_116, %c0_117] : memref<32x32xbf16, #tpu.memory_space<vmem>>, vector<32x32xbf16>
    %cst_118 = arith.constant dense<0.000000e+00> : vector<16x32xf32>
    %423 = tpu.matmul %421, %422, %cst_118 {dimension_numbers = #tpu.dot_dimension_numbers<[1], [0], [0], [1], [0, 0, 1, 1], [], []>} : vector<16x32xbf16>, vector<32x32xbf16>, vector<16x32xf32> -> vector<16x32xf32>
    %c0_119 = arith.constant 0 : index
    %c0_120 = arith.constant 0 : index
    %424 = vector.load %arg23[%c0_119, %c0_120] : memref<1x32xf32, #tpu.memory_space<vmem>>, vector<1x32xf32>
    %425 = vector.broadcast %424 : vector<1x32xf32> to vector<16x32xf32>
    %426 = arith.addf %423, %425 : vector<16x32xf32>
    %427 = arith.addf %227, %426 : vector<16x32xf32>
    %cst_121 = arith.constant dense<0.000000e+00> : vector<16xf32>
    %428 = vector.multi_reduction <add>, %427, %cst_121 [1] : vector<16x32xf32> to vector<16xf32>
    %429 = vector.shape_cast %428 : vector<16xf32> to vector<16x1xf32>
    %cst_122 = arith.constant 3.200000e+01 : f32
    %430 = vector.broadcast %cst_122 : f32 to vector<16x1xf32>
    %431 = arith.divf %429, %430 : vector<16x1xf32>
    %432 = vector.broadcast %431 : vector<16x1xf32> to vector<16x32xf32>
    %433 = arith.subf %427, %432 : vector<16x32xf32>
    %434 = arith.mulf %433, %433 : vector<16x32xf32>
    %cst_123 = arith.constant dense<0.000000e+00> : vector<16xf32>
    %435 = vector.multi_reduction <add>, %434, %cst_123 [1] : vector<16x32xf32> to vector<16xf32>
    %436 = vector.shape_cast %435 : vector<16xf32> to vector<16x1xf32>
    %cst_124 = arith.constant 3.200000e+01 : f32
    %437 = vector.broadcast %cst_124 : f32 to vector<16x1xf32>
    %438 = arith.divf %436, %437 : vector<16x1xf32>
    %cst_125 = arith.constant 9.99999974E-6 : f32
    %439 = vector.broadcast %cst_125 : f32 to vector<16x1xf32>
    %440 = arith.addf %438, %439 : vector<16x1xf32>
    %441 = math.rsqrt %440 : vector<16x1xf32>
    %442 = vector.broadcast %441 : vector<16x1xf32> to vector<16x32xf32>
    %443 = arith.mulf %433, %442 : vector<16x32xf32>
    %c0_126 = arith.constant 0 : index
    %c0_127 = arith.constant 0 : index
    %444 = vector.load %arg24[%c0_126, %c0_127] : memref<1x32xf32, #tpu.memory_space<vmem>>, vector<1x32xf32>
    %445 = vector.broadcast %444 : vector<1x32xf32> to vector<16x32xf32>
    %446 = arith.mulf %443, %445 : vector<16x32xf32>
    %c0_128 = arith.constant 0 : index
    %c0_129 = arith.constant 0 : index
    %447 = vector.load %arg25[%c0_128, %c0_129] : memref<1x32xf32, #tpu.memory_space<vmem>>, vector<1x32xf32>
    %448 = vector.broadcast %447 : vector<1x32xf32> to vector<16x32xf32>
    %449 = arith.addf %446, %448 : vector<16x32xf32>
    %450 = arith.truncf %449 : vector<16x32xf32> to vector<16x32xbf16>
    %c0_130 = arith.constant 0 : index
    %c0_131 = arith.constant 0 : index
    %451 = vector.load %arg26[%c0_130, %c0_131] : memref<32x64xbf16, #tpu.memory_space<vmem>>, vector<32x64xbf16>
    %cst_132 = arith.constant dense<0.000000e+00> : vector<16x64xf32>
    %452 = tpu.matmul %450, %451, %cst_132 {dimension_numbers = #tpu.dot_dimension_numbers<[1], [0], [0], [1], [0, 0, 1, 1], [], []>} : vector<16x32xbf16>, vector<32x64xbf16>, vector<16x64xf32> -> vector<16x64xf32>
    %c0_133 = arith.constant 0 : index
    %c0_134 = arith.constant 0 : index
    %453 = vector.load %arg27[%c0_133, %c0_134] : memref<1x64xf32, #tpu.memory_space<vmem>>, vector<1x64xf32>
    %454 = vector.broadcast %453 : vector<1x64xf32> to vector<16x64xf32>
    %455 = arith.addf %452, %454 : vector<16x64xf32>
    %cst_135 = arith.constant 0.000000e+00 : f32
    %456 = vector.broadcast %cst_135 : f32 to vector<16x64xf32>
    %457 = arith.maximumf %455, %456 : vector<16x64xf32>
    %458 = arith.truncf %457 : vector<16x64xf32> to vector<16x64xbf16>
    %c0_136 = arith.constant 0 : index
    %c0_137 = arith.constant 0 : index
    %459 = vector.load %arg28[%c0_136, %c0_137] : memref<64x32xbf16, #tpu.memory_space<vmem>>, vector<64x32xbf16>
    %cst_138 = arith.constant dense<0.000000e+00> : vector<16x32xf32>
    %460 = tpu.matmul %458, %459, %cst_138 {dimension_numbers = #tpu.dot_dimension_numbers<[1], [0], [0], [1], [0, 0, 1, 1], [], []>} : vector<16x64xbf16>, vector<64x32xbf16>, vector<16x32xf32> -> vector<16x32xf32>
    %c0_139 = arith.constant 0 : index
    %c0_140 = arith.constant 0 : index
    %461 = vector.load %arg29[%c0_139, %c0_140] : memref<1x32xf32, #tpu.memory_space<vmem>>, vector<1x32xf32>
    %462 = vector.broadcast %461 : vector<1x32xf32> to vector<16x32xf32>
    %463 = arith.addf %460, %462 : vector<16x32xf32>
    %464 = arith.addf %449, %463 : vector<16x32xf32>
    %cst_141 = arith.constant dense<0.000000e+00> : vector<16xf32>
    %465 = vector.multi_reduction <add>, %464, %cst_141 [1] : vector<16x32xf32> to vector<16xf32>
    %466 = vector.shape_cast %465 : vector<16xf32> to vector<16x1xf32>
    %cst_142 = arith.constant 3.200000e+01 : f32
    %467 = vector.broadcast %cst_142 : f32 to vector<16x1xf32>
    %468 = arith.divf %466, %467 : vector<16x1xf32>
    %469 = vector.broadcast %468 : vector<16x1xf32> to vector<16x32xf32>
    %470 = arith.subf %464, %469 : vector<16x32xf32>
    %471 = arith.mulf %470, %470 : vector<16x32xf32>
    %cst_143 = arith.constant dense<0.000000e+00> : vector<16xf32>
    %472 = vector.multi_reduction <add>, %471, %cst_143 [1] : vector<16x32xf32> to vector<16xf32>
    %473 = vector.shape_cast %472 : vector<16xf32> to vector<16x1xf32>
    %cst_144 = arith.constant 3.200000e+01 : f32
    %474 = vector.broadcast %cst_144 : f32 to vector<16x1xf32>
    %475 = arith.divf %473, %474 : vector<16x1xf32>
    %cst_145 = arith.constant 9.99999974E-6 : f32
    %476 = vector.broadcast %cst_145 : f32 to vector<16x1xf32>
    %477 = arith.addf %475, %476 : vector<16x1xf32>
    %478 = math.rsqrt %477 : vector<16x1xf32>
    %479 = vector.broadcast %478 : vector<16x1xf32> to vector<16x32xf32>
    %480 = arith.mulf %470, %479 : vector<16x32xf32>
    %c0_146 = arith.constant 0 : index
    %c0_147 = arith.constant 0 : index
    %481 = vector.load %arg30[%c0_146, %c0_147] : memref<1x32xf32, #tpu.memory_space<vmem>>, vector<1x32xf32>
    %482 = vector.broadcast %481 : vector<1x32xf32> to vector<16x32xf32>
    %483 = arith.mulf %480, %482 : vector<16x32xf32>
    %c0_148 = arith.constant 0 : index
    %c0_149 = arith.constant 0 : index
    %484 = vector.load %arg31[%c0_148, %c0_149] : memref<1x32xf32, #tpu.memory_space<vmem>>, vector<1x32xf32>
    %485 = vector.broadcast %484 : vector<1x32xf32> to vector<16x32xf32>
    %486 = arith.addf %483, %485 : vector<16x32xf32>
    %487 = arith.truncf %486 : vector<16x32xf32> to vector<16x32xbf16>
    %c0_150 = arith.constant 0 : index
    %c0_151 = arith.constant 0 : index
    %488 = vector.load %arg32[%c0_150, %c0_151] : memref<32x32xbf16, #tpu.memory_space<vmem>>, vector<32x32xbf16>
    %cst_152 = arith.constant dense<0.000000e+00> : vector<16x32xf32>
    %489 = tpu.matmul %487, %488, %cst_152 {dimension_numbers = #tpu.dot_dimension_numbers<[1], [0], [0], [1], [0, 0, 1, 1], [], []>} : vector<16x32xbf16>, vector<32x32xbf16>, vector<16x32xf32> -> vector<16x32xf32>
    %c0_153 = arith.constant 0 : index
    %c0_154 = arith.constant 0 : index
    %490 = vector.load %arg33[%c0_153, %c0_154] : memref<1x32xf32, #tpu.memory_space<vmem>>, vector<1x32xf32>
    %491 = vector.broadcast %490 : vector<1x32xf32> to vector<16x32xf32>
    %492 = arith.addf %489, %491 : vector<16x32xf32>
    %493 = arith.truncf %486 : vector<16x32xf32> to vector<16x32xbf16>
    %c0_155 = arith.constant 0 : index
    %c0_156 = arith.constant 0 : index
    %494 = vector.load %arg34[%c0_155, %c0_156] : memref<32x32xbf16, #tpu.memory_space<vmem>>, vector<32x32xbf16>
    %cst_157 = arith.constant dense<0.000000e+00> : vector<16x32xf32>
    %495 = tpu.matmul %493, %494, %cst_157 {dimension_numbers = #tpu.dot_dimension_numbers<[1], [0], [0], [1], [0, 0, 1, 1], [], []>} : vector<16x32xbf16>, vector<32x32xbf16>, vector<16x32xf32> -> vector<16x32xf32>
    %c0_158 = arith.constant 0 : index
    %c0_159 = arith.constant 0 : index
    %496 = vector.load %arg35[%c0_158, %c0_159] : memref<1x32xf32, #tpu.memory_space<vmem>>, vector<1x32xf32>
    %497 = vector.broadcast %496 : vector<1x32xf32> to vector<16x32xf32>
    %498 = arith.addf %495, %497 : vector<16x32xf32>
    %499 = arith.truncf %486 : vector<16x32xf32> to vector<16x32xbf16>
    %c0_160 = arith.constant 0 : index
    %c0_161 = arith.constant 0 : index
    %500 = vector.load %arg36[%c0_160, %c0_161] : memref<32x32xbf16, #tpu.memory_space<vmem>>, vector<32x32xbf16>
    %cst_162 = arith.constant dense<0.000000e+00> : vector<16x32xf32>
    %501 = tpu.matmul %499, %500, %cst_162 {dimension_numbers = #tpu.dot_dimension_numbers<[1], [0], [0], [1], [0, 0, 1, 1], [], []>} : vector<16x32xbf16>, vector<32x32xbf16>, vector<16x32xf32> -> vector<16x32xf32>
    %c0_163 = arith.constant 0 : index
    %c0_164 = arith.constant 0 : index
    %502 = vector.load %arg37[%c0_163, %c0_164] : memref<1x32xf32, #tpu.memory_space<vmem>>, vector<1x32xf32>
    %503 = vector.broadcast %502 : vector<1x32xf32> to vector<16x32xf32>
    %504 = arith.addf %501, %503 : vector<16x32xf32>
    %505 = vector.extract_strided_slice %492 {offsets = [0, 0], sizes = [8, 32], strides = [1, 1]} : vector<16x32xf32> to vector<8x32xf32>
    %506 = vector.extract_strided_slice %498 {offsets = [0, 0], sizes = [8, 32], strides = [1, 1]} : vector<16x32xf32> to vector<8x32xf32>
    %507 = vector.extract_strided_slice %504 {offsets = [0, 0], sizes = [8, 32], strides = [1, 1]} : vector<16x32xf32> to vector<8x32xf32>
    %508 = vector.extract_strided_slice %505 {offsets = [0, 0], sizes = [8, 8], strides = [1, 1]} : vector<8x32xf32> to vector<8x8xf32>
    %509 = arith.truncf %508 : vector<8x8xf32> to vector<8x8xbf16>
    %510 = vector.extract_strided_slice %506 {offsets = [0, 0], sizes = [8, 8], strides = [1, 1]} : vector<8x32xf32> to vector<8x8xf32>
    %511 = arith.truncf %510 : vector<8x8xf32> to vector<8x8xbf16>
    %cst_165 = arith.constant dense<0.000000e+00> : vector<8x8xf32>
    %512 = tpu.matmul %509, %511, %cst_165 {dimension_numbers = #tpu.dot_dimension_numbers<[1], [1], [0], [0], [0, 0, 1, 0], [], []>} : vector<8x8xbf16>, vector<8x8xbf16>, vector<8x8xf32> -> vector<8x8xf32>
    %513 = arith.addf %512, %8 : vector<8x8xf32>
    %cst_166 = arith.constant dense<0xFF800000> : vector<8xf32>
    %514 = vector.multi_reduction <maximumf>, %513, %cst_166 [1] : vector<8x8xf32> to vector<8xf32>
    %515 = vector.shape_cast %514 : vector<8xf32> to vector<8x1xf32>
    %516 = vector.broadcast %515 : vector<8x1xf32> to vector<8x8xf32>
    %517 = arith.subf %513, %516 : vector<8x8xf32>
    %518 = math.exp %517 : vector<8x8xf32>
    %cst_167 = arith.constant dense<0.000000e+00> : vector<8xf32>
    %519 = vector.multi_reduction <add>, %518, %cst_167 [1] : vector<8x8xf32> to vector<8xf32>
    %520 = vector.shape_cast %519 : vector<8xf32> to vector<8x1xf32>
    %521 = tpu.reciprocal %520 {approx = true} : vector<8x1xf32> -> vector<8x1xf32>
    %522 = vector.broadcast %521 : vector<8x1xf32> to vector<8x8xf32>
    %523 = arith.mulf %518, %522 : vector<8x8xf32>
    %524 = arith.truncf %523 : vector<8x8xf32> to vector<8x8xbf16>
    %525 = vector.extract_strided_slice %507 {offsets = [0, 0], sizes = [8, 8], strides = [1, 1]} : vector<8x32xf32> to vector<8x8xf32>
    %526 = arith.truncf %525 : vector<8x8xf32> to vector<8x8xbf16>
    %cst_168 = arith.constant dense<0.000000e+00> : vector<8x8xf32>
    %527 = tpu.matmul %524, %526, %cst_168 {dimension_numbers = #tpu.dot_dimension_numbers<[1], [0], [0], [1], [0, 0, 1, 1], [], []>} : vector<8x8xbf16>, vector<8x8xbf16>, vector<8x8xf32> -> vector<8x8xf32>
    %528 = vector.extract_strided_slice %505 {offsets = [0, 8], sizes = [8, 8], strides = [1, 1]} : vector<8x32xf32> to vector<8x8xf32>
    %529 = arith.truncf %528 : vector<8x8xf32> to vector<8x8xbf16>
    %530 = vector.extract_strided_slice %506 {offsets = [0, 8], sizes = [8, 8], strides = [1, 1]} : vector<8x32xf32> to vector<8x8xf32>
    %531 = arith.truncf %530 : vector<8x8xf32> to vector<8x8xbf16>
    %cst_169 = arith.constant dense<0.000000e+00> : vector<8x8xf32>
    %532 = tpu.matmul %529, %531, %cst_169 {dimension_numbers = #tpu.dot_dimension_numbers<[1], [1], [0], [0], [0, 0, 1, 0], [], []>} : vector<8x8xbf16>, vector<8x8xbf16>, vector<8x8xf32> -> vector<8x8xf32>
    %533 = arith.addf %532, %8 : vector<8x8xf32>
    %cst_170 = arith.constant dense<0xFF800000> : vector<8xf32>
    %534 = vector.multi_reduction <maximumf>, %533, %cst_170 [1] : vector<8x8xf32> to vector<8xf32>
    %535 = vector.shape_cast %534 : vector<8xf32> to vector<8x1xf32>
    %536 = vector.broadcast %535 : vector<8x1xf32> to vector<8x8xf32>
    %537 = arith.subf %533, %536 : vector<8x8xf32>
    %538 = math.exp %537 : vector<8x8xf32>
    %cst_171 = arith.constant dense<0.000000e+00> : vector<8xf32>
    %539 = vector.multi_reduction <add>, %538, %cst_171 [1] : vector<8x8xf32> to vector<8xf32>
    %540 = vector.shape_cast %539 : vector<8xf32> to vector<8x1xf32>
    %541 = tpu.reciprocal %540 {approx = true} : vector<8x1xf32> -> vector<8x1xf32>
    %542 = vector.broadcast %541 : vector<8x1xf32> to vector<8x8xf32>
    %543 = arith.mulf %538, %542 : vector<8x8xf32>
    %544 = arith.truncf %543 : vector<8x8xf32> to vector<8x8xbf16>
    %545 = vector.extract_strided_slice %507 {offsets = [0, 8], sizes = [8, 8], strides = [1, 1]} : vector<8x32xf32> to vector<8x8xf32>
    %546 = arith.truncf %545 : vector<8x8xf32> to vector<8x8xbf16>
    %cst_172 = arith.constant dense<0.000000e+00> : vector<8x8xf32>
    %547 = tpu.matmul %544, %546, %cst_172 {dimension_numbers = #tpu.dot_dimension_numbers<[1], [0], [0], [1], [0, 0, 1, 1], [], []>} : vector<8x8xbf16>, vector<8x8xbf16>, vector<8x8xf32> -> vector<8x8xf32>
    %548 = vector.extract_strided_slice %505 {offsets = [0, 16], sizes = [8, 8], strides = [1, 1]} : vector<8x32xf32> to vector<8x8xf32>
    %549 = arith.truncf %548 : vector<8x8xf32> to vector<8x8xbf16>
    %550 = vector.extract_strided_slice %506 {offsets = [0, 16], sizes = [8, 8], strides = [1, 1]} : vector<8x32xf32> to vector<8x8xf32>
    %551 = arith.truncf %550 : vector<8x8xf32> to vector<8x8xbf16>
    %cst_173 = arith.constant dense<0.000000e+00> : vector<8x8xf32>
    %552 = tpu.matmul %549, %551, %cst_173 {dimension_numbers = #tpu.dot_dimension_numbers<[1], [1], [0], [0], [0, 0, 1, 0], [], []>} : vector<8x8xbf16>, vector<8x8xbf16>, vector<8x8xf32> -> vector<8x8xf32>
    %553 = arith.addf %552, %8 : vector<8x8xf32>
    %cst_174 = arith.constant dense<0xFF800000> : vector<8xf32>
    %554 = vector.multi_reduction <maximumf>, %553, %cst_174 [1] : vector<8x8xf32> to vector<8xf32>
    %555 = vector.shape_cast %554 : vector<8xf32> to vector<8x1xf32>
    %556 = vector.broadcast %555 : vector<8x1xf32> to vector<8x8xf32>
    %557 = arith.subf %553, %556 : vector<8x8xf32>
    %558 = math.exp %557 : vector<8x8xf32>
    %cst_175 = arith.constant dense<0.000000e+00> : vector<8xf32>
    %559 = vector.multi_reduction <add>, %558, %cst_175 [1] : vector<8x8xf32> to vector<8xf32>
    %560 = vector.shape_cast %559 : vector<8xf32> to vector<8x1xf32>
    %561 = tpu.reciprocal %560 {approx = true} : vector<8x1xf32> -> vector<8x1xf32>
    %562 = vector.broadcast %561 : vector<8x1xf32> to vector<8x8xf32>
    %563 = arith.mulf %558, %562 : vector<8x8xf32>
    %564 = arith.truncf %563 : vector<8x8xf32> to vector<8x8xbf16>
    %565 = vector.extract_strided_slice %507 {offsets = [0, 16], sizes = [8, 8], strides = [1, 1]} : vector<8x32xf32> to vector<8x8xf32>
    %566 = arith.truncf %565 : vector<8x8xf32> to vector<8x8xbf16>
    %cst_176 = arith.constant dense<0.000000e+00> : vector<8x8xf32>
    %567 = tpu.matmul %564, %566, %cst_176 {dimension_numbers = #tpu.dot_dimension_numbers<[1], [0], [0], [1], [0, 0, 1, 1], [], []>} : vector<8x8xbf16>, vector<8x8xbf16>, vector<8x8xf32> -> vector<8x8xf32>
    %568 = vector.extract_strided_slice %505 {offsets = [0, 24], sizes = [8, 8], strides = [1, 1]} : vector<8x32xf32> to vector<8x8xf32>
    %569 = arith.truncf %568 : vector<8x8xf32> to vector<8x8xbf16>
    %570 = vector.extract_strided_slice %506 {offsets = [0, 24], sizes = [8, 8], strides = [1, 1]} : vector<8x32xf32> to vector<8x8xf32>
    %571 = arith.truncf %570 : vector<8x8xf32> to vector<8x8xbf16>
    %cst_177 = arith.constant dense<0.000000e+00> : vector<8x8xf32>
    %572 = tpu.matmul %569, %571, %cst_177 {dimension_numbers = #tpu.dot_dimension_numbers<[1], [1], [0], [0], [0, 0, 1, 0], [], []>} : vector<8x8xbf16>, vector<8x8xbf16>, vector<8x8xf32> -> vector<8x8xf32>
    %573 = arith.addf %572, %8 : vector<8x8xf32>
    %cst_178 = arith.constant dense<0xFF800000> : vector<8xf32>
    %574 = vector.multi_reduction <maximumf>, %573, %cst_178 [1] : vector<8x8xf32> to vector<8xf32>
    %575 = vector.shape_cast %574 : vector<8xf32> to vector<8x1xf32>
    %576 = vector.broadcast %575 : vector<8x1xf32> to vector<8x8xf32>
    %577 = arith.subf %573, %576 : vector<8x8xf32>
    %578 = math.exp %577 : vector<8x8xf32>
    %cst_179 = arith.constant dense<0.000000e+00> : vector<8xf32>
    %579 = vector.multi_reduction <add>, %578, %cst_179 [1] : vector<8x8xf32> to vector<8xf32>
    %580 = vector.shape_cast %579 : vector<8xf32> to vector<8x1xf32>
    %581 = tpu.reciprocal %580 {approx = true} : vector<8x1xf32> -> vector<8x1xf32>
    %582 = vector.broadcast %581 : vector<8x1xf32> to vector<8x8xf32>
    %583 = arith.mulf %578, %582 : vector<8x8xf32>
    %584 = arith.truncf %583 : vector<8x8xf32> to vector<8x8xbf16>
    %585 = vector.extract_strided_slice %507 {offsets = [0, 24], sizes = [8, 8], strides = [1, 1]} : vector<8x32xf32> to vector<8x8xf32>
    %586 = arith.truncf %585 : vector<8x8xf32> to vector<8x8xbf16>
    %cst_180 = arith.constant dense<0.000000e+00> : vector<8x8xf32>
    %587 = tpu.matmul %584, %586, %cst_180 {dimension_numbers = #tpu.dot_dimension_numbers<[1], [0], [0], [1], [0, 0, 1, 1], [], []>} : vector<8x8xbf16>, vector<8x8xbf16>, vector<8x8xf32> -> vector<8x8xf32>
    %588 = tpu.concatenate %527, %547, %567, %587 in 1 : vector<8x8xf32>, vector<8x8xf32>, vector<8x8xf32>, vector<8x8xf32> -> vector<8x32xf32>
    %589 = vector.extract_strided_slice %492 {offsets = [8, 0], sizes = [8, 32], strides = [1, 1]} : vector<16x32xf32> to vector<8x32xf32>
    %590 = vector.extract_strided_slice %498 {offsets = [8, 0], sizes = [8, 32], strides = [1, 1]} : vector<16x32xf32> to vector<8x32xf32>
    %591 = vector.extract_strided_slice %504 {offsets = [8, 0], sizes = [8, 32], strides = [1, 1]} : vector<16x32xf32> to vector<8x32xf32>
    %592 = vector.extract_strided_slice %589 {offsets = [0, 0], sizes = [8, 8], strides = [1, 1]} : vector<8x32xf32> to vector<8x8xf32>
    %593 = arith.truncf %592 : vector<8x8xf32> to vector<8x8xbf16>
    %594 = vector.extract_strided_slice %590 {offsets = [0, 0], sizes = [8, 8], strides = [1, 1]} : vector<8x32xf32> to vector<8x8xf32>
    %595 = arith.truncf %594 : vector<8x8xf32> to vector<8x8xbf16>
    %cst_181 = arith.constant dense<0.000000e+00> : vector<8x8xf32>
    %596 = tpu.matmul %593, %595, %cst_181 {dimension_numbers = #tpu.dot_dimension_numbers<[1], [1], [0], [0], [0, 0, 1, 0], [], []>} : vector<8x8xbf16>, vector<8x8xbf16>, vector<8x8xf32> -> vector<8x8xf32>
    %597 = arith.addf %596, %11 : vector<8x8xf32>
    %cst_182 = arith.constant dense<0xFF800000> : vector<8xf32>
    %598 = vector.multi_reduction <maximumf>, %597, %cst_182 [1] : vector<8x8xf32> to vector<8xf32>
    %599 = vector.shape_cast %598 : vector<8xf32> to vector<8x1xf32>
    %600 = vector.broadcast %599 : vector<8x1xf32> to vector<8x8xf32>
    %601 = arith.subf %597, %600 : vector<8x8xf32>
    %602 = math.exp %601 : vector<8x8xf32>
    %cst_183 = arith.constant dense<0.000000e+00> : vector<8xf32>
    %603 = vector.multi_reduction <add>, %602, %cst_183 [1] : vector<8x8xf32> to vector<8xf32>
    %604 = vector.shape_cast %603 : vector<8xf32> to vector<8x1xf32>
    %605 = tpu.reciprocal %604 {approx = true} : vector<8x1xf32> -> vector<8x1xf32>
    %606 = vector.broadcast %605 : vector<8x1xf32> to vector<8x8xf32>
    %607 = arith.mulf %602, %606 : vector<8x8xf32>
    %608 = arith.truncf %607 : vector<8x8xf32> to vector<8x8xbf16>
    %609 = vector.extract_strided_slice %591 {offsets = [0, 0], sizes = [8, 8], strides = [1, 1]} : vector<8x32xf32> to vector<8x8xf32>
    %610 = arith.truncf %609 : vector<8x8xf32> to vector<8x8xbf16>
    %cst_184 = arith.constant dense<0.000000e+00> : vector<8x8xf32>
    %611 = tpu.matmul %608, %610, %cst_184 {dimension_numbers = #tpu.dot_dimension_numbers<[1], [0], [0], [1], [0, 0, 1, 1], [], []>} : vector<8x8xbf16>, vector<8x8xbf16>, vector<8x8xf32> -> vector<8x8xf32>
    %612 = vector.extract_strided_slice %589 {offsets = [0, 8], sizes = [8, 8], strides = [1, 1]} : vector<8x32xf32> to vector<8x8xf32>
    %613 = arith.truncf %612 : vector<8x8xf32> to vector<8x8xbf16>
    %614 = vector.extract_strided_slice %590 {offsets = [0, 8], sizes = [8, 8], strides = [1, 1]} : vector<8x32xf32> to vector<8x8xf32>
    %615 = arith.truncf %614 : vector<8x8xf32> to vector<8x8xbf16>
    %cst_185 = arith.constant dense<0.000000e+00> : vector<8x8xf32>
    %616 = tpu.matmul %613, %615, %cst_185 {dimension_numbers = #tpu.dot_dimension_numbers<[1], [1], [0], [0], [0, 0, 1, 0], [], []>} : vector<8x8xbf16>, vector<8x8xbf16>, vector<8x8xf32> -> vector<8x8xf32>
    %617 = arith.addf %616, %11 : vector<8x8xf32>
    %cst_186 = arith.constant dense<0xFF800000> : vector<8xf32>
    %618 = vector.multi_reduction <maximumf>, %617, %cst_186 [1] : vector<8x8xf32> to vector<8xf32>
    %619 = vector.shape_cast %618 : vector<8xf32> to vector<8x1xf32>
    %620 = vector.broadcast %619 : vector<8x1xf32> to vector<8x8xf32>
    %621 = arith.subf %617, %620 : vector<8x8xf32>
    %622 = math.exp %621 : vector<8x8xf32>
    %cst_187 = arith.constant dense<0.000000e+00> : vector<8xf32>
    %623 = vector.multi_reduction <add>, %622, %cst_187 [1] : vector<8x8xf32> to vector<8xf32>
    %624 = vector.shape_cast %623 : vector<8xf32> to vector<8x1xf32>
    %625 = tpu.reciprocal %624 {approx = true} : vector<8x1xf32> -> vector<8x1xf32>
    %626 = vector.broadcast %625 : vector<8x1xf32> to vector<8x8xf32>
    %627 = arith.mulf %622, %626 : vector<8x8xf32>
    %628 = arith.truncf %627 : vector<8x8xf32> to vector<8x8xbf16>
    %629 = vector.extract_strided_slice %591 {offsets = [0, 8], sizes = [8, 8], strides = [1, 1]} : vector<8x32xf32> to vector<8x8xf32>
    %630 = arith.truncf %629 : vector<8x8xf32> to vector<8x8xbf16>
    %cst_188 = arith.constant dense<0.000000e+00> : vector<8x8xf32>
    %631 = tpu.matmul %628, %630, %cst_188 {dimension_numbers = #tpu.dot_dimension_numbers<[1], [0], [0], [1], [0, 0, 1, 1], [], []>} : vector<8x8xbf16>, vector<8x8xbf16>, vector<8x8xf32> -> vector<8x8xf32>
    %632 = vector.extract_strided_slice %589 {offsets = [0, 16], sizes = [8, 8], strides = [1, 1]} : vector<8x32xf32> to vector<8x8xf32>
    %633 = arith.truncf %632 : vector<8x8xf32> to vector<8x8xbf16>
    %634 = vector.extract_strided_slice %590 {offsets = [0, 16], sizes = [8, 8], strides = [1, 1]} : vector<8x32xf32> to vector<8x8xf32>
    %635 = arith.truncf %634 : vector<8x8xf32> to vector<8x8xbf16>
    %cst_189 = arith.constant dense<0.000000e+00> : vector<8x8xf32>
    %636 = tpu.matmul %633, %635, %cst_189 {dimension_numbers = #tpu.dot_dimension_numbers<[1], [1], [0], [0], [0, 0, 1, 0], [], []>} : vector<8x8xbf16>, vector<8x8xbf16>, vector<8x8xf32> -> vector<8x8xf32>
    %637 = arith.addf %636, %11 : vector<8x8xf32>
    %cst_190 = arith.constant dense<0xFF800000> : vector<8xf32>
    %638 = vector.multi_reduction <maximumf>, %637, %cst_190 [1] : vector<8x8xf32> to vector<8xf32>
    %639 = vector.shape_cast %638 : vector<8xf32> to vector<8x1xf32>
    %640 = vector.broadcast %639 : vector<8x1xf32> to vector<8x8xf32>
    %641 = arith.subf %637, %640 : vector<8x8xf32>
    %642 = math.exp %641 : vector<8x8xf32>
    %cst_191 = arith.constant dense<0.000000e+00> : vector<8xf32>
    %643 = vector.multi_reduction <add>, %642, %cst_191 [1] : vector<8x8xf32> to vector<8xf32>
    %644 = vector.shape_cast %643 : vector<8xf32> to vector<8x1xf32>
    %645 = tpu.reciprocal %644 {approx = true} : vector<8x1xf32> -> vector<8x1xf32>
    %646 = vector.broadcast %645 : vector<8x1xf32> to vector<8x8xf32>
    %647 = arith.mulf %642, %646 : vector<8x8xf32>
    %648 = arith.truncf %647 : vector<8x8xf32> to vector<8x8xbf16>
    %649 = vector.extract_strided_slice %591 {offsets = [0, 16], sizes = [8, 8], strides = [1, 1]} : vector<8x32xf32> to vector<8x8xf32>
    %650 = arith.truncf %649 : vector<8x8xf32> to vector<8x8xbf16>
    %cst_192 = arith.constant dense<0.000000e+00> : vector<8x8xf32>
    %651 = tpu.matmul %648, %650, %cst_192 {dimension_numbers = #tpu.dot_dimension_numbers<[1], [0], [0], [1], [0, 0, 1, 1], [], []>} : vector<8x8xbf16>, vector<8x8xbf16>, vector<8x8xf32> -> vector<8x8xf32>
    %652 = vector.extract_strided_slice %589 {offsets = [0, 24], sizes = [8, 8], strides = [1, 1]} : vector<8x32xf32> to vector<8x8xf32>
    %653 = arith.truncf %652 : vector<8x8xf32> to vector<8x8xbf16>
    %654 = vector.extract_strided_slice %590 {offsets = [0, 24], sizes = [8, 8], strides = [1, 1]} : vector<8x32xf32> to vector<8x8xf32>
    %655 = arith.truncf %654 : vector<8x8xf32> to vector<8x8xbf16>
    %cst_193 = arith.constant dense<0.000000e+00> : vector<8x8xf32>
    %656 = tpu.matmul %653, %655, %cst_193 {dimension_numbers = #tpu.dot_dimension_numbers<[1], [1], [0], [0], [0, 0, 1, 0], [], []>} : vector<8x8xbf16>, vector<8x8xbf16>, vector<8x8xf32> -> vector<8x8xf32>
    %657 = arith.addf %656, %11 : vector<8x8xf32>
    %cst_194 = arith.constant dense<0xFF800000> : vector<8xf32>
    %658 = vector.multi_reduction <maximumf>, %657, %cst_194 [1] : vector<8x8xf32> to vector<8xf32>
    %659 = vector.shape_cast %658 : vector<8xf32> to vector<8x1xf32>
    %660 = vector.broadcast %659 : vector<8x1xf32> to vector<8x8xf32>
    %661 = arith.subf %657, %660 : vector<8x8xf32>
    %662 = math.exp %661 : vector<8x8xf32>
    %cst_195 = arith.constant dense<0.000000e+00> : vector<8xf32>
    %663 = vector.multi_reduction <add>, %662, %cst_195 [1] : vector<8x8xf32> to vector<8xf32>
    %664 = vector.shape_cast %663 : vector<8xf32> to vector<8x1xf32>
    %665 = tpu.reciprocal %664 {approx = true} : vector<8x1xf32> -> vector<8x1xf32>
    %666 = vector.broadcast %665 : vector<8x1xf32> to vector<8x8xf32>
    %667 = arith.mulf %662, %666 : vector<8x8xf32>
    %668 = arith.truncf %667 : vector<8x8xf32> to vector<8x8xbf16>
    %669 = vector.extract_strided_slice %591 {offsets = [0, 24], sizes = [8, 8], strides = [1, 1]} : vector<8x32xf32> to vector<8x8xf32>
    %670 = arith.truncf %669 : vector<8x8xf32> to vector<8x8xbf16>
    %cst_196 = arith.constant dense<0.000000e+00> : vector<8x8xf32>
    %671 = tpu.matmul %668, %670, %cst_196 {dimension_numbers = #tpu.dot_dimension_numbers<[1], [0], [0], [1], [0, 0, 1, 1], [], []>} : vector<8x8xbf16>, vector<8x8xbf16>, vector<8x8xf32> -> vector<8x8xf32>
    %672 = tpu.concatenate %611, %631, %651, %671 in 1 : vector<8x8xf32>, vector<8x8xf32>, vector<8x8xf32>, vector<8x8xf32> -> vector<8x32xf32>
    %673 = tpu.concatenate %588, %672 in 0 : vector<8x32xf32>, vector<8x32xf32> -> vector<16x32xf32>
    %674 = arith.truncf %673 : vector<16x32xf32> to vector<16x32xbf16>
    %c0_197 = arith.constant 0 : index
    %c0_198 = arith.constant 0 : index
    %675 = vector.load %arg38[%c0_197, %c0_198] : memref<32x32xbf16, #tpu.memory_space<vmem>>, vector<32x32xbf16>
    %cst_199 = arith.constant dense<0.000000e+00> : vector<16x32xf32>
    %676 = tpu.matmul %674, %675, %cst_199 {dimension_numbers = #tpu.dot_dimension_numbers<[1], [0], [0], [1], [0, 0, 1, 1], [], []>} : vector<16x32xbf16>, vector<32x32xbf16>, vector<16x32xf32> -> vector<16x32xf32>
    %c0_200 = arith.constant 0 : index
    %c0_201 = arith.constant 0 : index
    %677 = vector.load %arg39[%c0_200, %c0_201] : memref<1x32xf32, #tpu.memory_space<vmem>>, vector<1x32xf32>
    %678 = vector.broadcast %677 : vector<1x32xf32> to vector<16x32xf32>
    %679 = arith.addf %676, %678 : vector<16x32xf32>
    %680 = arith.addf %486, %679 : vector<16x32xf32>
    %cst_202 = arith.constant dense<0.000000e+00> : vector<16xf32>
    %681 = vector.multi_reduction <add>, %680, %cst_202 [1] : vector<16x32xf32> to vector<16xf32>
    %682 = vector.shape_cast %681 : vector<16xf32> to vector<16x1xf32>
    %cst_203 = arith.constant 3.200000e+01 : f32
    %683 = vector.broadcast %cst_203 : f32 to vector<16x1xf32>
    %684 = arith.divf %682, %683 : vector<16x1xf32>
    %685 = vector.broadcast %684 : vector<16x1xf32> to vector<16x32xf32>
    %686 = arith.subf %680, %685 : vector<16x32xf32>
    %687 = arith.mulf %686, %686 : vector<16x32xf32>
    %cst_204 = arith.constant dense<0.000000e+00> : vector<16xf32>
    %688 = vector.multi_reduction <add>, %687, %cst_204 [1] : vector<16x32xf32> to vector<16xf32>
    %689 = vector.shape_cast %688 : vector<16xf32> to vector<16x1xf32>
    %cst_205 = arith.constant 3.200000e+01 : f32
    %690 = vector.broadcast %cst_205 : f32 to vector<16x1xf32>
    %691 = arith.divf %689, %690 : vector<16x1xf32>
    %cst_206 = arith.constant 9.99999974E-6 : f32
    %692 = vector.broadcast %cst_206 : f32 to vector<16x1xf32>
    %693 = arith.addf %691, %692 : vector<16x1xf32>
    %694 = math.rsqrt %693 : vector<16x1xf32>
    %695 = vector.broadcast %694 : vector<16x1xf32> to vector<16x32xf32>
    %696 = arith.mulf %686, %695 : vector<16x32xf32>
    %c0_207 = arith.constant 0 : index
    %c0_208 = arith.constant 0 : index
    %697 = vector.load %arg40[%c0_207, %c0_208] : memref<1x32xf32, #tpu.memory_space<vmem>>, vector<1x32xf32>
    %698 = vector.broadcast %697 : vector<1x32xf32> to vector<16x32xf32>
    %699 = arith.mulf %696, %698 : vector<16x32xf32>
    %c0_209 = arith.constant 0 : index
    %c0_210 = arith.constant 0 : index
    %700 = vector.load %arg41[%c0_209, %c0_210] : memref<1x32xf32, #tpu.memory_space<vmem>>, vector<1x32xf32>
    %701 = vector.broadcast %700 : vector<1x32xf32> to vector<16x32xf32>
    %702 = arith.addf %699, %701 : vector<16x32xf32>
    %703 = arith.truncf %702 : vector<16x32xf32> to vector<16x32xbf16>
    %c0_211 = arith.constant 0 : index
    %c0_212 = arith.constant 0 : index
    %704 = vector.load %arg42[%c0_211, %c0_212] : memref<32x32xbf16, #tpu.memory_space<vmem>>, vector<32x32xbf16>
    %cst_213 = arith.constant dense<0.000000e+00> : vector<16x32xf32>
    %705 = tpu.matmul %703, %704, %cst_213 {dimension_numbers = #tpu.dot_dimension_numbers<[1], [0], [0], [1], [0, 0, 1, 1], [], []>} : vector<16x32xbf16>, vector<32x32xbf16>, vector<16x32xf32> -> vector<16x32xf32>
    %c0_214 = arith.constant 0 : index
    %c0_215 = arith.constant 0 : index
    %706 = vector.load %arg43[%c0_214, %c0_215] : memref<1x32xf32, #tpu.memory_space<vmem>>, vector<1x32xf32>
    %707 = vector.broadcast %706 : vector<1x32xf32> to vector<16x32xf32>
    %708 = arith.addf %705, %707 : vector<16x32xf32>
    %c0_216 = arith.constant 0 : index
    %c0_217 = arith.constant 0 : index
    %709 = vector.load %arg44[%c0_216, %c0_217] : memref<32x32xbf16, #tpu.memory_space<vmem>>, vector<32x32xbf16>
    %cst_218 = arith.constant dense<0.000000e+00> : vector<32x32xf32>
    %710 = tpu.matmul %2, %709, %cst_218 {dimension_numbers = #tpu.dot_dimension_numbers<[1], [0], [0], [1], [0, 0, 1, 1], [], []>} : vector<32x32xbf16>, vector<32x32xbf16>, vector<32x32xf32> -> vector<32x32xf32>
    %c0_219 = arith.constant 0 : index
    %c0_220 = arith.constant 0 : index
    %711 = vector.load %arg45[%c0_219, %c0_220] : memref<1x32xf32, #tpu.memory_space<vmem>>, vector<1x32xf32>
    %712 = vector.broadcast %711 : vector<1x32xf32> to vector<32x32xf32>
    %713 = arith.addf %710, %712 : vector<32x32xf32>
    %c0_221 = arith.constant 0 : index
    %c0_222 = arith.constant 0 : index
    %714 = vector.load %arg46[%c0_221, %c0_222] : memref<32x32xbf16, #tpu.memory_space<vmem>>, vector<32x32xbf16>
    %cst_223 = arith.constant dense<0.000000e+00> : vector<32x32xf32>
    %715 = tpu.matmul %2, %714, %cst_223 {dimension_numbers = #tpu.dot_dimension_numbers<[1], [0], [0], [1], [0, 0, 1, 1], [], []>} : vector<32x32xbf16>, vector<32x32xbf16>, vector<32x32xf32> -> vector<32x32xf32>
    %c0_224 = arith.constant 0 : index
    %c0_225 = arith.constant 0 : index
    %716 = vector.load %arg47[%c0_224, %c0_225] : memref<1x32xf32, #tpu.memory_space<vmem>>, vector<1x32xf32>
    %717 = vector.broadcast %716 : vector<1x32xf32> to vector<32x32xf32>
    %718 = arith.addf %715, %717 : vector<32x32xf32>
    %719 = vector.extract_strided_slice %708 {offsets = [0, 0], sizes = [8, 32], strides = [1, 1]} : vector<16x32xf32> to vector<8x32xf32>
    %720 = vector.extract_strided_slice %713 {offsets = [0, 0], sizes = [16, 32], strides = [1, 1]} : vector<32x32xf32> to vector<16x32xf32>
    %721 = vector.extract_strided_slice %718 {offsets = [0, 0], sizes = [16, 32], strides = [1, 1]} : vector<32x32xf32> to vector<16x32xf32>
    %722 = vector.extract_strided_slice %719 {offsets = [0, 0], sizes = [8, 8], strides = [1, 1]} : vector<8x32xf32> to vector<8x8xf32>
    %723 = arith.truncf %722 : vector<8x8xf32> to vector<8x8xbf16>
    %724 = vector.extract_strided_slice %720 {offsets = [0, 0], sizes = [16, 8], strides = [1, 1]} : vector<16x32xf32> to vector<16x8xf32>
    %725 = arith.truncf %724 : vector<16x8xf32> to vector<16x8xbf16>
    %cst_226 = arith.constant dense<0.000000e+00> : vector<8x16xf32>
    %726 = tpu.matmul %723, %725, %cst_226 {dimension_numbers = #tpu.dot_dimension_numbers<[1], [1], [0], [0], [0, 0, 1, 0], [], []>} : vector<8x8xbf16>, vector<16x8xbf16>, vector<8x16xf32> -> vector<8x16xf32>
    %727 = vector.broadcast %5 : vector<1x16xf32> to vector<8x16xf32>
    %728 = arith.addf %726, %727 : vector<8x16xf32>
    %cst_227 = arith.constant dense<0xFF800000> : vector<8xf32>
    %729 = vector.multi_reduction <maximumf>, %728, %cst_227 [1] : vector<8x16xf32> to vector<8xf32>
    %730 = vector.shape_cast %729 : vector<8xf32> to vector<8x1xf32>
    %731 = vector.broadcast %730 : vector<8x1xf32> to vector<8x16xf32>
    %732 = arith.subf %728, %731 : vector<8x16xf32>
    %733 = math.exp %732 : vector<8x16xf32>
    %cst_228 = arith.constant dense<0.000000e+00> : vector<8xf32>
    %734 = vector.multi_reduction <add>, %733, %cst_228 [1] : vector<8x16xf32> to vector<8xf32>
    %735 = vector.shape_cast %734 : vector<8xf32> to vector<8x1xf32>
    %736 = tpu.reciprocal %735 {approx = true} : vector<8x1xf32> -> vector<8x1xf32>
    %737 = vector.broadcast %736 : vector<8x1xf32> to vector<8x16xf32>
    %738 = arith.mulf %733, %737 : vector<8x16xf32>
    %739 = arith.truncf %738 : vector<8x16xf32> to vector<8x16xbf16>
    %740 = vector.extract_strided_slice %721 {offsets = [0, 0], sizes = [16, 8], strides = [1, 1]} : vector<16x32xf32> to vector<16x8xf32>
    %741 = arith.truncf %740 : vector<16x8xf32> to vector<16x8xbf16>
    %cst_229 = arith.constant dense<0.000000e+00> : vector<8x8xf32>
    %742 = tpu.matmul %739, %741, %cst_229 {dimension_numbers = #tpu.dot_dimension_numbers<[1], [0], [0], [1], [0, 0, 1, 1], [], []>} : vector<8x16xbf16>, vector<16x8xbf16>, vector<8x8xf32> -> vector<8x8xf32>
    %743 = vector.extract_strided_slice %719 {offsets = [0, 8], sizes = [8, 8], strides = [1, 1]} : vector<8x32xf32> to vector<8x8xf32>
    %744 = arith.truncf %743 : vector<8x8xf32> to vector<8x8xbf16>
    %745 = vector.extract_strided_slice %720 {offsets = [0, 8], sizes = [16, 8], strides = [1, 1]} : vector<16x32xf32> to vector<16x8xf32>
    %746 = arith.truncf %745 : vector<16x8xf32> to vector<16x8xbf16>
    %cst_230 = arith.constant dense<0.000000e+00> : vector<8x16xf32>
    %747 = tpu.matmul %744, %746, %cst_230 {dimension_numbers = #tpu.dot_dimension_numbers<[1], [1], [0], [0], [0, 0, 1, 0], [], []>} : vector<8x8xbf16>, vector<16x8xbf16>, vector<8x16xf32> -> vector<8x16xf32>
    %748 = vector.broadcast %5 : vector<1x16xf32> to vector<8x16xf32>
    %749 = arith.addf %747, %748 : vector<8x16xf32>
    %cst_231 = arith.constant dense<0xFF800000> : vector<8xf32>
    %750 = vector.multi_reduction <maximumf>, %749, %cst_231 [1] : vector<8x16xf32> to vector<8xf32>
    %751 = vector.shape_cast %750 : vector<8xf32> to vector<8x1xf32>
    %752 = vector.broadcast %751 : vector<8x1xf32> to vector<8x16xf32>
    %753 = arith.subf %749, %752 : vector<8x16xf32>
    %754 = math.exp %753 : vector<8x16xf32>
    %cst_232 = arith.constant dense<0.000000e+00> : vector<8xf32>
    %755 = vector.multi_reduction <add>, %754, %cst_232 [1] : vector<8x16xf32> to vector<8xf32>
    %756 = vector.shape_cast %755 : vector<8xf32> to vector<8x1xf32>
    %757 = tpu.reciprocal %756 {approx = true} : vector<8x1xf32> -> vector<8x1xf32>
    %758 = vector.broadcast %757 : vector<8x1xf32> to vector<8x16xf32>
    %759 = arith.mulf %754, %758 : vector<8x16xf32>
    %760 = arith.truncf %759 : vector<8x16xf32> to vector<8x16xbf16>
    %761 = vector.extract_strided_slice %721 {offsets = [0, 8], sizes = [16, 8], strides = [1, 1]} : vector<16x32xf32> to vector<16x8xf32>
    %762 = arith.truncf %761 : vector<16x8xf32> to vector<16x8xbf16>
    %cst_233 = arith.constant dense<0.000000e+00> : vector<8x8xf32>
    %763 = tpu.matmul %760, %762, %cst_233 {dimension_numbers = #tpu.dot_dimension_numbers<[1], [0], [0], [1], [0, 0, 1, 1], [], []>} : vector<8x16xbf16>, vector<16x8xbf16>, vector<8x8xf32> -> vector<8x8xf32>
    %764 = vector.extract_strided_slice %719 {offsets = [0, 16], sizes = [8, 8], strides = [1, 1]} : vector<8x32xf32> to vector<8x8xf32>
    %765 = arith.truncf %764 : vector<8x8xf32> to vector<8x8xbf16>
    %766 = vector.extract_strided_slice %720 {offsets = [0, 16], sizes = [16, 8], strides = [1, 1]} : vector<16x32xf32> to vector<16x8xf32>
    %767 = arith.truncf %766 : vector<16x8xf32> to vector<16x8xbf16>
    %cst_234 = arith.constant dense<0.000000e+00> : vector<8x16xf32>
    %768 = tpu.matmul %765, %767, %cst_234 {dimension_numbers = #tpu.dot_dimension_numbers<[1], [1], [0], [0], [0, 0, 1, 0], [], []>} : vector<8x8xbf16>, vector<16x8xbf16>, vector<8x16xf32> -> vector<8x16xf32>
    %769 = vector.broadcast %5 : vector<1x16xf32> to vector<8x16xf32>
    %770 = arith.addf %768, %769 : vector<8x16xf32>
    %cst_235 = arith.constant dense<0xFF800000> : vector<8xf32>
    %771 = vector.multi_reduction <maximumf>, %770, %cst_235 [1] : vector<8x16xf32> to vector<8xf32>
    %772 = vector.shape_cast %771 : vector<8xf32> to vector<8x1xf32>
    %773 = vector.broadcast %772 : vector<8x1xf32> to vector<8x16xf32>
    %774 = arith.subf %770, %773 : vector<8x16xf32>
    %775 = math.exp %774 : vector<8x16xf32>
    %cst_236 = arith.constant dense<0.000000e+00> : vector<8xf32>
    %776 = vector.multi_reduction <add>, %775, %cst_236 [1] : vector<8x16xf32> to vector<8xf32>
    %777 = vector.shape_cast %776 : vector<8xf32> to vector<8x1xf32>
    %778 = tpu.reciprocal %777 {approx = true} : vector<8x1xf32> -> vector<8x1xf32>
    %779 = vector.broadcast %778 : vector<8x1xf32> to vector<8x16xf32>
    %780 = arith.mulf %775, %779 : vector<8x16xf32>
    %781 = arith.truncf %780 : vector<8x16xf32> to vector<8x16xbf16>
    %782 = vector.extract_strided_slice %721 {offsets = [0, 16], sizes = [16, 8], strides = [1, 1]} : vector<16x32xf32> to vector<16x8xf32>
    %783 = arith.truncf %782 : vector<16x8xf32> to vector<16x8xbf16>
    %cst_237 = arith.constant dense<0.000000e+00> : vector<8x8xf32>
    %784 = tpu.matmul %781, %783, %cst_237 {dimension_numbers = #tpu.dot_dimension_numbers<[1], [0], [0], [1], [0, 0, 1, 1], [], []>} : vector<8x16xbf16>, vector<16x8xbf16>, vector<8x8xf32> -> vector<8x8xf32>
    %785 = vector.extract_strided_slice %719 {offsets = [0, 24], sizes = [8, 8], strides = [1, 1]} : vector<8x32xf32> to vector<8x8xf32>
    %786 = arith.truncf %785 : vector<8x8xf32> to vector<8x8xbf16>
    %787 = vector.extract_strided_slice %720 {offsets = [0, 24], sizes = [16, 8], strides = [1, 1]} : vector<16x32xf32> to vector<16x8xf32>
    %788 = arith.truncf %787 : vector<16x8xf32> to vector<16x8xbf16>
    %cst_238 = arith.constant dense<0.000000e+00> : vector<8x16xf32>
    %789 = tpu.matmul %786, %788, %cst_238 {dimension_numbers = #tpu.dot_dimension_numbers<[1], [1], [0], [0], [0, 0, 1, 0], [], []>} : vector<8x8xbf16>, vector<16x8xbf16>, vector<8x16xf32> -> vector<8x16xf32>
    %790 = vector.broadcast %5 : vector<1x16xf32> to vector<8x16xf32>
    %791 = arith.addf %789, %790 : vector<8x16xf32>
    %cst_239 = arith.constant dense<0xFF800000> : vector<8xf32>
    %792 = vector.multi_reduction <maximumf>, %791, %cst_239 [1] : vector<8x16xf32> to vector<8xf32>
    %793 = vector.shape_cast %792 : vector<8xf32> to vector<8x1xf32>
    %794 = vector.broadcast %793 : vector<8x1xf32> to vector<8x16xf32>
    %795 = arith.subf %791, %794 : vector<8x16xf32>
    %796 = math.exp %795 : vector<8x16xf32>
    %cst_240 = arith.constant dense<0.000000e+00> : vector<8xf32>
    %797 = vector.multi_reduction <add>, %796, %cst_240 [1] : vector<8x16xf32> to vector<8xf32>
    %798 = vector.shape_cast %797 : vector<8xf32> to vector<8x1xf32>
    %799 = tpu.reciprocal %798 {approx = true} : vector<8x1xf32> -> vector<8x1xf32>
    %800 = vector.broadcast %799 : vector<8x1xf32> to vector<8x16xf32>
    %801 = arith.mulf %796, %800 : vector<8x16xf32>
    %802 = arith.truncf %801 : vector<8x16xf32> to vector<8x16xbf16>
    %803 = vector.extract_strided_slice %721 {offsets = [0, 24], sizes = [16, 8], strides = [1, 1]} : vector<16x32xf32> to vector<16x8xf32>
    %804 = arith.truncf %803 : vector<16x8xf32> to vector<16x8xbf16>
    %cst_241 = arith.constant dense<0.000000e+00> : vector<8x8xf32>
    %805 = tpu.matmul %802, %804, %cst_241 {dimension_numbers = #tpu.dot_dimension_numbers<[1], [0], [0], [1], [0, 0, 1, 1], [], []>} : vector<8x16xbf16>, vector<16x8xbf16>, vector<8x8xf32> -> vector<8x8xf32>
    %806 = tpu.concatenate %742, %763, %784, %805 in 1 : vector<8x8xf32>, vector<8x8xf32>, vector<8x8xf32>, vector<8x8xf32> -> vector<8x32xf32>
    %807 = vector.extract_strided_slice %708 {offsets = [8, 0], sizes = [8, 32], strides = [1, 1]} : vector<16x32xf32> to vector<8x32xf32>
    %808 = vector.extract_strided_slice %713 {offsets = [16, 0], sizes = [16, 32], strides = [1, 1]} : vector<32x32xf32> to vector<16x32xf32>
    %809 = vector.extract_strided_slice %718 {offsets = [16, 0], sizes = [16, 32], strides = [1, 1]} : vector<32x32xf32> to vector<16x32xf32>
    %810 = vector.extract_strided_slice %807 {offsets = [0, 0], sizes = [8, 8], strides = [1, 1]} : vector<8x32xf32> to vector<8x8xf32>
    %811 = arith.truncf %810 : vector<8x8xf32> to vector<8x8xbf16>
    %812 = vector.extract_strided_slice %808 {offsets = [0, 0], sizes = [16, 8], strides = [1, 1]} : vector<16x32xf32> to vector<16x8xf32>
    %813 = arith.truncf %812 : vector<16x8xf32> to vector<16x8xbf16>
    %cst_242 = arith.constant dense<0.000000e+00> : vector<8x16xf32>
    %814 = tpu.matmul %811, %813, %cst_242 {dimension_numbers = #tpu.dot_dimension_numbers<[1], [1], [0], [0], [0, 0, 1, 0], [], []>} : vector<8x8xbf16>, vector<16x8xbf16>, vector<8x16xf32> -> vector<8x16xf32>
    %815 = vector.broadcast %5 : vector<1x16xf32> to vector<8x16xf32>
    %816 = arith.addf %814, %815 : vector<8x16xf32>
    %cst_243 = arith.constant dense<0xFF800000> : vector<8xf32>
    %817 = vector.multi_reduction <maximumf>, %816, %cst_243 [1] : vector<8x16xf32> to vector<8xf32>
    %818 = vector.shape_cast %817 : vector<8xf32> to vector<8x1xf32>
    %819 = vector.broadcast %818 : vector<8x1xf32> to vector<8x16xf32>
    %820 = arith.subf %816, %819 : vector<8x16xf32>
    %821 = math.exp %820 : vector<8x16xf32>
    %cst_244 = arith.constant dense<0.000000e+00> : vector<8xf32>
    %822 = vector.multi_reduction <add>, %821, %cst_244 [1] : vector<8x16xf32> to vector<8xf32>
    %823 = vector.shape_cast %822 : vector<8xf32> to vector<8x1xf32>
    %824 = tpu.reciprocal %823 {approx = true} : vector<8x1xf32> -> vector<8x1xf32>
    %825 = vector.broadcast %824 : vector<8x1xf32> to vector<8x16xf32>
    %826 = arith.mulf %821, %825 : vector<8x16xf32>
    %827 = arith.truncf %826 : vector<8x16xf32> to vector<8x16xbf16>
    %828 = vector.extract_strided_slice %809 {offsets = [0, 0], sizes = [16, 8], strides = [1, 1]} : vector<16x32xf32> to vector<16x8xf32>
    %829 = arith.truncf %828 : vector<16x8xf32> to vector<16x8xbf16>
    %cst_245 = arith.constant dense<0.000000e+00> : vector<8x8xf32>
    %830 = tpu.matmul %827, %829, %cst_245 {dimension_numbers = #tpu.dot_dimension_numbers<[1], [0], [0], [1], [0, 0, 1, 1], [], []>} : vector<8x16xbf16>, vector<16x8xbf16>, vector<8x8xf32> -> vector<8x8xf32>
    %831 = vector.extract_strided_slice %807 {offsets = [0, 8], sizes = [8, 8], strides = [1, 1]} : vector<8x32xf32> to vector<8x8xf32>
    %832 = arith.truncf %831 : vector<8x8xf32> to vector<8x8xbf16>
    %833 = vector.extract_strided_slice %808 {offsets = [0, 8], sizes = [16, 8], strides = [1, 1]} : vector<16x32xf32> to vector<16x8xf32>
    %834 = arith.truncf %833 : vector<16x8xf32> to vector<16x8xbf16>
    %cst_246 = arith.constant dense<0.000000e+00> : vector<8x16xf32>
    %835 = tpu.matmul %832, %834, %cst_246 {dimension_numbers = #tpu.dot_dimension_numbers<[1], [1], [0], [0], [0, 0, 1, 0], [], []>} : vector<8x8xbf16>, vector<16x8xbf16>, vector<8x16xf32> -> vector<8x16xf32>
    %836 = vector.broadcast %5 : vector<1x16xf32> to vector<8x16xf32>
    %837 = arith.addf %835, %836 : vector<8x16xf32>
    %cst_247 = arith.constant dense<0xFF800000> : vector<8xf32>
    %838 = vector.multi_reduction <maximumf>, %837, %cst_247 [1] : vector<8x16xf32> to vector<8xf32>
    %839 = vector.shape_cast %838 : vector<8xf32> to vector<8x1xf32>
    %840 = vector.broadcast %839 : vector<8x1xf32> to vector<8x16xf32>
    %841 = arith.subf %837, %840 : vector<8x16xf32>
    %842 = math.exp %841 : vector<8x16xf32>
    %cst_248 = arith.constant dense<0.000000e+00> : vector<8xf32>
    %843 = vector.multi_reduction <add>, %842, %cst_248 [1] : vector<8x16xf32> to vector<8xf32>
    %844 = vector.shape_cast %843 : vector<8xf32> to vector<8x1xf32>
    %845 = tpu.reciprocal %844 {approx = true} : vector<8x1xf32> -> vector<8x1xf32>
    %846 = vector.broadcast %845 : vector<8x1xf32> to vector<8x16xf32>
    %847 = arith.mulf %842, %846 : vector<8x16xf32>
    %848 = arith.truncf %847 : vector<8x16xf32> to vector<8x16xbf16>
    %849 = vector.extract_strided_slice %809 {offsets = [0, 8], sizes = [16, 8], strides = [1, 1]} : vector<16x32xf32> to vector<16x8xf32>
    %850 = arith.truncf %849 : vector<16x8xf32> to vector<16x8xbf16>
    %cst_249 = arith.constant dense<0.000000e+00> : vector<8x8xf32>
    %851 = tpu.matmul %848, %850, %cst_249 {dimension_numbers = #tpu.dot_dimension_numbers<[1], [0], [0], [1], [0, 0, 1, 1], [], []>} : vector<8x16xbf16>, vector<16x8xbf16>, vector<8x8xf32> -> vector<8x8xf32>
    %852 = vector.extract_strided_slice %807 {offsets = [0, 16], sizes = [8, 8], strides = [1, 1]} : vector<8x32xf32> to vector<8x8xf32>
    %853 = arith.truncf %852 : vector<8x8xf32> to vector<8x8xbf16>
    %854 = vector.extract_strided_slice %808 {offsets = [0, 16], sizes = [16, 8], strides = [1, 1]} : vector<16x32xf32> to vector<16x8xf32>
    %855 = arith.truncf %854 : vector<16x8xf32> to vector<16x8xbf16>
    %cst_250 = arith.constant dense<0.000000e+00> : vector<8x16xf32>
    %856 = tpu.matmul %853, %855, %cst_250 {dimension_numbers = #tpu.dot_dimension_numbers<[1], [1], [0], [0], [0, 0, 1, 0], [], []>} : vector<8x8xbf16>, vector<16x8xbf16>, vector<8x16xf32> -> vector<8x16xf32>
    %857 = vector.broadcast %5 : vector<1x16xf32> to vector<8x16xf32>
    %858 = arith.addf %856, %857 : vector<8x16xf32>
    %cst_251 = arith.constant dense<0xFF800000> : vector<8xf32>
    %859 = vector.multi_reduction <maximumf>, %858, %cst_251 [1] : vector<8x16xf32> to vector<8xf32>
    %860 = vector.shape_cast %859 : vector<8xf32> to vector<8x1xf32>
    %861 = vector.broadcast %860 : vector<8x1xf32> to vector<8x16xf32>
    %862 = arith.subf %858, %861 : vector<8x16xf32>
    %863 = math.exp %862 : vector<8x16xf32>
    %cst_252 = arith.constant dense<0.000000e+00> : vector<8xf32>
    %864 = vector.multi_reduction <add>, %863, %cst_252 [1] : vector<8x16xf32> to vector<8xf32>
    %865 = vector.shape_cast %864 : vector<8xf32> to vector<8x1xf32>
    %866 = tpu.reciprocal %865 {approx = true} : vector<8x1xf32> -> vector<8x1xf32>
    %867 = vector.broadcast %866 : vector<8x1xf32> to vector<8x16xf32>
    %868 = arith.mulf %863, %867 : vector<8x16xf32>
    %869 = arith.truncf %868 : vector<8x16xf32> to vector<8x16xbf16>
    %870 = vector.extract_strided_slice %809 {offsets = [0, 16], sizes = [16, 8], strides = [1, 1]} : vector<16x32xf32> to vector<16x8xf32>
    %871 = arith.truncf %870 : vector<16x8xf32> to vector<16x8xbf16>
    %cst_253 = arith.constant dense<0.000000e+00> : vector<8x8xf32>
    %872 = tpu.matmul %869, %871, %cst_253 {dimension_numbers = #tpu.dot_dimension_numbers<[1], [0], [0], [1], [0, 0, 1, 1], [], []>} : vector<8x16xbf16>, vector<16x8xbf16>, vector<8x8xf32> -> vector<8x8xf32>
    %873 = vector.extract_strided_slice %807 {offsets = [0, 24], sizes = [8, 8], strides = [1, 1]} : vector<8x32xf32> to vector<8x8xf32>
    %874 = arith.truncf %873 : vector<8x8xf32> to vector<8x8xbf16>
    %875 = vector.extract_strided_slice %808 {offsets = [0, 24], sizes = [16, 8], strides = [1, 1]} : vector<16x32xf32> to vector<16x8xf32>
    %876 = arith.truncf %875 : vector<16x8xf32> to vector<16x8xbf16>
    %cst_254 = arith.constant dense<0.000000e+00> : vector<8x16xf32>
    %877 = tpu.matmul %874, %876, %cst_254 {dimension_numbers = #tpu.dot_dimension_numbers<[1], [1], [0], [0], [0, 0, 1, 0], [], []>} : vector<8x8xbf16>, vector<16x8xbf16>, vector<8x16xf32> -> vector<8x16xf32>
    %878 = vector.broadcast %5 : vector<1x16xf32> to vector<8x16xf32>
    %879 = arith.addf %877, %878 : vector<8x16xf32>
    %cst_255 = arith.constant dense<0xFF800000> : vector<8xf32>
    %880 = vector.multi_reduction <maximumf>, %879, %cst_255 [1] : vector<8x16xf32> to vector<8xf32>
    %881 = vector.shape_cast %880 : vector<8xf32> to vector<8x1xf32>
    %882 = vector.broadcast %881 : vector<8x1xf32> to vector<8x16xf32>
    %883 = arith.subf %879, %882 : vector<8x16xf32>
    %884 = math.exp %883 : vector<8x16xf32>
    %cst_256 = arith.constant dense<0.000000e+00> : vector<8xf32>
    %885 = vector.multi_reduction <add>, %884, %cst_256 [1] : vector<8x16xf32> to vector<8xf32>
    %886 = vector.shape_cast %885 : vector<8xf32> to vector<8x1xf32>
    %887 = tpu.reciprocal %886 {approx = true} : vector<8x1xf32> -> vector<8x1xf32>
    %888 = vector.broadcast %887 : vector<8x1xf32> to vector<8x16xf32>
    %889 = arith.mulf %884, %888 : vector<8x16xf32>
    %890 = arith.truncf %889 : vector<8x16xf32> to vector<8x16xbf16>
    %891 = vector.extract_strided_slice %809 {offsets = [0, 24], sizes = [16, 8], strides = [1, 1]} : vector<16x32xf32> to vector<16x8xf32>
    %892 = arith.truncf %891 : vector<16x8xf32> to vector<16x8xbf16>
    %cst_257 = arith.constant dense<0.000000e+00> : vector<8x8xf32>
    %893 = tpu.matmul %890, %892, %cst_257 {dimension_numbers = #tpu.dot_dimension_numbers<[1], [0], [0], [1], [0, 0, 1, 1], [], []>} : vector<8x16xbf16>, vector<16x8xbf16>, vector<8x8xf32> -> vector<8x8xf32>
    %894 = tpu.concatenate %830, %851, %872, %893 in 1 : vector<8x8xf32>, vector<8x8xf32>, vector<8x8xf32>, vector<8x8xf32> -> vector<8x32xf32>
    %895 = tpu.concatenate %806, %894 in 0 : vector<8x32xf32>, vector<8x32xf32> -> vector<16x32xf32>
    %896 = arith.truncf %895 : vector<16x32xf32> to vector<16x32xbf16>
    %c0_258 = arith.constant 0 : index
    %c0_259 = arith.constant 0 : index
    %897 = vector.load %arg48[%c0_258, %c0_259] : memref<32x32xbf16, #tpu.memory_space<vmem>>, vector<32x32xbf16>
    %cst_260 = arith.constant dense<0.000000e+00> : vector<16x32xf32>
    %898 = tpu.matmul %896, %897, %cst_260 {dimension_numbers = #tpu.dot_dimension_numbers<[1], [0], [0], [1], [0, 0, 1, 1], [], []>} : vector<16x32xbf16>, vector<32x32xbf16>, vector<16x32xf32> -> vector<16x32xf32>
    %c0_261 = arith.constant 0 : index
    %c0_262 = arith.constant 0 : index
    %899 = vector.load %arg49[%c0_261, %c0_262] : memref<1x32xf32, #tpu.memory_space<vmem>>, vector<1x32xf32>
    %900 = vector.broadcast %899 : vector<1x32xf32> to vector<16x32xf32>
    %901 = arith.addf %898, %900 : vector<16x32xf32>
    %902 = arith.addf %702, %901 : vector<16x32xf32>
    %cst_263 = arith.constant dense<0.000000e+00> : vector<16xf32>
    %903 = vector.multi_reduction <add>, %902, %cst_263 [1] : vector<16x32xf32> to vector<16xf32>
    %904 = vector.shape_cast %903 : vector<16xf32> to vector<16x1xf32>
    %cst_264 = arith.constant 3.200000e+01 : f32
    %905 = vector.broadcast %cst_264 : f32 to vector<16x1xf32>
    %906 = arith.divf %904, %905 : vector<16x1xf32>
    %907 = vector.broadcast %906 : vector<16x1xf32> to vector<16x32xf32>
    %908 = arith.subf %902, %907 : vector<16x32xf32>
    %909 = arith.mulf %908, %908 : vector<16x32xf32>
    %cst_265 = arith.constant dense<0.000000e+00> : vector<16xf32>
    %910 = vector.multi_reduction <add>, %909, %cst_265 [1] : vector<16x32xf32> to vector<16xf32>
    %911 = vector.shape_cast %910 : vector<16xf32> to vector<16x1xf32>
    %cst_266 = arith.constant 3.200000e+01 : f32
    %912 = vector.broadcast %cst_266 : f32 to vector<16x1xf32>
    %913 = arith.divf %911, %912 : vector<16x1xf32>
    %cst_267 = arith.constant 9.99999974E-6 : f32
    %914 = vector.broadcast %cst_267 : f32 to vector<16x1xf32>
    %915 = arith.addf %913, %914 : vector<16x1xf32>
    %916 = math.rsqrt %915 : vector<16x1xf32>
    %917 = vector.broadcast %916 : vector<16x1xf32> to vector<16x32xf32>
    %918 = arith.mulf %908, %917 : vector<16x32xf32>
    %c0_268 = arith.constant 0 : index
    %c0_269 = arith.constant 0 : index
    %919 = vector.load %arg50[%c0_268, %c0_269] : memref<1x32xf32, #tpu.memory_space<vmem>>, vector<1x32xf32>
    %920 = vector.broadcast %919 : vector<1x32xf32> to vector<16x32xf32>
    %921 = arith.mulf %918, %920 : vector<16x32xf32>
    %c0_270 = arith.constant 0 : index
    %c0_271 = arith.constant 0 : index
    %922 = vector.load %arg51[%c0_270, %c0_271] : memref<1x32xf32, #tpu.memory_space<vmem>>, vector<1x32xf32>
    %923 = vector.broadcast %922 : vector<1x32xf32> to vector<16x32xf32>
    %924 = arith.addf %921, %923 : vector<16x32xf32>
    %925 = arith.truncf %924 : vector<16x32xf32> to vector<16x32xbf16>
    %c0_272 = arith.constant 0 : index
    %c0_273 = arith.constant 0 : index
    %926 = vector.load %arg52[%c0_272, %c0_273] : memref<32x64xbf16, #tpu.memory_space<vmem>>, vector<32x64xbf16>
    %cst_274 = arith.constant dense<0.000000e+00> : vector<16x64xf32>
    %927 = tpu.matmul %925, %926, %cst_274 {dimension_numbers = #tpu.dot_dimension_numbers<[1], [0], [0], [1], [0, 0, 1, 1], [], []>} : vector<16x32xbf16>, vector<32x64xbf16>, vector<16x64xf32> -> vector<16x64xf32>
    %c0_275 = arith.constant 0 : index
    %c0_276 = arith.constant 0 : index
    %928 = vector.load %arg53[%c0_275, %c0_276] : memref<1x64xf32, #tpu.memory_space<vmem>>, vector<1x64xf32>
    %929 = vector.broadcast %928 : vector<1x64xf32> to vector<16x64xf32>
    %930 = arith.addf %927, %929 : vector<16x64xf32>
    %cst_277 = arith.constant 0.000000e+00 : f32
    %931 = vector.broadcast %cst_277 : f32 to vector<16x64xf32>
    %932 = arith.maximumf %930, %931 : vector<16x64xf32>
    %933 = arith.truncf %932 : vector<16x64xf32> to vector<16x64xbf16>
    %c0_278 = arith.constant 0 : index
    %c0_279 = arith.constant 0 : index
    %934 = vector.load %arg54[%c0_278, %c0_279] : memref<64x32xbf16, #tpu.memory_space<vmem>>, vector<64x32xbf16>
    %cst_280 = arith.constant dense<0.000000e+00> : vector<16x32xf32>
    %935 = tpu.matmul %933, %934, %cst_280 {dimension_numbers = #tpu.dot_dimension_numbers<[1], [0], [0], [1], [0, 0, 1, 1], [], []>} : vector<16x64xbf16>, vector<64x32xbf16>, vector<16x32xf32> -> vector<16x32xf32>
    %c0_281 = arith.constant 0 : index
    %c0_282 = arith.constant 0 : index
    %936 = vector.load %arg55[%c0_281, %c0_282] : memref<1x32xf32, #tpu.memory_space<vmem>>, vector<1x32xf32>
    %937 = vector.broadcast %936 : vector<1x32xf32> to vector<16x32xf32>
    %938 = arith.addf %935, %937 : vector<16x32xf32>
    %939 = arith.addf %924, %938 : vector<16x32xf32>
    %cst_283 = arith.constant dense<0.000000e+00> : vector<16xf32>
    %940 = vector.multi_reduction <add>, %939, %cst_283 [1] : vector<16x32xf32> to vector<16xf32>
    %941 = vector.shape_cast %940 : vector<16xf32> to vector<16x1xf32>
    %cst_284 = arith.constant 3.200000e+01 : f32
    %942 = vector.broadcast %cst_284 : f32 to vector<16x1xf32>
    %943 = arith.divf %941, %942 : vector<16x1xf32>
    %944 = vector.broadcast %943 : vector<16x1xf32> to vector<16x32xf32>
    %945 = arith.subf %939, %944 : vector<16x32xf32>
    %946 = arith.mulf %945, %945 : vector<16x32xf32>
    %cst_285 = arith.constant dense<0.000000e+00> : vector<16xf32>
    %947 = vector.multi_reduction <add>, %946, %cst_285 [1] : vector<16x32xf32> to vector<16xf32>
    %948 = vector.shape_cast %947 : vector<16xf32> to vector<16x1xf32>
    %cst_286 = arith.constant 3.200000e+01 : f32
    %949 = vector.broadcast %cst_286 : f32 to vector<16x1xf32>
    %950 = arith.divf %948, %949 : vector<16x1xf32>
    %cst_287 = arith.constant 9.99999974E-6 : f32
    %951 = vector.broadcast %cst_287 : f32 to vector<16x1xf32>
    %952 = arith.addf %950, %951 : vector<16x1xf32>
    %953 = math.rsqrt %952 : vector<16x1xf32>
    %954 = vector.broadcast %953 : vector<16x1xf32> to vector<16x32xf32>
    %955 = arith.mulf %945, %954 : vector<16x32xf32>
    %c0_288 = arith.constant 0 : index
    %c0_289 = arith.constant 0 : index
    %956 = vector.load %arg56[%c0_288, %c0_289] : memref<1x32xf32, #tpu.memory_space<vmem>>, vector<1x32xf32>
    %957 = vector.broadcast %956 : vector<1x32xf32> to vector<16x32xf32>
    %958 = arith.mulf %955, %957 : vector<16x32xf32>
    %c0_290 = arith.constant 0 : index
    %c0_291 = arith.constant 0 : index
    %959 = vector.load %arg57[%c0_290, %c0_291] : memref<1x32xf32, #tpu.memory_space<vmem>>, vector<1x32xf32>
    %960 = vector.broadcast %959 : vector<1x32xf32> to vector<16x32xf32>
    %961 = arith.addf %958, %960 : vector<16x32xf32>
    %962 = arith.truncf %961 : vector<16x32xf32> to vector<16x32xbf16>
    %c0_292 = arith.constant 0 : index
    %c0_293 = arith.constant 0 : index
    %963 = vector.load %arg58[%c0_292, %c0_293] : memref<16x32xbf16, #tpu.memory_space<vmem>>, vector<16x32xbf16>
    tpu.vector_store %arg58[%c0_292, %c0_293], %962 {strides = array<i32>} : memref<16x32xbf16, #tpu.memory_space<vmem>>, vector<16x32xbf16>,
    return
  }
  func.func @transform_0(%arg0: i32) -> (i32, i32) {
    %c0_i32 = arith.constant 0 : i32
    %c0_i32_0 = arith.constant 0 : i32
    %c0_i32_1 = arith.constant 0 : i32
    return %c0_i32, %c0_i32_0 : i32, i32
  }
  func.func @transform_1(%arg0: i32) -> (i32, i32) {
    %c0_i32 = arith.constant 0 : i32
    %c0_i32_0 = arith.constant 0 : i32
    %c0_i32_1 = arith.constant 0 : i32
    return %c0_i32, %c0_i32_0 : i32, i32
  }
  func.func @transform_2(%arg0: i32) -> (i32, i32) {
    %c0_i32 = arith.constant 0 : i32
    %c0_i32_0 = arith.constant 0 : i32
    %c0_i32_1 = arith.constant 0 : i32
    return %c0_i32, %c0_i32_0 : i32, i32
  }
  func.func @transform_3(%arg0: i32) -> (i32, i32) {
    %c0_i32 = arith.constant 0 : i32
    %c0_i32_0 = arith.constant 0 : i32
    %c0_i32_1 = arith.constant 0 : i32
    return %c0_i32, %c0_i32_0 : i32, i32
  }
  func.func @transform_4(%arg0: i32) -> (i32, i32) {
    %c0_i32 = arith.constant 0 : i32
    %c0_i32_0 = arith.constant 0 : i32
    %c0_i32_1 = arith.constant 0 : i32
    return %c0_i32, %c0_i32_0 : i32, i32
  }
  func.func @transform_5(%arg0: i32) -> (i32, i32) {
    %c0_i32 = arith.constant 0 : i32
    %c0_i32_0 = arith.constant 0 : i32
    %c0_i32_1 = arith.constant 0 : i32
    return %c0_i32, %c0_i32_0 : i32, i32
  }
  func.func @transform_6(%arg0: i32) -> (i32, i32) {
    %c0_i32 = arith.constant 0 : i32
    %c0_i32_0 = arith.constant 0 : i32
    %c0_i32_1 = arith.constant 0 : i32
    return %c0_i32, %c0_i32_0 : i32, i32
  }
  func.func @transform_7(%arg0: i32) -> (i32, i32) {
    %c0_i32 = arith.constant 0 : i32
    %c0_i32_0 = arith.constant 0 : i32
    %c0_i32_1 = arith.constant 0 : i32
    return %c0_i32, %c0_i32_0 : i32, i32
  }
  func.func @transform_8(%arg0: i32) -> (i32, i32) {
    %c0_i32 = arith.constant 0 : i32
    %c0_i32_0 = arith.constant 0 : i32
    %c0_i32_1 = arith.constant 0 : i32
    return %c0_i32, %c0_i32_0 : i32, i32
  }
  func.func @transform_9(%arg0: i32) -> (i32, i32) {
    %c0_i32 = arith.constant 0 : i32
    %c0_i32_0 = arith.constant 0 : i32
    %c0_i32_1 = arith.constant 0 : i32
    return %c0_i32, %c0_i32_0 : i32, i32
  }
  func.func @transform_10(%arg0: i32) -> (i32, i32) {
    %c0_i32 = arith.constant 0 : i32
    %c0_i32_0 = arith.constant 0 : i32
    %c0_i32_1 = arith.constant 0 : i32
    return %c0_i32, %c0_i32_0 : i32, i32
  }
  func.func @transform_11(%arg0: i32) -> (i32, i32) {
    %c0_i32 = arith.constant 0 : i32
    %c0_i32_0 = arith.constant 0 : i32
    %c0_i32_1 = arith.constant 0 : i32
    return %c0_i32, %c0_i32_0 : i32, i32
  }
  func.func @transform_12(%arg0: i32) -> (i32, i32) {
    %c0_i32 = arith.constant 0 : i32
    %c0_i32_0 = arith.constant 0 : i32
    %c0_i32_1 = arith.constant 0 : i32
    return %c0_i32, %c0_i32_0 : i32, i32
  }
  func.func @transform_13(%arg0: i32) -> (i32, i32) {
    %c0_i32 = arith.constant 0 : i32
    %c0_i32_0 = arith.constant 0 : i32
    %c0_i32_1 = arith.constant 0 : i32
    return %c0_i32, %c0_i32_0 : i32, i32
  }
  func.func @transform_14(%arg0: i32) -> (i32, i32) {
    %c0_i32 = arith.constant 0 : i32
    %c0_i32_0 = arith.constant 0 : i32
    %c0_i32_1 = arith.constant 0 : i32
    return %c0_i32, %c0_i32_0 : i32, i32
  }
  func.func @transform_15(%arg0: i32) -> (i32, i32) {
    %c0_i32 = arith.constant 0 : i32
    %c0_i32_0 = arith.constant 0 : i32
    %c0_i32_1 = arith.constant 0 : i32
    return %c0_i32, %c0_i32_0 : i32, i32
  }
  func.func @transform_16(%arg0: i32) -> (i32, i32) {
    %c0_i32 = arith.constant 0 : i32
    %c0_i32_0 = arith.constant 0 : i32
    %c0_i32_1 = arith.constant 0 : i32
    return %c0_i32, %c0_i32_0 : i32, i32
  }
  func.func @transform_17(%arg0: i32) -> (i32, i32) {
    %c0_i32 = arith.constant 0 : i32
    %c0_i32_0 = arith.constant 0 : i32
    %c0_i32_1 = arith.constant 0 : i32
    return %c0_i32, %c0_i32_0 : i32, i32
  }
  func.func @transform_18(%arg0: i32) -> (i32, i32) {
    %c0_i32 = arith.constant 0 : i32
    %c0_i32_0 = arith.constant 0 : i32
    %c0_i32_1 = arith.constant 0 : i32
    return %c0_i32, %c0_i32_0 : i32, i32
  }
  func.func @transform_19(%arg0: i32) -> (i32, i32) {
    %c0_i32 = arith.constant 0 : i32
    %c0_i32_0 = arith.constant 0 : i32
    %c0_i32_1 = arith.constant 0 : i32
    return %c0_i32, %c0_i32_0 : i32, i32
  }
  func.func @transform_20(%arg0: i32) -> (i32, i32) {
    %c0_i32 = arith.constant 0 : i32
    %c0_i32_0 = arith.constant 0 : i32
    %c0_i32_1 = arith.constant 0 : i32
    return %c0_i32, %c0_i32_0 : i32, i32
  }
  func.func @transform_21(%arg0: i32) -> (i32, i32) {
    %c0_i32 = arith.constant 0 : i32
    %c0_i32_0 = arith.constant 0 : i32
    %c0_i32_1 = arith.constant 0 : i32
    return %c0_i32, %c0_i32_0 : i32, i32
  }
  func.func @transform_22(%arg0: i32) -> (i32, i32) {
    %c0_i32 = arith.constant 0 : i32
    %c0_i32_0 = arith.constant 0 : i32
    %c0_i32_1 = arith.constant 0 : i32
    return %c0_i32, %c0_i32_0 : i32, i32
  }
  func.func @transform_23(%arg0: i32) -> (i32, i32) {
    %c0_i32 = arith.constant 0 : i32
    %c0_i32_0 = arith.constant 0 : i32
    %c0_i32_1 = arith.constant 0 : i32
    return %c0_i32, %c0_i32_0 : i32, i32
  }
  func.func @transform_24(%arg0: i32) -> (i32, i32) {
    %c0_i32 = arith.constant 0 : i32
    %c0_i32_0 = arith.constant 0 : i32
    %c0_i32_1 = arith.constant 0 : i32
    return %c0_i32, %c0_i32_0 : i32, i32
  }
  func.func @transform_25(%arg0: i32) -> (i32, i32) {
    %c0_i32 = arith.constant 0 : i32
    %c0_i32_0 = arith.constant 0 : i32
    %c0_i32_1 = arith.constant 0 : i32
    return %c0_i32, %c0_i32_0 : i32, i32
  }
  func.func @transform_26(%arg0: i32) -> (i32, i32) {
    %c0_i32 = arith.constant 0 : i32
    %c0_i32_0 = arith.constant 0 : i32
    %c0_i32_1 = arith.constant 0 : i32
    return %c0_i32, %c0_i32_0 : i32, i32
  }
  func.func @transform_27(%arg0: i32) -> (i32, i32) {
    %c0_i32 = arith.constant 0 : i32
    %c0_i32_0 = arith.constant 0 : i32
    %c0_i32_1 = arith.constant 0 : i32
    return %c0_i32, %c0_i32_0 : i32, i32
  }
  func.func @transform_28(%arg0: i32) -> (i32, i32) {
    %c0_i32 = arith.constant 0 : i32
    %c0_i32_0 = arith.constant 0 : i32
    %c0_i32_1 = arith.constant 0 : i32
    return %c0_i32, %c0_i32_0 : i32, i32
  }
  func.func @transform_29(%arg0: i32) -> (i32, i32) {
    %c0_i32 = arith.constant 0 : i32
    %c0_i32_0 = arith.constant 0 : i32
    %c0_i32_1 = arith.constant 0 : i32
    return %c0_i32, %c0_i32_0 : i32, i32
  }
  func.func @transform_30(%arg0: i32) -> (i32, i32) {
    %c0_i32 = arith.constant 0 : i32
    %c0_i32_0 = arith.constant 0 : i32
    %c0_i32_1 = arith.constant 0 : i32
    return %c0_i32, %c0_i32_0 : i32, i32
  }
  func.func @transform_31(%arg0: i32) -> (i32, i32) {
    %c0_i32 = arith.constant 0 : i32
    %c0_i32_0 = arith.constant 0 : i32
    %c0_i32_1 = arith.constant 0 : i32
    return %c0_i32, %c0_i32_0 : i32, i32
  }
  func.func @transform_32(%arg0: i32) -> (i32, i32) {
    %c0_i32 = arith.constant 0 : i32
    %c0_i32_0 = arith.constant 0 : i32
    %c0_i32_1 = arith.constant 0 : i32
    return %c0_i32, %c0_i32_0 : i32, i32
  }
  func.func @transform_33(%arg0: i32) -> (i32, i32) {
    %c0_i32 = arith.constant 0 : i32
    %c0_i32_0 = arith.constant 0 : i32
    %c0_i32_1 = arith.constant 0 : i32
    return %c0_i32, %c0_i32_0 : i32, i32
  }
  func.func @transform_34(%arg0: i32) -> (i32, i32) {
    %c0_i32 = arith.constant 0 : i32
    %c0_i32_0 = arith.constant 0 : i32
    %c0_i32_1 = arith.constant 0 : i32
    return %c0_i32, %c0_i32_0 : i32, i32
  }
  func.func @transform_35(%arg0: i32) -> (i32, i32) {
    %c0_i32 = arith.constant 0 : i32
    %c0_i32_0 = arith.constant 0 : i32
    %c0_i32_1 = arith.constant 0 : i32
    return %c0_i32, %c0_i32_0 : i32, i32
  }
  func.func @transform_36(%arg0: i32) -> (i32, i32) {
    %c0_i32 = arith.constant 0 : i32
    %c0_i32_0 = arith.constant 0 : i32
    %c0_i32_1 = arith.constant 0 : i32
    return %c0_i32, %c0_i32_0 : i32, i32
  }
  func.func @transform_37(%arg0: i32) -> (i32, i32) {
    %c0_i32 = arith.constant 0 : i32
    %c0_i32_0 = arith.constant 0 : i32
    %c0_i32_1 = arith.constant 0 : i32
    return %c0_i32, %c0_i32_0 : i32, i32
  }
  func.func @transform_38(%arg0: i32) -> (i32, i32) {
    %c0_i32 = arith.constant 0 : i32
    %c0_i32_0 = arith.constant 0 : i32
    %c0_i32_1 = arith.constant 0 : i32
    return %c0_i32, %c0_i32_0 : i32, i32
  }
  func.func @transform_39(%arg0: i32) -> (i32, i32) {
    %c0_i32 = arith.constant 0 : i32
    %c0_i32_0 = arith.constant 0 : i32
    %c0_i32_1 = arith.constant 0 : i32
    return %c0_i32, %c0_i32_0 : i32, i32
  }
  func.func @transform_40(%arg0: i32) -> (i32, i32) {
    %c0_i32 = arith.constant 0 : i32
    %c0_i32_0 = arith.constant 0 : i32
    %c0_i32_1 = arith.constant 0 : i32
    return %c0_i32, %c0_i32_0 : i32, i32
  }
  func.func @transform_41(%arg0: i32) -> (i32, i32) {
    %c0_i32 = arith.constant 0 : i32
    %c0_i32_0 = arith.constant 0 : i32
    %c0_i32_1 = arith.constant 0 : i32
    return %c0_i32, %c0_i32_0 : i32, i32
  }
  func.func @transform_42(%arg0: i32) -> (i32, i32) {
    %c0_i32 = arith.constant 0 : i32
    %c0_i32_0 = arith.constant 0 : i32
    %c0_i32_1 = arith.constant 0 : i32
    return %c0_i32, %c0_i32_0 : i32, i32
  }
  func.func @transform_43(%arg0: i32) -> (i32, i32) {
    %c0_i32 = arith.constant 0 : i32
    %c0_i32_0 = arith.constant 0 : i32
    %c0_i32_1 = arith.constant 0 : i32
    return %c0_i32, %c0_i32_0 : i32, i32
  }
  func.func @transform_44(%arg0: i32) -> (i32, i32) {
    %c0_i32 = arith.constant 0 : i32
    %c0_i32_0 = arith.constant 0 : i32
    %c0_i32_1 = arith.constant 0 : i32
    return %c0_i32, %c0_i32_0 : i32, i32
  }
  func.func @transform_45(%arg0: i32) -> (i32, i32) {
    %c0_i32 = arith.constant 0 : i32
    %c0_i32_0 = arith.constant 0 : i32
    %c0_i32_1 = arith.constant 0 : i32
    return %c0_i32, %c0_i32_0 : i32, i32
  }
  func.func @transform_46(%arg0: i32) -> (i32, i32) {
    %c0_i32 = arith.constant 0 : i32
    %c0_i32_0 = arith.constant 0 : i32
    %c0_i32_1 = arith.constant 0 : i32
    return %c0_i32, %c0_i32_0 : i32, i32
  }
  func.func @transform_47(%arg0: i32) -> (i32, i32) {
    %c0_i32 = arith.constant 0 : i32
    %c0_i32_0 = arith.constant 0 : i32
    %c0_i32_1 = arith.constant 0 : i32
    return %c0_i32, %c0_i32_0 : i32, i32
  }
  func.func @transform_48(%arg0: i32) -> (i32, i32) {
    %c0_i32 = arith.constant 0 : i32
    %c0_i32_0 = arith.constant 0 : i32
    %c0_i32_1 = arith.constant 0 : i32
    return %c0_i32, %c0_i32_0 : i32, i32
  }
  func.func @transform_49(%arg0: i32) -> (i32, i32) {
    %c0_i32 = arith.constant 0 : i32
    %c0_i32_0 = arith.constant 0 : i32
    %c0_i32_1 = arith.constant 0 : i32
    return %c0_i32, %c0_i32_0 : i32, i32
  }
  func.func @transform_50(%arg0: i32) -> (i32, i32) {
    %c0_i32 = arith.constant 0 : i32
    %c0_i32_0 = arith.constant 0 : i32
    %c0_i32_1 = arith.constant 0 : i32
    return %c0_i32, %c0_i32_0 : i32, i32
  }
  func.func @transform_51(%arg0: i32) -> (i32, i32) {
    %c0_i32 = arith.constant 0 : i32
    %c0_i32_0 = arith.constant 0 : i32
    %c0_i32_1 = arith.constant 0 : i32
    return %c0_i32, %c0_i32_0 : i32, i32
  }
  func.func @transform_52(%arg0: i32) -> (i32, i32) {
    %c0_i32 = arith.constant 0 : i32
    %c0_i32_0 = arith.constant 0 : i32
    %c0_i32_1 = arith.constant 0 : i32
    return %c0_i32, %c0_i32_0 : i32, i32
  }
  func.func @transform_53(%arg0: i32) -> (i32, i32) {
    %c0_i32 = arith.constant 0 : i32
    %c0_i32_0 = arith.constant 0 : i32
    %c0_i32_1 = arith.constant 0 : i32
    return %c0_i32, %c0_i32_0 : i32, i32
  }
  func.func @transform_54(%arg0: i32) -> (i32, i32) {
    %c0_i32 = arith.constant 0 : i32
    %c0_i32_0 = arith.constant 0 : i32
    %c0_i32_1 = arith.constant 0 : i32
    return %c0_i32, %c0_i32_0 : i32, i32
  }
  func.func @transform_55(%arg0: i32) -> (i32, i32) {
    %c0_i32 = arith.constant 0 : i32
    %c0_i32_0 = arith.constant 0 : i32
    %c0_i32_1 = arith.constant 0 : i32
    return %c0_i32, %c0_i32_0 : i32, i32
  }
  func.func @transform_56(%arg0: i32) -> (i32, i32) {
    %c0_i32 = arith.constant 0 : i32
    %c0_i32_0 = arith.constant 0 : i32
    %c0_i32_1 = arith.constant 0 : i32
    return %c0_i32, %c0_i32_0 : i32, i32
  }
  func.func @transform_57(%arg0: i32) -> (i32, i32) {
    %c0_i32 = arith.constant 0 : i32
    %c0_i32_0 = arith.constant 0 : i32
    %c0_i32_1 = arith.constant 0 : i32
    return %c0_i32, %c0_i32_0 : i32, i32
  }
}

</mosaic_0001>

<bundles_post_ra>
// kernel: decoder_only_forward.3
= control target key start
LH: loop header
LB: loop body
LE: loop exit
PB: predicated region body
PF: predicated region fallthrough
CT: control target
= control target key end

     0   :  { %v176_v1 = vmov 0.0   ;;  %vm177_vm0 = vmmov 0   ;;  %vm20_vm1 = vcmask 162816   ;;  %s222_s0 = inlined_call_operand.vmem [shape: bf16[16,32], index: 0, kind: input, shape index: {}]   ;;  %s223_s1 = inlined_call_operand.vmem [shape: bf16[32,20], index: 1, kind: input, shape index: {}]   ;;  %s224_s2 = inlined_call_operand.vmem [shape: f32[1,20], index: 2, kind: input, shape index: {}]   ;;  %s225_s3 = inlined_call_operand.hbm [shape: f32[16,20], index: 3, kind: output, shape index: {}]  }
   0x1   :  { %v151_v0 = vld [vmem:[%s223_s1 + $0x8] sm:$0xff]   ;;  %138 = vmatprep.subr.bf16.mxu0 %v176_v1  ;;  %v152_v2 = vld [vmem:[%s223_s1] sm:$0xff]   ;;  %142 = vmatprep.mubr.msk.bf16.mxu0 %vm177_vm0, %v176_v1 }
   0x2   :  { %139 = vmatpush3.bf16.msra.mxu0 %v151_v0 }
   0x3   :  { %140 = vmatprep.subr.bf16.mxu0 %v176_v1 }
   0x4   :  { %8 = vsyncpa [#allocation4], 0  ;;  %21 = vst.msk [vmem:[#allocation2] sm:$0xff] %vm20_vm1, %v176_v1  ;;  %v153_v3 = vld [vmem:[%s222_s0] sm:$0xff]   ;;  %vm48_vm2 = vcmask 261120   ;;  %s178_s0 = smov [#allocation3]  }
   0x5   :  { %22 = vst.msk [vmem:[#allocation2 + $0x8] sm:$0xff] %vm20_vm1, %v176_v1  ;;  %v134_v12 = vld [vmem:[%s224_s2] ss:$0 sm:$0xff]  ;;  %s119_s19 = sshll.u32 %s178_s0, 4  ;;  %s120_s19 = int_to_ptr.vmem [resolvable:$true] %s119_s19 }
   0x6   :  { %141 = vmatpush3.bf16.msra.mxu0 %v152_v2  ;;  %s154_s20 = scalar_lea.vmem %s120_s19, 256  ;;  %p159_p1 = scmp.lt.s32.totalorder %s120_s19, %s120_s19 }
   0x7   :  { %p155_p0 = scmp.ne.s32.totalorder %s120_s19, %s154_s20  ;;  %p160_p2 = scmp.lt.s32.totalorder %s154_s20, %s154_s20 }
   0x9   :  { %143 = vmatmul.mubr.msk.bf16.vlgmr.msra.gmra.mxu0 %vm48_vm2, %v153_v3  ;;  %p161_p3 = por %p160_p2, %p159_p1 }
   0xb   :  { %v23_v4 = vld [vmem:[#allocation2] sm:$0xff]  ;;  %p162_p4 = pnand %p161_p3, %p155_p0 }
   0xc   :  { %v24_v8 = vld [vmem:[#allocation2 + $0x8] sm:$0xff] }
  0xc9   :  { %v86_v5 = vpop.f32.mrf.mxu0 }
  0xca   :  { %v93_v6 = vadd.f32 %v86_v5, %v23_v4 }
  0xcb   :  { %v144_v7 = vpop.f32.mrf.mxu0 }
  0xcc   :  { %96 = vst.msk [vmem:[#allocation2] sm:$0xff] %vm20_vm1, %v93_v6 }
  0xcd   :  { %v89_v9 = vpop.f32.mrf.mxu0 }
  0xce   :  { %v94_v10 = vadd.f32 %v89_v9, %v24_v8 }
  0xcf   :  { %v145_v11 = vpop.f32.mrf.mxu0 }
  0xd0   :  { %97 = vst.msk [vmem:[#allocation2 + $0x8] sm:$0xff] %vm20_vm1, %v94_v10 }
  0xd3   :  { %v101_v13 = vld [vmem:[#allocation2] sm:$0xff] }
  0xd4   :  { %v110_v14 = vadd.f32 %v134_v12, %v101_v13 }
  0xd6   :  { %112 = vst.msk [vmem:[#allocation3] sm:$0xff] %vm20_vm1, %v110_v14 }
  0xd7   :  { %v102_v15 = vld [vmem:[#allocation2 + $0x8] sm:$0xff] }
  0xd8   :  { %v111_v16 = vadd.f32 %v134_v12, %v102_v15 }
  0xda   :  { %113 = vst.msk [vmem:[#allocation3 + $0x8] sm:$0xff] %vm20_vm1, %v111_v16 }
  0xdb   :  { %165 = shalt.err (!%p162_p4)
}
  0xdc   :  { %s179_s21 = smov 128   ;;  %s180_s2 = smov 8  }
  0xdd   :  { %125 = dma.vmem_to_hbm [thread:$0]  %s120_s19, 256, %s225_s3, [#allocation4], %s179_s21, %s179_s21, %s180_s2  }
  0xde   :  { %174 = dma.done.wait [#allocation4], 256  }
  0xdf   :  { %175 = vsyncadd [#allocation4], 4294967040 }
  0xe0   :  { %129 = vsyncpa [#allocation4], 1 }

// kernel: decoder_only_forward.2
= control target key start
LH: loop header
LB: loop body
LE: loop exit
PB: predicated region body
PF: predicated region fallthrough
CT: control target
= control target key end

     0   :  { %s7433_s6 = smov 1   ;;  %s7434_s10 = smov 2   ;;  %s8722_s0 = inlined_call_operand.smem [shape: u32[58], index: -1, kind: input, shape index: {}] }
   0x1   :  { %s7522_s5 = sld [smem:[%s8722_s0]]   ;;  %s7435_s14 = smov 3  }
   0x2   :  { %s7527_s9 = sld [smem:[%s8722_s0 + %s7433_s6]]   ;;  %s7436_s18 = smov 4  }
   0x3   :  { %s7532_s13 = sld [smem:[%s8722_s0 + %s7434_s10]]   ;;  %s7437_s22 = smov 5  }
   0x4   :  { %s7537_s17 = sld [smem:[%s8722_s0 + %s7435_s14]]   ;;  %s7438_s26 = smov 6  }
   0x5   :  { %s7542_s21 = sld [smem:[%s8722_s0 + %s7436_s18]]   ;;  %s7439_s30 = smov 7  }
   0x6   :  { %s7547_s25 = sld [smem:[%s8722_s0 + %s7437_s22]]   ;;  %s7440_s4 = smov 8  }
   0x7   :  { %8744 = sst [smem:[#allocation36_spill]] %s7522_s5  ;;  %s7441_s10 = smov 9  }
   0x8   :  { %8745 = sst [smem:[#allocation37_spill]] %s7527_s9  ;;  %s7442_s15 = smov 10  }
   0x9   :  { %8746 = sst [smem:[#allocation38_spill]] %s7532_s13  ;;  %s7443_s20 = smov 11  }
   0xa   :  { %8747 = sst [smem:[#allocation39_spill]] %s7537_s17  ;;  %s7445_s1 = smov 13  }
   0xb   :  { %8748 = sst [smem:[#allocation40_spill]] %s7542_s21  ;;  %s7446_s7 = smov 14  }
   0xc   :  { %s7552_s29 = sld [smem:[%s8722_s0 + %s7438_s26]]   ;;  %s7444_s26 = smov 12  }
   0xd   :  { %s7557_s3 = sld [smem:[%s8722_s0 + %s7439_s30]]   ;;  %s7448_s22 = smov 16  }
   0xe   :  { %s7562_s8 = sld [smem:[%s8722_s0 + %s7440_s4]]   ;;  %s7449_s28 = smov 17  }
   0xf   :  { %s7567_s14 = sld [smem:[%s8722_s0 + %s7441_s10]]  }
  0x10   :  { %s7572_s19 = sld [smem:[%s8722_s0 + %s7442_s15]]   ;;  %s7447_s15 = smov 15  }
  0x11   :  { %s7577_s24 = sld [smem:[%s8722_s0 + %s7443_s20]]  }
  0x12   :  { %8749 = sst [smem:[#allocation41_spill]] %s7552_s29 }
  0x13   :  { %8750 = sst [smem:[#allocation42_spill]] %s7557_s3 }
  0x14   :  { %8751 = sst [smem:[#allocation43_spill]] %s7562_s8 }
  0x15   :  { %8752 = sst [smem:[#allocation44_spill]] %s7567_s14 }
  0x16   :  { %8753 = sst [smem:[#allocation45_spill]] %s7572_s19 }
  0x17   :  { %8754 = sst [smem:[#allocation46_spill]] %s7577_s24 }
  0x18   :  { %s7582_s30 = sld [smem:[%s8722_s0 + %s7444_s26]]  }
  0x19   :  { %s7587_s6 = sld [smem:[%s8722_s0 + %s7445_s1]]  }
  0x1a   :  { %s7592_s12 = sld [smem:[%s8722_s0 + %s7446_s7]]   ;;  %s7450_s7 = smov 18  }
  0x1b   :  { %s7597_s20 = sld [smem:[%s8722_s0 + %s7447_s15]]   ;;  %s7451_s15 = smov 19  }
  0x1c   :  { %s7602_s27 = sld [smem:[%s8722_s0 + %s7448_s22]]   ;;  %s7452_s22 = smov 20  }
  0x1d   :  { %s7607_s4 = sld [smem:[%s8722_s0 + %s7449_s28]]   ;;  %s7453_s28 = smov 21  }
  0x1e   :  { %8755 = sst [smem:[#allocation47_spill]] %s7582_s30 }
  0x1f   :  { %8756 = sst [smem:[#allocation48_spill]] %s7587_s6 }
  0x20   :  { %8757 = sst [smem:[#allocation49_spill]] %s7592_s12 }
  0x21   :  { %8758 = sst [smem:[#allocation50_spill]] %s7597_s20 }
  0x22   :  { %8759 = sst [smem:[#allocation51_spill]] %s7602_s27 }
  0x23   :  { %8760 = sst [smem:[#allocation52_spill]] %s7607_s4 }
  0x24   :  { %s7612_s21 = sld [smem:[%s8722_s0 + %s7450_s7]]   ;;  %s7454_s7 = smov 22  }
  0x25   :  { %s7617_s12 = sld [smem:[%s8722_s0 + %s7451_s15]]   ;;  %s7455_s15 = smov 23  }
  0x26   :  { %s7622_s27 = sld [smem:[%s8722_s0 + %s7452_s22]]   ;;  %s7456_s22 = smov 24  }
  0x27   :  { %s7627_s6 = sld [smem:[%s8722_s0 + %s7453_s28]]   ;;  %s7457_s28 = smov 25  }
  0x2a   :  { %8761 = sst [smem:[#allocation53_spill]] %s7612_s21 }
  0x2b   :  { %8762 = sst [smem:[#allocation54_spill]] %s7617_s12 }
  0x2c   :  { %8763 = sst [smem:[#allocation55_spill]] %s7622_s27 }
  0x2d   :  { %8764 = sst [smem:[#allocation56_spill]] %s7627_s6 }
  0x2e   :  { %s7632_s21 = sld [smem:[%s8722_s0 + %s7454_s7]]   ;;  %s7458_s7 = smov 26  }
  0x2f   :  { %s7637_s12 = sld [smem:[%s8722_s0 + %s7455_s15]]   ;;  %s7459_s15 = smov 27  }
  0x30   :  { %s7642_s27 = sld [smem:[%s8722_s0 + %s7456_s22]]   ;;  %s7460_s22 = smov 28  }
  0x31   :  { %s7647_s6 = sld [smem:[%s8722_s0 + %s7457_s28]]   ;;  %s7461_s28 = smov 29  }
  0x34   :  { %8765 = sst [smem:[#allocation57_spill]] %s7632_s21 }
  0x35   :  { %8766 = sst [smem:[#allocation58_spill]] %s7637_s12 }
  0x36   :  { %8767 = sst [smem:[#allocation59_spill]] %s7642_s27 }
  0x37   :  { %8768 = sst [smem:[#allocation60_spill]] %s7647_s6 }
  0x38   :  { %s7652_s21 = sld [smem:[%s8722_s0 + %s7458_s7]]   ;;  %s7462_s7 = smov 30  }
  0x39   :  { %s7657_s12 = sld [smem:[%s8722_s0 + %s7459_s15]]   ;;  %s7463_s15 = smov 31  }
  0x3a   :  { %s7662_s27 = sld [smem:[%s8722_s0 + %s7460_s22]]   ;;  %s7464_s22 = smov 32  }
  0x3b   :  { %s7667_s6 = sld [smem:[%s8722_s0 + %s7461_s28]]   ;;  %s7465_s28 = smov 33  }
  0x3e   :  { %8769 = sst [smem:[#allocation61_spill]] %s7652_s21 }
  0x3f   :  { %8770 = sst [smem:[#allocation62_spill]] %s7657_s12 }
  0x40   :  { %8771 = sst [smem:[#allocation63_spill]] %s7662_s27 }
  0x41   :  { %8772 = sst [smem:[#allocation64_spill]] %s7667_s6 }
  0x42   :  { %s7672_s21 = sld [smem:[%s8722_s0 + %s7462_s7]]   ;;  %s7466_s7 = smov 34  }
  0x43   :  { %s7677_s12 = sld [smem:[%s8722_s0 + %s7463_s15]]   ;;  %s7467_s15 = smov 35  }
  0x44   :  { %s7682_s27 = sld [smem:[%s8722_s0 + %s7464_s22]]   ;;  %s7468_s22 = smov 36  }
  0x45   :  { %s7687_s6 = sld [smem:[%s8722_s0 + %s7465_s28]]   ;;  %s7469_s28 = smov 37  }
  0x46   :  { %s7702_s20 = sld [smem:[%s8722_s0 + %s7468_s22]]   ;;  %s7472_s22 = smov 40  }
  0x47   :  { %s7722_s4 = sld [smem:[%s8722_s0 + %s7472_s22]]   ;;  %s7476_s22 = smov 44  }
  0x48   :  { %8773 = sst [smem:[#allocation65_spill]] %s7672_s21 }
  0x49   :  { %8774 = sst [smem:[#allocation66_spill]] %s7677_s12 }
  0x4a   :  { %s7692_s21 = sld [smem:[%s8722_s0 + %s7466_s7]]   ;;  %s7470_s7 = smov 38  }
  0x4b   :  { %8775 = sst [smem:[#allocation67_spill]] %s7687_s6 }
  0x4c   :  { %s7697_s12 = sld [smem:[%s8722_s0 + %s7467_s15]]   ;;  %s7471_s15 = smov 39  }
  0x4d   :  { %s7707_s6 = sld [smem:[%s8722_s0 + %s7469_s28]]   ;;  %s7473_s28 = smov 41  }
  0x4e   :  { %s7712_s9 = sld [smem:[%s8722_s0 + %s7470_s7]]   ;;  %s7474_s7 = smov 42  }
  0x4f   :  { %s7732_s30 = sld [smem:[%s8722_s0 + %s7474_s7]]   ;;  %s7478_s7 = smov 46  }
  0x50   :  { %s7742_s19 = sld [smem:[%s8722_s0 + %s7476_s22]]   ;;  %s7480_s22 = smov 48  }
  0x51   :  { %s7752_s13 = sld [smem:[%s8722_s0 + %s7478_s7]]   ;;  %s7482_s7 = smov 50  }
  0x52   :  { %8776 = sst [smem:[#allocation68_spill]] %s7697_s12 }
  0x53   :  { %8777 = sst [smem:[#allocation69_spill]] %s7707_s6 }
  0x54   :  { %s7717_s12 = sld [smem:[%s8722_s0 + %s7471_s15]]   ;;  %s7475_s15 = smov 43  }
  0x55   :  { %s7727_s6 = sld [smem:[%s8722_s0 + %s7473_s28]]   ;;  %s7477_s28 = smov 45  }
  0x56   :  { %s7737_s24 = sld [smem:[%s8722_s0 + %s7475_s15]]   ;;  %s7479_s15 = smov 47  }
  0x57   :  { %s7762_s17 = sld [smem:[%s8722_s0 + %s7480_s22]]   ;;  %s7484_s22 = smov 52  }
  0x58   :  { %s7772_s14 = sld [smem:[%s8722_s0 + %s7482_s7]]   ;;  %s7486_s7 = smov 54  }
  0x59   :  { %s7782_s29 = sld [smem:[%s8722_s0 + %s7484_s22]]   ;;  %s7488_s22 = smov 56  }
  0x5a   :  { %s7792_s3 = sld [smem:[%s8722_s0 + %s7486_s7]]  }
  0x5b   :  { %8778 = sst [smem:[#allocation70_spill]] %s7727_s6 }
  0x5c   :  { %8779 = sst [smem:[#allocation71_spill]] %s7737_s24 }
  0x5d   :  { %s7747_s6 = sld [smem:[%s8722_s0 + %s7477_s28]]   ;;  %s7481_s28 = smov 49  }
  0x5e   :  { %s7757_s24 = sld [smem:[%s8722_s0 + %s7479_s15]]   ;;  %s7483_s15 = smov 51  }
  0x5f   :  { %s7802_s5 = sld [smem:[%s8722_s0 + %s7488_s22]]  }
  0x63   :  { %8780 = sst [smem:[#allocation72_spill]] %s7747_s6 }
  0x64   :  { %8781 = sst [smem:[#allocation73_spill]] %s7757_s24 }
  0x65   :  { %s7767_s6 = sld [smem:[%s8722_s0 + %s7481_s28]]   ;;  %s7485_s28 = smov 53  }
  0x66   :  { %s7777_s24 = sld [smem:[%s8722_s0 + %s7483_s15]]   ;;  %s7487_s15 = smov 55  }
  0x67   :  { %s7787_s8 = sld [smem:[%s8722_s0 + %s7485_s28]]   ;;  %s7489_s28 = smov 57  }
  0x6c   :  { %8782 = sst [smem:[#allocation74_spill]] %s7777_s24 }
  0x6d   :  { %8783 = sst [smem:[#allocation75_spill]] %s7787_s8 }
  0x6e   :  { %s7797_s24 = sld [smem:[%s8722_s0 + %s7487_s15]]  }
  0x6f   :  { %s7807_s8 = sld [smem:[%s8722_s0 + %s7489_s28]]  }
  0x70   :  { %120 = vsyncpa [#allocation3], 0 }
  0x71   :  { %121 = vsyncpa [#allocation5], 0 }
  0x72   :  { %122 = vsyncpa [#allocation8], 0 }
  0x73   :  { %123 = vsyncpa [#allocation11], 0 }
  0x74   :  { %124 = vsyncpa [#allocation14], 0 }
  0x75   :  { %125 = vsyncpa [#allocation17], 0 }
  0x76   :  { %126 = vsyncpa [#allocation20], 0 }
  0x77   :  { %127 = vsyncpa [#allocation23], 0 }
  0x78   :  { %128 = vsyncpa [#allocation26], 0  ;;  %s7490_s7 = smov [#allocation4]   ;;  %s7491_s11 = smov [#allocation7]  }
  0x79   :  { %s211_s10 = sshll.u32 %s7490_s7, 4  ;;  %s235_s15 = sshll.u32 %s7491_s11, 4  ;;  %s212_s10 = int_to_ptr.vmem [resolvable:$true] %s211_s10  ;;  %s236_s15 = int_to_ptr.vmem [resolvable:$true] %s235_s15 }
  0x7a   :  { %s7103_s16 = scalar_lea.vmem %s212_s10, 16  ;;  %s7107_s18 = scalar_lea.vmem %s212_s10, 32 }
  0x7b   :  { %p7104_p0 = scmp.ne.s32.totalorder %s212_s10, %s7103_s16  ;;  %p7108_p1 = scmp.lt.s32.totalorder %s212_s10, %s212_s10 }
  0x7c   :  { %p7109_p2 = scmp.lt.s32.totalorder %s7107_s18, %s7103_s16 }
  0x7e   :  { %p7110_p3 = por %p7109_p2, %p7108_p1 }
  0x80   :  { %p7111_p4 = pnand %p7110_p3, %p7104_p0 }
  0x82   :  { %7114 = shalt.err (!%p7111_p4)
}
  0x83   :  { %214 = dma.hbm_to_vmem [thread:$0]  %s7692_s21, 16, %s212_s10, [#allocation5]  }
  0x84   :  { %s7123_s0 = scalar_lea.vmem %s236_s15, 16  ;;  %s7127_s22 = scalar_lea.vmem %s236_s15, 32 }
  0x85   :  { %p7124_p5 = scmp.ne.s32.totalorder %s236_s15, %s7123_s0  ;;  %p7128_p6 = scmp.lt.s32.totalorder %s236_s15, %s236_s15 }
  0x86   :  { %p7129_p7 = scmp.lt.s32.totalorder %s7127_s22, %s7123_s0 }
  0x88   :  { %p7130_p8 = por %p7129_p7, %p7128_p6 }
  0x8a   :  { %p7131_p9 = pnand %p7130_p8, %p7124_p5 }
  0x8c   :  { %7134 = shalt.err (!%p7131_p9)
}
  0x8d   :  { %238 = dma.hbm_to_vmem [thread:$0]  %s7712_s9, 16, %s236_s15, [#allocation8]  }
  0x8e   :  { %s7492_s23 = smov [#allocation10]   ;;  %s7493_s28 = smov [#allocation13]  }
  0x8f   :  { %s255_s26 = sshll.u32 %s7492_s23, 4  ;;  %s279_s1 = sshll.u32 %s7493_s28, 4  ;;  %s256_s26 = int_to_ptr.vmem [resolvable:$true] %s255_s26  ;;  %s280_s1 = int_to_ptr.vmem [resolvable:$true] %s279_s1 }
  0x90   :  { %s7143_s2 = scalar_lea.vmem %s256_s26, 16  ;;  %s7147_s7 = scalar_lea.vmem %s256_s26, 32 }
  0x91   :  { %p7144_p10 = scmp.ne.s32.totalorder %s256_s26, %s7143_s2  ;;  %p7148_p11 = scmp.lt.s32.totalorder %s256_s26, %s256_s26 }
  0x92   :  { %p7149_p12 = scmp.lt.s32.totalorder %s7147_s7, %s7143_s2 }
  0x94   :  { %p7150_p13 = por %p7149_p12, %p7148_p11 }
  0x96   :  { %p7151_p0 = pnand %p7150_p13, %p7144_p10 }
  0x98   :  { %7154 = shalt.err (!%p7151_p0)
}
  0x99   :  { %258 = dma.hbm_to_vmem [thread:$0]  %s7722_s4, 16, %s256_s26, [#allocation11]  }
  0x9a   :  { %s7163_s21 = scalar_lea.vmem %s280_s1, 16  ;;  %s7167_s10 = scalar_lea.vmem %s280_s1, 32 }
  0x9b   :  { %p7164_p1 = scmp.ne.s32.totalorder %s280_s1, %s7163_s21  ;;  %p7168_p2 = scmp.lt.s32.totalorder %s280_s1, %s280_s1 }
  0x9c   :  { %p7169_p3 = scmp.lt.s32.totalorder %s7167_s10, %s7163_s21 }
  0x9e   :  { %p7170_p4 = por %p7169_p3, %p7168_p2 }
  0xa0   :  { %p7171_p5 = pnand %p7170_p4, %p7164_p1 }
  0xa2   :  { %7174 = shalt.err (!%p7171_p5)
}
  0xa3   :  { %282 = dma.hbm_to_vmem [thread:$0]  %s7742_s19, 16, %s280_s1, [#allocation14]  }
  0xa4   :  { %s7494_s9 = smov [#allocation16]   ;;  %s7495_s15 = smov [#allocation19]  }
  0xa5   :  { %s303_s11 = sshll.u32 %s7494_s9, 4  ;;  %s323_s16 = sshll.u32 %s7495_s15, 4  ;;  %s304_s11 = int_to_ptr.vmem [resolvable:$true] %s303_s11  ;;  %s324_s16 = int_to_ptr.vmem [resolvable:$true] %s323_s16 }
  0xa6   :  { %s7183_s18 = scalar_lea.vmem %s304_s11, 16  ;;  %s7187_s0 = scalar_lea.vmem %s304_s11, 32 }
  0xa7   :  { %p7184_p6 = scmp.ne.s32.totalorder %s304_s11, %s7183_s18  ;;  %p7188_p7 = scmp.lt.s32.totalorder %s304_s11, %s304_s11 }
  0xa8   :  { %p7189_p8 = scmp.lt.s32.totalorder %s7187_s0, %s7183_s18 }
  0xaa   :  { %p7190_p9 = por %p7189_p8, %p7188_p7 }
  0xac   :  { %p7191_p10 = pnand %p7190_p9, %p7184_p6 }
  0xae   :  { %7194 = shalt.err (!%p7191_p10)
}
  0xaf   :  { %306 = dma.hbm_to_vmem [thread:$0]  %s7762_s17, 16, %s304_s11, [#allocation17]  }
  0xb0   :  { %s7203_s4 = scalar_lea.vmem %s324_s16, 16  ;;  %s7207_s22 = scalar_lea.vmem %s324_s16, 32 }
  0xb1   :  { %p7204_p11 = scmp.ne.s32.totalorder %s324_s16, %s7203_s4  ;;  %p7208_p12 = scmp.lt.s32.totalorder %s324_s16, %s324_s16 }
  0xb2   :  { %p7209_p13 = scmp.lt.s32.totalorder %s7207_s22, %s7203_s4 }
  0xb4   :  { %p7210_p0 = por %p7209_p13, %p7208_p12 }
  0xb6   :  { %p7211_p1 = pnand %p7210_p0, %p7204_p11 }
  0xb8   :  { %7214 = shalt.err (!%p7211_p1)
}
  0xb9   :  { %326 = dma.hbm_to_vmem [thread:$0]  %s7772_s14, 16, %s324_s16, [#allocation20]  }
  0xba   :  { %s7496_s19 = smov [#allocation22]   ;;  %s7497_s26 = smov [#allocation2]  }
  0xbb   :  { %s347_s23 = sshll.u32 %s7496_s19, 4  ;;  %s199_s28 = sshll.u32 %s7497_s26, 4  ;;  %s348_s23 = int_to_ptr.vmem [resolvable:$true] %s347_s23  ;;  %s200_s28 = int_to_ptr.vmem [resolvable:$true] %s199_s28 }
  0xbc   :  { %s7223_s1 = scalar_lea.vmem %s348_s23, 16  ;;  %s7227_s2 = scalar_lea.vmem %s348_s23, 32 }
  0xbd   :  { %p7224_p2 = scmp.ne.s32.totalorder %s348_s23, %s7223_s1  ;;  %p7228_p3 = scmp.lt.s32.totalorder %s348_s23, %s348_s23 }
  0xbe   :  { %p7229_p4 = scmp.lt.s32.totalorder %s7227_s2, %s7223_s1 }
  0xc0   :  { %p7230_p5 = por %p7229_p4, %p7228_p3 }
  0xc2   :  { %p7231_p6 = pnand %p7230_p5, %p7224_p2 }
  0xc4   :  { %7234 = shalt.err (!%p7231_p6)
}
  0xc5   :  { %350 = dma.hbm_to_vmem [thread:$0]  %s7792_s3, 16, %s348_s23, [#allocation23]  }
  0xc6   :  { %s7243_s17 = scalar_lea.vmem %s200_s28, 16  ;;  %s7247_s7 = scalar_lea.vmem %s200_s28, 32 }
  0xc7   :  { %p7244_p7 = scmp.ne.s32.totalorder %s200_s28, %s7243_s17  ;;  %p7248_p8 = scmp.lt.s32.totalorder %s200_s28, %s200_s28 }
  0xc8   :  { %p7249_p9 = scmp.lt.s32.totalorder %s7247_s7, %s7243_s17 }
  0xca   :  { %p7250_p10 = por %p7249_p9, %p7248_p8 }
  0xcc   :  { %p7251_p11 = pnand %p7250_p10, %p7244_p7 }
  0xce   :  { %7254 = shalt.err (!%p7251_p11)
}
  0xcf   :  { %202 = dma.hbm_to_vmem [thread:$0]  %s7682_s27, 16, %s200_s28, [#allocation3]  }
  0xd0   :  { %s7498_s14 = smov [#allocation6]   ;;  %s7499_s10 = smov [#allocation9]  }
  0xd1   :  { %s223_s21 = sshll.u32 %s7498_s14, 4  ;;  %s245_s9 = sshll.u32 %s7499_s10, 4  ;;  %s224_s21 = int_to_ptr.vmem [resolvable:$true] %s223_s21  ;;  %s246_s9 = int_to_ptr.vmem [resolvable:$true] %s245_s9 }
  0xd2   :  { %s7263_s11 = scalar_lea.vmem %s224_s21, 16  ;;  %s7267_s15 = scalar_lea.vmem %s224_s21, 32 }
  0xd3   :  { %p7264_p12 = scmp.ne.s32.totalorder %s224_s21, %s7263_s11  ;;  %p7268_p13 = scmp.lt.s32.totalorder %s224_s21, %s224_s21 }
  0xd4   :  { %p7269_p0 = scmp.lt.s32.totalorder %s7267_s15, %s7263_s11 }
  0xd6   :  { %p7270_p1 = por %p7269_p0, %p7268_p13 }
  0xd8   :  { %p7271_p2 = pnand %p7270_p1, %p7264_p12 }
  0xda   :  { %7274 = shalt.err (!%p7271_p2)
}
  0xdb   :  { %226 = dma.hbm_to_vmem [thread:$0]  %s7702_s20, 16, %s224_s21, [#allocation5]  }
  0xdc   :  { %s7283_s3 = scalar_lea.vmem %s246_s9, 16  ;;  %s7287_s16 = scalar_lea.vmem %s246_s9, 32 }
  0xdd   :  { %p7284_p3 = scmp.ne.s32.totalorder %s246_s9, %s7283_s3  ;;  %p7288_p4 = scmp.lt.s32.totalorder %s246_s9, %s246_s9 }
  0xde   :  { %p7289_p5 = scmp.lt.s32.totalorder %s7287_s16, %s7283_s3 }
  0xe0   :  { %p7290_p6 = por %p7289_p5, %p7288_p4 }
  0xe2   :  { %p7291_p7 = pnand %p7290_p6, %p7284_p3 }
  0xe4   :  { %7294 = shalt.err (!%p7291_p7)
}
  0xe5   :  { %248 = dma.hbm_to_vmem [thread:$0]  %s7717_s12, 16, %s246_s9, [#allocation8]  }
  0xe6   :  { %s7500_s27 = smov [#allocation12]   ;;  %s7501_s0 = smov [#allocation15]  }
  0xe7   :  { %s267_s18 = sshll.u32 %s7500_s27, 4  ;;  %s291_s4 = sshll.u32 %s7501_s0, 4  ;;  %s268_s18 = int_to_ptr.vmem [resolvable:$true] %s267_s18  ;;  %s292_s4 = int_to_ptr.vmem [resolvable:$true] %s291_s4 }
  0xe8   :  { %s7303_s22 = scalar_lea.vmem %s268_s18, 16  ;;  %s7307_s19 = scalar_lea.vmem %s268_s18, 32 }
  0xe9   :  { %p7304_p8 = scmp.ne.s32.totalorder %s268_s18, %s7303_s22  ;;  %p7308_p9 = scmp.lt.s32.totalorder %s268_s18, %s268_s18 }
  0xea   :  { %p7309_p10 = scmp.lt.s32.totalorder %s7307_s19, %s7303_s22 }
  0xec   :  { %p7310_p11 = por %p7309_p10, %p7308_p9 }
  0xee   :  { %p7311_p12 = pnand %p7310_p11, %p7304_p8 }
  0xf0   :  { %7314 = shalt.err (!%p7311_p12)
}
  0xf1   :  { %270 = dma.hbm_to_vmem [thread:$0]  %s7732_s30, 16, %s268_s18, [#allocation11]  }
  0xf2   :  { %s7323_s20 = scalar_lea.vmem %s292_s4, 16  ;;  %s7327_s23 = scalar_lea.vmem %s292_s4, 32 }
  0xf3   :  { %p7324_p13 = scmp.ne.s32.totalorder %s292_s4, %s7323_s20  ;;  %p7328_p0 = scmp.lt.s32.totalorder %s292_s4, %s292_s4 }
  0xf4   :  { %p7329_p1 = scmp.lt.s32.totalorder %s7327_s23, %s7323_s20 }
  0xf6   :  { %p7330_p2 = por %p7329_p1, %p7328_p0 }
  0xf8   :  { %p7331_p3 = pnand %p7330_p2, %p7324_p13 }
  0xfa   :  { %7334 = shalt.err (!%p7331_p3)
}
  0xfb   :  { %294 = dma.hbm_to_vmem [thread:$0]  %s7752_s13, 16, %s292_s4, [#allocation14]  }
  0xfc   :  { %s7502_s12 = smov [#allocation18]   ;;  %s7503_s28 = smov [#allocation21]  }
  0xfd   :  { %s313_s26 = sshll.u32 %s7502_s12, 4  ;;  %s335_s1 = sshll.u32 %s7503_s28, 4  ;;  %s314_s26 = int_to_ptr.vmem [resolvable:$true] %s313_s26  ;;  %s336_s1 = int_to_ptr.vmem [resolvable:$true] %s335_s1 }
  0xfe   :  { %s7343_s2 = scalar_lea.vmem %s314_s26, 16  ;;  %s7347_s17 = scalar_lea.vmem %s314_s26, 32 }
  0xff   :  { %p7344_p4 = scmp.ne.s32.totalorder %s314_s26, %s7343_s2  ;;  %p7348_p5 = scmp.lt.s32.totalorder %s314_s26, %s314_s26 }
 0x100   :  { %p7349_p6 = scmp.lt.s32.totalorder %s7347_s17, %s7343_s2 }
 0x102   :  { %p7350_p7 = por %p7349_p6, %p7348_p5 }
 0x104   :  { %p7351_p8 = pnand %p7350_p7, %p7344_p4 }
 0x106   :  { %7354 = shalt.err (!%p7351_p8)
}
 0x107   :  { %316 = dma.hbm_to_vmem [thread:$0]  %s7767_s6, 16, %s314_s26, [#allocation17]  }
 0x108   :  { %s7363_s30 = scalar_lea.vmem %s336_s1, 16  ;;  %s7367_s7 = scalar_lea.vmem %s336_s1, 32 }
 0x109   :  { %p7364_p9 = scmp.ne.s32.totalorder %s336_s1, %s7363_s30  ;;  %p7368_p10 = scmp.lt.s32.totalorder %s336_s1, %s336_s1 }
 0x10a   :  { %p7369_p11 = scmp.lt.s32.totalorder %s7367_s7, %s7363_s30 }
 0x10c   :  { %p7370_p12 = por %p7369_p11, %p7368_p10 }
 0x10e   :  { %p7371_p13 = pnand %p7370_p12, %p7364_p9 }
 0x110   :  { %7374 = shalt.err (!%p7371_p13)
}
 0x111   :  { %338 = dma.hbm_to_vmem [thread:$0]  %s7782_s29, 16, %s336_s1, [#allocation20]  }
 0x112   :  { %s7504_s13 = smov [#allocation24]   ;;  %s7505_s21 = smov [#allocation25]  }
 0x113   :  { %s357_s14 = sshll.u32 %s7504_s13, 4  ;;  %s367_s10 = sshll.u32 %s7505_s21, 4  ;;  %s358_s14 = int_to_ptr.vmem [resolvable:$true] %s357_s14  ;;  %s368_s10 = int_to_ptr.vmem [resolvable:$true] %s367_s10 }
 0x114   :  { %s7383_s9 = scalar_lea.vmem %s358_s14, 16  ;;  %s7387_s11 = scalar_lea.vmem %s358_s14, 32 }
 0x115   :  { %p7384_p0 = scmp.ne.s32.totalorder %s358_s14, %s7383_s9  ;;  %p7388_p1 = scmp.lt.s32.totalorder %s358_s14, %s358_s14 }
 0x116   :  { %p7389_p2 = scmp.lt.s32.totalorder %s7387_s11, %s7383_s9 }
 0x118   :  { %p7390_p3 = por %p7389_p2, %p7388_p1 }
 0x11a   :  { %p7391_p4 = pnand %p7390_p3, %p7384_p0 }
 0x11c   :  { %7394 = shalt.err (!%p7391_p4)
}
 0x11d   :  { %360 = dma.hbm_to_vmem [thread:$0]  %s7797_s24, 16, %s358_s14, [#allocation23]  }
 0x11e   :  { %s7403_s6 = scalar_lea.vmem %s368_s10, 16  ;;  %s7407_s15 = scalar_lea.vmem %s368_s10, 32 }
 0x11f   :  { %p7404_p5 = scmp.ne.s32.totalorder %s368_s10, %s7403_s6  ;;  %p7408_p6 = scmp.lt.s32.totalorder %s368_s10, %s368_s10 }
 0x120   :  { %p7409_p7 = scmp.lt.s32.totalorder %s7407_s15, %s7403_s6 }
 0x122   :  { %p7410_p8 = por %p7409_p7, %p7408_p6 }
 0x124   :  { %p7411_p9 = pnand %p7410_p8, %p7404_p5 }
 0x126   :  { %7414 = shalt.err (!%p7411_p9)
}
 0x127   :  { %370 = dma.hbm_to_vmem [thread:$0]  %s7802_s5, 16, %s368_s10, [#allocation26]  }
 0x128   :  { %7415 = dma.done.wait [#allocation3], 16  }
 0x129   :  { %7416 = vsyncadd [#allocation3], 4294967280 }
 0x12a   :  { %7417 = dma.done.wait [#allocation5], 32  }
 0x12b   :  { %7418 = vsyncadd [#allocation5], 4294967264 }
 0x12c   :  { %7419 = dma.done.wait [#allocation8], 32  }
 0x12d   :  { %7420 = vsyncadd [#allocation8], 4294967264 }
 0x12e   :  { %7421 = dma.done.wait [#allocation11], 32  }
 0x12f   :  { %7422 = vsyncadd [#allocation11], 4294967264 }
 0x130   :  { %7423 = dma.done.wait [#allocation14], 32  }
 0x131   :  { %7424 = vsyncadd [#allocation14], 4294967264 }
 0x132   :  { %7425 = dma.done.wait [#allocation17], 32  }
 0x133   :  { %7426 = vsyncadd [#allocation17], 4294967264 }
 0x134   :  { %7427 = dma.done.wait [#allocation20], 32  }
 0x135   :  { %7428 = vsyncadd [#allocation20], 4294967264 }
 0x136   :  { %7429 = dma.done.wait [#allocation23], 32  }
 0x137   :  { %7430 = vsyncadd [#allocation23], 4294967264 }
 0x138   :  { %7431 = dma.done.wait [#allocation26], 16  }
 0x139   :  { %7432 = vsyncadd [#allocation26], 4294967280  ;;  %s8784_s5 = sld [smem:[#allocation36_spill]]  ;;  %v7506_v0 = vmov 0.0   ;;  %vm7507_vm0 = vmmov 0   ;;  %v6892_v1 = vld [vmem:[%s7547_s25 + $0x8] sm:$0xff]   ;;  %v431_v46 = vlaneseq }
 0x13a   :  { %s8785_s29 = sld [smem:[#allocation42_spill]]  ;;  %6199 = vmatprep.subr.bf16.mxu1 %v7506_v0  ;;  %6203 = vmatprep.mubr.msk.bf16.mxu1 %vm7507_vm0, %v7506_v0  ;;  %v6893_v2 = vld [vmem:[%s7547_s25] sm:$0xff]   ;;  %vm469_vm1 = vcmask 261120   ;;  %vm644_vm2 = vcmask 64512   ;;  %s7508_s25 = smov 112   ;;  %vm707_vm3 = vcmask 1043456  }
 0x13b   :  { %6215 = vmatprep.subr.bf16.mxu0 %v7506_v0  ;;  %6219 = vmatprep.mubr.msk.bf16.mxu0 %vm7507_vm0, %v7506_v0  ;;  %s8786_s24 = sld [smem:[#allocation43_spill]]  ;;  %s7509_s16 = smov 120   ;;  %v432_v47 = vshrl.u32 %v431_v46, 7  ;;  %vm1097_vm4 = vcmask 130048   ;;  %vm1099_vm5 = vcmask 195584   ;;  %vm3021_vm6 = vcmask 523264  }
 0x13c   :  { %6200 = vmatpush3.bf16.msra.mxu1 %v6892_v1  ;;  %s8787_s3 = sld [smem:[#allocation41_spill]]  ;;  %s7510_s18 = smov 104   ;;  %vm5758_vm7 = vcmask 257024  }
 0x13d   :  { %6201 = vmatprep.subr.bf16.mxu1 %v7506_v0  ;;  %s8788_s27 = sld [smem:[#allocation44_spill]]  ;;  %v433_v48 = vsub.s32 0, %v432_v47  ;;  %s7511_s20 = smov 8  }
 0x13e   :  { %s8789_s0 = sld [smem:[#allocation39_spill]]  ;;  %s7512_s23 = smov 16  }
 0x13f   :  { %v7834_v3 = vld [vmem:[%s8784_s5] sm:$0xff]   ;;  %s8790_s4 = sld [smem:[#allocation38_spill]]  ;;  %s7513_s12 = smov 24  }
 0x140   :  { %v6895_v4 = vld [vmem:[%s8785_s29 + $0x8] sm:$0xff]   ;;  %6202 = vmatpush3.bf16.msra.mxu1 %v6893_v2  ;;  %v6896_v5 = vld [vmem:[%s8785_s29] sm:$0xff]   ;;  %s8791_s22 = sld [smem:[#allocation45_spill]] }
 0x141   :  { %6207 = vmatprep.subr.bf16.mxu1 %v7506_v0  ;;  %v5836_v10 = vld [vmem:[%s8786_s24] ss:$0 sm:$0xff]  ;;  %s8792_s19 = sld [smem:[#allocation46_spill]] }
 0x142   :  { %v5831_v11 = vld [vmem:[%s8787_s3] ss:$0 sm:$0xff]  ;;  %s8793_s26 = sld [smem:[#allocation47_spill]] }
 0x143   :  { %6204 = vmatmul.mubr.msk.bf16.vlgmr.msra.gmra.mxu1 %vm469_vm1, %v7834_v3  ;;  %v6897_v25 = vld [vmem:[%s8788_s27 + $0x8] sm:$0xff]   ;;  %v6898_v26 = vld [vmem:[%s8788_s27] sm:$0xff]   ;;  %s8794_s28 = sld [smem:[#allocation52_spill]] }
 0x144   :  { %6208 = vmatpush3.bf16.msra.mxu1 %v6895_v4  ;;  %6211 = vmatprep.mubr.msk.bf16.mxu1 %vm7507_vm0, %v7506_v0  ;;  %v429_v49 = vld [vmem:[%s8789_s0] sm:$0x3]  ;;  %s8795_s1 = sld [smem:[#allocation37_spill]] }
 0x145   :  { %6209 = vmatprep.subr.bf16.mxu1 %v7506_v0  ;;  %6216 = vmatpush3.bf16.msra.mxu0 %v6897_v25  ;;  %v434_v50 = vrot.slane %v429_v49, %v433_v48  ;;  %v428_v51 = vld [vmem:[%s8790_s4] sm:$0xff]  ;;  %s8796_s2 = sld [smem:[#allocation50_spill]] }
 0x146   :  { %6217 = vmatprep.subr.bf16.mxu0 %v7506_v0  ;;  %s8797_s17 = sld [smem:[#allocation48_spill]] }
 0x147   :  { %v7914_v52 = vadd.f32 %v434_v50, %v428_v51  ;;  %s8798_s30 = sld [smem:[#allocation49_spill]] }
 0x148   :  { %6210 = vmatpush3.bf16.msra.mxu1 %v6896_v5  ;;  %s8799_s7 = sld [smem:[#allocation53_spill]] }
 0x149   :  { %6223 = vmatprep.subr.bf16.mxu1 %v7506_v0  ;;  %6218 = vmatpush3.bf16.msra.mxu0 %v6898_v26  ;;  %s8800_s13 = sld [smem:[#allocation51_spill]] }
 0x14a   :  { %6229 = vmatprep.subr.bf16.mxu0 %v7506_v0  ;;  %s8801_s14 = sld [smem:[#allocation54_spill]] }
 0x14b   :  { %6212 = vmatmul.mubr.msk.bf16.vlgmr.msra.gmra.mxu1 %vm469_vm1, %v7834_v3  ;;  %s8802_s21 = sld [smem:[#allocation40_spill]] }
 0x14c   :  { %6225 = vmatprep.mubr.msk.bf16.mxu1 %vm7507_vm0, %v7506_v0  ;;  %6220 = vmatmul.mubr.msk.bf16.vlgmr.msra.gmra.mxu0 %vm469_vm1, %v7834_v3  ;;  %s8803_s10 = sld [smem:[#allocation55_spill]] }
 0x14d   :  { %6231 = vmatprep.mubr.msk.bf16.mxu0 %vm7507_vm0, %v7506_v0  ;;  %s8804_s9 = sld [smem:[#allocation56_spill]] }
 0x14e   :  { %s8805_s11 = sld [smem:[#allocation57_spill]] }
 0x14f   :  { %s8806_s6 = sld [smem:[#allocation60_spill]] }
 0x150   :  { %s8807_s15 = sld [smem:[#allocation62_spill]] }
 0x151   :  { %s8808_s5 = sld [smem:[#allocation58_spill]] }
 0x152   :  { %s8809_s29 = sld [smem:[#allocation59_spill]] }
 0x153   :  { %s8810_s24 = sld [smem:[#allocation61_spill]] }
 0x154   :  { %s8811_s3 = sld [smem:[#allocation63_spill]] }
 0x155   :  { %s8812_s27 = sld [smem:[#allocation66_spill]] }
 0x156   :  { %s8813_s0 = sld [smem:[#allocation68_spill]] }
 0x157   :  { %s8814_s4 = sld [smem:[#allocation64_spill]] }
 0x203   :  { %v507_v6 = vpop.f32.mrf.mxu1 }
 0x204   :  { %v508_v15 = vadd.f32 %v5831_v11, %v507_v6 }
 0x205   :  { %v6205_v7 = vpop.f32.mrf.mxu1 }
 0x206   :  { %v642_v20 = vpack.c.bf16 %v508_v15, %v508_v15 }
 0x207   :  { %v510_v8 = vpop.f32.mrf.mxu1 }
 0x208   :  { %v511_v21 = vadd.f32 %v5831_v11, %v510_v8  ;;  %v438_v8 = vsub.s32 1, %v432_v47 }
 0x209   :  { %v6206_v9 = vpop.f32.mrf.mxu1 }
 0x20a   :  { %v1101_v23 = vpack.c.bf16 %v511_v21, %v511_v21 }
 0x20b   :  { %v571_v12 = vpop.f32.mrf.mxu1 }
 0x20c   :  { %v572_v13 = vadd.f32 %v5836_v10, %v571_v12  ;;  %v439_v12 = vrot.slane %v429_v49, %v438_v8 }
 0x20d   :  { %v6213_v14 = vpop.f32.mrf.mxu1 }
 0x20e   :  { %v643_v16 = vpack.c.bf16 %v572_v13, %v572_v13 }
 0x20f   :  { %v574_v17 = vpop.f32.mrf.mxu1 }
 0x210   :  { %866 = vrot.lane.b32.xlu1 %v643_v16, %s7508_s25  ;;  %755 = vrot.lane.b32.xlu0 %v643_v16, %s7509_s16  ;;  %v649_v18 = vsel %vm644_vm2, %v643_v16, 0  ;;  %v575_v22 = vadd.f32 %v5836_v10, %v574_v17 }
 0x211   :  { %v6214_v19 = vpop.f32.mrf.mxu1  ;;  %6224 = vmatpush3.bf16.xpose.msra.mxu1 %v649_v18 }
 0x212   :  { %6235 = vmatprep.subr.bf16.mxu1 %v7506_v0  ;;  %v1102_v24 = vpack.c.bf16 %v575_v22, %v575_v22 }
 0x214   :  { %864 = vrot.lane.b32.xlu1 %v642_v20, %s7508_s25  ;;  %752 = vrot.lane.b32.xlu0 %v642_v20, %s7509_s16  ;;  %v1107_v36 = vsel %vm644_vm2, %v1102_v24, 0 }
 0x218   :  { %974 = vrot.lane.b32.xlu1 %v642_v20, %s7510_s18  ;;  %976 = vrot.lane.b32.xlu0 %v643_v16, %s7510_s18  ;;  %v7933_v16 = vadd.f32 %v439_v12, %v428_v51 }
 0x219   :  { %6226 = vmatmul.mubr.msk.bf16.vlgmr.msra.gmra.mxu1 %vm644_vm2, %v642_v20 }
 0x21a   :  { %6237 = vmatprep.mubr.msk.bf16.mxu1 %vm7507_vm0, %v7506_v0 }
 0x21c   :  { %1209 = vrot.lane.b32.xlu1 %v1101_v23, %s7509_s16  ;;  %1212 = vrot.lane.b32.xlu0 %v1102_v24, %s7509_s16 }
 0x220   :  { %1321 = vrot.lane.b32.xlu1 %v1101_v23, %s7508_s25  ;;  %1323 = vrot.lane.b32.xlu0 %v1102_v24, %s7508_s25 }
 0x224   :  { %1431 = vrot.lane.b32.xlu1 %v1101_v23, %s7510_s18  ;;  %1433 = vrot.lane.b32.xlu0 %v1102_v24, %s7510_s18 }
 0x282   :  { %v756_v27 = vpop.permute.xlu0 %755  ;;  %v867_v29 = vpop.permute.xlu1 %866 }
 0x283   :  { %v761_v28 = vsel %vm644_vm2, %v756_v27, 0  ;;  %v872_v31 = vsel %vm644_vm2, %v867_v29, 0 }
 0x284   :  { %6236 = vmatpush3.bf16.xpose.msra.mxu1 %v761_v28 }
 0x285   :  { %6247 = vmatprep.subr.bf16.mxu1 %v7506_v0 }
 0x286   :  { %v753_v30 = vpop.permute.xlu0 %752  ;;  %v865_v33 = vpop.permute.xlu1 %864 }
 0x28a   :  { %v977_v32 = vpop.permute.xlu0 %976  ;;  %v975_v35 = vpop.permute.xlu1 %974 }
 0x28b   :  { %6238 = vmatmul.mubr.msk.bf16.vlgmr.msra.gmra.mxu1 %vm644_vm2, %v753_v30  ;;  %v982_v34 = vsel %vm644_vm2, %v977_v32, 0 }
 0x28c   :  { %6248 = vmatpush3.bf16.xpose.msra.mxu1 %v872_v31  ;;  %6249 = vmatprep.mubr.msk.bf16.mxu1 %vm7507_vm0, %v7506_v0 }
 0x28d   :  { %6259 = vmatprep.subr.bf16.mxu1 %v7506_v0 }
 0x28e   :  { %v1213_v37 = vpop.permute.xlu0 %1212  ;;  %v1210_v40 = vpop.permute.xlu1 %1209 }
 0x28f   :  { %v1218_v38 = vsel %vm644_vm2, %v1213_v37, 0 }
 0x292   :  { %v1324_v39 = vpop.permute.xlu0 %1323  ;;  %v1322_v43 = vpop.permute.xlu1 %1321 }
 0x293   :  { %6250 = vmatmul.mubr.msk.bf16.vlgmr.msra.gmra.mxu1 %vm644_vm2, %v865_v33  ;;  %v1329_v41 = vsel %vm644_vm2, %v1324_v39, 0 }
 0x294   :  { %6260 = vmatpush3.bf16.xpose.msra.mxu1 %v982_v34  ;;  %6261 = vmatprep.mubr.msk.bf16.mxu1 %vm7507_vm0, %v7506_v0 }
 0x295   :  { %6271 = vmatprep.subr.bf16.mxu1 %v7506_v0 }
 0x296   :  { %v1434_v42 = vpop.permute.xlu0 %1433  ;;  %v1432_v45 = vpop.permute.xlu1 %1431 }
 0x297   :  { %v1439_v44 = vsel %vm644_vm2, %v1434_v42, 0  ;;  %v635_v42 = vpop.f32.mrf.mxu0 }
 0x299   :  { %v6221_v46 = vpop.f32.mrf.mxu0 }
 0x29b   :  { %6262 = vmatmul.mubr.msk.bf16.vlgmr.msra.gmra.mxu1 %vm644_vm2, %v975_v35  ;;  %v638_v50 = vpop.f32.mrf.mxu0 }
 0x29c   :  { %6272 = vmatpush3.bf16.xpose.msra.mxu1 %v1107_v36  ;;  %6273 = vmatprep.mubr.msk.bf16.mxu1 %vm7507_vm0, %v7506_v0 }
 0x29d   :  { %6283 = vmatprep.subr.bf16.mxu1 %v7506_v0 }
 0x2a3   :  { %6274 = vmatmul.mubr.msk.bf16.vlgmr.msra.gmra.mxu1 %vm644_vm2, %v1101_v23 }
 0x2a4   :  { %6284 = vmatpush3.bf16.xpose.msra.mxu1 %v1218_v38  ;;  %6285 = vmatprep.mubr.msk.bf16.mxu1 %vm7507_vm0, %v7506_v0 }
 0x2a5   :  { %6295 = vmatprep.subr.bf16.mxu1 %v7506_v0 }
 0x2ab   :  { %6286 = vmatmul.mubr.msk.bf16.vlgmr.msra.gmra.mxu1 %vm644_vm2, %v1210_v40 }
 0x2ac   :  { %6296 = vmatpush3.bf16.xpose.msra.mxu1 %v1329_v41  ;;  %6297 = vmatprep.mubr.msk.bf16.mxu1 %vm7507_vm0, %v7506_v0 }
 0x2ad   :  { %6307 = vmatprep.subr.bf16.mxu1 %v7506_v0 }
 0x2b3   :  { %6298 = vmatmul.mubr.msk.bf16.vlgmr.msra.gmra.mxu1 %vm644_vm2, %v1322_v43 }
 0x2b4   :  { %6308 = vmatpush3.bf16.xpose.msra.mxu1 %v1439_v44  ;;  %6309 = vmatprep.mubr.msk.bf16.mxu1 %vm7507_vm0, %v7506_v0 }
 0x2b5   :  { %6319 = vmatprep.subr.bf16.mxu1 %v7506_v0 }
 0x2bb   :  { %6310 = vmatmul.mubr.msk.bf16.vlgmr.msra.gmra.mxu1 %vm644_vm2, %v1432_v45  ;;  %v5840_v45 = vld [vmem:[%s8791_s22] ss:$0 sm:$0xff]  ;;  %s8815_s22 = sld [smem:[#allocation65_spill]] }
 0x2bc   :  { %6323 = vmatprep.mubr.msk.bf16.mxu1 %vm7507_vm0, %v7506_v0  ;;  %v636_v48 = vadd.f32 %v5840_v45, %v635_v42  ;;  %v7954_v51 = vadd.f32 %v5840_v45, %v638_v50 }
 0x2d9   :  { %v685_v53 = vpop.f32.mrf.mxu1 }
 0x2da   :  { %v686_v54 = vadd.f32 %v685_v53, %v7914_v52 }
 0x2db   :  { %v6227_v55 = vpop.f32.mrf.mxu1 }
 0x2dc   :  { %v691_v56 = vsel %vm644_vm2, %v686_v54, -inf  ;;  %v703_v55 = vpack.c.bf16 %v636_v48, %v636_v48 }
 0x2dd   :  { %692 = vmax.xlane.f32.xlu0 %v691_v56  ;;  %v688_v57 = vpop.f32.mrf.mxu1 }
 0x2de   :  { %v709_v56 = vsel %vm707_vm3, %v703_v55, 0 }
 0x2df   :  { %v6228_v58 = vpop.f32.mrf.mxu1  ;;  %6230 = vmatpush3.bf16.msra.mxu0 %v709_v56 }
 0x2e0   :  { %6241 = vmatprep.subr.bf16.mxu0 %v7506_v0 }
 0x34b   :  { %v797_v59 = vpop.f32.mrf.mxu1 }
 0x34c   :  { %v7919_v60 = vadd.f32 %v797_v59, %v7914_v52 }
 0x34d   :  { %v6239_v61 = vpop.f32.mrf.mxu1 }
 0x34e   :  { %v803_v62 = vsel %vm644_vm2, %v7919_v60, -inf }
 0x34f   :  { %804 = vmax.xlane.f32.xlu1 %v803_v62  ;;  %v800_v63 = vpop.f32.mrf.mxu1 }
 0x351   :  { %v6240_v1 = vpop.f32.mrf.mxu1 }
 0x353   :  { %v908_v2 = vpop.f32.mrf.mxu1 }
 0x354   :  { %v7924_v4 = vadd.f32 %v908_v2, %v7914_v52 }
 0x355   :  { %v6251_v5 = vpop.f32.mrf.mxu1 }
 0x356   :  { %v914_v6 = vsel %vm644_vm2, %v7924_v4, -inf }
 0x357   :  { %915 = vmax.xlane.f32.xlu0 %v914_v6  ;;  %v911_v7 = vpop.f32.mrf.mxu1 }
 0x359   :  { %v6252_v9 = vpop.f32.mrf.mxu1 }
 0x35b   :  { %v1018_v10 = vpop.f32.mrf.mxu1 }
 0x35c   :  { %v7929_v11 = vadd.f32 %v1018_v10, %v7914_v52 }
 0x35d   :  { %v6263_v13 = vpop.f32.mrf.mxu1 }
 0x35e   :  { %v1024_v14 = vsel %vm644_vm2, %v7929_v11, -inf }
 0x35f   :  { %1025 = vmax.xlane.f32.xlu0 %v1024_v14  ;;  %v1021_v15 = vpop.f32.mrf.mxu1 }
 0x361   :  { %v6264_v17 = vpop.f32.mrf.mxu1 }
 0x363   :  { %v1143_v18 = vpop.f32.mrf.mxu1 }
 0x364   :  { %v7936_v19 = vadd.f32 %v1143_v18, %v7933_v16 }
 0x365   :  { %v6275_v20 = vpop.f32.mrf.mxu1 }
 0x366   :  { %v693_v21 = vpop.xlane.xlu0 %692  ;;  %v1149_v22 = vsel %vm644_vm2, %v7936_v19, -inf }
 0x367   :  { %v694_v23 = vsub.f32 %v686_v54, %v693_v21  ;;  %1150 = vmax.xlane.f32.xlu1 %v1149_v22  ;;  %v1146_v24 = vpop.f32.mrf.mxu1  ;;  %v6222_v54 = vpop.f32.mrf.mxu0 }
 0x369   :  { %v695_v25 = vmul.f32 1.442695, %v694_v23  ;;  %v6276_v26 = vpop.f32.mrf.mxu1 }
 0x36b   :  { %6940 = vpow2.f32 %v695_v25  ;;  %v1254_v27 = vpop.f32.mrf.mxu1 }
 0x36c   :  { %v7941_v28 = vadd.f32 %v1254_v27, %v7933_v16 }
 0x36d   :  { %v6287_v29 = vpop.f32.mrf.mxu1 }
 0x36e   :  { %v1260_v30 = vsel %vm644_vm2, %v7941_v28, -inf }
 0x36f   :  { %1261 = vmax.xlane.f32.xlu0 %v1260_v30  ;;  %v1257_v31 = vpop.f32.mrf.mxu1 }
 0x371   :  { %v6288_v32 = vpop.f32.mrf.mxu1 }
 0x373   :  { %v1365_v33 = vpop.f32.mrf.mxu1 }
 0x374   :  { %v7946_v34 = vadd.f32 %v1365_v33, %v7933_v16 }
 0x375   :  { %v6299_v35 = vpop.f32.mrf.mxu1 }
 0x376   :  { %v1371_v36 = vsel %vm644_vm2, %v7946_v34, -inf  ;;  %v1161_v35 = vpack.c.bf16 %v7954_v51, %v7954_v51 }
 0x377   :  { %1372 = vmax.xlane.f32.xlu1 %v1371_v36  ;;  %v1368_v37 = vpop.f32.mrf.mxu1 }
 0x378   :  { %v6941_v38 = vpop.eup %6940 }
 0x379   :  { %v6300_v39 = vpop.f32.mrf.mxu1  ;;  %v697_v40 = vsel %vm644_vm2, %v6941_v38, 0.0 }
 0x37b   :  { %698 = vadd.xlane.f32.xlu1 %v697_v40  ;;  %v1475_v41 = vpop.f32.mrf.mxu1 }
 0x37c   :  { %v1476_v43 = vadd.f32 %v1475_v41, %v7933_v16 }
 0x37d   :  { %v6311_v44 = vpop.f32.mrf.mxu1 }
 0x37e   :  { %v1481_v47 = vsel %vm644_vm2, %v1476_v43, -inf }
 0x37f   :  { %1482 = vmax.xlane.f32.xlu0 %v1481_v47  ;;  %v1478_v49 = vpop.f32.mrf.mxu1 }
 0x381   :  { %v6312_v53 = vpop.f32.mrf.mxu1 }
 0x3d8   :  { %v805_v57 = vpop.xlane.xlu1 %804 }
 0x3d9   :  { %v806_v58 = vsub.f32 %v7919_v60, %v805_v57 }
 0x3db   :  { %v807_v59 = vmul.f32 1.442695, %v806_v58 }
 0x3dd   :  { %6942 = vpow2.f32 %v807_v59 }
 0x3e0   :  { %v916_v61 = vpop.xlane.xlu0 %915 }
 0x3e1   :  { %v917_v62 = vsub.f32 %v7924_v4, %v916_v61 }
 0x3e3   :  { %v918_v63 = vmul.f32 1.442695, %v917_v62 }
 0x3e5   :  { %6944 = vpow2.f32 %v918_v63 }
 0x3e8   :  { %v1026_v1 = vpop.xlane.xlu0 %1025 }
 0x3e9   :  { %v1027_v2 = vsub.f32 %v7929_v11, %v1026_v1 }
 0x3ea   :  { %v6943_v5 = vpop.eup %6942 }
 0x3eb   :  { %v1028_v6 = vmul.f32 1.442695, %v1027_v2  ;;  %v809_v7 = vsel %vm644_vm2, %v6943_v5, 0.0 }
 0x3ec   :  { %810 = vadd.xlane.f32.xlu0 %v809_v7 }
 0x3ed   :  { %6946 = vpow2.f32 %v1028_v6 }
 0x3f0   :  { %v1151_v10 = vpop.xlane.xlu1 %1150 }
 0x3f1   :  { %v1152_v14 = vsub.f32 %v7936_v19, %v1151_v10 }
 0x3f2   :  { %v7962_v8 = vpop.eup %6944 }
 0x3f3   :  { %v920_v60 = vsel %vm644_vm2, %v7962_v8, 0.0  ;;  %v1153_v21 = vmul.f32 1.442695, %v1152_v14 }
 0x3f4   :  { %921 = vadd.xlane.f32.xlu1 %v920_v60 }
 0x3f8   :  { %v1262_v15 = vpop.xlane.xlu0 %1261 }
 0x3f9   :  { %v1263_v20 = vsub.f32 %v7941_v28, %v1262_v15 }
 0x3fa   :  { %v7966_v9 = vpop.eup %6946 }
 0x3fb   :  { %v1030_v4 = vsel %vm644_vm2, %v7966_v9, 0.0  ;;  %v1264_v24 = vmul.f32 1.442695, %v1263_v20 }
 0x3fc   :  { %1031 = vadd.xlane.f32.xlu0 %v1030_v4 }
 0x400   :  { %v1373_v11 = vpop.xlane.xlu1 %1372 }
 0x401   :  { %v1374_v22 = vsub.f32 %v7946_v34, %v1373_v11 }
 0x403   :  { %v1375_v25 = vmul.f32 1.442695, %v1374_v22 }
 0x404   :  { %v699_v12 = vpop.xlane.xlu1 %698 }
 0x405   :  { %926 = vrot.lane.b32.xlu1 %v703_v55, %s7508_s25  ;;  %6948 = vrcp.f32 %v699_v12 }
 0x406   :  { %6950 = vpow2.f32 %v1153_v21 }
 0x407   :  { %6952 = vpow2.f32 %v1264_v24 }
 0x408   :  { %v1483_v23 = vpop.xlane.xlu0 %1482  ;;  %6954 = vpow2.f32 %v1375_v25 }
 0x409   :  { %1036 = vrot.lane.b32.xlu1 %v703_v55, %s7510_s18  ;;  %v1484_v26 = vsub.f32 %v1476_v43, %v1483_v23 }
 0x40b   :  { %v1485_v19 = vmul.f32 1.442695, %v1484_v26 }
 0x40d   :  { %6956 = vpow2.f32 %v1485_v19 }
 0x412   :  { %816 = vrot.lane.b32.xlu0 %v703_v55, %s7509_s16  ;;  %v6949_v13 = vpop.eup %6948  ;;  %v1166_v55 = vsel %vm707_vm3, %v1161_v35, 0 }
 0x413   :  { %v701_v17 = vmul.f32 %v6949_v13, %v6941_v38  ;;  %v6951_v27 = vpop.eup %6950 }
 0x414   :  { %v7979_v29 = vpop.eup %6952  ;;  %v1155_v28 = vsel %vm644_vm2, %v6951_v27, 0.0 }
 0x415   :  { %v702_v18 = vpack.c.bf16 %v701_v17, %v701_v17  ;;  %v7982_v30 = vpop.eup %6954  ;;  %v1266_v31 = vsel %vm644_vm2, %v7979_v29, 0.0 }
 0x416   :  { %v1377_v32 = vsel %vm644_vm2, %v7982_v30, 0.0 }
 0x417   :  { %6232 = vmatmul.mubr.msk.bf16.vlgmr.msra.gmra.mxu0 %vm644_vm2, %v702_v18 }
 0x418   :  { %6243 = vmatprep.mubr.msk.bf16.mxu0 %vm7507_vm0, %v7506_v0 }
 0x41a   :  { %v7988_v33 = vpop.eup %6956 }
 0x41b   :  { %v1487_v34 = vsel %vm644_vm2, %v7988_v33, 0.0 }
 0x42d   :  { %1156 = vadd.xlane.f32.xlu1 %v1155_v28 }
 0x431   :  { %1267 = vadd.xlane.f32.xlu1 %v1266_v31  ;;  %1378 = vadd.xlane.f32.xlu0 %v1377_v32 }
 0x435   :  { %1488 = vadd.xlane.f32.xlu1 %v1487_v34 }
 0x446   :  { %1383 = vrot.lane.b32.xlu1 %v1161_v35, %s7508_s25 }
 0x447   :  { %1273 = vrot.lane.b32.xlu0 %v1161_v35, %s7509_s16 }
 0x44b   :  { %1493 = vrot.lane.b32.xlu0 %v1161_v35, %s7510_s18 }
 0x475   :  { %v811_v36 = vpop.xlane.xlu0 %810 }
 0x476   :  { %6958 = vrcp.f32 %v811_v36 }
 0x47d   :  { %v922_v37 = vpop.xlane.xlu1 %921 }
 0x47e   :  { %6960 = vrcp.f32 %v922_v37 }
 0x481   :  { %v927_v43 = vpop.permute.xlu1 %926 }
 0x482   :  { %v932_v46 = vsel %vm707_vm3, %v927_v43, 0  ;;  %v6900_v43 = vld [vmem:[%s8792_s19] sm:$0xff]  }
 0x483   :  { %v6959_v38 = vpop.eup %6958 }
 0x484   :  { %v813_v40 = vmul.f32 %v6959_v38, %v6943_v5  ;;  %v6899_v38 = vld [vmem:[%s8792_s19 + $0x8] sm:$0xff]   ;;  %s8816_s19 = sld [smem:[#allocation67_spill]] }
 0x485   :  { %v1032_v39 = vpop.xlane.xlu0 %1031  ;;  %v1037_v48 = vpop.permute.xlu1 %1036  ;;  %6320 = vmatpush3.bf16.msra.mxu1 %v6899_v38 }
 0x486   :  { %6962 = vrcp.f32 %v1032_v39  ;;  %v814_v44 = vpack.c.bf16 %v813_v40, %v813_v40  ;;  %v1042_v51 = vsel %vm707_vm3, %v1037_v48, 0  ;;  %6321 = vmatprep.subr.bf16.mxu1 %v7506_v0 }
 0x489   :  { %v817_v41 = vpop.permute.xlu0 %816  ;;  %6322 = vmatpush3.bf16.msra.mxu1 %v6900_v43 }
 0x48a   :  { %v822_v42 = vsel %vm707_vm3, %v817_v41, 0 }
 0x48b   :  { %6242 = vmatpush3.bf16.msra.mxu0 %v822_v42  ;;  %v6961_v45 = vpop.eup %6960 }
 0x48c   :  { %6253 = vmatprep.subr.bf16.mxu0 %v7506_v0  ;;  %v924_v47 = vmul.f32 %v6961_v45, %v7962_v8 }
 0x48e   :  { %6244 = vmatmul.mubr.msk.bf16.vlgmr.msra.gmra.mxu0 %vm644_vm2, %v814_v44  ;;  %v925_v49 = vpack.c.bf16 %v924_v47, %v924_v47 }
 0x48f   :  { %6254 = vmatpush3.bf16.msra.mxu0 %v932_v46  ;;  %6255 = vmatprep.mubr.msk.bf16.mxu0 %vm7507_vm0, %v7506_v0 }
 0x490   :  { %6265 = vmatprep.subr.bf16.mxu0 %v7506_v0 }
 0x493   :  { %v6963_v50 = vpop.eup %6962 }
 0x494   :  { %v1034_v53 = vmul.f32 %v6963_v50, %v7966_v9 }
 0x496   :  { %6256 = vmatmul.mubr.msk.bf16.vlgmr.msra.gmra.mxu0 %vm644_vm2, %v925_v49  ;;  %v1035_v54 = vpack.c.bf16 %v1034_v53, %v1034_v53 }
 0x497   :  { %6266 = vmatpush3.bf16.msra.mxu0 %v1042_v51  ;;  %6267 = vmatprep.mubr.msk.bf16.mxu0 %vm7507_vm0, %v7506_v0 }
 0x498   :  { %6277 = vmatprep.subr.bf16.mxu0 %v7506_v0 }
 0x49e   :  { %6268 = vmatmul.mubr.msk.bf16.vlgmr.msra.gmra.mxu0 %vm644_vm2, %v1035_v54 }
 0x49f   :  { %6278 = vmatpush3.bf16.msra.mxu0 %v1166_v55  ;;  %6279 = vmatprep.mubr.msk.bf16.mxu0 %vm7507_vm0, %v7506_v0 }
 0x4a0   :  { %6289 = vmatprep.subr.bf16.mxu0 %v7506_v0 }
 0x4b6   :  { %v1157_v56 = vpop.xlane.xlu1 %1156 }
 0x4b7   :  { %6964 = vrcp.f32 %v1157_v56 }
 0x4ba   :  { %v1268_v57 = vpop.xlane.xlu1 %1267  ;;  %v1379_v58 = vpop.xlane.xlu0 %1378 }
 0x4bb   :  { %6966 = vrcp.f32 %v1268_v57 }
 0x4bc   :  { %6968 = vrcp.f32 %v1379_v58 }
 0x4be   :  { %v1274_v62 = vpop.permute.xlu0 %1273  ;;  %v1489_v2 = vpop.xlane.xlu1 %1488 }
 0x4bf   :  { %v1279_v5 = vsel %vm707_vm3, %v1274_v62, 0  ;;  %6970 = vrcp.f32 %v1489_v2 }
 0x4c2   :  { %v1384_v7 = vpop.permute.xlu1 %1383  ;;  %v1494_v10 = vpop.permute.xlu0 %1493 }
 0x4c3   :  { %v1389_v9 = vsel %vm707_vm3, %v1384_v7, 0  ;;  %v1499_v14 = vsel %vm707_vm3, %v1494_v10, 0  ;;  %v422_v10 = vunpack.c.l.bf16 %v7834_v3 }
 0x4c4   :  { %v6965_v59 = vpop.eup %6964 }
 0x4c5   :  { %v1159_v61 = vmul.f32 %v6965_v59, %v6951_v27 }
 0x4c7   :  { %v1160_v63 = vpack.c.bf16 %v1159_v61, %v1159_v61 }
 0x4c8   :  { %v6967_v1 = vpop.eup %6966 }
 0x4c9   :  { %6280 = vmatmul.mubr.msk.bf16.vlgmr.msra.gmra.mxu0 %vm644_vm2, %v1160_v63  ;;  %v1270_v6 = vmul.f32 %v6967_v1, %v7979_v29  ;;  %v6969_v60 = vpop.eup %6968 }
 0x4ca   :  { %6290 = vmatpush3.bf16.msra.mxu0 %v1279_v5  ;;  %6291 = vmatprep.mubr.msk.bf16.mxu0 %vm7507_vm0, %v7506_v0  ;;  %v1381_v4 = vmul.f32 %v6969_v60, %v7982_v30 }
 0x4cb   :  { %6301 = vmatprep.subr.bf16.mxu0 %v7506_v0  ;;  %v1271_v8 = vpack.c.bf16 %v1270_v6, %v1270_v6 }
 0x4cc   :  { %v1382_v11 = vpack.c.bf16 %v1381_v4, %v1381_v4  ;;  %v6971_v12 = vpop.eup %6970  ;;  %v5860_v4 = vld [vmem:[%s8793_s26] ss:$0 sm:$0xff]  ;;  %s8817_s26 = sld [smem:[#allocation69_spill]] }
 0x4cd   :  { %v1491_v17 = vmul.f32 %v6971_v12, %v7988_v33 }
 0x4cf   :  { %v1492_v21 = vpack.c.bf16 %v1491_v17, %v1491_v17 }
 0x4d1   :  { %6292 = vmatmul.mubr.msk.bf16.vlgmr.msra.gmra.mxu0 %vm644_vm2, %v1271_v8 }
 0x4d2   :  { %6302 = vmatpush3.bf16.msra.mxu0 %v1389_v9  ;;  %6303 = vmatprep.mubr.msk.bf16.mxu0 %vm7507_vm0, %v7506_v0 }
 0x4d3   :  { %6313 = vmatprep.subr.bf16.mxu0 %v7506_v0 }
 0x4d7   :  { %v8028_v13 = vpop.f32.mrf.mxu0 }
 0x4d9   :  { %6304 = vmatmul.mubr.msk.bf16.vlgmr.msra.gmra.mxu0 %vm644_vm2, %v1382_v11  ;;  %v6233_v15 = vpop.f32.mrf.mxu0 }
 0x4da   :  { %6314 = vmatpush3.bf16.msra.mxu0 %v1499_v14  ;;  %6315 = vmatprep.mubr.msk.bf16.mxu0 %vm7507_vm0, %v7506_v0  ;;  %v423_v15 = vunpack.c.h.bf16 %v7834_v3 }
 0x4db   :  { %6327 = vmatprep.subr.bf16.mxu0 %v7506_v0  ;;  %v748_v18 = vpop.f32.mrf.mxu0 }
 0x4dd   :  { %v6234_v20 = vpop.f32.mrf.mxu0 }
 0x4e1   :  { %6316 = vmatmul.mubr.msk.bf16.vlgmr.msra.gmra.mxu0 %vm644_vm2, %v1492_v21 }
 0x4e2   :  { %6331 = vmatprep.mubr.msk.bf16.mxu0 %vm7507_vm0, %v7506_v0 }
 0x54e   :  { %v858_v22 = vpop.f32.mrf.mxu0 }
 0x550   :  { %v6245_v23 = vpop.f32.mrf.mxu0 }
 0x552   :  { %v861_v24 = vpop.f32.mrf.mxu0 }
 0x554   :  { %v6246_v25 = vpop.f32.mrf.mxu0 }
 0x556   :  { %v968_v26 = vpop.f32.mrf.mxu0 }
 0x558   :  { %v6257_v19 = vpop.f32.mrf.mxu0 }
 0x55a   :  { %v971_v27 = vpop.f32.mrf.mxu0 }
 0x55c   :  { %v6258_v29 = vpop.f32.mrf.mxu0 }
 0x55e   :  { %v1078_v28 = vpop.f32.mrf.mxu0 }
 0x560   :  { %v6269_v30 = vpop.f32.mrf.mxu0 }
 0x562   :  { %v1081_v31 = vpop.f32.mrf.mxu0 }
 0x564   :  { %v6270_v32 = vpop.f32.mrf.mxu0 }
 0x565   :  { %v6901_v32 = vld [vmem:[%s8794_s28 + $0x8] sm:$0xff]  }
 0x566   :  { %6335 = vmatprep.subr.bf16.mxu1 %v6901_v32 }
 0x589   :  { %v1202_v33 = vpop.f32.mrf.mxu0 }
 0x58b   :  { %v6281_v34 = vpop.f32.mrf.mxu0 }
 0x58c   :  { %v6903_v34 = vld [vmem:[%s8795_s1] sm:$0xff]  }
 0x58d   :  { %v1205_v35 = vpop.f32.mrf.mxu0 }
 0x58e   :  { %v8064_v35 = vld [vmem:[%s8795_s1 + $0x8] sm:$0xff]  }
 0x58f   :  { %v6282_v36 = vpop.f32.mrf.mxu0 }
 0x590   :  { %v6905_v36 = vld [vmem:[%s8796_s2 + $0x8] sm:$0xff]  }
 0x591   :  { %v1315_v37 = vpop.f32.mrf.mxu0  ;;  %6328 = vmatpush3.bf16.msra.mxu0 %v6905_v36  ;;  %v8147_v36 = vld [vmem:[%s8802_s21] ss:$0 sm:$0xff] }
 0x592   :  { %v6832_v39 = vpack.i.bf16 %v1315_v37, %v858_v22  ;;  %v6906_v37 = vld [vmem:[%s8796_s2] sm:$0xff]   ;;  %6329 = vmatprep.subr.bf16.mxu0 %v7506_v0  ;;  %s8819_s2 = sld [smem:[#allocation70_spill]] }
 0x593   :  { %v6293_v40 = vpop.f32.mrf.mxu0 }
 0x594   :  { %6833 = vrot.lane.b32.xlu0 %v6832_v39, %s7511_s20 }
 0x595   :  { %v1318_v41 = vpop.f32.mrf.mxu0  ;;  %6330 = vmatpush3.bf16.msra.mxu0 %v6906_v37 }
 0x597   :  { %v6294_v42 = vpop.f32.mrf.mxu0 }
 0x599   :  { %v1425_v44 = vpop.f32.mrf.mxu0 }
 0x59a   :  { %v6837_v45 = vpack.i.bf16 %v1425_v44, %v968_v26 }
 0x59b   :  { %v6305_v46 = vpop.f32.mrf.mxu0 }
 0x59c   :  { %6838 = vrot.lane.b32.xlu1 %v6837_v45, %s7512_s23  ;;  %v5864_v46 = vld [vmem:[%s8797_s17] ss:$0 sm:$0xff] }
 0x59d   :  { %v1428_v47 = vpop.f32.mrf.mxu0 }
 0x59f   :  { %v6306_v48 = vpop.f32.mrf.mxu0 }
 0x5a1   :  { %v1535_v49 = vpop.f32.mrf.mxu0 }
 0x5a2   :  { %v6842_v50 = vpack.i.bf16 %v1535_v49, %v1078_v28 }
 0x5a3   :  { %v6317_v51 = vpop.f32.mrf.mxu0 }
 0x5a4   :  { %6843 = vrot.lane.b32.xlu0 %v6842_v50, %s7513_s12  ;;  %v5865_v50 = vld [vmem:[%s8798_s30] ss:$0 sm:$0xff] }
 0x5a5   :  { %v1538_v53 = vpop.f32.mrf.mxu0 }
 0x5a7   :  { %v6318_v54 = vpop.f32.mrf.mxu0 }
 0x606   :  { %v6834_v55 = vpop.permute.xlu0 %6833 }
 0x607   :  { %v6836_v57 = vunpack.i.h.bf16 %v6834_v55  ;;  %v6835_v58 = vunpack.i.l.bf16 %v6834_v55 }
 0x609   :  { %v1553_v63 = vsel %vm644_vm2, %v1202_v33, %v6836_v57  ;;  %v1096_v1 = vsel %vm644_vm2, %v8028_v13, %v6835_v58  ;;  %v6902_v33 = vld [vmem:[%s8794_s28] sm:$0xff]   ;;  %s8818_s28 = sld [smem:[#allocation71_spill]] }
 0x60e   :  { %v6839_v56 = vpop.permute.xlu1 %6838 }
 0x60f   :  { %v6841_v59 = vunpack.i.h.bf16 %v6839_v56  ;;  %v6840_v61 = vunpack.i.l.bf16 %v6839_v56  ;;  %v5870_v56 = vld [vmem:[%s8799_s7] ss:$0 sm:$0xff] }
 0x611   :  { %v1098_v6 = vsel %vm1097_vm4, %v1096_v1, %v6840_v61  ;;  %v1554_v7 = vsel %vm1097_vm4, %v1553_v63, %v6841_v59 }
 0x616   :  { %v6844_v62 = vpop.permute.xlu0 %6843 }
 0x617   :  { %v6846_v2 = vunpack.i.h.bf16 %v6844_v62  ;;  %v6845_v5 = vunpack.i.l.bf16 %v6844_v62 }
 0x619   :  { %v1100_v8 = vsel %vm1099_vm5, %v1098_v6, %v6845_v5  ;;  %v1555_v60 = vsel %vm1099_vm5, %v1554_v7, %v6846_v2 }
 0x61a   :  { %v1556_v9 = vpack.c.bf16 %v1555_v60, %v1100_v8  ;;  %v5866_v8 = vld [vmem:[%s8800_s13] ss:$0 sm:$0xff] }
 0x61c   :  { %6324 = vmatmul.mubr.msk.bf16.vlgmr.msra.gmra.mxu1 %vm469_vm1, %v1556_v9 }
 0x61d   :  { %6336 = vmatpush3.bf16.msra.mxu1 %v6901_v32  ;;  %6339 = vmatprep.mubr.msk.bf16.mxu1 %vm469_vm1, %v6903_v34 }
 0x61e   :  { %6337 = vmatprep.subr.bf16.mxu1 %v6902_v33 }
 0x621   :  { %6338 = vmatpush3.bf16.msra.mxu1 %v6902_v33 }
 0x622   :  { %6351 = vmatprep.subr.bf16.mxu1 %v7506_v0 }
 0x624   :  { %6340 = vmatmul.mubr.msk.bf16.vlgmr.msra.gmra.mxu1 %vm469_vm1, %v8064_v35 }
 0x625   :  { %6353 = vmatprep.mubr.msk.bf16.mxu1 %vm7507_vm0, %v7506_v0 }
 0x6dc   :  { %v1617_v11 = vpop.f32.mrf.mxu1 }
 0x6dd   :  { %v1618_v12 = vadd.f32 %v5860_v4, %v1617_v11 }
 0x6de   :  { %v6325_v14 = vpop.f32.mrf.mxu1 }
 0x6df   :  { %v1624_v13 = vadd.f32 %v1618_v12, %v422_v10 }
 0x6e0   :  { %v1620_v17 = vpop.f32.mrf.mxu1 }
 0x6e1   :  { %v1621_v18 = vadd.f32 %v5860_v4, %v1620_v17  ;;  %v1626_v20 = vsel %vm469_vm1, %v1624_v13, 0.0 }
 0x6e2   :  { %v6326_v21 = vpop.f32.mrf.mxu1  ;;  %1627 = vadd.xlane.f32.xlu1 %v1626_v20  ;;  %v6908_v20 = vld [vmem:[%s8801_s14] sm:$0xff]  }
 0x6e3   :  { %v1625_v22 = vadd.f32 %v1621_v18, %v423_v15  ;;  %v6907_v18 = vld [vmem:[%s8801_s14 + $0x8] sm:$0xff]  }
 0x6e4   :  { %v6341_v57 = vpop.f32.mrf.mxu1  ;;  %6343 = vmatprep.subr.bf16.mxu0 %v6907_v18 }
 0x6e5   :  { %v1629_v23 = vsel %vm469_vm1, %v1625_v22, 0.0  ;;  %v1821_v58 = vadd.f32 %v6341_v57, %v5870_v56 }
 0x6e6   :  { %1630 = vadd.xlane.f32.xlu0 %v1629_v23  ;;  %v1812_v59 = vpop.f32.mrf.mxu1 }
 0x6e7   :  { %v1813_v62 = vadd.f32 %v5870_v56, %v1812_v59 }
 0x6e8   :  { %v6342_v61 = vpop.f32.mrf.mxu1 }
 0x6e9   :  { %v1824_v63 = vadd.f32 %v6342_v61, %v5870_v56 }
 0x6ea   :  { %v1815_v1 = vpop.f32.mrf.mxu1 }
 0x6eb   :  { %v2352_v2 = vpack.c.bf16 %v1824_v63, %v1821_v58  ;;  %v1816_v5 = vadd.f32 %v5870_v56, %v1815_v1 }
 0x6ed   :  { %v1900_v6 = vpack.c.bf16 %v1816_v5, %v1813_v62 }
 0x6ef   :  { %v1911_v7 = vsel %vm644_vm2, %v1900_v6, 0 }
 0x6f0   :  { %6352 = vmatpush3.bf16.xpose.msra.mxu1 %v1911_v7 }
 0x6f1   :  { %6363 = vmatprep.subr.bf16.mxu1 %v7506_v0 }
 0x76b   :  { %v1628_v24 = vpop.xlane.xlu1 %1627 }
 0x76c   :  { %v1633_v25 = vmul.f32 0.03125, %v1628_v24 }
 0x76e   :  { %v1635_v26 = vsub.f32 %v1624_v13, %v1633_v25 }
 0x76f   :  { %v1631_v19 = vpop.xlane.xlu0 %1630 }
 0x770   :  { %v1634_v27 = vmul.f32 0.03125, %v1631_v19  ;;  %v1637_v3 = vmul.f32 %v1635_v26, %v1635_v26 }
 0x772   :  { %v1636_v29 = vsub.f32 %v1625_v22, %v1634_v27  ;;  %v1639_v28 = vsel %vm469_vm1, %v1637_v3, 0.0  ;;  %v2357_v27 = vsel %vm644_vm2, %v2352_v2, 0 }
 0x773   :  { %1640 = vadd.xlane.f32.xlu0 %v1639_v28 }
 0x774   :  { %v1638_v30 = vmul.f32 %v1636_v29, %v1636_v29 }
 0x776   :  { %v1642_v31 = vsel %vm469_vm1, %v1638_v30, 0.0 }
 0x777   :  { %1643 = vadd.xlane.f32.xlu1 %v1642_v31 }
 0x789   :  { %2013 = vrot.lane.b32.xlu0 %v1900_v6, %s7509_s16 }
 0x7fc   :  { %v1641_v38 = vpop.xlane.xlu0 %1640 }
 0x7fd   :  { %v1645_v39 = vmul.f32 0.03125, %v1641_v38 }
 0x7ff   :  { %v1647_v40 = vadd.f32 1e-05, %v1645_v39 }
 0x800   :  { %v1644_v41 = vpop.xlane.xlu1 %1643  ;;  %v2014_v4 = vpop.permute.xlu0 %2013 }
 0x801   :  { %6972 = vrsqrt.f32 %v1647_v40  ;;  %v1646_v42 = vmul.f32 0.03125, %v1644_v41  ;;  %v2019_v14 = vsel %vm644_vm2, %v2014_v4, 0 }
 0x803   :  { %v1648_v43 = vadd.f32 1e-05, %v1646_v42 }
 0x805   :  { %6974 = vrsqrt.f32 %v1648_v43 }
 0x80e   :  { %v6973_v44 = vpop.eup %6972 }
 0x80f   :  { %v1651_v45 = vmul.f32 %v6973_v44, %v1635_v26  ;;  %v5877_v44 = vld [vmem:[%s8803_s10] ss:$0 sm:$0xff] }
 0x811   :  { %v1660_v49 = vmul.f32 %v5864_v46, %v1651_v45 }
 0x812   :  { %v6975_v47 = vpop.eup %6974 }
 0x813   :  { %v1652_v48 = vmul.f32 %v6975_v47, %v1636_v29  ;;  %v8077_v53 = vadd.f32 %v5865_v50, %v1660_v49 }
 0x815   :  { %v1661_v51 = vmul.f32 %v5864_v46, %v1652_v48 }
 0x817   :  { %v8079_v54 = vadd.f32 %v5865_v50, %v1661_v51 }
 0x819   :  { %v1671_v55 = vpack.c.bf16 %v8079_v54, %v8077_v53 }
 0x81b   :  { %6332 = vmatmul.mubr.msk.bf16.vlgmr.msra.gmra.mxu0 %vm469_vm1, %v1671_v55 }
 0x81c   :  { %6347 = vmatprep.mubr.msk.bf16.mxu0 %vm469_vm1, %v6903_v34  ;;  %6344 = vmatpush3.bf16.msra.mxu0 %v6907_v18 }
 0x81d   :  { %6345 = vmatprep.subr.bf16.mxu0 %v6908_v20 }
 0x820   :  { %6346 = vmatpush3.bf16.msra.mxu0 %v6908_v20 }
 0x821   :  { %6357 = vmatprep.subr.bf16.mxu0 %v7506_v0 }
 0x823   :  { %6348 = vmatmul.mubr.msk.bf16.vlgmr.msra.gmra.mxu0 %vm469_vm1, %v8064_v35 }
 0x824   :  { %6359 = vmatprep.mubr.msk.bf16.mxu0 %vm7507_vm0, %v7506_v0 }
 0x8db   :  { %v1732_v60 = vpop.f32.mrf.mxu0 }
 0x8dc   :  { %v1733_v9 = vadd.f32 %v5866_v8, %v1732_v60 }
 0x8dd   :  { %v6333_v10 = vpop.f32.mrf.mxu0 }
 0x8de   :  { %v1899_v11 = vpack.c.bf16 %v1733_v9, %v1733_v9 }
 0x8df   :  { %v1735_v12 = vpop.f32.mrf.mxu0 }
 0x8e0   :  { %2120 = vrot.lane.b32.xlu0 %v1899_v11, %s7508_s25  ;;  %2010 = vrot.lane.b32.xlu1 %v1899_v11, %s7509_s16  ;;  %v1736_v15 = vadd.f32 %v5866_v8, %v1735_v12 }
 0x8e1   :  { %6354 = vmatmul.mubr.msk.bf16.vlgmr.msra.gmra.mxu1 %vm644_vm2, %v1899_v11  ;;  %v6334_v13 = vpop.f32.mrf.mxu0 }
 0x8e2   :  { %6364 = vmatpush3.bf16.xpose.msra.mxu1 %v2019_v14  ;;  %6365 = vmatprep.mubr.msk.bf16.mxu1 %vm7507_vm0, %v7506_v0  ;;  %v2351_v17 = vpack.c.bf16 %v1736_v15, %v1736_v15 }
 0x8e3   :  { %6375 = vmatprep.subr.bf16.mxu1 %v7506_v0  ;;  %v6349_v43 = vpop.f32.mrf.mxu0 }
 0x8e4   :  { %2228 = vrot.lane.b32.xlu0 %v1899_v11, %s7510_s18  ;;  %2122 = vrot.lane.b32.xlu1 %v1900_v6, %s7508_s25  ;;  %v1893_v45 = vadd.f32 %v6349_v43, %v5877_v44 }
 0x8e5   :  { %v1884_v46 = vpop.f32.mrf.mxu0 }
 0x8e6   :  { %v1885_v48 = vadd.f32 %v5877_v44, %v1884_v46 }
 0x8e7   :  { %v6350_v47 = vpop.f32.mrf.mxu0 }
 0x8e8   :  { %2230 = vrot.lane.b32.xlu1 %v1900_v6, %s7510_s18  ;;  %2456 = vrot.lane.b32.xlu0 %v2351_v17, %s7509_s16  ;;  %v1896_v49 = vadd.f32 %v6350_v47, %v5877_v44 }
 0x8e9   :  { %v1887_v50 = vpop.f32.mrf.mxu0 }
 0x8ea   :  { %v8152_v51 = vpack.c.bf16 %v1896_v49, %v1893_v45  ;;  %v1888_v55 = vadd.f32 %v5877_v44, %v1887_v50 }
 0x8ec   :  { %2459 = vrot.lane.b32.xlu1 %v2352_v2, %s7509_s16  ;;  %2566 = vrot.lane.b32.xlu0 %v2351_v17, %s7508_s25  ;;  %v8154_v56 = vpack.c.bf16 %v1888_v55, %v1885_v48 }
 0x8ee   :  { %6358 = vmatpush3.bf16.msra.mxu0 %v8154_v56 }
 0x8ef   :  { %6369 = vmatprep.subr.bf16.mxu0 %v7506_v0 }
 0x8f0   :  { %2568 = vrot.lane.b32.xlu1 %v2352_v2, %s7508_s25  ;;  %2674 = vrot.lane.b32.xlu0 %v2351_v17, %s7510_s18 }
 0x8f4   :  { %2676 = vrot.lane.b32.xlu1 %v2352_v2, %s7510_s18 }
 0x952   :  { %v2011_v21 = vpop.permute.xlu1 %2010  ;;  %v2121_v25 = vpop.permute.xlu0 %2120 }
 0x953   :  { %6366 = vmatmul.mubr.msk.bf16.vlgmr.msra.gmra.mxu1 %vm644_vm2, %v2011_v21 }
 0x954   :  { %6377 = vmatprep.mubr.msk.bf16.mxu1 %vm7507_vm0, %v7506_v0 }
 0x956   :  { %v2123_v22 = vpop.permute.xlu1 %2122  ;;  %v2229_v19 = vpop.permute.xlu0 %2228 }
 0x957   :  { %v2128_v23 = vsel %vm644_vm2, %v2123_v22, 0 }
 0x958   :  { %6376 = vmatpush3.bf16.xpose.msra.mxu1 %v2128_v23 }
 0x959   :  { %6387 = vmatprep.subr.bf16.mxu1 %v7506_v0 }
 0x95a   :  { %v2231_v24 = vpop.permute.xlu1 %2230  ;;  %v2457_v30 = vpop.permute.xlu0 %2456 }
 0x95b   :  { %v2236_v26 = vsel %vm644_vm2, %v2231_v24, 0 }
 0x95e   :  { %v2460_v3 = vpop.permute.xlu1 %2459  ;;  %v2567_v33 = vpop.permute.xlu0 %2566 }
 0x95f   :  { %6378 = vmatmul.mubr.msk.bf16.vlgmr.msra.gmra.mxu1 %vm644_vm2, %v2121_v25  ;;  %v2465_v29 = vsel %vm644_vm2, %v2460_v3, 0 }
 0x960   :  { %6388 = vmatpush3.bf16.xpose.msra.mxu1 %v2236_v26  ;;  %6389 = vmatprep.mubr.msk.bf16.mxu1 %vm7507_vm0, %v7506_v0 }
 0x961   :  { %6399 = vmatprep.subr.bf16.mxu1 %v7506_v0 }
 0x962   :  { %v2569_v28 = vpop.permute.xlu1 %2568  ;;  %v2675_v35 = vpop.permute.xlu0 %2674 }
 0x963   :  { %v2574_v31 = vsel %vm644_vm2, %v2569_v28, 0 }
 0x966   :  { %v2677_v32 = vpop.permute.xlu1 %2676 }
 0x967   :  { %6390 = vmatmul.mubr.msk.bf16.vlgmr.msra.gmra.mxu1 %vm644_vm2, %v2229_v19  ;;  %v2682_v34 = vsel %vm644_vm2, %v2677_v32, 0 }
 0x968   :  { %6400 = vmatpush3.bf16.xpose.msra.mxu1 %v2357_v27  ;;  %6401 = vmatprep.mubr.msk.bf16.mxu1 %vm7507_vm0, %v7506_v0 }
 0x969   :  { %6411 = vmatprep.subr.bf16.mxu1 %v7506_v0 }
 0x96f   :  { %6402 = vmatmul.mubr.msk.bf16.vlgmr.msra.gmra.mxu1 %vm644_vm2, %v2351_v17 }
 0x970   :  { %6412 = vmatpush3.bf16.xpose.msra.mxu1 %v2465_v29  ;;  %6413 = vmatprep.mubr.msk.bf16.mxu1 %vm7507_vm0, %v7506_v0 }
 0x971   :  { %6423 = vmatprep.subr.bf16.mxu1 %v7506_v0 }
 0x977   :  { %6414 = vmatmul.mubr.msk.bf16.vlgmr.msra.gmra.mxu1 %vm644_vm2, %v2457_v30 }
 0x978   :  { %6424 = vmatpush3.bf16.xpose.msra.mxu1 %v2574_v31  ;;  %6425 = vmatprep.mubr.msk.bf16.mxu1 %vm7507_vm0, %v7506_v0 }
 0x979   :  { %6435 = vmatprep.subr.bf16.mxu1 %v7506_v0 }
 0x97f   :  { %6426 = vmatmul.mubr.msk.bf16.vlgmr.msra.gmra.mxu1 %vm644_vm2, %v2567_v33 }
 0x980   :  { %6436 = vmatpush3.bf16.xpose.msra.mxu1 %v2682_v34  ;;  %6437 = vmatprep.mubr.msk.bf16.mxu1 %vm7507_vm0, %v7506_v0 }
 0x981   :  { %6447 = vmatprep.subr.bf16.mxu1 %v7506_v0 }
 0x987   :  { %6438 = vmatmul.mubr.msk.bf16.vlgmr.msra.gmra.mxu1 %vm644_vm2, %v2675_v35 }
 0x988   :  { %6451 = vmatprep.mubr.msk.bf16.mxu1 %vm7507_vm0, %v7506_v0 }
 0x9a1   :  { %v1947_v37 = vpop.f32.mrf.mxu1 }
 0x9a2   :  { %v1948_v38 = vadd.f32 %v8147_v36, %v1947_v37 }
 0x9a3   :  { %v6355_v39 = vpop.f32.mrf.mxu1 }
 0x9a4   :  { %v1953_v40 = vsel %vm1097_vm4, %v1948_v38, -inf }
 0x9a5   :  { %1954 = vmax.xlane.f32.xlu1 %v1953_v40  ;;  %v1950_v41 = vpop.f32.mrf.mxu1 }
 0x9a7   :  { %v6356_v42 = vpop.f32.mrf.mxu1 }
 0xa13   :  { %v2055_v57 = vpop.f32.mrf.mxu1 }
 0xa14   :  { %v2056_v58 = vadd.f32 %v8147_v36, %v2055_v57 }
 0xa15   :  { %v6367_v59 = vpop.f32.mrf.mxu1 }
 0xa16   :  { %v2061_v61 = vsel %vm1097_vm4, %v2056_v58, -inf }
 0xa17   :  { %v2058_v62 = vpop.f32.mrf.mxu1  ;;  %2062 = vmax.xlane.f32.xlu0 %v2061_v61 }
 0xa19   :  { %v6368_v63 = vpop.f32.mrf.mxu1 }
 0xa1f   :  { %v2164_v1 = vpop.f32.mrf.mxu1 }
 0xa20   :  { %v2165_v2 = vadd.f32 %v8147_v36, %v2164_v1 }
 0xa21   :  { %v6379_v5 = vpop.f32.mrf.mxu1 }
 0xa22   :  { %v2170_v6 = vsel %vm1097_vm4, %v2165_v2, -inf }
 0xa23   :  { %v2167_v7 = vpop.f32.mrf.mxu1  ;;  %2171 = vmax.xlane.f32.xlu0 %v2170_v6 }
 0xa25   :  { %v6380_v8 = vpop.f32.mrf.mxu1 }
 0xa27   :  { %v2272_v60 = vpop.f32.mrf.mxu1 }
 0xa28   :  { %v2273_v9 = vadd.f32 %v8147_v36, %v2272_v60 }
 0xa29   :  { %v6391_v4 = vpop.f32.mrf.mxu1 }
 0xa2a   :  { %v2278_v10 = vsel %vm1097_vm4, %v2273_v9, -inf }
 0xa2b   :  { %2279 = vmax.xlane.f32.xlu1 %v2278_v10  ;;  %v2275_v11 = vpop.f32.mrf.mxu1 }
 0xa2d   :  { %v6392_v12 = vpop.f32.mrf.mxu1 }
 0xa2e   :  { %v1955_v14 = vpop.xlane.xlu1 %1954 }
 0xa2f   :  { %v1956_v13 = vsub.f32 %v1948_v38, %v1955_v14  ;;  %v2393_v15 = vpop.f32.mrf.mxu1 }
 0xa30   :  { %v2394_v17 = vadd.f32 %v8147_v36, %v2393_v15 }
 0xa31   :  { %v6403_v18 = vpop.f32.mrf.mxu1  ;;  %v1957_v20 = vmul.f32 1.442695, %v1956_v13 }
 0xa32   :  { %v2399_v21 = vsel %vm1097_vm4, %v2394_v17, -inf }
 0xa33   :  { %2400 = vmax.xlane.f32.xlu0 %v2399_v21  ;;  %v2396_v22 = vpop.f32.mrf.mxu1  ;;  %6976 = vpow2.f32 %v1957_v20 }
 0xa35   :  { %v6404_v23 = vpop.f32.mrf.mxu1 }
 0xa37   :  { %v2501_v24 = vpop.f32.mrf.mxu1 }
 0xa38   :  { %v8167_v25 = vadd.f32 %v8147_v36, %v2501_v24 }
 0xa39   :  { %v6415_v26 = vpop.f32.mrf.mxu1 }
 0xa3a   :  { %v2507_v19 = vsel %vm1097_vm4, %v8167_v25, -inf }
 0xa3b   :  { %2508 = vmax.xlane.f32.xlu1 %v2507_v19  ;;  %v2504_v27 = vpop.f32.mrf.mxu1 }
 0xa3d   :  { %v6416_v3 = vpop.f32.mrf.mxu1 }
 0xa3f   :  { %v2610_v29 = vpop.f32.mrf.mxu1 }
 0xa40   :  { %v2611_v28 = vadd.f32 %v8147_v36, %v2610_v29  ;;  %v6977_v32 = vpop.eup %6976 }
 0xa41   :  { %v6427_v30 = vpop.f32.mrf.mxu1  ;;  %v1959_v35 = vsel %vm1097_vm4, %v6977_v32, 0.0 }
 0xa42   :  { %v2616_v31 = vsel %vm1097_vm4, %v2611_v28, -inf }
 0xa43   :  { %2617 = vmax.xlane.f32.xlu0 %v2616_v31  ;;  %v2613_v33 = vpop.f32.mrf.mxu1 }
 0xa45   :  { %v6428_v34 = vpop.f32.mrf.mxu1 }
 0xa47   :  { %1960 = vadd.xlane.f32.xlu0 %v1959_v35  ;;  %v2718_v37 = vpop.f32.mrf.mxu1 }
 0xa48   :  { %v2719_v38 = vadd.f32 %v8147_v36, %v2718_v37 }
 0xa49   :  { %v6439_v39 = vpop.f32.mrf.mxu1 }
 0xa4a   :  { %v2724_v40 = vsel %vm1097_vm4, %v2719_v38, -inf }
 0xa4b   :  { %2725 = vmax.xlane.f32.xlu1 %v2724_v40  ;;  %v2721_v41 = vpop.f32.mrf.mxu1 }
 0xa4d   :  { %v6440_v42 = vpop.f32.mrf.mxu1 }
 0xa5c   :  { %2074 = vrot.lane.b32.xlu1 %v8154_v56, %s7509_s16 }
 0xa5d   :  { %2182 = vrot.lane.b32.xlu0 %v8154_v56, %s7508_s25 }
 0xaa0   :  { %v2063_v43 = vpop.xlane.xlu0 %2062 }
 0xaa1   :  { %v2064_v44 = vsub.f32 %v2056_v58, %v2063_v43 }
 0xaa3   :  { %v2065_v45 = vmul.f32 1.442695, %v2064_v44 }
 0xaa5   :  { %6978 = vpow2.f32 %v2065_v45 }
 0xaac   :  { %v2172_v46 = vpop.xlane.xlu0 %2171 }
 0xaad   :  { %v2173_v47 = vsub.f32 %v2165_v2, %v2172_v46 }
 0xaaf   :  { %v2174_v48 = vmul.f32 1.442695, %v2173_v47 }
 0xab1   :  { %6980 = vpow2.f32 %v2174_v48 }
 0xab2   :  { %v6979_v36 = vpop.eup %6978 }
 0xab3   :  { %v2067_v49 = vsel %vm1097_vm4, %v6979_v36, 0.0 }
 0xab4   :  { %v2280_v50 = vpop.xlane.xlu1 %2279  ;;  %2068 = vadd.xlane.f32.xlu1 %v2067_v49 }
 0xab5   :  { %v2281_v55 = vsub.f32 %v2273_v9, %v2280_v50 }
 0xab7   :  { %v2282_v57 = vmul.f32 1.442695, %v2281_v55 }
 0xab9   :  { %6982 = vpow2.f32 %v2282_v57 }
 0xabc   :  { %v2401_v59 = vpop.xlane.xlu0 %2400 }
 0xabd   :  { %v2402_v61 = vsub.f32 %v2394_v17, %v2401_v59 }
 0xabe   :  { %v6981_v62 = vpop.eup %6980 }
 0xabf   :  { %v2403_v63 = vmul.f32 1.442695, %v2402_v61  ;;  %v2176_v58 = vsel %vm1097_vm4, %v6981_v62, 0.0 }
 0xac0   :  { %2177 = vadd.xlane.f32.xlu0 %v2176_v58 }
 0xac1   :  { %6984 = vpow2.f32 %v2403_v63 }
 0xac4   :  { %v2509_v60 = vpop.xlane.xlu1 %2508 }
 0xac5   :  { %v2510_v15 = vsub.f32 %v8167_v25, %v2509_v60 }
 0xac6   :  { %v8182_v1 = vpop.eup %6982 }
 0xac7   :  { %v2284_v2 = vsel %vm1097_vm4, %v8182_v1, 0.0  ;;  %v2511_v17 = vmul.f32 1.442695, %v2510_v15 }
 0xac8   :  { %2285 = vadd.xlane.f32.xlu1 %v2284_v2 }
 0xacc   :  { %v2618_v5 = vpop.xlane.xlu0 %2617 }
 0xacd   :  { %v2619_v14 = vsub.f32 %v2611_v28, %v2618_v5 }
 0xace   :  { %v8186_v6 = vpop.eup %6984 }
 0xacf   :  { %v2405_v7 = vsel %vm1097_vm4, %v8186_v6, 0.0  ;;  %v2620_v13 = vmul.f32 1.442695, %v2619_v14 }
 0xad0   :  { %v1961_v8 = vpop.xlane.xlu0 %1960  ;;  %2406 = vadd.xlane.f32.xlu0 %v2405_v7 }
 0xad1   :  { %6986 = vrcp.f32 %v1961_v8 }
 0xad2   :  { %6988 = vpow2.f32 %v2620_v13 }
 0xad3   :  { %6990 = vpow2.f32 %v2511_v17 }
 0xad4   :  { %v2726_v9 = vpop.xlane.xlu1 %2725  ;;  %v2183_v19 = vpop.permute.xlu0 %2182 }
 0xad5   :  { %v2727_v18 = vsub.f32 %v2719_v38, %v2726_v9 }
 0xad7   :  { %v2728_v20 = vmul.f32 1.442695, %v2727_v18 }
 0xad8   :  { %v2075_v12 = vpop.permute.xlu1 %2074 }
 0xad9   :  { %2520 = vrot.lane.b32.xlu1 %v8152_v51, %s7509_s16  ;;  %6992 = vpow2.f32 %v2728_v20 }
 0xade   :  { %v6987_v4 = vpop.eup %6986 }
 0xadf   :  { %v1963_v10 = vmul.f32 %v6987_v4, %v6977_v32  ;;  %v8199_v21 = vpop.eup %6988 }
 0xae0   :  { %v2622_v22 = vsel %vm1097_vm4, %v8199_v21, 0.0  ;;  %v6991_v23 = vpop.eup %6990 }
 0xae1   :  { %v1964_v11 = vpack.c.bf16 %v1963_v10, %v1963_v10 }
 0xae3   :  { %6360 = vmatmul.mubr.msk.bf16.vlgmr.msra.gmra.mxu0 %vm1097_vm4, %v1964_v11 }
 0xae4   :  { %6370 = vmatpush3.bf16.msra.mxu0 %v2075_v12  ;;  %6371 = vmatprep.mubr.msk.bf16.mxu0 %vm7507_vm0, %v7506_v0 }
 0xae5   :  { %6381 = vmatprep.subr.bf16.mxu0 %v7506_v0 }
 0xae6   :  { %2290 = vrot.lane.b32.xlu0 %v8154_v56, %s7510_s18  ;;  %v2513_v56 = vsel %vm1097_vm4, %v6991_v23, 0.0  ;;  %v8204_v24 = vpop.eup %6992 }
 0xae7   :  { %v2730_v25 = vsel %vm1097_vm4, %v8204_v24, 0.0 }
 0xafd   :  { %2623 = vadd.xlane.f32.xlu1 %v2622_v22  ;;  %v6909_v22 = vld [vmem:[%s8804_s9 + $0x8] sm:$0xff]  }
 0xafe   :  { %6448 = vmatpush3.bf16.msra.mxu1 %v6909_v22 }
 0xaff   :  { %6449 = vmatprep.subr.bf16.mxu1 %v7506_v0 }
 0xb05   :  { %2514 = vadd.xlane.f32.xlu0 %v2513_v56 }
 0xb09   :  { %2731 = vadd.xlane.f32.xlu0 %v2730_v25 }
 0xb0e   :  { %2736 = vrot.lane.b32.xlu1 %v8152_v51, %s7510_s18 }
 0xb1f   :  { %2628 = vrot.lane.b32.xlu0 %v8152_v51, %s7508_s25 }
 0xb3d   :  { %v2069_v26 = vpop.xlane.xlu1 %2068 }
 0xb3e   :  { %6994 = vrcp.f32 %v2069_v26  ;;  %v6910_v26 = vld [vmem:[%s8804_s9] sm:$0xff]  }
 0xb3f   :  { %6450 = vmatpush3.bf16.msra.mxu1 %v6910_v26 }
 0xb40   :  { %6463 = vmatprep.subr.bf16.mxu1 %v7506_v0 }
 0xb49   :  { %v2178_v27 = vpop.xlane.xlu0 %2177 }
 0xb4a   :  { %6996 = vrcp.f32 %v2178_v27 }
 0xb4b   :  { %v6995_v3 = vpop.eup %6994 }
 0xb4c   :  { %v2071_v29 = vmul.f32 %v6995_v3, %v6979_v36 }
 0xb4e   :  { %v2072_v28 = vpack.c.bf16 %v2071_v29, %v2071_v29 }
 0xb50   :  { %6372 = vmatmul.mubr.msk.bf16.vlgmr.msra.gmra.mxu0 %vm1097_vm4, %v2072_v28 }
 0xb51   :  { %6382 = vmatpush3.bf16.msra.mxu0 %v2183_v19  ;;  %v2286_v30 = vpop.xlane.xlu1 %2285  ;;  %6383 = vmatprep.mubr.msk.bf16.mxu0 %vm7507_vm0, %v7506_v0 }
 0xb52   :  { %6998 = vrcp.f32 %v2286_v30  ;;  %6393 = vmatprep.subr.bf16.mxu0 %v7506_v0 }
 0xb55   :  { %v2521_v43 = vpop.permute.xlu1 %2520 }
 0xb57   :  { %v6997_v31 = vpop.eup %6996 }
 0xb58   :  { %v2180_v32 = vmul.f32 %v6997_v31, %v6981_v62 }
 0xb59   :  { %v2407_v33 = vpop.xlane.xlu0 %2406 }
 0xb5a   :  { %7000 = vrcp.f32 %v2407_v33  ;;  %v2181_v34 = vpack.c.bf16 %v2180_v32, %v2180_v32 }
 0xb5c   :  { %6384 = vmatmul.mubr.msk.bf16.vlgmr.msra.gmra.mxu0 %vm1097_vm4, %v2181_v34 }
 0xb5d   :  { %v2291_v35 = vpop.permute.xlu0 %2290  ;;  %6395 = vmatprep.mubr.msk.bf16.mxu0 %vm7507_vm0, %v7506_v0 }
 0xb5e   :  { %6394 = vmatpush3.bf16.msra.mxu0 %v2291_v35 }
 0xb5f   :  { %v6999_v37 = vpop.eup %6998  ;;  %6405 = vmatprep.subr.bf16.mxu0 %v7506_v0 }
 0xb60   :  { %v2288_v38 = vmul.f32 %v6999_v37, %v8182_v1 }
 0xb62   :  { %v2289_v39 = vpack.c.bf16 %v2288_v38, %v2288_v38 }
 0xb64   :  { %6396 = vmatmul.mubr.msk.bf16.vlgmr.msra.gmra.mxu0 %vm1097_vm4, %v2289_v39 }
 0xb65   :  { %6406 = vmatpush3.bf16.msra.mxu0 %v8152_v51  ;;  %6407 = vmatprep.mubr.msk.bf16.mxu0 %vm7507_vm0, %v7506_v0 }
 0xb66   :  { %6417 = vmatprep.subr.bf16.mxu0 %v7506_v0 }
 0xb67   :  { %v7001_v40 = vpop.eup %7000 }
 0xb68   :  { %v2409_v41 = vmul.f32 %v7001_v40, %v8186_v6 }
 0xb6a   :  { %v2410_v42 = vpack.c.bf16 %v2409_v41, %v2409_v41 }
 0xb6c   :  { %6408 = vmatmul.mubr.msk.bf16.vlgmr.msra.gmra.mxu0 %vm1097_vm4, %v2410_v42 }
 0xb6d   :  { %6418 = vmatpush3.bf16.msra.mxu0 %v2521_v43  ;;  %6419 = vmatprep.mubr.msk.bf16.mxu0 %vm7507_vm0, %v7506_v0 }
 0xb6e   :  { %6429 = vmatprep.subr.bf16.mxu0 %v7506_v0 }
 0xb86   :  { %v2624_v51 = vpop.xlane.xlu1 %2623 }
 0xb8a   :  { %v2737_v63 = vpop.permute.xlu1 %2736 }
 0xb8e   :  { %v2515_v44 = vpop.xlane.xlu0 %2514 }
 0xb8f   :  { %7002 = vrcp.f32 %v2515_v44 }
 0xb90   :  { %7004 = vrcp.f32 %v2624_v51 }
 0xb92   :  { %v2732_v45 = vpop.xlane.xlu0 %2731 }
 0xb93   :  { %7006 = vrcp.f32 %v2732_v45 }
 0xb96   :  { %v2629_v49 = vpop.permute.xlu0 %2628 }
 0xb9c   :  { %v7003_v46 = vpop.eup %7002 }
 0xb9d   :  { %v2517_v47 = vmul.f32 %v7003_v46, %v6991_v23  ;;  %v7005_v36 = vpop.eup %7004 }
 0xb9e   :  { %v2626_v50 = vmul.f32 %v7005_v36, %v8199_v21 }
 0xb9f   :  { %v2518_v48 = vpack.c.bf16 %v2517_v47, %v2517_v47 }
 0xba0   :  { %v2627_v59 = vpack.c.bf16 %v2626_v50, %v2626_v50  ;;  %v7007_v61 = vpop.eup %7006  ;;  %v5899_v50 = vld [vmem:[%s8805_s11] ss:$0 sm:$0xff] }
 0xba1   :  { %6420 = vmatmul.mubr.msk.bf16.vlgmr.msra.gmra.mxu0 %vm1097_vm4, %v2518_v48  ;;  %v2734_v1 = vmul.f32 %v7007_v61, %v8204_v24 }
 0xba2   :  { %6430 = vmatpush3.bf16.msra.mxu0 %v2629_v49  ;;  %6431 = vmatprep.mubr.msk.bf16.mxu0 %vm7507_vm0, %v7506_v0 }
 0xba3   :  { %6441 = vmatprep.subr.bf16.mxu0 %v7506_v0  ;;  %v8236_v55 = vpop.f32.mrf.mxu0  ;;  %v2735_v2 = vpack.c.bf16 %v2734_v1, %v2734_v1 }
 0xba5   :  { %v6361_v57 = vpop.f32.mrf.mxu0 }
 0xba7   :  { %v2006_v62 = vpop.f32.mrf.mxu0 }
 0xba9   :  { %6432 = vmatmul.mubr.msk.bf16.vlgmr.msra.gmra.mxu0 %vm1097_vm4, %v2627_v59  ;;  %v6362_v58 = vpop.f32.mrf.mxu0 }
 0xbaa   :  { %6442 = vmatpush3.bf16.msra.mxu0 %v2737_v63  ;;  %6443 = vmatprep.mubr.msk.bf16.mxu0 %vm7507_vm0, %v7506_v0 }
 0xbab   :  { %6455 = vmatprep.subr.bf16.mxu0 %v7506_v0 }
 0xbb1   :  { %6444 = vmatmul.mubr.msk.bf16.vlgmr.msra.gmra.mxu0 %vm1097_vm4, %v2735_v2 }
 0xbb2   :  { %6459 = vmatprep.mubr.msk.bf16.mxu0 %vm7507_vm0, %v7506_v0 }
 0xc10   :  { %v2114_v5 = vpop.f32.mrf.mxu0 }
 0xc12   :  { %v6373_v6 = vpop.f32.mrf.mxu0 }
 0xc14   :  { %v2117_v7 = vpop.f32.mrf.mxu0 }
 0xc16   :  { %v6374_v8 = vpop.f32.mrf.mxu0 }
 0xc1c   :  { %v2222_v60 = vpop.f32.mrf.mxu0 }
 0xc1e   :  { %v6385_v9 = vpop.f32.mrf.mxu0 }
 0xc20   :  { %v2225_v4 = vpop.f32.mrf.mxu0 }
 0xc22   :  { %v6386_v10 = vpop.f32.mrf.mxu0 }
 0xc24   :  { %v2330_v11 = vpop.f32.mrf.mxu0 }
 0xc26   :  { %v6397_v12 = vpop.f32.mrf.mxu0 }
 0xc28   :  { %v2333_v14 = vpop.f32.mrf.mxu0 }
 0xc29   :  { %v6912_v14 = vld [vmem:[%s8806_s6] sm:$0xff]  }
 0xc2a   :  { %v6398_v13 = vpop.f32.mrf.mxu0 }
 0xc2b   :  { %v6913_v13 = vld [vmem:[%s8807_s15 + $0x18] sm:$0xff]  }
 0xc2c   :  { %v2449_v15 = vpop.f32.mrf.mxu0 }
 0xc2e   :  { %v6409_v17 = vpop.f32.mrf.mxu0 }
 0xc30   :  { %v2452_v18 = vpop.f32.mrf.mxu0 }
 0xc32   :  { %v6410_v20 = vpop.f32.mrf.mxu0 }
 0xc61   :  { %v2560_v21 = vpop.f32.mrf.mxu0 }
 0xc62   :  { %v6847_v23 = vpack.i.bf16 %v2560_v21, %v2114_v5 }
 0xc63   :  { %v6421_v56 = vpop.f32.mrf.mxu0 }
 0xc64   :  { %6848 = vrot.lane.b32.xlu1 %v6847_v23, %s7511_s20 }
 0xc65   :  { %v2563_v24 = vpop.f32.mrf.mxu0 }
 0xc66   :  { %v5903_v24 = vld [vmem:[%s8808_s5] ss:$0 sm:$0xff] }
 0xc67   :  { %v6422_v25 = vpop.f32.mrf.mxu0 }
 0xc69   :  { %v2668_v19 = vpop.f32.mrf.mxu0 }
 0xc6a   :  { %v6852_v27 = vpack.i.bf16 %v2668_v19, %v2222_v60 }
 0xc6b   :  { %v6433_v3 = vpop.f32.mrf.mxu0 }
 0xc6c   :  { %6853 = vrot.lane.b32.xlu1 %v6852_v27, %s7512_s23  ;;  %v5904_v27 = vld [vmem:[%s8809_s29] ss:$0 sm:$0xff] }
 0xc6d   :  { %v2671_v29 = vpop.f32.mrf.mxu0 }
 0xc6f   :  { %v6434_v28 = vpop.f32.mrf.mxu0 }
 0xc71   :  { %v2776_v30 = vpop.f32.mrf.mxu0 }
 0xc72   :  { %v6857_v31 = vpack.i.bf16 %v2776_v30, %v2330_v11 }
 0xc73   :  { %v6445_v32 = vpop.f32.mrf.mxu0 }
 0xc74   :  { %6858 = vrot.lane.b32.xlu1 %v6857_v31, %s7513_s12  ;;  %v6914_v31 = vld [vmem:[%s8807_s15 + $0x10] sm:$0xff]   ;;  %v6915_v32 = vld [vmem:[%s8807_s15 + $0x8] sm:$0xff]  }
 0xc75   :  { %v2779_v33 = vpop.f32.mrf.mxu0 }
 0xc76   :  { %v6916_v33 = vld [vmem:[%s8807_s15] sm:$0xff]  }
 0xc77   :  { %v6446_v34 = vpop.f32.mrf.mxu0 }
 0xc78   :  { %v5905_v34 = vld [vmem:[%s8810_s24] ss:$0 sm:$0xff] }
 0xcd6   :  { %v6849_v35 = vpop.permute.xlu1 %6848 }
 0xcd7   :  { %v6851_v38 = vunpack.i.h.bf16 %v6849_v35  ;;  %v6850_v39 = vunpack.i.l.bf16 %v6849_v35 }
 0xcd9   :  { %v2794_v43 = vsel %vm644_vm2, %v2449_v15, %v6851_v38  ;;  %v2348_v44 = vsel %vm644_vm2, %v8236_v55, %v6850_v39 }
 0xcde   :  { %v6854_v37 = vpop.permute.xlu1 %6853 }
 0xcdf   :  { %v6856_v40 = vunpack.i.h.bf16 %v6854_v37  ;;  %v6855_v41 = vunpack.i.l.bf16 %v6854_v37 }
 0xce1   :  { %v2795_v46 = vsel %vm1097_vm4, %v2794_v43, %v6856_v40  ;;  %v2349_v47 = vsel %vm1097_vm4, %v2348_v44, %v6855_v41 }
 0xce6   :  { %v6859_v42 = vpop.permute.xlu1 %6858 }
 0xce7   :  { %v6861_v51 = vunpack.i.h.bf16 %v6859_v42  ;;  %v6860_v45 = vunpack.i.l.bf16 %v6859_v42 }
 0xce9   :  { %v2796_v48 = vsel %vm1099_vm5, %v2795_v46, %v6861_v51  ;;  %v2350_v36 = vsel %vm1099_vm5, %v2349_v47, %v6860_v45  ;;  %v5909_v51 = vld [vmem:[%s8811_s3] ss:$0 sm:$0xff] }
 0xcea   :  { %v2797_v49 = vpack.c.bf16 %v2796_v48, %v2350_v36 }
 0xcec   :  { %6452 = vmatmul.mubr.msk.bf16.vlgmr.msra.gmra.mxu1 %vm469_vm1, %v2797_v49 }
 0xced   :  { %6471 = vmatprep.mubr.msk.bf16.mxu1 %vm7507_vm0, %v7506_v0  ;;  %6464 = vmatpush3.bf16.msra.mxu1 %v6913_v13 }
 0xcee   :  { %6465 = vmatprep.subr.bf16.mxu1 %v7506_v0 }
 0xcf1   :  { %6466 = vmatpush3.bf16.msra.mxu1 %v6914_v31 }
 0xcf2   :  { %6467 = vmatprep.subr.bf16.mxu1 %v7506_v0 }
 0xcf5   :  { %6468 = vmatpush3.bf16.msra.mxu1 %v6915_v32 }
 0xcf6   :  { %6469 = vmatprep.subr.bf16.mxu1 %v7506_v0 }
 0xcf9   :  { %6470 = vmatpush3.bf16.msra.mxu1 %v6916_v33 }
 0xcfa   :  { %6491 = vmatprep.subr.bf16.mxu1 %v7506_v0 }
 0xdac   :  { %v2858_v57 = vpop.f32.mrf.mxu1 }
 0xdad   :  { %v2859_v59 = vadd.f32 %v5899_v50, %v2858_v57 }
 0xdae   :  { %v6453_v55 = vpop.f32.mrf.mxu1 }
 0xdaf   :  { %v2865_v61 = vadd.f32 %v2859_v59, %v8077_v53 }
 0xdb0   :  { %v2861_v62 = vpop.f32.mrf.mxu1 }
 0xdb1   :  { %v2862_v63 = vadd.f32 %v5899_v50, %v2861_v62  ;;  %v2867_v58 = vsel %vm469_vm1, %v2865_v61, 0.0 }
 0xdb2   :  { %2868 = vadd.xlane.f32.xlu0 %v2867_v58  ;;  %v6454_v1 = vpop.f32.mrf.mxu1 }
 0xdb3   :  { %v2866_v2 = vadd.f32 %v2862_v63, %v8079_v54  ;;  %v6911_v54 = vld [vmem:[%s8806_s6 + $0x8] sm:$0xff]  }
 0xdb4   :  { %6456 = vmatpush3.bf16.msra.mxu0 %v6911_v54 }
 0xdb5   :  { %v2870_v5 = vsel %vm469_vm1, %v2866_v2, 0.0  ;;  %6457 = vmatprep.subr.bf16.mxu0 %v7506_v0 }
 0xdb6   :  { %2871 = vadd.xlane.f32.xlu1 %v2870_v5 }
 0xdb8   :  { %6458 = vmatpush3.bf16.msra.mxu0 %v6912_v14 }
 0xdb9   :  { %6475 = vmatprep.subr.bf16.mxu0 %v7506_v0 }
 0xe3b   :  { %v2869_v6 = vpop.xlane.xlu0 %2868 }
 0xe3c   :  { %v2873_v7 = vmul.f32 0.03125, %v2869_v6 }
 0xe3e   :  { %v2875_v8 = vsub.f32 %v2865_v61, %v2873_v7 }
 0xe3f   :  { %v2872_v60 = vpop.xlane.xlu1 %2871 }
 0xe40   :  { %v2874_v9 = vmul.f32 0.03125, %v2872_v60  ;;  %v2877_v53 = vmul.f32 %v2875_v8, %v2875_v8  ;;  %v6917_v60 = vld [vmem:[%s8812_s27 + $0x8] sm:$0xff]  }
 0xe42   :  { %v2876_v4 = vsub.f32 %v2866_v2, %v2874_v9  ;;  %v2879_v10 = vsel %vm469_vm1, %v2877_v53, 0.0  ;;  %v6918_v9 = vld [vmem:[%s8813_s0 + $0x8] sm:$0xff]   ;;  %v6919_v53 = vld [vmem:[%s8812_s27] sm:$0xff]  }
 0xe43   :  { %2880 = vadd.xlane.f32.xlu0 %v2879_v10 }
 0xe44   :  { %v2878_v11 = vmul.f32 %v2876_v4, %v2876_v4 }
 0xe46   :  { %v2882_v12 = vsel %vm469_vm1, %v2878_v11, 0.0 }
 0xe47   :  { %2883 = vadd.xlane.f32.xlu0 %v2882_v12 }
 0xecc   :  { %v2881_v15 = vpop.xlane.xlu0 %2880 }
 0xecd   :  { %v2885_v17 = vmul.f32 0.03125, %v2881_v15 }
 0xecf   :  { %v2887_v18 = vadd.f32 1e-05, %v2885_v17 }
 0xed0   :  { %v2884_v20 = vpop.xlane.xlu0 %2883 }
 0xed1   :  { %7008 = vrsqrt.f32 %v2887_v18  ;;  %v2886_v21 = vmul.f32 0.03125, %v2884_v20  ;;  %v5915_v18 = vld [vmem:[%s8814_s4] ss:$0 sm:$0xff] }
 0xed3   :  { %v2888_v22 = vadd.f32 1e-05, %v2886_v21 }
 0xed5   :  { %7010 = vrsqrt.f32 %v2888_v22 }
 0xede   :  { %v7009_v23 = vpop.eup %7008 }
 0xedf   :  { %v2891_v56 = vmul.f32 %v7009_v23, %v2875_v8  ;;  %v5916_v23 = vld [vmem:[%s8815_s22] ss:$0 sm:$0xff] }
 0xee1   :  { %v2900_v19 = vmul.f32 %v5903_v24, %v2891_v56 }
 0xee2   :  { %v7011_v25 = vpop.eup %7010 }
 0xee3   :  { %v2892_v26 = vmul.f32 %v7011_v25, %v2876_v4  ;;  %v2909_v29 = vadd.f32 %v5904_v27, %v2900_v19  ;;  %v6920_v4 = vld [vmem:[%s8813_s0] sm:$0xff]  }
 0xee5   :  { %v2901_v3 = vmul.f32 %v5903_v24, %v2892_v26  ;;  %v6921_v26 = vld [vmem:[%s8816_s19 + $0x8] sm:$0xff]  }
 0xee7   :  { %v2910_v28 = vadd.f32 %v5904_v27, %v2901_v3  ;;  %v6922_v27 = vld [vmem:[%s8816_s19] sm:$0xff]  }
 0xee8   :  { %v5917_v3 = vld [vmem:[#allocation2] ss:$0 sm:$0xff] }
 0xee9   :  { %v2911_v30 = vpack.c.bf16 %v2910_v28, %v2909_v29 }
 0xeeb   :  { %6460 = vmatmul.mubr.msk.bf16.vlgmr.msra.gmra.mxu0 %vm469_vm1, %v2911_v30 }
 0xeec   :  { %6479 = vmatprep.mubr.msk.bf16.mxu0 %vm7507_vm0, %v7506_v0  ;;  %6476 = vmatpush3.bf16.msra.mxu0 %v6917_v60 }
 0xeed   :  { %6477 = vmatprep.subr.bf16.mxu0 %v7506_v0 }
 0xef0   :  { %6478 = vmatpush3.bf16.msra.mxu0 %v6919_v53 }
 0xef1   :  { %6483 = vmatprep.subr.bf16.mxu0 %v7506_v0 }
 0xfab   :  { %v2972_v35 = vpop.f32.mrf.mxu0 }
 0xfac   :  { %v2973_v38 = vadd.f32 %v5905_v34, %v2972_v35 }
 0xfad   :  { %v6461_v37 = vpop.f32.mrf.mxu0 }
 0xfae   :  { %v2979_v42 = vmax.f32 %v2973_v38, 0.0 }
 0xfaf   :  { %v2975_v39 = vpop.f32.mrf.mxu0 }
 0xfb0   :  { %v2976_v40 = vadd.f32 %v5905_v34, %v2975_v39 }
 0xfb1   :  { %v6462_v41 = vpop.f32.mrf.mxu0 }
 0xfb2   :  { %v2980_v43 = vmax.f32 %v2976_v40, 0.0 }
 0xfb4   :  { %v2981_v44 = vpack.c.bf16 %v2980_v43, %v2979_v42 }
 0xfb6   :  { %6472 = vmatmul.mubr.msk.bf16.vlgmr.msra.gmra.mxu1 %vm3021_vm6, %v2981_v44  ;;  %v5921_v44 = vld [vmem:[#allocation4] ss:$0 sm:$0xff] }
 0xfb7   :  { %6495 = vmatprep.mubr.msk.bf16.mxu1 %vm7507_vm0, %v7506_v0  ;;  %6492 = vmatpush3.bf16.msra.mxu1 %v6918_v9 }
 0xfb8   :  { %6493 = vmatprep.subr.bf16.mxu1 %v7506_v0 }
 0xfbb   :  { %6494 = vmatpush3.bf16.msra.mxu1 %v6920_v4 }
 0xfbc   :  { %6505 = vmatprep.subr.bf16.mxu1 %v7506_v0 }
0x1076   :  { %v3059_v45 = vpop.f32.mrf.mxu1 }
0x1077   :  { %v3060_v46 = vadd.f32 %v5909_v51, %v3059_v45 }
0x1078   :  { %v6473_v47 = vpop.f32.mrf.mxu1 }
0x1079   :  { %v3066_v48 = vadd.f32 %v3060_v46, %v2909_v29  ;;  %v5925_v29 = vld [vmem:[#allocation6] ss:$0 sm:$0xff] }
0x107a   :  { %v3062_v36 = vpop.f32.mrf.mxu1 }
0x107b   :  { %v3063_v49 = vadd.f32 %v5909_v51, %v3062_v36  ;;  %v3068_v50 = vsel %vm469_vm1, %v3066_v48, 0.0 }
0x107c   :  { %3069 = vadd.xlane.f32.xlu1 %v3068_v50  ;;  %v6474_v57 = vpop.f32.mrf.mxu1 }
0x107d   :  { %v3067_v59 = vadd.f32 %v3063_v49, %v2910_v28 }
0x107f   :  { %v3071_v55 = vsel %vm469_vm1, %v3067_v59, 0.0 }
0x1080   :  { %3072 = vadd.xlane.f32.xlu0 %v3071_v55 }
0x1105   :  { %v3070_v61 = vpop.xlane.xlu1 %3069 }
0x1106   :  { %v3074_v62 = vmul.f32 0.03125, %v3070_v61 }
0x1108   :  { %v3076_v63 = vsub.f32 %v3066_v48, %v3074_v62 }
0x1109   :  { %v3073_v58 = vpop.xlane.xlu0 %3072 }
0x110a   :  { %v3075_v1 = vmul.f32 0.03125, %v3073_v58  ;;  %v3078_v2 = vmul.f32 %v3076_v63, %v3076_v63 }
0x110c   :  { %v3077_v5 = vsub.f32 %v3067_v59, %v3075_v1  ;;  %v3080_v6 = vsel %vm469_vm1, %v3078_v2, 0.0 }
0x110d   :  { %3081 = vadd.xlane.f32.xlu1 %v3080_v6 }
0x110e   :  { %v3079_v7 = vmul.f32 %v3077_v5, %v3077_v5 }
0x1110   :  { %v3083_v8 = vsel %vm469_vm1, %v3079_v7, 0.0 }
0x1111   :  { %3084 = vadd.xlane.f32.xlu0 %v3083_v8 }
0x1196   :  { %v3082_v10 = vpop.xlane.xlu1 %3081 }
0x1197   :  { %v3086_v11 = vmul.f32 0.03125, %v3082_v10 }
0x1199   :  { %v3088_v12 = vadd.f32 1e-05, %v3086_v11 }
0x119a   :  { %v3085_v54 = vpop.xlane.xlu0 %3084 }
0x119b   :  { %7012 = vrsqrt.f32 %v3088_v12  ;;  %v3087_v14 = vmul.f32 0.03125, %v3085_v54 }
0x119d   :  { %v3089_v13 = vadd.f32 1e-05, %v3087_v14 }
0x119f   :  { %7014 = vrsqrt.f32 %v3089_v13 }
0x11a8   :  { %v7013_v15 = vpop.eup %7012 }
0x11a9   :  { %v3092_v17 = vmul.f32 %v7013_v15, %v3076_v63 }
0x11ab   :  { %v3101_v22 = vmul.f32 %v5915_v18, %v3092_v17 }
0x11ac   :  { %v7015_v20 = vpop.eup %7014 }
0x11ad   :  { %v3093_v21 = vmul.f32 %v7015_v20, %v3077_v5  ;;  %v8306_v24 = vadd.f32 %v5916_v23, %v3101_v22 }
0x11af   :  { %v3102_v56 = vmul.f32 %v5915_v18, %v3093_v21 }
0x11b1   :  { %v8308_v25 = vadd.f32 %v5916_v23, %v3102_v56 }
0x11b3   :  { %v3112_v19 = vpack.c.bf16 %v8308_v25, %v8306_v24 }
0x11b5   :  { %6480 = vmatmul.mubr.msk.bf16.vlgmr.msra.gmra.mxu0 %vm469_vm1, %v3112_v19  ;;  %6496 = vmatmul.mubr.msk.bf16.vlgmr.msra.gmra.mxu1 %vm469_vm1, %v3112_v19 }
0x11b6   :  { %6484 = vmatpush3.bf16.msra.mxu0 %v6921_v26  ;;  %6487 = vmatprep.mubr.msk.bf16.mxu0 %vm7507_vm0, %v7506_v0 }
0x11b7   :  { %6485 = vmatprep.subr.bf16.mxu0 %v7506_v0  ;;  %6507 = vmatprep.mubr.msk.bf16.mxu1 %vm7507_vm0, %v7506_v0 }
0x11ba   :  { %6486 = vmatpush3.bf16.msra.mxu0 %v6922_v27 }
0x11bb   :  { %6499 = vmatprep.subr.bf16.mxu0 %v7506_v0 }
0x11bd   :  { %6488 = vmatmul.mubr.msk.bf16.vlgmr.msra.gmra.mxu0 %vm469_vm1, %v3112_v19 }
0x11be   :  { %6501 = vmatprep.mubr.msk.bf16.mxu0 %vm7507_vm0, %v7506_v0 }
0x1275   :  { %v3173_v28 = vpop.f32.mrf.mxu0  ;;  %v3301_v30 = vpop.f32.mrf.mxu1 }
0x1276   :  { %v3174_v31 = vadd.f32 %v5917_v3, %v3173_v28  ;;  %v3302_v32 = vadd.f32 %v5925_v29, %v3301_v30 }
0x1277   :  { %v6481_v33 = vpop.f32.mrf.mxu0  ;;  %v6497_v34 = vpop.f32.mrf.mxu1 }
0x1278   :  { %v3308_v35 = vpack.c.bf16 %v3174_v31, %v3174_v31  ;;  %v8325_v37 = vpack.c.bf16 %v3302_v32, %v3302_v32 }
0x1279   :  { %v3176_v38 = vpop.f32.mrf.mxu0  ;;  %v3304_v39 = vpop.f32.mrf.mxu1 }
0x127a   :  { %v8327_v40 = vadd.f32 %v5925_v29, %v3304_v39  ;;  %3416 = vrot.lane.b32.xlu0 %v3308_v35, %s7509_s16  ;;  %v3373_v41 = vsel %vm707_vm3, %v8325_v37, 0  ;;  %v3177_v59 = vadd.f32 %v5917_v3, %v3176_v38 }
0x127b   :  { %v6482_v42 = vpop.f32.mrf.mxu0  ;;  %v6498_v43 = vpop.f32.mrf.mxu1  ;;  %6506 = vmatpush3.bf16.msra.mxu1 %v3373_v41 }
0x127c   :  { %6517 = vmatprep.subr.bf16.mxu1 %v7506_v0  ;;  %v3763_v55 = vpack.c.bf16 %v3177_v59, %v3177_v59 }
0x127d   :  { %v3237_v51 = vpop.f32.mrf.mxu0 }
0x127e   :  { %v3238_v45 = vadd.f32 %v5921_v44, %v3237_v51 }
0x127f   :  { %v6489_v46 = vpop.f32.mrf.mxu0 }
0x1280   :  { %v3309_v47 = vpack.c.bf16 %v3238_v45, %v3238_v45 }
0x1281   :  { %v3240_v48 = vpop.f32.mrf.mxu0 }
0x1282   :  { %v3241_v36 = vadd.f32 %v5921_v44, %v3240_v48  ;;  %3640 = vrot.lane.b32.xlu0 %v3309_v47, %s7510_s18  ;;  %3419 = vrot.lane.b32.xlu1 %v3309_v47, %s7509_s16  ;;  %v3314_v49 = vsel %vm644_vm2, %v3309_v47, 0 }
0x1283   :  { %v6490_v50 = vpop.f32.mrf.mxu0  ;;  %6500 = vmatpush3.bf16.xpose.msra.mxu0 %v3314_v49 }
0x1284   :  { %v3764_v57 = vpack.c.bf16 %v3241_v36, %v3241_v36  ;;  %6511 = vmatprep.subr.bf16.mxu0 %v7506_v0 }
0x1286   :  { %3530 = vrot.lane.b32.xlu1 %v3309_v47, %s7508_s25  ;;  %3874 = vrot.lane.b32.xlu0 %v3764_v57, %s7509_s16  ;;  %v3769_v8 = vsel %vm644_vm2, %v3764_v57, 0 }
0x128a   :  { %3528 = vrot.lane.b32.xlu1 %v3308_v35, %s7508_s25  ;;  %6502 = vmatmul.mubr.msk.bf16.vlgmr.msra.gmra.mxu0 %vm644_vm2, %v3308_v35 }
0x128b   :  { %3985 = vrot.lane.b32.xlu0 %v3764_v57, %s7508_s25  ;;  %6513 = vmatprep.mubr.msk.bf16.mxu0 %vm7507_vm0, %v7506_v0 }
0x128e   :  { %3638 = vrot.lane.b32.xlu1 %v3308_v35, %s7510_s18 }
0x128f   :  { %4095 = vrot.lane.b32.xlu0 %v3764_v57, %s7510_s18 }
0x1292   :  { %3871 = vrot.lane.b32.xlu1 %v3763_v55, %s7509_s16 }
0x1296   :  { %3983 = vrot.lane.b32.xlu1 %v3763_v55, %s7508_s25 }
0x129a   :  { %4093 = vrot.lane.b32.xlu1 %v3763_v55, %s7510_s18 }
0x12ec   :  { %v3417_v58 = vpop.permute.xlu0 %3416 }
0x12f4   :  { %v3420_v61 = vpop.permute.xlu1 %3419  ;;  %v3641_v2 = vpop.permute.xlu0 %3640 }
0x12f5   :  { %v3425_v62 = vsel %vm644_vm2, %v3420_v61, 0  ;;  %v3646_v6 = vsel %vm644_vm2, %v3641_v2, 0 }
0x12f6   :  { %6512 = vmatpush3.bf16.xpose.msra.mxu0 %v3425_v62 }
0x12f7   :  { %6523 = vmatprep.subr.bf16.mxu0 %v7506_v0 }
0x12f8   :  { %v3531_v63 = vpop.permute.xlu1 %3530  ;;  %v3875_v60 = vpop.permute.xlu0 %3874 }
0x12f9   :  { %v3536_v1 = vsel %vm644_vm2, %v3531_v63, 0  ;;  %v3880_v9 = vsel %vm644_vm2, %v3875_v60, 0 }
0x12fc   :  { %v3529_v5 = vpop.permute.xlu1 %3528 }
0x12fd   :  { %6514 = vmatmul.mubr.msk.bf16.vlgmr.msra.gmra.mxu0 %vm644_vm2, %v3417_v58  ;;  %v3986_v53 = vpop.permute.xlu0 %3985 }
0x12fe   :  { %6524 = vmatpush3.bf16.xpose.msra.mxu0 %v3536_v1  ;;  %6525 = vmatprep.mubr.msk.bf16.mxu0 %vm7507_vm0, %v7506_v0  ;;  %v3991_v10 = vsel %vm644_vm2, %v3986_v53, 0 }
0x12ff   :  { %6535 = vmatprep.subr.bf16.mxu0 %v7506_v0 }
0x1300   :  { %v3639_v7 = vpop.permute.xlu1 %3638 }
0x1301   :  { %v4096_v11 = vpop.permute.xlu0 %4095 }
0x1302   :  { %v4101_v54 = vsel %vm644_vm2, %v4096_v11, 0 }
0x1304   :  { %v3872_v4 = vpop.permute.xlu1 %3871 }
0x1305   :  { %6526 = vmatmul.mubr.msk.bf16.vlgmr.msra.gmra.mxu0 %vm644_vm2, %v3529_v5 }
0x1306   :  { %6536 = vmatpush3.bf16.xpose.msra.mxu0 %v3646_v6  ;;  %6537 = vmatprep.mubr.msk.bf16.mxu0 %vm7507_vm0, %v7506_v0 }
0x1307   :  { %6547 = vmatprep.subr.bf16.mxu0 %v7506_v0 }
0x1308   :  { %v3984_v12 = vpop.permute.xlu1 %3983 }
0x130c   :  { %v4094_v14 = vpop.permute.xlu1 %4093 }
0x130d   :  { %6538 = vmatmul.mubr.msk.bf16.vlgmr.msra.gmra.mxu0 %vm644_vm2, %v3639_v7 }
0x130e   :  { %6548 = vmatpush3.bf16.xpose.msra.mxu0 %v3769_v8  ;;  %6549 = vmatprep.mubr.msk.bf16.mxu0 %vm7507_vm0, %v7506_v0 }
0x130f   :  { %6559 = vmatprep.subr.bf16.mxu0 %v7506_v0 }
0x1315   :  { %6550 = vmatmul.mubr.msk.bf16.vlgmr.msra.gmra.mxu0 %vm644_vm2, %v3763_v55 }
0x1316   :  { %6560 = vmatpush3.bf16.xpose.msra.mxu0 %v3880_v9  ;;  %6561 = vmatprep.mubr.msk.bf16.mxu0 %vm7507_vm0, %v7506_v0 }
0x1317   :  { %6571 = vmatprep.subr.bf16.mxu0 %v7506_v0 }
0x131d   :  { %6562 = vmatmul.mubr.msk.bf16.vlgmr.msra.gmra.mxu0 %vm644_vm2, %v3872_v4 }
0x131e   :  { %6572 = vmatpush3.bf16.xpose.msra.mxu0 %v3991_v10  ;;  %6573 = vmatprep.mubr.msk.bf16.mxu0 %vm7507_vm0, %v7506_v0 }
0x131f   :  { %6583 = vmatprep.subr.bf16.mxu0 %v7506_v0 }
0x1325   :  { %6574 = vmatmul.mubr.msk.bf16.vlgmr.msra.gmra.mxu0 %vm644_vm2, %v3984_v12 }
0x1326   :  { %6584 = vmatpush3.bf16.xpose.msra.mxu0 %v4101_v54  ;;  %6585 = vmatprep.mubr.msk.bf16.mxu0 %vm7507_vm0, %v7506_v0 }
0x1327   :  { %6595 = vmatprep.subr.bf16.mxu0 %v7506_v0 }
0x132d   :  { %6586 = vmatmul.mubr.msk.bf16.vlgmr.msra.gmra.mxu0 %vm644_vm2, %v4094_v14 }
0x132e   :  { %6599 = vmatprep.mubr.msk.bf16.mxu0 %vm7507_vm0, %v7506_v0 }
0x134a   :  { %v3350_v13 = vpop.f32.mrf.mxu0 }
0x134b   :  { %v3351_v15 = vadd.f32 %v3350_v13, %v7914_v52 }
0x134c   :  { %v6503_v17 = vpop.f32.mrf.mxu0 }
0x134d   :  { %v3356_v18 = vsel %vm644_vm2, %v3351_v15, -inf }
0x134e   :  { %3357 = vmax.xlane.f32.xlu0 %v3356_v18  ;;  %v3353_v20 = vpop.f32.mrf.mxu0 }
0x1350   :  { %v6504_v21 = vpop.f32.mrf.mxu0 }
0x13bd   :  { %v3461_v22 = vpop.f32.mrf.mxu0 }
0x13be   :  { %v3462_v23 = vadd.f32 %v3461_v22, %v7914_v52 }
0x13bf   :  { %v6515_v56 = vpop.f32.mrf.mxu0 }
0x13c0   :  { %v3467_v26 = vsel %vm644_vm2, %v3462_v23, -inf }
0x13c1   :  { %3468 = vmax.xlane.f32.xlu1 %v3467_v26  ;;  %v3464_v19 = vpop.f32.mrf.mxu0 }
0x13c3   :  { %v6516_v27 = vpop.f32.mrf.mxu0 }
0x13c5   :  { %v3572_v3 = vpop.f32.mrf.mxu0 }
0x13c6   :  { %v3573_v29 = vadd.f32 %v3572_v3, %v7914_v52 }
0x13c7   :  { %v6527_v28 = vpop.f32.mrf.mxu0 }
0x13c8   :  { %v3578_v30 = vsel %vm644_vm2, %v3573_v29, -inf }
0x13c9   :  { %3579 = vmax.xlane.f32.xlu0 %v3578_v30  ;;  %v3575_v31 = vpop.f32.mrf.mxu0 }
0x13cb   :  { %v6528_v32 = vpop.f32.mrf.mxu0 }
0x13cd   :  { %v3682_v33 = vpop.f32.mrf.mxu0 }
0x13ce   :  { %v3683_v34 = vadd.f32 %v3682_v33, %v7914_v52 }
0x13cf   :  { %v6539_v35 = vpop.f32.mrf.mxu0 }
0x13d0   :  { %v3688_v38 = vsel %vm644_vm2, %v3683_v34, -inf }
0x13d1   :  { %3689 = vmax.xlane.f32.xlu0 %v3688_v38  ;;  %v3685_v39 = vpop.f32.mrf.mxu0 }
0x13d3   :  { %v6540_v41 = vpop.f32.mrf.mxu0 }
0x13d5   :  { %v3805_v42 = vpop.f32.mrf.mxu0 }
0x13d6   :  { %v8393_v43 = vadd.f32 %v3805_v42, %v7933_v16 }
0x13d7   :  { %v3358_v44 = vpop.xlane.xlu0 %3357  ;;  %v6551_v51 = vpop.f32.mrf.mxu0 }
0x13d8   :  { %v3359_v45 = vsub.f32 %v3351_v15, %v3358_v44  ;;  %v3811_v46 = vsel %vm644_vm2, %v8393_v43, -inf }
0x13d9   :  { %3812 = vmax.xlane.f32.xlu1 %v3811_v46  ;;  %v3808_v47 = vpop.f32.mrf.mxu0 }
0x13da   :  { %v3360_v48 = vmul.f32 1.442695, %v3359_v45 }
0x13db   :  { %v6552_v52 = vpop.f32.mrf.mxu0 }
0x13dc   :  { %7016 = vpow2.f32 %v3360_v48  ;;  %v3823_v52 = vpack.c.bf16 %v8327_v40, %v8327_v40 }
0x13dd   :  { %v3916_v36 = vpop.f32.mrf.mxu0 }
0x13de   :  { %v3917_v49 = vadd.f32 %v3916_v36, %v7933_v16 }
0x13df   :  { %v6563_v50 = vpop.f32.mrf.mxu0 }
0x13e0   :  { %v3922_v57 = vsel %vm644_vm2, %v3917_v49, -inf }
0x13e1   :  { %3923 = vmax.xlane.f32.xlu0 %v3922_v57  ;;  %v3919_v59 = vpop.f32.mrf.mxu0 }
0x13e3   :  { %v6564_v55 = vpop.f32.mrf.mxu0 }
0x13e5   :  { %v4027_v61 = vpop.f32.mrf.mxu0 }
0x13e6   :  { %v4028_v62 = vadd.f32 %v4027_v61, %v7933_v16 }
0x13e7   :  { %v6575_v63 = vpop.f32.mrf.mxu0 }
0x13e8   :  { %v4033_v58 = vsel %vm644_vm2, %v4028_v62, -inf }
0x13e9   :  { %v7017_v1 = vpop.eup %7016  ;;  %4034 = vmax.xlane.f32.xlu1 %v4033_v58  ;;  %v4030_v2 = vpop.f32.mrf.mxu0 }
0x13ea   :  { %v3362_v6 = vsel %vm644_vm2, %v7017_v1, 0.0 }
0x13eb   :  { %v6576_v5 = vpop.f32.mrf.mxu0 }
0x13ed   :  { %3363 = vadd.xlane.f32.xlu1 %v3362_v6  ;;  %v4137_v7 = vpop.f32.mrf.mxu0 }
0x13ee   :  { %v4138_v8 = vadd.f32 %v4137_v7, %v7933_v16 }
0x13ef   :  { %v6587_v60 = vpop.f32.mrf.mxu0 }
0x13f0   :  { %v4143_v9 = vsel %vm644_vm2, %v4138_v8, -inf }
0x13f1   :  { %4144 = vmax.xlane.f32.xlu0 %v4143_v9  ;;  %v4140_v53 = vpop.f32.mrf.mxu0  ;;  %v3828_v9 = vsel %vm707_vm3, %v3823_v52, 0 }
0x13f3   :  { %v6588_v4 = vpop.f32.mrf.mxu0 }
0x144a   :  { %v3469_v10 = vpop.xlane.xlu1 %3468 }
0x144b   :  { %v3470_v11 = vsub.f32 %v3462_v23, %v3469_v10 }
0x144d   :  { %v3471_v12 = vmul.f32 1.442695, %v3470_v11 }
0x144f   :  { %7018 = vpow2.f32 %v3471_v12 }
0x1452   :  { %v3580_v54 = vpop.xlane.xlu0 %3579 }
0x1453   :  { %v3581_v14 = vsub.f32 %v3573_v29, %v3580_v54 }
0x1455   :  { %v3582_v13 = vmul.f32 1.442695, %v3581_v14 }
0x1457   :  { %7020 = vpow2.f32 %v3582_v13 }
0x145a   :  { %v3690_v15 = vpop.xlane.xlu0 %3689 }
0x145b   :  { %v3691_v17 = vsub.f32 %v3683_v34, %v3690_v15 }
0x145c   :  { %v7019_v18 = vpop.eup %7018 }
0x145d   :  { %v3692_v20 = vmul.f32 1.442695, %v3691_v17  ;;  %v3473_v16 = vsel %vm644_vm2, %v7019_v18, 0.0 }
0x145e   :  { %3474 = vadd.xlane.f32.xlu0 %v3473_v16 }
0x145f   :  { %7022 = vpow2.f32 %v3692_v20 }
0x1462   :  { %v3813_v26 = vpop.xlane.xlu1 %3812 }
0x1463   :  { %v3814_v29 = vsub.f32 %v8393_v43, %v3813_v26 }
0x1464   :  { %v8405_v21 = vpop.eup %7020 }
0x1465   :  { %v3584_v22 = vsel %vm644_vm2, %v8405_v21, 0.0  ;;  %v3815_v33 = vmul.f32 1.442695, %v3814_v29 }
0x1466   :  { %3585 = vadd.xlane.f32.xlu1 %v3584_v22 }
0x146a   :  { %v3924_v28 = vpop.xlane.xlu0 %3923 }
0x146b   :  { %v3925_v32 = vsub.f32 %v3917_v49, %v3924_v28 }
0x146c   :  { %v8409_v23 = vpop.eup %7022 }
0x146d   :  { %v3694_v56 = vsel %vm644_vm2, %v8409_v23, 0.0  ;;  %v3926_v38 = vmul.f32 1.442695, %v3925_v32 }
0x146e   :  { %3695 = vadd.xlane.f32.xlu0 %v3694_v56 }
0x1472   :  { %v4035_v19 = vpop.xlane.xlu1 %4034 }
0x1473   :  { %v4036_v34 = vsub.f32 %v4028_v62, %v4035_v19 }
0x1475   :  { %v4037_v39 = vmul.f32 1.442695, %v4036_v34 }
0x1476   :  { %v3364_v27 = vpop.xlane.xlu1 %3363 }
0x1477   :  { %3590 = vrot.lane.b32.xlu1 %v8325_v37, %s7508_s25  ;;  %7024 = vrcp.f32 %v3364_v27 }
0x1478   :  { %7026 = vpow2.f32 %v3815_v33 }
0x1479   :  { %7028 = vpow2.f32 %v3926_v38 }
0x147a   :  { %v4145_v35 = vpop.xlane.xlu0 %4144  ;;  %7030 = vpow2.f32 %v4037_v39 }
0x147b   :  { %3700 = vrot.lane.b32.xlu1 %v8325_v37, %s7510_s18  ;;  %v4146_v41 = vsub.f32 %v4138_v8, %v4145_v35 }
0x1484   :  { %3480 = vrot.lane.b32.xlu0 %v8325_v37, %s7509_s16  ;;  %v7025_v3 = vpop.eup %7024  ;;  %v4147_v37 = vmul.f32 1.442695, %v4146_v41 }
0x1485   :  { %v3366_v30 = vmul.f32 %v7025_v3, %v7017_v1  ;;  %v7027_v42 = vpop.eup %7026 }
0x1486   :  { %7032 = vpow2.f32 %v4147_v37  ;;  %v8423_v43 = vpop.eup %7028  ;;  %v3817_v44 = vsel %vm644_vm2, %v7027_v42, 0.0 }
0x1487   :  { %v3367_v31 = vpack.c.bf16 %v3366_v30, %v3366_v30  ;;  %v8426_v51 = vpop.eup %7030  ;;  %v3928_v45 = vsel %vm644_vm2, %v8423_v43, 0.0 }
0x1488   :  { %v4039_v46 = vsel %vm644_vm2, %v8426_v51, 0.0 }
0x1489   :  { %6508 = vmatmul.mubr.msk.bf16.vlgmr.msra.gmra.mxu1 %vm644_vm2, %v3367_v31 }
0x148a   :  { %6519 = vmatprep.mubr.msk.bf16.mxu1 %vm7507_vm0, %v7506_v0 }
0x1493   :  { %v8432_v47 = vpop.eup %7032 }
0x1494   :  { %v4149_v48 = vsel %vm644_vm2, %v8432_v47, 0.0 }
0x149f   :  { %3818 = vadd.xlane.f32.xlu1 %v3817_v44 }
0x14a3   :  { %3929 = vadd.xlane.f32.xlu1 %v3928_v45  ;;  %4040 = vadd.xlane.f32.xlu0 %v4039_v46 }
0x14a7   :  { %4150 = vadd.xlane.f32.xlu1 %v4149_v48 }
0x14b8   :  { %4045 = vrot.lane.b32.xlu1 %v3823_v52, %s7508_s25 }
0x14b9   :  { %3935 = vrot.lane.b32.xlu0 %v3823_v52, %s7509_s16 }
0x14bd   :  { %4155 = vrot.lane.b32.xlu0 %v3823_v52, %s7510_s18 }
0x14e7   :  { %v3475_v36 = vpop.xlane.xlu0 %3474 }
0x14e8   :  { %7034 = vrcp.f32 %v3475_v36 }
0x14ef   :  { %v3586_v49 = vpop.xlane.xlu1 %3585 }
0x14f0   :  { %7036 = vrcp.f32 %v3586_v49  ;;  %v6923_v49 = vld [vmem:[%s8817_s26 + $0x8] sm:$0xff]  }
0x14f1   :  { %6596 = vmatpush3.bf16.msra.mxu0 %v6923_v49 }
0x14f2   :  { %6597 = vmatprep.subr.bf16.mxu0 %v7506_v0 }
0x14f3   :  { %v3591_v62 = vpop.permute.xlu1 %3590 }
0x14f4   :  { %v3596_v58 = vsel %vm707_vm3, %v3591_v62, 0 }
0x14f5   :  { %v7035_v50 = vpop.eup %7034 }
0x14f6   :  { %v3477_v59 = vmul.f32 %v7035_v50, %v7019_v18 }
0x14f7   :  { %v3696_v57 = vpop.xlane.xlu0 %3695  ;;  %v3701_v2 = vpop.permute.xlu1 %3700 }
0x14f8   :  { %7038 = vrcp.f32 %v3696_v57  ;;  %v3478_v40 = vpack.c.bf16 %v3477_v59, %v3477_v59  ;;  %v3706_v7 = vsel %vm707_vm3, %v3701_v2, 0 }
0x14fb   :  { %v3481_v55 = vpop.permute.xlu0 %3480 }
0x14fc   :  { %v3486_v61 = vsel %vm707_vm3, %v3481_v55, 0 }
0x14fd   :  { %6518 = vmatpush3.bf16.msra.mxu1 %v3486_v61  ;;  %v7037_v63 = vpop.eup %7036  ;;  %v6924_v61 = vld [vmem:[%s8817_s26] sm:$0xff]  }
0x14fe   :  { %6529 = vmatprep.subr.bf16.mxu1 %v7506_v0  ;;  %v3588_v1 = vmul.f32 %v7037_v63, %v8405_v21  ;;  %6598 = vmatpush3.bf16.msra.mxu0 %v6924_v61 }
0x1500   :  { %6520 = vmatmul.mubr.msk.bf16.vlgmr.msra.gmra.mxu1 %vm644_vm2, %v3478_v40  ;;  %v3589_v5 = vpack.c.bf16 %v3588_v1, %v3588_v1 }
0x1501   :  { %6530 = vmatpush3.bf16.msra.mxu1 %v3596_v58  ;;  %6531 = vmatprep.mubr.msk.bf16.mxu1 %vm7507_vm0, %v7506_v0 }
0x1502   :  { %6541 = vmatprep.subr.bf16.mxu1 %v7506_v0 }
0x1505   :  { %v7039_v6 = vpop.eup %7038 }
0x1506   :  { %v3698_v8 = vmul.f32 %v7039_v6, %v8409_v23 }
0x1508   :  { %6532 = vmatmul.mubr.msk.bf16.vlgmr.msra.gmra.mxu1 %vm644_vm2, %v3589_v5  ;;  %v3699_v60 = vpack.c.bf16 %v3698_v8, %v3698_v8 }
0x1509   :  { %6542 = vmatpush3.bf16.msra.mxu1 %v3706_v7  ;;  %6543 = vmatprep.mubr.msk.bf16.mxu1 %vm7507_vm0, %v7506_v0 }
0x150a   :  { %6553 = vmatprep.subr.bf16.mxu1 %v7506_v0 }
0x1510   :  { %6544 = vmatmul.mubr.msk.bf16.vlgmr.msra.gmra.mxu1 %vm644_vm2, %v3699_v60 }
0x1511   :  { %6554 = vmatpush3.bf16.msra.mxu1 %v3828_v9  ;;  %6555 = vmatprep.mubr.msk.bf16.mxu1 %vm7507_vm0, %v7506_v0 }
0x1512   :  { %6565 = vmatprep.subr.bf16.mxu1 %v7506_v0 }
0x1528   :  { %v3819_v53 = vpop.xlane.xlu1 %3818 }
0x1529   :  { %7040 = vrcp.f32 %v3819_v53 }
0x152c   :  { %v3930_v4 = vpop.xlane.xlu1 %3929  ;;  %v4041_v10 = vpop.xlane.xlu0 %4040 }
0x152d   :  { %7042 = vrcp.f32 %v3930_v4 }
0x152e   :  { %7044 = vrcp.f32 %v4041_v10 }
0x1530   :  { %v3936_v54 = vpop.permute.xlu0 %3935  ;;  %v4151_v15 = vpop.xlane.xlu1 %4150 }
0x1531   :  { %v3941_v17 = vsel %vm707_vm3, %v3936_v54, 0  ;;  %7046 = vrcp.f32 %v4151_v15 }
0x1534   :  { %v4046_v20 = vpop.permute.xlu1 %4045  ;;  %v4156_v56 = vpop.permute.xlu0 %4155 }
0x1535   :  { %v4051_v22 = vsel %vm707_vm3, %v4046_v20, 0  ;;  %v4161_v3 = vsel %vm707_vm3, %v4156_v56, 0 }
0x1536   :  { %v7041_v11 = vpop.eup %7040 }
0x1537   :  { %v3821_v12 = vmul.f32 %v7041_v11, %v7027_v42 }
0x1539   :  { %v3822_v14 = vpack.c.bf16 %v3821_v12, %v3821_v12 }
0x153a   :  { %v7043_v13 = vpop.eup %7042 }
0x153b   :  { %6556 = vmatmul.mubr.msk.bf16.vlgmr.msra.gmra.mxu1 %vm644_vm2, %v3822_v14  ;;  %v3932_v18 = vmul.f32 %v7043_v13, %v8423_v43  ;;  %v7045_v21 = vpop.eup %7044 }
0x153c   :  { %6566 = vmatpush3.bf16.msra.mxu1 %v3941_v17  ;;  %6567 = vmatprep.mubr.msk.bf16.mxu1 %vm7507_vm0, %v7506_v0  ;;  %v4043_v23 = vmul.f32 %v7045_v21, %v8426_v51 }
0x153d   :  { %6577 = vmatprep.subr.bf16.mxu1 %v7506_v0  ;;  %v3933_v16 = vpack.c.bf16 %v3932_v18, %v3932_v18 }
0x153e   :  { %v4044_v26 = vpack.c.bf16 %v4043_v23, %v4043_v23  ;;  %v7047_v19 = vpop.eup %7046  ;;  %v5945_v23 = vld [vmem:[#allocation7] ss:$0 sm:$0xff] }
0x153f   :  { %v4153_v28 = vmul.f32 %v7047_v19, %v8432_v47 }
0x1541   :  { %v4154_v32 = vpack.c.bf16 %v4153_v28, %v4153_v28 }
0x1543   :  { %6568 = vmatmul.mubr.msk.bf16.vlgmr.msra.gmra.mxu1 %vm644_vm2, %v3933_v16 }
0x1544   :  { %6578 = vmatpush3.bf16.msra.mxu1 %v4051_v22  ;;  %6579 = vmatprep.mubr.msk.bf16.mxu1 %vm7507_vm0, %v7506_v0  ;;  %v7092_v22 = vld [vmem:[%s8795_s1] sm:$0xff]  }
0x1545   :  { %6589 = vmatprep.subr.bf16.mxu1 %v7506_v0 }
0x1549   :  { %v3409_v27 = vpop.f32.mrf.mxu1 }
0x154b   :  { %6580 = vmatmul.mubr.msk.bf16.vlgmr.msra.gmra.mxu1 %vm644_vm2, %v4044_v26  ;;  %v6509_v29 = vpop.f32.mrf.mxu1 }
0x154c   :  { %6590 = vmatpush3.bf16.msra.mxu1 %v4161_v3  ;;  %6591 = vmatprep.mubr.msk.bf16.mxu1 %vm7507_vm0, %v7506_v0 }
0x154d   :  { %6603 = vmatprep.subr.bf16.mxu1 %v7506_v0  ;;  %v3412_v30 = vpop.f32.mrf.mxu1 }
0x154f   :  { %v6510_v31 = vpop.f32.mrf.mxu1 }
0x1553   :  { %6592 = vmatmul.mubr.msk.bf16.vlgmr.msra.gmra.mxu1 %vm644_vm2, %v4154_v32 }
0x1554   :  { %6607 = vmatprep.mubr.msk.bf16.mxu1 %vm7507_vm0, %v7506_v0 }
0x15c0   :  { %v3522_v33 = vpop.f32.mrf.mxu1 }
0x15c2   :  { %v6521_v34 = vpop.f32.mrf.mxu1 }
0x15c4   :  { %v3525_v35 = vpop.f32.mrf.mxu1 }
0x15c6   :  { %v6522_v38 = vpop.f32.mrf.mxu1 }
0x15c8   :  { %v3632_v39 = vpop.f32.mrf.mxu1 }
0x15ca   :  { %v6533_v41 = vpop.f32.mrf.mxu1 }
0x15cc   :  { %v3635_v37 = vpop.f32.mrf.mxu1 }
0x15ce   :  { %v6534_v42 = vpop.f32.mrf.mxu1 }
0x15d0   :  { %v3742_v43 = vpop.f32.mrf.mxu1 }
0x15d2   :  { %v6545_v44 = vpop.f32.mrf.mxu1 }
0x15d3   :  { %v6926_v44 = vld [vmem:[%s8818_s28] sm:$0xff]  }
0x15d4   :  { %v3745_v51 = vpop.f32.mrf.mxu1 }
0x15d5   :  { %v8506_v51 = vld [vmem:[%s8795_s1 + $0x8] sm:$0xff]   ;;  %s8820_s1 = sld [smem:[#allocation72_spill]] }
0x15d6   :  { %v6546_v45 = vpop.f32.mrf.mxu1 }
0x15d7   :  { %v6927_v45 = vld [vmem:[%s8819_s2 + $0x8] sm:$0xff]  }
0x15d8   :  { %6604 = vmatpush3.bf16.msra.mxu1 %v6927_v45 }
0x15d9   :  { %6605 = vmatprep.subr.bf16.mxu1 %v7506_v0 }
0x15fb   :  { %v3864_v46 = vpop.f32.mrf.mxu1 }
0x15fd   :  { %v6557_v47 = vpop.f32.mrf.mxu1 }
0x15ff   :  { %v3867_v48 = vpop.f32.mrf.mxu1 }
0x1601   :  { %v6558_v52 = vpop.f32.mrf.mxu1 }
0x1603   :  { %v3977_v36 = vpop.f32.mrf.mxu1 }
0x1604   :  { %v6862_v50 = vpack.i.bf16 %v3977_v36, %v3522_v33 }
0x1605   :  { %v6569_v57 = vpop.f32.mrf.mxu1 }
0x1606   :  { %6863 = vrot.lane.b32.xlu0 %v6862_v50, %s7511_s20 }
0x1607   :  { %v3980_v59 = vpop.f32.mrf.mxu1 }
0x1609   :  { %v6570_v55 = vpop.f32.mrf.mxu1 }
0x160a   :  { %v5949_v55 = vld [vmem:[#allocation9] ss:$0 sm:$0xff] }
0x160b   :  { %v4087_v62 = vpop.f32.mrf.mxu1 }
0x160c   :  { %v6867_v40 = vpack.i.bf16 %v4087_v62, %v3632_v39 }
0x160d   :  { %v6581_v63 = vpop.f32.mrf.mxu1 }
0x160e   :  { %6868 = vrot.lane.b32.xlu1 %v6867_v40, %s7512_s23  ;;  %v5950_v63 = vld [vmem:[#allocation10] ss:$0 sm:$0xff] }
0x160f   :  { %v4090_v58 = vpop.f32.mrf.mxu1 }
0x1611   :  { %v6582_v1 = vpop.f32.mrf.mxu1 }
0x1613   :  { %v4197_v2 = vpop.f32.mrf.mxu1 }
0x1614   :  { %v6872_v5 = vpack.i.bf16 %v4197_v2, %v3742_v43  ;;  %v6925_v43 = vld [vmem:[%s8818_s28 + $0x8] sm:$0xff]  }
0x1615   :  { %v6593_v6 = vpop.f32.mrf.mxu1  ;;  %6611 = vmatprep.subr.bf16.mxu0 %v6925_v43 }
0x1616   :  { %6873 = vrot.lane.b32.xlu0 %v6872_v5, %s7513_s12  ;;  %v5955_v6 = vld [vmem:[#allocation13] ss:$0 sm:$0xff] }
0x1617   :  { %v4200_v7 = vpop.f32.mrf.mxu1 }
0x1619   :  { %v6594_v8 = vpop.f32.mrf.mxu1 }
0x1678   :  { %v6864_v60 = vpop.permute.xlu0 %6863 }
0x1679   :  { %v6866_v53 = vunpack.i.h.bf16 %v6864_v60  ;;  %v6865_v4 = vunpack.i.l.bf16 %v6864_v60 }
0x167b   :  { %v4215_v54 = vsel %vm644_vm2, %v3864_v46, %v6866_v53  ;;  %v3760_v14 = vsel %vm644_vm2, %v3409_v27, %v6865_v4  ;;  %v6928_v46 = vld [vmem:[%s8819_s2] sm:$0xff]  }
0x167c   :  { %6606 = vmatpush3.bf16.msra.mxu1 %v6928_v46 }
0x1680   :  { %v6869_v9 = vpop.permute.xlu1 %6868 }
0x1681   :  { %v6871_v10 = vunpack.i.h.bf16 %v6869_v9  ;;  %v6870_v11 = vunpack.i.l.bf16 %v6869_v9 }
0x1683   :  { %v3761_v17 = vsel %vm1097_vm4, %v3760_v14, %v6870_v11  ;;  %v4216_v18 = vsel %vm1097_vm4, %v4215_v54, %v6871_v10 }
0x1688   :  { %v6874_v12 = vpop.permute.xlu0 %6873 }
0x1689   :  { %v6876_v13 = vunpack.i.h.bf16 %v6874_v12  ;;  %v6875_v15 = vunpack.i.l.bf16 %v6874_v12 }
0x168b   :  { %v3762_v20 = vsel %vm1099_vm5, %v3761_v17, %v6875_v15  ;;  %v4217_v16 = vsel %vm1099_vm5, %v4216_v18, %v6876_v13  ;;  %v5951_v13 = vld [vmem:[#allocation12] ss:$0 sm:$0xff] }
0x168c   :  { %v4218_v21 = vpack.c.bf16 %v4217_v16, %v3762_v20 }
0x168e   :  { %6600 = vmatmul.mubr.msk.bf16.vlgmr.msra.gmra.mxu0 %vm469_vm1, %v4218_v21 }
0x168f   :  { %6615 = vmatprep.mubr.msk.bf16.mxu0 %vm469_vm1, %v7092_v22  ;;  %6612 = vmatpush3.bf16.msra.mxu0 %v6925_v43 }
0x1690   :  { %6613 = vmatprep.subr.bf16.mxu0 %v6926_v44 }
0x1693   :  { %6614 = vmatpush3.bf16.msra.mxu0 %v6926_v44 }
0x1694   :  { %6627 = vmatprep.subr.bf16.mxu0 %v7506_v0 }
0x1696   :  { %6616 = vmatmul.mubr.msk.bf16.vlgmr.msra.gmra.mxu0 %vm469_vm1, %v8506_v51 }
0x1697   :  { %6629 = vmatprep.mubr.msk.bf16.mxu0 %vm7507_vm0, %v7506_v0 }
0x174e   :  { %v4279_v56 = vpop.f32.mrf.mxu0 }
0x174f   :  { %v4280_v26 = vadd.f32 %v5945_v23, %v4279_v56 }
0x1750   :  { %v6601_v19 = vpop.f32.mrf.mxu0 }
0x1751   :  { %v4286_v27 = vadd.f32 %v4280_v26, %v8306_v24  ;;  %v6929_v19 = vld [vmem:[%s8820_s1 + $0x8] sm:$0xff]  }
0x1752   :  { %v4282_v3 = vpop.f32.mrf.mxu0  ;;  %6619 = vmatprep.subr.bf16.mxu1 %v6929_v19 }
0x1753   :  { %v4283_v29 = vadd.f32 %v5945_v23, %v4282_v3  ;;  %v4288_v28 = vsel %vm469_vm1, %v4286_v27, 0.0 }
0x1754   :  { %4289 = vadd.xlane.f32.xlu1 %v4288_v28  ;;  %v6602_v30 = vpop.f32.mrf.mxu0 }
0x1755   :  { %v4287_v31 = vadd.f32 %v4283_v29, %v8308_v25 }
0x1756   :  { %v6617_v7 = vpop.f32.mrf.mxu0 }
0x1757   :  { %v4291_v32 = vsel %vm469_vm1, %v4287_v31, 0.0  ;;  %v4466_v8 = vadd.f32 %v6617_v7, %v5955_v6 }
0x1758   :  { %4292 = vadd.xlane.f32.xlu0 %v4291_v32  ;;  %v4457_v60 = vpop.f32.mrf.mxu0 }
0x1759   :  { %v4458_v53 = vadd.f32 %v5955_v6, %v4457_v60 }
0x175a   :  { %v6618_v9 = vpop.f32.mrf.mxu0 }
0x175b   :  { %v4469_v4 = vadd.f32 %v6618_v9, %v5955_v6 }
0x175c   :  { %v4460_v10 = vpop.f32.mrf.mxu0 }
0x175d   :  { %v4991_v11 = vpack.c.bf16 %v4469_v4, %v4466_v8  ;;  %v4461_v12 = vadd.f32 %v5955_v6, %v4460_v10 }
0x175f   :  { %v4545_v54 = vpack.c.bf16 %v4461_v12, %v4458_v53 }
0x1761   :  { %v4550_v14 = vsel %vm644_vm2, %v4545_v54, 0 }
0x1762   :  { %6628 = vmatpush3.bf16.xpose.msra.mxu0 %v4550_v14 }
0x1763   :  { %6639 = vmatprep.subr.bf16.mxu0 %v7506_v0 }
0x17dd   :  { %v4290_v33 = vpop.xlane.xlu1 %4289 }
0x17de   :  { %v4294_v34 = vmul.f32 0.03125, %v4290_v33 }
0x17e0   :  { %v4296_v35 = vsub.f32 %v4286_v27, %v4294_v34  ;;  %v6930_v27 = vld [vmem:[%s8820_s1] sm:$0xff]   ;;  %v4996_v34 = vsel %vm644_vm2, %v4991_v11, 0 }
0x17e1   :  { %v4293_v38 = vpop.xlane.xlu0 %4292 }
0x17e2   :  { %v4295_v39 = vmul.f32 0.03125, %v4293_v38  ;;  %v4298_v24 = vmul.f32 %v4296_v35, %v4296_v35 }
0x17e4   :  { %v4297_v41 = vsub.f32 %v4287_v31, %v4295_v39  ;;  %v4300_v37 = vsel %vm469_vm1, %v4298_v24, 0.0 }
0x17e5   :  { %4301 = vadd.xlane.f32.xlu0 %v4300_v37 }
0x17e6   :  { %v4299_v42 = vmul.f32 %v4297_v41, %v4297_v41 }
0x17e8   :  { %v4303_v25 = vsel %vm469_vm1, %v4299_v42, 0.0 }
0x17e9   :  { %4304 = vadd.xlane.f32.xlu1 %v4303_v25 }
0x17fb   :  { %4652 = vrot.lane.b32.xlu0 %v4545_v54, %s7509_s16 }
0x186e   :  { %v4302_v47 = vpop.xlane.xlu0 %4301 }
0x186f   :  { %v4306_v48 = vmul.f32 0.03125, %v4302_v47 }
0x1871   :  { %v4308_v52 = vadd.f32 1e-05, %v4306_v48 }
0x1872   :  { %v4305_v36 = vpop.xlane.xlu1 %4304  ;;  %v4653_v18 = vpop.permute.xlu0 %4652 }
0x1873   :  { %7048 = vrsqrt.f32 %v4308_v52  ;;  %v4307_v49 = vmul.f32 0.03125, %v4305_v36 }
0x1875   :  { %v4309_v50 = vadd.f32 1e-05, %v4307_v49  ;;  %v5960_v49 = vld [vmem:[#allocation15] ss:$0 sm:$0xff] }
0x1877   :  { %7050 = vrsqrt.f32 %v4309_v50 }
0x1880   :  { %v7049_v57 = vpop.eup %7048 }
0x1881   :  { %v4312_v59 = vmul.f32 %v7049_v57, %v4296_v35 }
0x1883   :  { %v4321_v62 = vmul.f32 %v5949_v55, %v4312_v59 }
0x1884   :  { %v7051_v61 = vpop.eup %7050 }
0x1885   :  { %v4313_v40 = vmul.f32 %v7051_v61, %v4297_v41  ;;  %v8515_v1 = vadd.f32 %v5950_v63, %v4321_v62 }
0x1887   :  { %v4322_v58 = vmul.f32 %v5949_v55, %v4313_v40 }
0x1889   :  { %v8517_v2 = vadd.f32 %v5950_v63, %v4322_v58 }
0x188b   :  { %v4332_v5 = vpack.c.bf16 %v8517_v2, %v8515_v1 }
0x188d   :  { %6608 = vmatmul.mubr.msk.bf16.vlgmr.msra.gmra.mxu1 %vm469_vm1, %v4332_v5 }
0x188e   :  { %6623 = vmatprep.mubr.msk.bf16.mxu1 %vm469_vm1, %v7092_v22  ;;  %v4658_v22 = vsel %vm644_vm2, %v4653_v18, 0  ;;  %6620 = vmatpush3.bf16.msra.mxu1 %v6929_v19 }
0x188f   :  { %6621 = vmatprep.subr.bf16.mxu1 %v6930_v27 }
0x1892   :  { %6622 = vmatpush3.bf16.msra.mxu1 %v6930_v27 }
0x1893   :  { %6633 = vmatprep.subr.bf16.mxu1 %v7506_v0 }
0x1895   :  { %6624 = vmatmul.mubr.msk.bf16.vlgmr.msra.gmra.mxu1 %vm469_vm1, %v8506_v51  ;;  %v8583_v51 = vld [vmem:[%s8802_s21] ss:$0 sm:$0xff] }
0x1896   :  { %6635 = vmatprep.mubr.msk.bf16.mxu1 %vm7507_vm0, %v7506_v0 }
0x194d   :  { %v4393_v15 = vpop.f32.mrf.mxu1 }
0x194e   :  { %v4394_v17 = vadd.f32 %v5951_v13, %v4393_v15 }
0x194f   :  { %v6609_v20 = vpop.f32.mrf.mxu1 }
0x1950   :  { %v4544_v16 = vpack.c.bf16 %v4394_v17, %v4394_v17 }
0x1951   :  { %v4396_v21 = vpop.f32.mrf.mxu1 }
0x1952   :  { %4649 = vrot.lane.b32.xlu1 %v4544_v16, %s7509_s16  ;;  %4759 = vrot.lane.b32.xlu0 %v4544_v16, %s7508_s25  ;;  %v4397_v56 = vadd.f32 %v5951_v13, %v4396_v21 }
0x1953   :  { %6630 = vmatmul.mubr.msk.bf16.vlgmr.msra.gmra.mxu0 %vm644_vm2, %v4544_v16  ;;  %v6610_v23 = vpop.f32.mrf.mxu1 }
0x1954   :  { %6640 = vmatpush3.bf16.xpose.msra.mxu0 %v4658_v22  ;;  %6641 = vmatprep.mubr.msk.bf16.mxu0 %vm7507_vm0, %v7506_v0  ;;  %v4990_v26 = vpack.c.bf16 %v4397_v56, %v4397_v56 }
0x1955   :  { %6651 = vmatprep.subr.bf16.mxu0 %v7506_v0  ;;  %v6625_v36 = vpop.f32.mrf.mxu1 }
0x1956   :  { %4761 = vrot.lane.b32.xlu1 %v4545_v54, %s7508_s25  ;;  %4867 = vrot.lane.b32.xlu0 %v4544_v16, %s7510_s18  ;;  %v4538_v50 = vadd.f32 %v6625_v36, %v5960_v49 }
0x1957   :  { %v4529_v57 = vpop.f32.mrf.mxu1 }
0x1958   :  { %v4530_v55 = vadd.f32 %v5960_v49, %v4529_v57 }
0x1959   :  { %v6626_v59 = vpop.f32.mrf.mxu1 }
0x195a   :  { %4869 = vrot.lane.b32.xlu1 %v4545_v54, %s7510_s18  ;;  %5095 = vrot.lane.b32.xlu0 %v4990_v26, %s7509_s16  ;;  %v4541_v61 = vadd.f32 %v6626_v59, %v5960_v49 }
0x195b   :  { %v4532_v62 = vpop.f32.mrf.mxu1 }
0x195c   :  { %v8587_v40 = vpack.c.bf16 %v4541_v61, %v4538_v50  ;;  %v4533_v63 = vadd.f32 %v5960_v49, %v4532_v62 }
0x195e   :  { %5098 = vrot.lane.b32.xlu1 %v4991_v11, %s7509_s16  ;;  %5205 = vrot.lane.b32.xlu0 %v4990_v26, %s7508_s25  ;;  %v8589_v58 = vpack.c.bf16 %v4533_v63, %v4530_v55 }
0x1960   :  { %6634 = vmatpush3.bf16.msra.mxu1 %v8589_v58 }
0x1961   :  { %6645 = vmatprep.subr.bf16.mxu1 %v7506_v0 }
0x1962   :  { %5207 = vrot.lane.b32.xlu1 %v4991_v11, %s7508_s25  ;;  %5313 = vrot.lane.b32.xlu0 %v4990_v26, %s7510_s18 }
0x1966   :  { %5315 = vrot.lane.b32.xlu1 %v4991_v11, %s7510_s18 }
0x19c4   :  { %v4650_v3 = vpop.permute.xlu1 %4649  ;;  %v4760_v31 = vpop.permute.xlu0 %4759 }
0x19c5   :  { %6642 = vmatmul.mubr.msk.bf16.vlgmr.msra.gmra.mxu0 %vm644_vm2, %v4650_v3 }
0x19c6   :  { %6653 = vmatprep.mubr.msk.bf16.mxu0 %vm7507_vm0, %v7506_v0 }
0x19c8   :  { %v4762_v29 = vpop.permute.xlu1 %4761  ;;  %v4868_v33 = vpop.permute.xlu0 %4867 }
0x19c9   :  { %v4767_v28 = vsel %vm644_vm2, %v4762_v29, 0 }
0x19ca   :  { %6652 = vmatpush3.bf16.xpose.msra.mxu0 %v4767_v28 }
0x19cb   :  { %6663 = vmatprep.subr.bf16.mxu0 %v7506_v0 }
0x19cc   :  { %v4870_v30 = vpop.permute.xlu1 %4869  ;;  %v5096_v24 = vpop.permute.xlu0 %5095 }
0x19cd   :  { %v4875_v32 = vsel %vm644_vm2, %v4870_v30, 0 }
0x19d0   :  { %v5099_v35 = vpop.permute.xlu1 %5098  ;;  %v5206_v42 = vpop.permute.xlu0 %5205 }
0x19d1   :  { %6654 = vmatmul.mubr.msk.bf16.vlgmr.msra.gmra.mxu0 %vm644_vm2, %v4760_v31  ;;  %v5104_v38 = vsel %vm644_vm2, %v5099_v35, 0 }
0x19d2   :  { %6664 = vmatpush3.bf16.xpose.msra.mxu0 %v4875_v32  ;;  %6665 = vmatprep.mubr.msk.bf16.mxu0 %vm7507_vm0, %v7506_v0 }
0x19d3   :  { %6675 = vmatprep.subr.bf16.mxu0 %v7506_v0 }
0x19d4   :  { %v5208_v39 = vpop.permute.xlu1 %5207  ;;  %v5314_v43 = vpop.permute.xlu0 %5313 }
0x19d5   :  { %v5213_v41 = vsel %vm644_vm2, %v5208_v39, 0 }
0x19d8   :  { %v5316_v37 = vpop.permute.xlu1 %5315 }
0x19d9   :  { %6666 = vmatmul.mubr.msk.bf16.vlgmr.msra.gmra.mxu0 %vm644_vm2, %v4868_v33  ;;  %v5321_v25 = vsel %vm644_vm2, %v5316_v37, 0 }
0x19da   :  { %6676 = vmatpush3.bf16.xpose.msra.mxu0 %v4996_v34  ;;  %6677 = vmatprep.mubr.msk.bf16.mxu0 %vm7507_vm0, %v7506_v0 }
0x19db   :  { %6687 = vmatprep.subr.bf16.mxu0 %v7506_v0 }
0x19e1   :  { %6678 = vmatmul.mubr.msk.bf16.vlgmr.msra.gmra.mxu0 %vm644_vm2, %v4990_v26 }
0x19e2   :  { %6688 = vmatpush3.bf16.xpose.msra.mxu0 %v5104_v38  ;;  %6689 = vmatprep.mubr.msk.bf16.mxu0 %vm7507_vm0, %v7506_v0 }
0x19e3   :  { %6699 = vmatprep.subr.bf16.mxu0 %v7506_v0 }
0x19e9   :  { %6690 = vmatmul.mubr.msk.bf16.vlgmr.msra.gmra.mxu0 %vm644_vm2, %v5096_v24 }
0x19ea   :  { %6700 = vmatpush3.bf16.xpose.msra.mxu0 %v5213_v41  ;;  %6701 = vmatprep.mubr.msk.bf16.mxu0 %vm7507_vm0, %v7506_v0 }
0x19eb   :  { %6711 = vmatprep.subr.bf16.mxu0 %v7506_v0 }
0x19f1   :  { %6702 = vmatmul.mubr.msk.bf16.vlgmr.msra.gmra.mxu0 %vm644_vm2, %v5206_v42 }
0x19f2   :  { %6712 = vmatpush3.bf16.xpose.msra.mxu0 %v5321_v25  ;;  %6713 = vmatprep.mubr.msk.bf16.mxu0 %vm7507_vm0, %v7506_v0 }
0x19f3   :  { %6723 = vmatprep.subr.bf16.mxu0 %v7506_v0 }
0x19f9   :  { %6714 = vmatmul.mubr.msk.bf16.vlgmr.msra.gmra.mxu0 %vm644_vm2, %v5314_v43 }
0x19fa   :  { %6727 = vmatprep.mubr.msk.bf16.mxu0 %vm7507_vm0, %v7506_v0 }
0x1a13   :  { %v4586_v44 = vpop.f32.mrf.mxu0 }
0x1a14   :  { %v4587_v45 = vadd.f32 %v8583_v51, %v4586_v44 }
0x1a15   :  { %v6631_v46 = vpop.f32.mrf.mxu0 }
0x1a16   :  { %v4592_v47 = vsel %vm1097_vm4, %v4587_v45, -inf }
0x1a17   :  { %4593 = vmax.xlane.f32.xlu1 %v4592_v47  ;;  %v4589_v48 = vpop.f32.mrf.mxu0 }
0x1a19   :  { %v6632_v52 = vpop.f32.mrf.mxu0 }
0x1a85   :  { %v4694_v5 = vpop.f32.mrf.mxu0 }
0x1a86   :  { %v4695_v6 = vadd.f32 %v8583_v51, %v4694_v5 }
0x1a87   :  { %v6643_v7 = vpop.f32.mrf.mxu0 }
0x1a88   :  { %v4700_v8 = vsel %vm1097_vm4, %v4695_v6, -inf }
0x1a89   :  { %4701 = vmax.xlane.f32.xlu0 %v4700_v8  ;;  %v4697_v60 = vpop.f32.mrf.mxu0 }
0x1a8b   :  { %v6644_v9 = vpop.f32.mrf.mxu0 }
0x1a91   :  { %v4803_v53 = vpop.f32.mrf.mxu0 }
0x1a92   :  { %v4804_v4 = vadd.f32 %v8583_v51, %v4803_v53 }
0x1a93   :  { %v6655_v10 = vpop.f32.mrf.mxu0 }
0x1a94   :  { %v4809_v11 = vsel %vm1097_vm4, %v4804_v4, -inf }
0x1a95   :  { %4810 = vmax.xlane.f32.xlu0 %v4809_v11  ;;  %v4806_v12 = vpop.f32.mrf.mxu0 }
0x1a97   :  { %v6656_v54 = vpop.f32.mrf.mxu0 }
0x1a99   :  { %v4911_v14 = vpop.f32.mrf.mxu0 }
0x1a9a   :  { %v4912_v13 = vadd.f32 %v8583_v51, %v4911_v14 }
0x1a9b   :  { %v6667_v15 = vpop.f32.mrf.mxu0 }
0x1a9c   :  { %v4917_v17 = vsel %vm1097_vm4, %v4912_v13, -inf }
0x1a9d   :  { %4918 = vmax.xlane.f32.xlu1 %v4917_v17  ;;  %v4914_v18 = vpop.f32.mrf.mxu0 }
0x1a9f   :  { %v6668_v20 = vpop.f32.mrf.mxu0 }
0x1aa0   :  { %v4594_v16 = vpop.xlane.xlu1 %4593 }
0x1aa1   :  { %v4595_v21 = vsub.f32 %v4587_v45, %v4594_v16  ;;  %v5032_v22 = vpop.f32.mrf.mxu0 }
0x1aa2   :  { %v5033_v23 = vadd.f32 %v8583_v51, %v5032_v22 }
0x1aa3   :  { %v6679_v56 = vpop.f32.mrf.mxu0  ;;  %v4596_v26 = vmul.f32 1.442695, %v4595_v21 }
0x1aa4   :  { %v5038_v19 = vsel %vm1097_vm4, %v5033_v23, -inf }
0x1aa5   :  { %5039 = vmax.xlane.f32.xlu0 %v5038_v19  ;;  %v5035_v27 = vpop.f32.mrf.mxu0  ;;  %7052 = vpow2.f32 %v4596_v26 }
0x1aa7   :  { %v6680_v3 = vpop.f32.mrf.mxu0 }
0x1aa9   :  { %v5140_v29 = vpop.f32.mrf.mxu0 }
0x1aaa   :  { %v8602_v28 = vadd.f32 %v8583_v51, %v5140_v29 }
0x1aab   :  { %v6691_v30 = vpop.f32.mrf.mxu0 }
0x1aac   :  { %v5146_v31 = vsel %vm1097_vm4, %v8602_v28, -inf }
0x1aad   :  { %5147 = vmax.xlane.f32.xlu1 %v5146_v31  ;;  %v5143_v32 = vpop.f32.mrf.mxu0 }
0x1aaf   :  { %v6692_v33 = vpop.f32.mrf.mxu0 }
0x1ab1   :  { %v5249_v34 = vpop.f32.mrf.mxu0 }
0x1ab2   :  { %v5250_v35 = vadd.f32 %v8583_v51, %v5249_v34  ;;  %v7053_v24 = vpop.eup %7052 }
0x1ab3   :  { %v6703_v38 = vpop.f32.mrf.mxu0  ;;  %v4598_v42 = vsel %vm1097_vm4, %v7053_v24, 0.0 }
0x1ab4   :  { %v5255_v39 = vsel %vm1097_vm4, %v5250_v35, -inf }
0x1ab5   :  { %5256 = vmax.xlane.f32.xlu0 %v5255_v39  ;;  %v5252_v41 = vpop.f32.mrf.mxu0 }
0x1ab7   :  { %v6704_v37 = vpop.f32.mrf.mxu0 }
0x1ab9   :  { %4599 = vadd.xlane.f32.xlu0 %v4598_v42  ;;  %v5357_v25 = vpop.f32.mrf.mxu0 }
0x1aba   :  { %v5358_v43 = vadd.f32 %v8583_v51, %v5357_v25 }
0x1abb   :  { %v6715_v44 = vpop.f32.mrf.mxu0 }
0x1abc   :  { %v5363_v45 = vsel %vm1097_vm4, %v5358_v43, -inf }
0x1abd   :  { %5364 = vmax.xlane.f32.xlu1 %v5363_v45  ;;  %v5360_v46 = vpop.f32.mrf.mxu0 }
0x1abf   :  { %v6716_v47 = vpop.f32.mrf.mxu0 }
0x1ace   :  { %4713 = vrot.lane.b32.xlu1 %v8589_v58, %s7509_s16 }
0x1acf   :  { %4821 = vrot.lane.b32.xlu0 %v8589_v58, %s7508_s25 }
0x1b12   :  { %v4702_v48 = vpop.xlane.xlu0 %4701 }
0x1b13   :  { %v4703_v52 = vsub.f32 %v4695_v6, %v4702_v48 }
0x1b15   :  { %v4704_v36 = vmul.f32 1.442695, %v4703_v52 }
0x1b17   :  { %7054 = vpow2.f32 %v4704_v36 }
0x1b1e   :  { %v4811_v49 = vpop.xlane.xlu0 %4810 }
0x1b1f   :  { %v4812_v50 = vsub.f32 %v4804_v4, %v4811_v49 }
0x1b21   :  { %v4813_v57 = vmul.f32 1.442695, %v4812_v50 }
0x1b23   :  { %7056 = vpow2.f32 %v4813_v57 }
0x1b24   :  { %v7055_v51 = vpop.eup %7054 }
0x1b25   :  { %v4706_v59 = vsel %vm1097_vm4, %v7055_v51, 0.0 }
0x1b26   :  { %v4919_v55 = vpop.xlane.xlu1 %4918  ;;  %4707 = vadd.xlane.f32.xlu1 %v4706_v59 }
0x1b27   :  { %v4920_v61 = vsub.f32 %v4912_v13, %v4919_v55 }
0x1b29   :  { %v4921_v62 = vmul.f32 1.442695, %v4920_v61 }
0x1b2b   :  { %7058 = vpow2.f32 %v4921_v62 }
0x1b2e   :  { %v5040_v63 = vpop.xlane.xlu0 %5039 }
0x1b2f   :  { %v5041_v5 = vsub.f32 %v5033_v23, %v5040_v63 }
0x1b30   :  { %v7057_v7 = vpop.eup %7056 }
0x1b31   :  { %v5042_v8 = vmul.f32 1.442695, %v5041_v5  ;;  %v4815_v6 = vsel %vm1097_vm4, %v7057_v7, 0.0 }
0x1b32   :  { %4816 = vadd.xlane.f32.xlu0 %v4815_v6 }
0x1b33   :  { %7060 = vpow2.f32 %v5042_v8 }
0x1b36   :  { %v5148_v12 = vpop.xlane.xlu1 %5147 }
0x1b37   :  { %v5149_v16 = vsub.f32 %v8602_v28, %v5148_v12 }
0x1b38   :  { %v8617_v60 = vpop.eup %7058 }
0x1b39   :  { %v4923_v9 = vsel %vm1097_vm4, %v8617_v60, 0.0  ;;  %v5150_v21 = vmul.f32 1.442695, %v5149_v16 }
0x1b3a   :  { %4924 = vadd.xlane.f32.xlu1 %v4923_v9 }
0x1b3e   :  { %v5257_v53 = vpop.xlane.xlu0 %5256 }
0x1b3f   :  { %v5258_v18 = vsub.f32 %v5250_v35, %v5257_v53 }
0x1b40   :  { %v8621_v4 = vpop.eup %7060 }
0x1b41   :  { %v5044_v10 = vsel %vm1097_vm4, %v8621_v4, 0.0  ;;  %v5259_v20 = vmul.f32 1.442695, %v5258_v18 }
0x1b42   :  { %5045 = vadd.xlane.f32.xlu0 %v5044_v10  ;;  %v4600_v11 = vpop.xlane.xlu0 %4599 }
0x1b43   :  { %7062 = vrcp.f32 %v4600_v11 }
0x1b44   :  { %7064 = vpow2.f32 %v5259_v20 }
0x1b45   :  { %7066 = vpow2.f32 %v5150_v21 }
0x1b46   :  { %v5365_v54 = vpop.xlane.xlu1 %5364  ;;  %v4822_v28 = vpop.permute.xlu0 %4821 }
0x1b47   :  { %v5366_v22 = vsub.f32 %v5358_v43, %v5365_v54 }
0x1b49   :  { %v5367_v23 = vmul.f32 1.442695, %v5366_v22 }
0x1b4a   :  { %v4714_v17 = vpop.permute.xlu1 %4713 }
0x1b4b   :  { %5159 = vrot.lane.b32.xlu1 %v8587_v40, %s7509_s16  ;;  %7068 = vpow2.f32 %v5367_v23  ;;  %s8822_s16 = sld [smem:[#allocation74_spill]] }
0x1b50   :  { %v7063_v14 = vpop.eup %7062 }
0x1b51   :  { %v4602_v13 = vmul.f32 %v7063_v14, %v7053_v24  ;;  %v8634_v56 = vpop.eup %7064 }
0x1b52   :  { %v5261_v26 = vsel %vm1097_vm4, %v8634_v56, 0.0  ;;  %v7067_v19 = vpop.eup %7066 }
0x1b53   :  { %v4603_v15 = vpack.c.bf16 %v4602_v13, %v4602_v13 }
0x1b55   :  { %6636 = vmatmul.mubr.msk.bf16.vlgmr.msra.gmra.mxu1 %vm1097_vm4, %v4603_v15 }
0x1b56   :  { %6646 = vmatpush3.bf16.msra.mxu1 %v4714_v17  ;;  %6647 = vmatprep.mubr.msk.bf16.mxu1 %vm7507_vm0, %v7506_v0 }
0x1b57   :  { %6657 = vmatprep.subr.bf16.mxu1 %v7506_v0 }
0x1b58   :  { %4929 = vrot.lane.b32.xlu0 %v8589_v58, %s7510_s18  ;;  %v5152_v58 = vsel %vm1097_vm4, %v7067_v19, 0.0  ;;  %v8639_v27 = vpop.eup %7068 }
0x1b59   :  { %v5369_v3 = vsel %vm1097_vm4, %v8639_v27, 0.0 }
0x1b6f   :  { %5262 = vadd.xlane.f32.xlu1 %v5261_v26 }
0x1b77   :  { %5153 = vadd.xlane.f32.xlu0 %v5152_v58 }
0x1b7b   :  { %5370 = vadd.xlane.f32.xlu0 %v5369_v3 }
0x1b80   :  { %5375 = vrot.lane.b32.xlu1 %v8587_v40, %s7510_s18  ;;  %s8823_s18 = sld [smem:[#allocation75_spill]] }
0x1b91   :  { %5267 = vrot.lane.b32.xlu0 %v8587_v40, %s7508_s25  ;;  %s8821_s25 = sld [smem:[#allocation73_spill]] }
0x1b97   :  { %v6931_v23 = vld [vmem:[%s8821_s25 + $0x8] sm:$0xff]  }
0x1b98   :  { %6724 = vmatpush3.bf16.msra.mxu0 %v6931_v23 }
0x1b99   :  { %6725 = vmatprep.subr.bf16.mxu0 %v7506_v0 }
0x1baf   :  { %v4708_v29 = vpop.xlane.xlu1 %4707 }
0x1bb0   :  { %7070 = vrcp.f32 %v4708_v29 }
0x1bbb   :  { %v4817_v30 = vpop.xlane.xlu0 %4816 }
0x1bbc   :  { %7072 = vrcp.f32 %v4817_v30 }
0x1bbd   :  { %v7071_v31 = vpop.eup %7070 }
0x1bbe   :  { %v4710_v32 = vmul.f32 %v7071_v31, %v7055_v51 }
0x1bc0   :  { %v4711_v33 = vpack.c.bf16 %v4710_v32, %v4710_v32 }
0x1bc2   :  { %6648 = vmatmul.mubr.msk.bf16.vlgmr.msra.gmra.mxu1 %vm1097_vm4, %v4711_v33 }
0x1bc3   :  { %6658 = vmatpush3.bf16.msra.mxu1 %v4822_v28  ;;  %v4925_v34 = vpop.xlane.xlu1 %4924  ;;  %6659 = vmatprep.mubr.msk.bf16.mxu1 %vm7507_vm0, %v7506_v0 }
0x1bc4   :  { %7074 = vrcp.f32 %v4925_v34  ;;  %6669 = vmatprep.subr.bf16.mxu1 %v7506_v0 }
0x1bc7   :  { %v5160_v46 = vpop.permute.xlu1 %5159 }
0x1bc9   :  { %v7073_v35 = vpop.eup %7072 }
0x1bca   :  { %v4819_v38 = vmul.f32 %v7073_v35, %v7057_v7 }
0x1bcb   :  { %v5046_v39 = vpop.xlane.xlu0 %5045 }
0x1bcc   :  { %v4820_v24 = vpack.c.bf16 %v4819_v38, %v4819_v38  ;;  %7076 = vrcp.f32 %v5046_v39 }
0x1bce   :  { %6660 = vmatmul.mubr.msk.bf16.vlgmr.msra.gmra.mxu1 %vm1097_vm4, %v4820_v24 }
0x1bcf   :  { %v4930_v41 = vpop.permute.xlu0 %4929  ;;  %6671 = vmatprep.mubr.msk.bf16.mxu1 %vm7507_vm0, %v7506_v0 }
0x1bd0   :  { %6670 = vmatpush3.bf16.msra.mxu1 %v4930_v41 }
0x1bd1   :  { %v7075_v37 = vpop.eup %7074  ;;  %6681 = vmatprep.subr.bf16.mxu1 %v7506_v0 }
0x1bd2   :  { %v4927_v42 = vmul.f32 %v7075_v37, %v8617_v60 }
0x1bd4   :  { %v4928_v25 = vpack.c.bf16 %v4927_v42, %v4927_v42 }
0x1bd6   :  { %6672 = vmatmul.mubr.msk.bf16.vlgmr.msra.gmra.mxu1 %vm1097_vm4, %v4928_v25 }
0x1bd7   :  { %6682 = vmatpush3.bf16.msra.mxu1 %v8587_v40  ;;  %6683 = vmatprep.mubr.msk.bf16.mxu1 %vm7507_vm0, %v7506_v0 }
0x1bd8   :  { %6693 = vmatprep.subr.bf16.mxu1 %v7506_v0 }
0x1bd9   :  { %v7077_v43 = vpop.eup %7076 }
0x1bda   :  { %v5048_v44 = vmul.f32 %v7077_v43, %v8621_v4 }
0x1bdc   :  { %v5049_v45 = vpack.c.bf16 %v5048_v44, %v5048_v44 }
0x1bde   :  { %6684 = vmatmul.mubr.msk.bf16.vlgmr.msra.gmra.mxu1 %vm1097_vm4, %v5049_v45 }
0x1bdf   :  { %6694 = vmatpush3.bf16.msra.mxu1 %v5160_v46  ;;  %6695 = vmatprep.mubr.msk.bf16.mxu1 %vm7507_vm0, %v7506_v0 }
0x1be0   :  { %6705 = vmatprep.subr.bf16.mxu1 %v7506_v0 }
0x1bf8   :  { %v5263_v40 = vpop.xlane.xlu1 %5262 }
0x1bfc   :  { %v5376_v5 = vpop.permute.xlu1 %5375 }
0x1c00   :  { %v5154_v47 = vpop.xlane.xlu0 %5153 }
0x1c01   :  { %7078 = vrcp.f32 %v5154_v47 }
0x1c02   :  { %7080 = vrcp.f32 %v5263_v40 }
0x1c04   :  { %v5371_v48 = vpop.xlane.xlu0 %5370 }
0x1c05   :  { %7082 = vrcp.f32 %v5371_v48 }
0x1c08   :  { %v5268_v57 = vpop.permute.xlu0 %5267 }
0x1c0e   :  { %v7079_v52 = vpop.eup %7078 }
0x1c0f   :  { %v5156_v36 = vmul.f32 %v7079_v52, %v7067_v19  ;;  %v7081_v50 = vpop.eup %7080 }
0x1c10   :  { %v5265_v51 = vmul.f32 %v7081_v50, %v8634_v56  ;;  %v5981_v50 = vld [vmem:[#allocation16] ss:$0 sm:$0xff] }
0x1c11   :  { %v5157_v49 = vpack.c.bf16 %v5156_v36, %v5156_v36 }
0x1c12   :  { %v5266_v61 = vpack.c.bf16 %v5265_v51, %v5265_v51  ;;  %v7083_v62 = vpop.eup %7082 }
0x1c13   :  { %6696 = vmatmul.mubr.msk.bf16.vlgmr.msra.gmra.mxu1 %vm1097_vm4, %v5157_v49  ;;  %v5373_v8 = vmul.f32 %v7083_v62, %v8639_v27  ;;  %v6932_v27 = vld [vmem:[%s8821_s25] sm:$0xff]  }
0x1c14   :  { %6706 = vmatpush3.bf16.msra.mxu1 %v5268_v57  ;;  %6707 = vmatprep.mubr.msk.bf16.mxu1 %vm7507_vm0, %v7506_v0 }
0x1c15   :  { %6717 = vmatprep.subr.bf16.mxu1 %v7506_v0  ;;  %v8671_v59 = vpop.f32.mrf.mxu1  ;;  %v5374_v6 = vpack.c.bf16 %v5373_v8, %v5373_v8  ;;  %6726 = vmatpush3.bf16.msra.mxu0 %v6932_v27  ;;  %v5986_v27 = vld [vmem:[#allocation19] ss:$0 sm:$0xff] }
0x1c16   :  { %6739 = vmatprep.subr.bf16.mxu0 %v7506_v0 }
0x1c17   :  { %v6637_v55 = vpop.f32.mrf.mxu1 }
0x1c19   :  { %v4645_v63 = vpop.f32.mrf.mxu1 }
0x1c1b   :  { %6708 = vmatmul.mubr.msk.bf16.vlgmr.msra.gmra.mxu1 %vm1097_vm4, %v5266_v61  ;;  %v6638_v7 = vpop.f32.mrf.mxu1 }
0x1c1c   :  { %6718 = vmatpush3.bf16.msra.mxu1 %v5376_v5  ;;  %6719 = vmatprep.mubr.msk.bf16.mxu1 %vm7507_vm0, %v7506_v0 }
0x1c1d   :  { %6731 = vmatprep.subr.bf16.mxu1 %v7506_v0 }
0x1c23   :  { %6720 = vmatmul.mubr.msk.bf16.vlgmr.msra.gmra.mxu1 %vm1097_vm4, %v5374_v6 }
0x1c24   :  { %6735 = vmatprep.mubr.msk.bf16.mxu1 %vm7507_vm0, %v7506_v0 }
0x1c82   :  { %v4753_v60 = vpop.f32.mrf.mxu1 }
0x1c84   :  { %v6649_v9 = vpop.f32.mrf.mxu1 }
0x1c86   :  { %v4756_v53 = vpop.f32.mrf.mxu1 }
0x1c88   :  { %v6650_v4 = vpop.f32.mrf.mxu1 }
0x1c8e   :  { %v4861_v10 = vpop.f32.mrf.mxu1 }
0x1c90   :  { %v6661_v11 = vpop.f32.mrf.mxu1 }
0x1c92   :  { %v4864_v12 = vpop.f32.mrf.mxu1 }
0x1c94   :  { %v6662_v54 = vpop.f32.mrf.mxu1 }
0x1c96   :  { %v4969_v14 = vpop.f32.mrf.mxu1 }
0x1c98   :  { %v6673_v13 = vpop.f32.mrf.mxu1 }
0x1c99   :  { %v6935_v13 = vld [vmem:[%s8823_s18 + $0x18] sm:$0xff]  }
0x1c9a   :  { %v4972_v15 = vpop.f32.mrf.mxu1 }
0x1c9c   :  { %v6674_v17 = vpop.f32.mrf.mxu1 }
0x1c9e   :  { %v5088_v18 = vpop.f32.mrf.mxu1 }
0x1ca0   :  { %v6685_v20 = vpop.f32.mrf.mxu1 }
0x1ca2   :  { %v5091_v16 = vpop.f32.mrf.mxu1 }
0x1ca4   :  { %v6686_v21 = vpop.f32.mrf.mxu1 }
0x1cd3   :  { %v5199_v22 = vpop.f32.mrf.mxu1 }
0x1cd4   :  { %v6877_v56 = vpack.i.bf16 %v5199_v22, %v4753_v60 }
0x1cd5   :  { %v6697_v26 = vpop.f32.mrf.mxu1 }
0x1cd6   :  { %6878 = vrot.lane.b32.xlu1 %v6877_v56, %s7511_s20  ;;  %v5985_v56 = vld [vmem:[#allocation18] ss:$0 sm:$0xff] }
0x1cd7   :  { %v5202_v19 = vpop.f32.mrf.mxu1 }
0x1cd9   :  { %v6698_v58 = vpop.f32.mrf.mxu1 }
0x1cdb   :  { %v5307_v3 = vpop.f32.mrf.mxu1 }
0x1cdc   :  { %v6882_v29 = vpack.i.bf16 %v5307_v3, %v4861_v10 }
0x1cdd   :  { %v6709_v28 = vpop.f32.mrf.mxu1 }
0x1cde   :  { %6883 = vrot.lane.b32.xlu1 %v6882_v29, %s7512_s23 }
0x1cdf   :  { %v5310_v30 = vpop.f32.mrf.mxu1 }
0x1ce1   :  { %v6710_v31 = vpop.f32.mrf.mxu1 }
0x1ce2   :  { %v6936_v31 = vld [vmem:[%s8823_s18 + $0x10] sm:$0xff]  }
0x1ce3   :  { %v5415_v32 = vpop.f32.mrf.mxu1 }
0x1ce4   :  { %v6887_v33 = vpack.i.bf16 %v5415_v32, %v4969_v14  ;;  %v6934_v14 = vld [vmem:[%s8822_s16] sm:$0xff]   ;;  %v6937_v32 = vld [vmem:[%s8823_s18 + $0x8] sm:$0xff]  }
0x1ce5   :  { %v6721_v34 = vpop.f32.mrf.mxu1 }
0x1ce6   :  { %6888 = vrot.lane.b32.xlu1 %v6887_v33, %s7513_s12  ;;  %v6938_v33 = vld [vmem:[%s8823_s18] sm:$0xff]   ;;  %v5987_v34 = vld [vmem:[#allocation21] ss:$0 sm:$0xff] }
0x1ce7   :  { %v5418_v35 = vpop.f32.mrf.mxu1 }
0x1ce9   :  { %v6722_v38 = vpop.f32.mrf.mxu1 }
0x1d48   :  { %v6879_v39 = vpop.permute.xlu1 %6878 }
0x1d49   :  { %v6881_v41 = vunpack.i.h.bf16 %v6879_v39  ;;  %v6880_v37 = vunpack.i.l.bf16 %v6879_v39 }
0x1d4b   :  { %v5433_v44 = vsel %vm644_vm2, %v5088_v18, %v6881_v41  ;;  %v4987_v45 = vsel %vm644_vm2, %v8671_v59, %v6880_v37 }
0x1d50   :  { %v6884_v24 = vpop.permute.xlu1 %6883 }
0x1d51   :  { %v6886_v42 = vunpack.i.h.bf16 %v6884_v24  ;;  %v6885_v25 = vunpack.i.l.bf16 %v6884_v24 }
0x1d53   :  { %v4988_v40 = vsel %vm1097_vm4, %v4987_v45, %v6885_v25  ;;  %v5434_v48 = vsel %vm1097_vm4, %v5433_v44, %v6886_v42  ;;  %v5991_v44 = vld [vmem:[#allocation22] ss:$0 sm:$0xff] }
0x1d58   :  { %v6889_v43 = vpop.permute.xlu1 %6888 }
0x1d59   :  { %v6891_v46 = vunpack.i.h.bf16 %v6889_v43  ;;  %v6890_v47 = vunpack.i.l.bf16 %v6889_v43 }
0x1d5b   :  { %v4989_v52 = vsel %vm1099_vm5, %v4988_v40, %v6890_v47  ;;  %v5435_v36 = vsel %vm1099_vm5, %v5434_v48, %v6891_v46 }
0x1d5c   :  { %v5436_v49 = vpack.c.bf16 %v5435_v36, %v4989_v52 }
0x1d5e   :  { %6728 = vmatmul.mubr.msk.bf16.vlgmr.msra.gmra.mxu0 %vm469_vm1, %v5436_v49 }
0x1d5f   :  { %6747 = vmatprep.mubr.msk.bf16.mxu0 %vm7507_vm0, %v7506_v0  ;;  %6740 = vmatpush3.bf16.msra.mxu0 %v6935_v13 }
0x1d60   :  { %6741 = vmatprep.subr.bf16.mxu0 %v7506_v0 }
0x1d63   :  { %6742 = vmatpush3.bf16.msra.mxu0 %v6936_v31 }
0x1d64   :  { %6743 = vmatprep.subr.bf16.mxu0 %v7506_v0 }
0x1d67   :  { %6744 = vmatpush3.bf16.msra.mxu0 %v6937_v32 }
0x1d68   :  { %6745 = vmatprep.subr.bf16.mxu0 %v7506_v0 }
0x1d6b   :  { %6746 = vmatpush3.bf16.msra.mxu0 %v6938_v33 }
0x1e1e   :  { %v5497_v57 = vpop.f32.mrf.mxu0 }
0x1e1f   :  { %v5498_v51 = vadd.f32 %v5981_v50, %v5497_v57 }
0x1e20   :  { %v6729_v59 = vpop.f32.mrf.mxu0 }
0x1e21   :  { %v5504_v55 = vadd.f32 %v5498_v51, %v8515_v1 }
0x1e22   :  { %v5500_v61 = vpop.f32.mrf.mxu0 }
0x1e23   :  { %v5501_v62 = vadd.f32 %v5981_v50, %v5500_v61  ;;  %v5506_v63 = vsel %vm469_vm1, %v5504_v55, 0.0 }
0x1e24   :  { %5507 = vadd.xlane.f32.xlu0 %v5506_v63  ;;  %v6730_v5 = vpop.f32.mrf.mxu0 }
0x1e25   :  { %v5505_v7 = vadd.f32 %v5501_v62, %v8517_v2  ;;  %v6933_v2 = vld [vmem:[%s8822_s16 + $0x8] sm:$0xff]  }
0x1e26   :  { %6732 = vmatpush3.bf16.msra.mxu1 %v6933_v2 }
0x1e27   :  { %v5509_v8 = vsel %vm469_vm1, %v5505_v7, 0.0  ;;  %6733 = vmatprep.subr.bf16.mxu1 %v7506_v0 }
0x1e28   :  { %5510 = vadd.xlane.f32.xlu1 %v5509_v8 }
0x1e2a   :  { %6734 = vmatpush3.bf16.msra.mxu1 %v6934_v14 }
0x1ead   :  { %v5508_v6 = vpop.xlane.xlu0 %5507 }
0x1eae   :  { %v5512_v60 = vmul.f32 0.03125, %v5508_v6 }
0x1eb0   :  { %v5514_v9 = vsub.f32 %v5504_v55, %v5512_v60 }
0x1eb1   :  { %v5511_v53 = vpop.xlane.xlu1 %5510 }
0x1eb2   :  { %v5513_v4 = vmul.f32 0.03125, %v5511_v53  ;;  %v5516_v1 = vmul.f32 %v5514_v9, %v5514_v9 }
0x1eb4   :  { %v5515_v10 = vsub.f32 %v5505_v7, %v5513_v4  ;;  %v5518_v11 = vsel %vm469_vm1, %v5516_v1, 0.0 }
0x1eb5   :  { %5519 = vadd.xlane.f32.xlu0 %v5518_v11  ;;  %v5997_v11 = vld [vmem:[#allocation24] ss:$0 sm:$0xff] }
0x1eb6   :  { %v5517_v12 = vmul.f32 %v5515_v10, %v5515_v10 }
0x1eb8   :  { %v5521_v54 = vsel %vm469_vm1, %v5517_v12, 0.0 }
0x1eb9   :  { %5522 = vadd.xlane.f32.xlu0 %v5521_v54  ;;  %v5998_v54 = vld [vmem:[#allocation25] ss:$0 sm:$0xff] }
0x1f3e   :  { %v5520_v15 = vpop.xlane.xlu0 %5519 }
0x1f3f   :  { %v5524_v17 = vmul.f32 0.03125, %v5520_v15 }
0x1f41   :  { %v5526_v18 = vadd.f32 1e-05, %v5524_v17 }
0x1f42   :  { %v5523_v20 = vpop.xlane.xlu0 %5522 }
0x1f43   :  { %7084 = vrsqrt.f32 %v5526_v18  ;;  %v5525_v16 = vmul.f32 0.03125, %v5523_v20 }
0x1f45   :  { %v5527_v21 = vadd.f32 1e-05, %v5525_v16 }
0x1f47   :  { %7086 = vrsqrt.f32 %v5527_v21 }
0x1f50   :  { %v7085_v22 = vpop.eup %7084 }
0x1f51   :  { %v5530_v23 = vmul.f32 %v7085_v22, %v5514_v9 }
0x1f53   :  { %v5539_v19 = vmul.f32 %v5985_v56, %v5530_v23 }
0x1f54   :  { %v7087_v26 = vpop.eup %7086 }
0x1f55   :  { %v5531_v58 = vmul.f32 %v7087_v26, %v5515_v10  ;;  %v5548_v29 = vadd.f32 %v5986_v27, %v5539_v19 }
0x1f57   :  { %v5540_v3 = vmul.f32 %v5985_v56, %v5531_v58 }
0x1f59   :  { %v5549_v28 = vadd.f32 %v5986_v27, %v5540_v3 }
0x1f5b   :  { %v5550_v30 = vpack.c.bf16 %v5549_v28, %v5548_v29 }
0x1f5d   :  { %6736 = vmatmul.mubr.msk.bf16.vlgmr.msra.gmra.mxu1 %vm469_vm1, %v5550_v30 }
0x201d   :  { %v5611_v35 = vpop.f32.mrf.mxu1 }
0x201e   :  { %v5612_v39 = vadd.f32 %v5987_v34, %v5611_v35 }
0x201f   :  { %v6737_v38 = vpop.f32.mrf.mxu1 }
0x2020   :  { %v5618_v42 = vmax.f32 %v5612_v39, 0.0 }
0x2021   :  { %v5614_v24 = vpop.f32.mrf.mxu1 }
0x2022   :  { %v5615_v41 = vadd.f32 %v5987_v34, %v5614_v24 }
0x2023   :  { %v6738_v37 = vpop.f32.mrf.mxu1 }
0x2024   :  { %v5619_v25 = vmax.f32 %v5615_v41, 0.0 }
0x2026   :  { %v5620_v43 = vpack.c.bf16 %v5619_v25, %v5618_v42 }
0x2028   :  { %6748 = vmatmul.mubr.msk.bf16.vlgmr.msra.gmra.mxu0 %vm3021_vm6, %v5620_v43 }
0x20e8   :  { %v5697_v45 = vpop.f32.mrf.mxu0 }
0x20e9   :  { %v5698_v46 = vadd.f32 %v5991_v44, %v5697_v45 }
0x20ea   :  { %v6749_v47 = vpop.f32.mrf.mxu0 }
0x20eb   :  { %v5704_v40 = vadd.f32 %v5698_v46, %v5548_v29 }
0x20ec   :  { %v5700_v0 = vpop.f32.mrf.mxu0 }
0x20ed   :  { %v5701_v48 = vadd.f32 %v5991_v44, %v5700_v0  ;;  %v5706_v52 = vsel %vm469_vm1, %v5704_v40, 0.0 }
0x20ee   :  { %5707 = vadd.xlane.f32.xlu1 %v5706_v52  ;;  %v6750_v36 = vpop.f32.mrf.mxu0 }
0x20ef   :  { %v5705_v49 = vadd.f32 %v5701_v48, %v5549_v28 }
0x20f1   :  { %v5709_v50 = vsel %vm469_vm1, %v5705_v49, 0.0 }
0x20f2   :  { %5710 = vadd.xlane.f32.xlu0 %v5709_v50 }
0x2177   :  { %v5708_v57 = vpop.xlane.xlu1 %5707 }
0x2178   :  { %v5712_v51 = vmul.f32 0.03125, %v5708_v57 }
0x217a   :  { %v5714_v59 = vsub.f32 %v5704_v40, %v5712_v51 }
0x217b   :  { %v5711_v55 = vpop.xlane.xlu0 %5710 }
0x217c   :  { %v5713_v61 = vmul.f32 0.03125, %v5711_v55  ;;  %v5716_v62 = vmul.f32 %v5714_v59, %v5714_v59 }
0x217e   :  { %v5715_v63 = vsub.f32 %v5705_v49, %v5713_v61  ;;  %v5718_v5 = vsel %vm469_vm1, %v5716_v62, 0.0 }
0x217f   :  { %5719 = vadd.xlane.f32.xlu1 %v5718_v5 }
0x2180   :  { %v5717_v7 = vmul.f32 %v5715_v63, %v5715_v63 }
0x2182   :  { %v5721_v8 = vsel %vm469_vm1, %v5717_v7, 0.0 }
0x2183   :  { %5722 = vadd.xlane.f32.xlu0 %v5721_v8 }
0x2208   :  { %v5720_v6 = vpop.xlane.xlu1 %5719 }
0x2209   :  { %v5724_v60 = vmul.f32 0.03125, %v5720_v6 }
0x220b   :  { %v5726_v9 = vadd.f32 1e-05, %v5724_v60 }
0x220c   :  { %v5723_v53 = vpop.xlane.xlu0 %5722 }
0x220d   :  { %7088 = vrsqrt.f32 %v5726_v9  ;;  %v5725_v4 = vmul.f32 0.03125, %v5723_v53 }
0x220f   :  { %v5727_v1 = vadd.f32 1e-05, %v5725_v4 }
0x2211   :  { %7090 = vrsqrt.f32 %v5727_v1 }
0x221a   :  { %v7089_v10 = vpop.eup %7088 }
0x221b   :  { %v5730_v12 = vmul.f32 %v7089_v10, %v5714_v59 }
0x221d   :  { %v5739_v2 = vmul.f32 %v5997_v11, %v5730_v12 }
0x221e   :  { %v7091_v14 = vpop.eup %7090 }
0x221f   :  { %v5748_v13 = vadd.f32 %v5998_v54, %v5739_v2  ;;  %v5731_v15 = vmul.f32 %v7091_v14, %v5715_v63 }
0x2221   :  { %v6001_v17 = vpack.c.bf16 %v5748_v13, %v5748_v13  ;;  %v5740_v18 = vmul.f32 %v5997_v11, %v5731_v15 }
0x2223   :  { %5759 = vst.msk [vmem:[%s7807_s8] sm:$0xf] %vm5758_vm7, %v6001_v17  ;;  %v5749_v20 = vadd.f32 %v5998_v54, %v5740_v18 }
0x2225   :  { %v6002_v16 = vpack.c.bf16 %v5749_v20, %v5749_v20 }
0x2227   :  { %5760 = vst.msk [vmem:[%s7807_s8 + $0x4] sm:$0xf] %vm5758_vm7, %v6002_v16 }
0x2228   :  { %5765 = vsyncpa [#allocation3], 1 }
0x2229   :  { %5766 = vsyncpa [#allocation5], 1 }
0x222a   :  { %5767 = vsyncpa [#allocation8], 1 }
0x222b   :  { %5768 = vsyncpa [#allocation11], 1 }
0x222c   :  { %5769 = vsyncpa [#allocation14], 1 }
0x222d   :  { %5770 = vsyncpa [#allocation17], 1 }
0x222e   :  { %5771 = vsyncpa [#allocation20], 1 }
0x222f   :  { %5772 = vsyncpa [#allocation23], 1 }
0x2230   :  { %5773 = vsyncpa [#allocation26], 1 }

</bundles_post_ra>
